<compile_context>
chip_gen: v5e
topology: v5e:2x2
jax: 0.10.0
libtpu: 0.0.40
codegen_flags: <defaults>
</compile_context>

<pallas_src>
import numpy as np
import jax
import jax.numpy as jnp
from jax.experimental import pallas as pl
from jax.experimental.pallas import tpu as pltpu


# ----------------------------- static geometry -----------------------------
K = 5                            # conv kernel size
H0, W0 = 32, 32                  # input spatial size (CIFAR)
C0, C1, C2 = 3, 6, 16            # channels: input, conv1 out, conv2 out
HC1 = WC1 = H0 - K + 1           # 28  (conv1 output spatial)
HP1 = WP1 = HC1 // 2             # 14  (pool1 output spatial)
HC2 = WC2 = HP1 - K + 1          # 10  (conv2 output spatial)
HP2 = WP2 = HC2 // 2             # 5   (pool2 output spatial)
L1 = (HC1 - 1) * W0 + WC1        # 892: flat conv1 output length (row stride W0)
L2 = (HC2 - 1) * WP1 + WC2       # 136: flat conv2 output length (row stride WP1)
FC_IN = C2 * HP2 * WP2           # 400
B_TILE = 8                       # images per grid step


def make_pool_matrix(hc, wc, ws):
    """(L, (hc//2)*(wc//2)) matrix that 2x2-average-pools a conv output stored
    flat with row stride `ws` (valid width `wc`), producing a dense pooled
    layout with row stride wc//2. Each column has four 0.25 entries."""
    hp, wp = hc // 2, wc // 2
    length = (hc - 1) * ws + wc
    P = np.zeros((length, hp * wp), np.float32)
    for py in range(hp):
        for px in range(wp):
            q = py * wp + px
            for dy in (0, 1):
                for dx in (0, 1):
                    P[(2 * py + dy) * ws + (2 * px + dx), q] = 0.25
    return P


# ------------------------------ fused kernel --------------------------------

def _lenet5_kernel(x_ref, w1_ref, b1_ref, p1_ref, w2_ref, b2_ref, p2_ref,
                   fw1_ref, fb1_ref, fw2_ref, fb2_ref, fw3_ref, fb3_ref,
                   o_ref, col1_ref, col2_ref, feat_ref):
    bt = x_ref.shape[0]

    # Hoist small weight / pool-matrix loads out of the per-image loop.
    w1 = w1_ref[...]          # (6, 75)   bf16
    b1 = b1_ref[...]          # (6, 1)    f32
    p1 = p1_ref[...]          # (892,196) bf16
    w2 = w2_ref[...]          # (16, 150) bf16
    b2 = b2_ref[...]          # (16, 1)   f32
    p2 = p2_ref[...]          # (136, 25) bf16

    def per_image(b, carry):
        xi = x_ref[b]                                     # (C0, H0*W0) bf16
        # --- conv1 as one im2col matmul: col1 = (C0*K*K, L1) = (75, 892) ---
        for t in range(K * K):
            s = (t // K) * W0 + (t % K)
            col1_ref[t * C0:(t + 1) * C0, :] = xi[:, s:s + L1]
        c1 = jnp.dot(w1, col1_ref[...],
                     preferred_element_type=jnp.float32)  # (6, 892) f32
        # --- pool1 as a matmul (+ bias after pool; pooling is linear) ---
        h1 = jnp.dot(c1.astype(jnp.bfloat16), p1,
                     preferred_element_type=jnp.float32) + b1   # (6, 196) f32
        h1 = h1.astype(jnp.bfloat16)
        # --- conv2 as one im2col matmul: col2 = (C1*K*K, L2) = (150, 136) ---
        for t in range(K * K):
            s = (t // K) * WP1 + (t % K)
            col2_ref[t * C1:(t + 1) * C1, :] = h1[:, s:s + L2]
        c2 = jnp.dot(w2, col2_ref[...],
                     preferred_element_type=jnp.float32)  # (16, 136) f32
        # --- pool2 (+ bias) -> (16, 25) feature block for this image ---
        pool2 = jnp.dot(c2.astype(jnp.bfloat16), p2,
                        preferred_element_type=jnp.float32) + b2
        feat_ref[b] = pool2.astype(jnp.bfloat16)
        return carry

    jax.lax.fori_loop(0, bt, per_image, None, unroll=True)

    # --- fused FC head on the whole batch tile (M = bt) ---
    # FC1 contracts over the channel axis with 16 static dots so we never need
    # a lane-unfriendly (16,25)->(400,) reshape; fc1 weights are pre-packed as
    # (C2, 25, 120) to match torch's channel-major flatten order.
    feat = feat_ref[...]                                  # (bt, 16, 25) bf16
    acc = jnp.zeros((bt, 120), jnp.float32)
    for c in range(C2):
        acc = acc + jnp.dot(feat[:, c, :], fw1_ref[c],
                            preferred_element_type=jnp.float32)
    h = jnp.maximum(acc + fb1_ref[...], 0.0)              # f32 ReLU
    h = jnp.dot(h.astype(jnp.bfloat16), fw2_ref[...],
                preferred_element_type=jnp.float32) + fb2_ref[...]
    h = jnp.maximum(h, 0.0)
    o_ref[...] = jnp.dot(h.astype(jnp.bfloat16), fw3_ref[...],
                         preferred_element_type=jnp.float32) + fb3_ref[...]


# -------------------------------- wrapper -----------------------------------

def lenet5_forward(packed, x, block_b=B_TILE):
    n = x.shape[0]
    bt = min(block_b, n)
    n_pad = ((n + bt - 1) // bt) * bt
    xf = x.reshape(n, C0, H0 * W0).astype(jnp.bfloat16)   # lane dim = spatial
    if n_pad != n:
        xf = jnp.pad(xf, ((0, n_pad - n), (0, 0), (0, 0)))

    out = pl.pallas_call(
        _lenet5_kernel,
        out_shape=jax.ShapeDtypeStruct((n_pad, 10), jnp.float32),
        grid=(n_pad // bt,),
        in_specs=[
            pl.BlockSpec((bt, C0, H0 * W0), lambda i: (i, 0, 0)),    # x tile
            pl.BlockSpec((C1, C0 * K * K), lambda i: (0, 0)),        # conv1 w
            pl.BlockSpec((C1, 1), lambda i: (0, 0)),                 # conv1 b
            pl.BlockSpec((L1, HP1 * WP1), lambda i: (0, 0)),         # pool1 mat
            pl.BlockSpec((C2, C1 * K * K), lambda i: (0, 0)),        # conv2 w
            pl.BlockSpec((C2, 1), lambda i: (0, 0)),                 # conv2 b
            pl.BlockSpec((L2, HP2 * WP2), lambda i: (0, 0)),         # pool2 mat
            pl.BlockSpec((C2, HP2 * WP2, 120), lambda i: (0, 0, 0)), # fc1 w
            pl.BlockSpec((1, 120), lambda i: (0, 0)),                # fc1 b
            pl.BlockSpec((120, 84), lambda i: (0, 0)),               # fc2 w
            pl.BlockSpec((1, 84), lambda i: (0, 0)),                 # fc2 b
            pl.BlockSpec((84, 10), lambda i: (0, 0)),                # fc3 w
            pl.BlockSpec((1, 10), lambda i: (0, 0)),                 # fc3 b
        ],
        out_specs=pl.BlockSpec((bt, 10), lambda i: (i, 0)),
        scratch_shapes=[
            pltpu.VMEM((C0 * K * K, L1), jnp.bfloat16),   # im2col for conv1
            pltpu.VMEM((C1 * K * K, L2), jnp.bfloat16),   # im2col for conv2
            pltpu.VMEM((bt, C2, HP2 * WP2), jnp.bfloat16),  # per-tile features
        ],
        compiler_params=pltpu.CompilerParams(
            dimension_semantics=("parallel",)),
    )(xf, packed["conv1_w"], packed["conv1_b"], packed["p1"],
      packed["conv2_w"], packed["conv2_b"], packed["p2"],
      packed["fc1_w"], packed["fc1_b"], packed["fc2_w"], packed["fc2_b"],
      packed["fc3_w"], packed["fc3_b"])
    return out[:n] if n_pad != n else out


# ------------------------------- parameters ---------------------------------

def init_params(key):
    ks = jax.random.split(key, 10)
    s = 0.05
    return {
        "conv1_w": jax.random.normal(ks[0], (C1, C0, K, K), jnp.float32) * s,
        "conv1_b": jax.random.normal(ks[1], (C1,), jnp.float32) * s,
        "conv2_w": jax.random.normal(ks[2], (C2, C1, K, K), jnp.float32) * s,
        "conv2_b": jax.random.normal(ks[3], (C2,), jnp.float32) * s,
        "fc1_w": jax.random.normal(ks[4], (120, FC_IN), jnp.float32) * s,
        "fc1_b": jax.random.normal(ks[5], (120,), jnp.float32) * s,
        "fc2_w": jax.random.normal(ks[6], (84, 120), jnp.float32) * s,
        "fc2_b": jax.random.normal(ks[7], (84,), jnp.float32) * s,
        "fc3_w": jax.random.normal(ks[8], (10, 84), jnp.float32) * s,
        "fc3_b": jax.random.normal(ks[9], (10,), jnp.float32) * s,
    }


def pack_params(p):
    """One-time packing so the forward path has no transposes/reshapes:
       conv w -> (Cout, K*K*Cin) bf16 (row order = tap*Cin + cin, matching the
       in-kernel im2col); fc1 w -> (C2, 25, 120) bf16 (channel-major flatten);
       fc2/fc3 w -> (K, N) bf16; biases f32 column/row vectors; bf16 pool mats."""
    def pack_conv(w):      # (Cout, Cin, K, K) -> (Cout, K*K*Cin)
        co, ci = w.shape[0], w.shape[1]
        return jnp.transpose(w, (0, 2, 3, 1)).reshape(co, K * K * ci).astype(jnp.bfloat16)
    return {
        "conv1_w": pack_conv(p["conv1_w"]),
        "conv1_b": p["conv1_b"].reshape(C1, 1).astype(jnp.float32),
        "conv2_w": pack_conv(p["conv2_w"]),
        "conv2_b": p["conv2_b"].reshape(C2, 1).astype(jnp.float32),
        # fc1: W[n, c*25+q] -> pack[c, q, n]
        "fc1_w": jnp.transpose(p["fc1_w"].reshape(120, C2, HP2 * WP2),
                               (1, 2, 0)).astype(jnp.bfloat16),
        "fc1_b": p["fc1_b"].reshape(1, -1).astype(jnp.float32),
        "fc2_w": p["fc2_w"].T.astype(jnp.bfloat16),
        "fc2_b": p["fc2_b"].reshape(1, -1).astype(jnp.float32),
        "fc3_w": p["fc3_w"].T.astype(jnp.bfloat16),
        "fc3_b": p["fc3_b"].reshape(1, -1).astype(jnp.float32),
        "p1": jnp.asarray(make_pool_matrix(HC1, WC1, W0), jnp.bfloat16),
        "p2": jnp.asarray(make_pool_matrix(HC2, WC2, WP1), jnp.bfloat16),
    }


if __name__ == "__main__":
    key = jax.random.PRNGKey(0)
    pkey, xkey = jax.random.split(key)
    params = init_params(pkey)
    packed = pack_params(params)
    # LeNet5's fc_unit hard-codes 16*5*5, so spatial must be 32x32 (CIFAR).
    x = jax.random.normal(xkey, (2, 3, 32, 32), jnp.float32)
    fwd = jax.jit(lenet5_forward)
    logits = fwd(packed, x)
    jax.block_until_ready(logits)
    assert logits.shape == (2, 10) and logits.dtype == jnp.float32
    assert bool(jnp.all(jnp.isfinite(logits)))
    print("KERNEL_OK")
</pallas_src>

<mosaic_0001>
module attributes {stable_mosaic.version = 11 : i64} {
  func.func @_lenet5_kernel(%arg0: i32, %arg1: memref<2x3x1024xbf16, #tpu.memory_space<vmem>>, %arg2: memref<6x75xbf16, #tpu.memory_space<vmem>>, %arg3: memref<6x1xf32, #tpu.memory_space<vmem>>, %arg4: memref<892x196xbf16, #tpu.memory_space<vmem>>, %arg5: memref<16x150xbf16, #tpu.memory_space<vmem>>, %arg6: memref<16x1xf32, #tpu.memory_space<vmem>>, %arg7: memref<136x25xbf16, #tpu.memory_space<vmem>>, %arg8: memref<16x25x120xbf16, #tpu.memory_space<vmem>>, %arg9: memref<1x120xf32, #tpu.memory_space<vmem>>, %arg10: memref<120x84xbf16, #tpu.memory_space<vmem>>, %arg11: memref<1x84xf32, #tpu.memory_space<vmem>>, %arg12: memref<84x10xbf16, #tpu.memory_space<vmem>>, %arg13: memref<1x10xf32, #tpu.memory_space<vmem>>, %arg14: memref<2x10xf32, #tpu.memory_space<vmem>>, %arg15: memref<75x892xbf16, #tpu.memory_space<vmem>>, %arg16: memref<150x136xbf16, #tpu.memory_space<vmem>>, %arg17: memref<2x16x25xbf16, #tpu.memory_space<vmem>>) attributes {dimension_semantics = [#tpu.dimension_semantics<parallel>], iteration_bounds = array<i64: 1>, scalar_prefetch = 0 : i64, scratch_operands = 3 : i64, tpu.core_type = #tpu.core_type<tc>, window_params = [{transform_indices = @transform_0, window_bounds = array<i64: 2, 3, 1024>}, {pipeline_mode = #tpu.pipeline_mode<synchronous>, transform_indices = @transform_1, window_bounds = array<i64: 6, 75>}, {pipeline_mode = #tpu.pipeline_mode<synchronous>, transform_indices = @transform_2, window_bounds = array<i64: 6, 1>}, {pipeline_mode = #tpu.pipeline_mode<synchronous>, transform_indices = @transform_3, window_bounds = array<i64: 892, 196>}, {pipeline_mode = #tpu.pipeline_mode<synchronous>, transform_indices = @transform_4, window_bounds = array<i64: 16, 150>}, {pipeline_mode = #tpu.pipeline_mode<synchronous>, transform_indices = @transform_5, window_bounds = array<i64: 16, 1>}, {pipeline_mode = #tpu.pipeline_mode<synchronous>, transform_indices = @transform_6, window_bounds = array<i64: 136, 25>}, {pipeline_mode = #tpu.pipeline_mode<synchronous>, transform_indices = @transform_7, window_bounds = array<i64: 16, 25, 120>}, {pipeline_mode = #tpu.pipeline_mode<synchronous>, transform_indices = @transform_8, window_bounds = array<i64: 1, 120>}, {pipeline_mode = #tpu.pipeline_mode<synchronous>, transform_indices = @transform_9, window_bounds = array<i64: 120, 84>}, {pipeline_mode = #tpu.pipeline_mode<synchronous>, transform_indices = @transform_10, window_bounds = array<i64: 1, 84>}, {pipeline_mode = #tpu.pipeline_mode<synchronous>, transform_indices = @transform_11, window_bounds = array<i64: 84, 10>}, {pipeline_mode = #tpu.pipeline_mode<synchronous>, transform_indices = @transform_12, window_bounds = array<i64: 1, 10>}, {transform_indices = @transform_13, window_bounds = array<i64: 2, 10>}]} {
    %c0 = arith.constant 0 : index
    %c0_0 = arith.constant 0 : index
    %0 = vector.load %arg2[%c0, %c0_0] : memref<6x75xbf16, #tpu.memory_space<vmem>>, vector<6x75xbf16>
    %c0_1 = arith.constant 0 : index
    %c0_2 = arith.constant 0 : index
    %1 = vector.load %arg3[%c0_1, %c0_2] : memref<6x1xf32, #tpu.memory_space<vmem>>, vector<6x1xf32>
    %c0_3 = arith.constant 0 : index
    %c0_4 = arith.constant 0 : index
    %2 = vector.load %arg4[%c0_3, %c0_4] : memref<892x196xbf16, #tpu.memory_space<vmem>>, vector<892x196xbf16>
    %c0_5 = arith.constant 0 : index
    %c0_6 = arith.constant 0 : index
    %3 = vector.load %arg5[%c0_5, %c0_6] : memref<16x150xbf16, #tpu.memory_space<vmem>>, vector<16x150xbf16>
    %c0_7 = arith.constant 0 : index
    %c0_8 = arith.constant 0 : index
    %4 = vector.load %arg6[%c0_7, %c0_8] : memref<16x1xf32, #tpu.memory_space<vmem>>, vector<16x1xf32>
    %c0_9 = arith.constant 0 : index
    %c0_10 = arith.constant 0 : index
    %5 = vector.load %arg7[%c0_9, %c0_10] : memref<136x25xbf16, #tpu.memory_space<vmem>>, vector<136x25xbf16>
    %c0_i32 = arith.constant 0 : i32
    %6 = arith.index_cast %c0_i32 : i32 to index
    %c0_11 = arith.constant 0 : index
    %c0_12 = arith.constant 0 : index
    %7 = vector.load %arg1[%6, %c0_11, %c0_12] : memref<2x3x1024xbf16, #tpu.memory_space<vmem>>, vector<1x3x1024xbf16>
    %8 = vector.shape_cast %7 : vector<1x3x1024xbf16> to vector<3x1024xbf16>
    %9 = vector.extract_strided_slice %8 {offsets = [0, 0], sizes = [3, 892], strides = [1, 1]} : vector<3x1024xbf16> to vector<3x892xbf16>
    %c0_13 = arith.constant 0 : index
    %c0_14 = arith.constant 0 : index
    %10 = vector.load %arg15[%c0_13, %c0_14] : memref<75x892xbf16, #tpu.memory_space<vmem>>, vector<3x892xbf16>
    tpu.vector_store %arg15[%c0_13, %c0_14], %9 {strides = array<i32>} : memref<75x892xbf16, #tpu.memory_space<vmem>>, vector<3x892xbf16>,
    %11 = vector.extract_strided_slice %8 {offsets = [0, 1], sizes = [3, 892], strides = [1, 1]} : vector<3x1024xbf16> to vector<3x892xbf16>
    %c3 = arith.constant 3 : index
    %c0_15 = arith.constant 0 : index
    %12 = vector.load %arg15[%c3, %c0_15] : memref<75x892xbf16, #tpu.memory_space<vmem>>, vector<3x892xbf16>
    tpu.vector_store %arg15[%c3, %c0_15], %11 {strides = array<i32>} : memref<75x892xbf16, #tpu.memory_space<vmem>>, vector<3x892xbf16>,
    %13 = vector.extract_strided_slice %8 {offsets = [0, 2], sizes = [3, 892], strides = [1, 1]} : vector<3x1024xbf16> to vector<3x892xbf16>
    %c6 = arith.constant 6 : index
    %c0_16 = arith.constant 0 : index
    %14 = vector.load %arg15[%c6, %c0_16] : memref<75x892xbf16, #tpu.memory_space<vmem>>, vector<3x892xbf16>
    tpu.vector_store %arg15[%c6, %c0_16], %13 {strides = array<i32>} : memref<75x892xbf16, #tpu.memory_space<vmem>>, vector<3x892xbf16>,
    %15 = vector.extract_strided_slice %8 {offsets = [0, 3], sizes = [3, 892], strides = [1, 1]} : vector<3x1024xbf16> to vector<3x892xbf16>
    %c9 = arith.constant 9 : index
    %c0_17 = arith.constant 0 : index
    %16 = vector.load %arg15[%c9, %c0_17] : memref<75x892xbf16, #tpu.memory_space<vmem>>, vector<3x892xbf16>
    tpu.vector_store %arg15[%c9, %c0_17], %15 {strides = array<i32>} : memref<75x892xbf16, #tpu.memory_space<vmem>>, vector<3x892xbf16>,
    %17 = vector.extract_strided_slice %8 {offsets = [0, 4], sizes = [3, 892], strides = [1, 1]} : vector<3x1024xbf16> to vector<3x892xbf16>
    %c12 = arith.constant 12 : index
    %c0_18 = arith.constant 0 : index
    %18 = vector.load %arg15[%c12, %c0_18] : memref<75x892xbf16, #tpu.memory_space<vmem>>, vector<3x892xbf16>
    tpu.vector_store %arg15[%c12, %c0_18], %17 {strides = array<i32>} : memref<75x892xbf16, #tpu.memory_space<vmem>>, vector<3x892xbf16>,
    %19 = vector.extract_strided_slice %8 {offsets = [0, 32], sizes = [3, 892], strides = [1, 1]} : vector<3x1024xbf16> to vector<3x892xbf16>
    %c15 = arith.constant 15 : index
    %c0_19 = arith.constant 0 : index
    %20 = vector.load %arg15[%c15, %c0_19] : memref<75x892xbf16, #tpu.memory_space<vmem>>, vector<3x892xbf16>
    tpu.vector_store %arg15[%c15, %c0_19], %19 {strides = array<i32>} : memref<75x892xbf16, #tpu.memory_space<vmem>>, vector<3x892xbf16>,
    %21 = vector.extract_strided_slice %8 {offsets = [0, 33], sizes = [3, 892], strides = [1, 1]} : vector<3x1024xbf16> to vector<3x892xbf16>
    %c18 = arith.constant 18 : index
    %c0_20 = arith.constant 0 : index
    %22 = vector.load %arg15[%c18, %c0_20] : memref<75x892xbf16, #tpu.memory_space<vmem>>, vector<3x892xbf16>
    tpu.vector_store %arg15[%c18, %c0_20], %21 {strides = array<i32>} : memref<75x892xbf16, #tpu.memory_space<vmem>>, vector<3x892xbf16>,
    %23 = vector.extract_strided_slice %8 {offsets = [0, 34], sizes = [3, 892], strides = [1, 1]} : vector<3x1024xbf16> to vector<3x892xbf16>
    %c21 = arith.constant 21 : index
    %c0_21 = arith.constant 0 : index
    %24 = vector.load %arg15[%c21, %c0_21] : memref<75x892xbf16, #tpu.memory_space<vmem>>, vector<3x892xbf16>
    tpu.vector_store %arg15[%c21, %c0_21], %23 {strides = array<i32>} : memref<75x892xbf16, #tpu.memory_space<vmem>>, vector<3x892xbf16>,
    %25 = vector.extract_strided_slice %8 {offsets = [0, 35], sizes = [3, 892], strides = [1, 1]} : vector<3x1024xbf16> to vector<3x892xbf16>
    %c24 = arith.constant 24 : index
    %c0_22 = arith.constant 0 : index
    %26 = vector.load %arg15[%c24, %c0_22] : memref<75x892xbf16, #tpu.memory_space<vmem>>, vector<3x892xbf16>
    tpu.vector_store %arg15[%c24, %c0_22], %25 {strides = array<i32>} : memref<75x892xbf16, #tpu.memory_space<vmem>>, vector<3x892xbf16>,
    %27 = vector.extract_strided_slice %8 {offsets = [0, 36], sizes = [3, 892], strides = [1, 1]} : vector<3x1024xbf16> to vector<3x892xbf16>
    %c27 = arith.constant 27 : index
    %c0_23 = arith.constant 0 : index
    %28 = vector.load %arg15[%c27, %c0_23] : memref<75x892xbf16, #tpu.memory_space<vmem>>, vector<3x892xbf16>
    tpu.vector_store %arg15[%c27, %c0_23], %27 {strides = array<i32>} : memref<75x892xbf16, #tpu.memory_space<vmem>>, vector<3x892xbf16>,
    %29 = vector.extract_strided_slice %8 {offsets = [0, 64], sizes = [3, 892], strides = [1, 1]} : vector<3x1024xbf16> to vector<3x892xbf16>
    %c30 = arith.constant 30 : index
    %c0_24 = arith.constant 0 : index
    %30 = vector.load %arg15[%c30, %c0_24] : memref<75x892xbf16, #tpu.memory_space<vmem>>, vector<3x892xbf16>
    tpu.vector_store %arg15[%c30, %c0_24], %29 {strides = array<i32>} : memref<75x892xbf16, #tpu.memory_space<vmem>>, vector<3x892xbf16>,
    %31 = vector.extract_strided_slice %8 {offsets = [0, 65], sizes = [3, 892], strides = [1, 1]} : vector<3x1024xbf16> to vector<3x892xbf16>
    %c33 = arith.constant 33 : index
    %c0_25 = arith.constant 0 : index
    %32 = vector.load %arg15[%c33, %c0_25] : memref<75x892xbf16, #tpu.memory_space<vmem>>, vector<3x892xbf16>
    tpu.vector_store %arg15[%c33, %c0_25], %31 {strides = array<i32>} : memref<75x892xbf16, #tpu.memory_space<vmem>>, vector<3x892xbf16>,
    %33 = vector.extract_strided_slice %8 {offsets = [0, 66], sizes = [3, 892], strides = [1, 1]} : vector<3x1024xbf16> to vector<3x892xbf16>
    %c36 = arith.constant 36 : index
    %c0_26 = arith.constant 0 : index
    %34 = vector.load %arg15[%c36, %c0_26] : memref<75x892xbf16, #tpu.memory_space<vmem>>, vector<3x892xbf16>
    tpu.vector_store %arg15[%c36, %c0_26], %33 {strides = array<i32>} : memref<75x892xbf16, #tpu.memory_space<vmem>>, vector<3x892xbf16>,
    %35 = vector.extract_strided_slice %8 {offsets = [0, 67], sizes = [3, 892], strides = [1, 1]} : vector<3x1024xbf16> to vector<3x892xbf16>
    %c39 = arith.constant 39 : index
    %c0_27 = arith.constant 0 : index
    %36 = vector.load %arg15[%c39, %c0_27] : memref<75x892xbf16, #tpu.memory_space<vmem>>, vector<3x892xbf16>
    tpu.vector_store %arg15[%c39, %c0_27], %35 {strides = array<i32>} : memref<75x892xbf16, #tpu.memory_space<vmem>>, vector<3x892xbf16>,
    %37 = vector.extract_strided_slice %8 {offsets = [0, 68], sizes = [3, 892], strides = [1, 1]} : vector<3x1024xbf16> to vector<3x892xbf16>
    %c42 = arith.constant 42 : index
    %c0_28 = arith.constant 0 : index
    %38 = vector.load %arg15[%c42, %c0_28] : memref<75x892xbf16, #tpu.memory_space<vmem>>, vector<3x892xbf16>
    tpu.vector_store %arg15[%c42, %c0_28], %37 {strides = array<i32>} : memref<75x892xbf16, #tpu.memory_space<vmem>>, vector<3x892xbf16>,
    %39 = vector.extract_strided_slice %8 {offsets = [0, 96], sizes = [3, 892], strides = [1, 1]} : vector<3x1024xbf16> to vector<3x892xbf16>
    %c45 = arith.constant 45 : index
    %c0_29 = arith.constant 0 : index
    %40 = vector.load %arg15[%c45, %c0_29] : memref<75x892xbf16, #tpu.memory_space<vmem>>, vector<3x892xbf16>
    tpu.vector_store %arg15[%c45, %c0_29], %39 {strides = array<i32>} : memref<75x892xbf16, #tpu.memory_space<vmem>>, vector<3x892xbf16>,
    %41 = vector.extract_strided_slice %8 {offsets = [0, 97], sizes = [3, 892], strides = [1, 1]} : vector<3x1024xbf16> to vector<3x892xbf16>
    %c48 = arith.constant 48 : index
    %c0_30 = arith.constant 0 : index
    %42 = vector.load %arg15[%c48, %c0_30] : memref<75x892xbf16, #tpu.memory_space<vmem>>, vector<3x892xbf16>
    tpu.vector_store %arg15[%c48, %c0_30], %41 {strides = array<i32>} : memref<75x892xbf16, #tpu.memory_space<vmem>>, vector<3x892xbf16>,
    %43 = vector.extract_strided_slice %8 {offsets = [0, 98], sizes = [3, 892], strides = [1, 1]} : vector<3x1024xbf16> to vector<3x892xbf16>
    %c51 = arith.constant 51 : index
    %c0_31 = arith.constant 0 : index
    %44 = vector.load %arg15[%c51, %c0_31] : memref<75x892xbf16, #tpu.memory_space<vmem>>, vector<3x892xbf16>
    tpu.vector_store %arg15[%c51, %c0_31], %43 {strides = array<i32>} : memref<75x892xbf16, #tpu.memory_space<vmem>>, vector<3x892xbf16>,
    %45 = vector.extract_strided_slice %8 {offsets = [0, 99], sizes = [3, 892], strides = [1, 1]} : vector<3x1024xbf16> to vector<3x892xbf16>
    %c54 = arith.constant 54 : index
    %c0_32 = arith.constant 0 : index
    %46 = vector.load %arg15[%c54, %c0_32] : memref<75x892xbf16, #tpu.memory_space<vmem>>, vector<3x892xbf16>
    tpu.vector_store %arg15[%c54, %c0_32], %45 {strides = array<i32>} : memref<75x892xbf16, #tpu.memory_space<vmem>>, vector<3x892xbf16>,
    %47 = vector.extract_strided_slice %8 {offsets = [0, 100], sizes = [3, 892], strides = [1, 1]} : vector<3x1024xbf16> to vector<3x892xbf16>
    %c57 = arith.constant 57 : index
    %c0_33 = arith.constant 0 : index
    %48 = vector.load %arg15[%c57, %c0_33] : memref<75x892xbf16, #tpu.memory_space<vmem>>, vector<3x892xbf16>
    tpu.vector_store %arg15[%c57, %c0_33], %47 {strides = array<i32>} : memref<75x892xbf16, #tpu.memory_space<vmem>>, vector<3x892xbf16>,
    %49 = vector.extract_strided_slice %8 {offsets = [0, 128], sizes = [3, 892], strides = [1, 1]} : vector<3x1024xbf16> to vector<3x892xbf16>
    %c60 = arith.constant 60 : index
    %c0_34 = arith.constant 0 : index
    %50 = vector.load %arg15[%c60, %c0_34] : memref<75x892xbf16, #tpu.memory_space<vmem>>, vector<3x892xbf16>
    tpu.vector_store %arg15[%c60, %c0_34], %49 {strides = array<i32>} : memref<75x892xbf16, #tpu.memory_space<vmem>>, vector<3x892xbf16>,
    %51 = vector.extract_strided_slice %8 {offsets = [0, 129], sizes = [3, 892], strides = [1, 1]} : vector<3x1024xbf16> to vector<3x892xbf16>
    %c63 = arith.constant 63 : index
    %c0_35 = arith.constant 0 : index
    %52 = vector.load %arg15[%c63, %c0_35] : memref<75x892xbf16, #tpu.memory_space<vmem>>, vector<3x892xbf16>
    tpu.vector_store %arg15[%c63, %c0_35], %51 {strides = array<i32>} : memref<75x892xbf16, #tpu.memory_space<vmem>>, vector<3x892xbf16>,
    %53 = vector.extract_strided_slice %8 {offsets = [0, 130], sizes = [3, 892], strides = [1, 1]} : vector<3x1024xbf16> to vector<3x892xbf16>
    %c66 = arith.constant 66 : index
    %c0_36 = arith.constant 0 : index
    %54 = vector.load %arg15[%c66, %c0_36] : memref<75x892xbf16, #tpu.memory_space<vmem>>, vector<3x892xbf16>
    tpu.vector_store %arg15[%c66, %c0_36], %53 {strides = array<i32>} : memref<75x892xbf16, #tpu.memory_space<vmem>>, vector<3x892xbf16>,
    %55 = vector.extract_strided_slice %8 {offsets = [0, 131], sizes = [3, 892], strides = [1, 1]} : vector<3x1024xbf16> to vector<3x892xbf16>
    %c69 = arith.constant 69 : index
    %c0_37 = arith.constant 0 : index
    %56 = vector.load %arg15[%c69, %c0_37] : memref<75x892xbf16, #tpu.memory_space<vmem>>, vector<3x892xbf16>
    tpu.vector_store %arg15[%c69, %c0_37], %55 {strides = array<i32>} : memref<75x892xbf16, #tpu.memory_space<vmem>>, vector<3x892xbf16>,
    %57 = vector.extract_strided_slice %8 {offsets = [0, 132], sizes = [3, 892], strides = [1, 1]} : vector<3x1024xbf16> to vector<3x892xbf16>
    %c72 = arith.constant 72 : index
    %c0_38 = arith.constant 0 : index
    %58 = vector.load %arg15[%c72, %c0_38] : memref<75x892xbf16, #tpu.memory_space<vmem>>, vector<3x892xbf16>
    tpu.vector_store %arg15[%c72, %c0_38], %57 {strides = array<i32>} : memref<75x892xbf16, #tpu.memory_space<vmem>>, vector<3x892xbf16>,
    %c0_39 = arith.constant 0 : index
    %c0_40 = arith.constant 0 : index
    %59 = vector.load %arg15[%c0_39, %c0_40] : memref<75x892xbf16, #tpu.memory_space<vmem>>, vector<75x892xbf16>
    %cst = arith.constant dense<0.000000e+00> : vector<6x892xf32>
    %60 = tpu.matmul %0, %59, %cst {dimension_numbers = #tpu.dot_dimension_numbers<[1], [0], [0], [1], [0, 0, 1, 1], [], []>} : vector<6x75xbf16>, vector<75x892xbf16>, vector<6x892xf32> -> vector<6x892xf32>
    %61 = arith.truncf %60 : vector<6x892xf32> to vector<6x892xbf16>
    %cst_41 = arith.constant dense<0.000000e+00> : vector<6x196xf32>
    %62 = tpu.matmul %61, %2, %cst_41 {dimension_numbers = #tpu.dot_dimension_numbers<[1], [0], [0], [1], [0, 0, 1, 1], [], []>} : vector<6x892xbf16>, vector<892x196xbf16>, vector<6x196xf32> -> vector<6x196xf32>
    %63 = vector.broadcast %1 : vector<6x1xf32> to vector<6x196xf32>
    %64 = arith.addf %62, %63 : vector<6x196xf32>
    %65 = arith.truncf %64 : vector<6x196xf32> to vector<6x196xbf16>
    %66 = vector.extract_strided_slice %65 {offsets = [0, 0], sizes = [6, 136], strides = [1, 1]} : vector<6x196xbf16> to vector<6x136xbf16>
    %c0_42 = arith.constant 0 : index
    %c0_43 = arith.constant 0 : index
    %67 = vector.load %arg16[%c0_42, %c0_43] : memref<150x136xbf16, #tpu.memory_space<vmem>>, vector<6x136xbf16>
    tpu.vector_store %arg16[%c0_42, %c0_43], %66 {strides = array<i32>} : memref<150x136xbf16, #tpu.memory_space<vmem>>, vector<6x136xbf16>,
    %68 = vector.extract_strided_slice %65 {offsets = [0, 1], sizes = [6, 136], strides = [1, 1]} : vector<6x196xbf16> to vector<6x136xbf16>
    %c6_44 = arith.constant 6 : index
    %c0_45 = arith.constant 0 : index
    %69 = vector.load %arg16[%c6_44, %c0_45] : memref<150x136xbf16, #tpu.memory_space<vmem>>, vector<6x136xbf16>
    tpu.vector_store %arg16[%c6_44, %c0_45], %68 {strides = array<i32>} : memref<150x136xbf16, #tpu.memory_space<vmem>>, vector<6x136xbf16>,
    %70 = vector.extract_strided_slice %65 {offsets = [0, 2], sizes = [6, 136], strides = [1, 1]} : vector<6x196xbf16> to vector<6x136xbf16>
    %c12_46 = arith.constant 12 : index
    %c0_47 = arith.constant 0 : index
    %71 = vector.load %arg16[%c12_46, %c0_47] : memref<150x136xbf16, #tpu.memory_space<vmem>>, vector<6x136xbf16>
    tpu.vector_store %arg16[%c12_46, %c0_47], %70 {strides = array<i32>} : memref<150x136xbf16, #tpu.memory_space<vmem>>, vector<6x136xbf16>,
    %72 = vector.extract_strided_slice %65 {offsets = [0, 3], sizes = [6, 136], strides = [1, 1]} : vector<6x196xbf16> to vector<6x136xbf16>
    %c18_48 = arith.constant 18 : index
    %c0_49 = arith.constant 0 : index
    %73 = vector.load %arg16[%c18_48, %c0_49] : memref<150x136xbf16, #tpu.memory_space<vmem>>, vector<6x136xbf16>
    tpu.vector_store %arg16[%c18_48, %c0_49], %72 {strides = array<i32>} : memref<150x136xbf16, #tpu.memory_space<vmem>>, vector<6x136xbf16>,
    %74 = vector.extract_strided_slice %65 {offsets = [0, 4], sizes = [6, 136], strides = [1, 1]} : vector<6x196xbf16> to vector<6x136xbf16>
    %c24_50 = arith.constant 24 : index
    %c0_51 = arith.constant 0 : index
    %75 = vector.load %arg16[%c24_50, %c0_51] : memref<150x136xbf16, #tpu.memory_space<vmem>>, vector<6x136xbf16>
    tpu.vector_store %arg16[%c24_50, %c0_51], %74 {strides = array<i32>} : memref<150x136xbf16, #tpu.memory_space<vmem>>, vector<6x136xbf16>,
    %76 = vector.extract_strided_slice %65 {offsets = [0, 14], sizes = [6, 136], strides = [1, 1]} : vector<6x196xbf16> to vector<6x136xbf16>
    %c30_52 = arith.constant 30 : index
    %c0_53 = arith.constant 0 : index
    %77 = vector.load %arg16[%c30_52, %c0_53] : memref<150x136xbf16, #tpu.memory_space<vmem>>, vector<6x136xbf16>
    tpu.vector_store %arg16[%c30_52, %c0_53], %76 {strides = array<i32>} : memref<150x136xbf16, #tpu.memory_space<vmem>>, vector<6x136xbf16>,
    %78 = vector.extract_strided_slice %65 {offsets = [0, 15], sizes = [6, 136], strides = [1, 1]} : vector<6x196xbf16> to vector<6x136xbf16>
    %c36_54 = arith.constant 36 : index
    %c0_55 = arith.constant 0 : index
    %79 = vector.load %arg16[%c36_54, %c0_55] : memref<150x136xbf16, #tpu.memory_space<vmem>>, vector<6x136xbf16>
    tpu.vector_store %arg16[%c36_54, %c0_55], %78 {strides = array<i32>} : memref<150x136xbf16, #tpu.memory_space<vmem>>, vector<6x136xbf16>,
    %80 = vector.extract_strided_slice %65 {offsets = [0, 16], sizes = [6, 136], strides = [1, 1]} : vector<6x196xbf16> to vector<6x136xbf16>
    %c42_56 = arith.constant 42 : index
    %c0_57 = arith.constant 0 : index
    %81 = vector.load %arg16[%c42_56, %c0_57] : memref<150x136xbf16, #tpu.memory_space<vmem>>, vector<6x136xbf16>
    tpu.vector_store %arg16[%c42_56, %c0_57], %80 {strides = array<i32>} : memref<150x136xbf16, #tpu.memory_space<vmem>>, vector<6x136xbf16>,
    %82 = vector.extract_strided_slice %65 {offsets = [0, 17], sizes = [6, 136], strides = [1, 1]} : vector<6x196xbf16> to vector<6x136xbf16>
    %c48_58 = arith.constant 48 : index
    %c0_59 = arith.constant 0 : index
    %83 = vector.load %arg16[%c48_58, %c0_59] : memref<150x136xbf16, #tpu.memory_space<vmem>>, vector<6x136xbf16>
    tpu.vector_store %arg16[%c48_58, %c0_59], %82 {strides = array<i32>} : memref<150x136xbf16, #tpu.memory_space<vmem>>, vector<6x136xbf16>,
    %84 = vector.extract_strided_slice %65 {offsets = [0, 18], sizes = [6, 136], strides = [1, 1]} : vector<6x196xbf16> to vector<6x136xbf16>
    %c54_60 = arith.constant 54 : index
    %c0_61 = arith.constant 0 : index
    %85 = vector.load %arg16[%c54_60, %c0_61] : memref<150x136xbf16, #tpu.memory_space<vmem>>, vector<6x136xbf16>
    tpu.vector_store %arg16[%c54_60, %c0_61], %84 {strides = array<i32>} : memref<150x136xbf16, #tpu.memory_space<vmem>>, vector<6x136xbf16>,
    %86 = vector.extract_strided_slice %65 {offsets = [0, 28], sizes = [6, 136], strides = [1, 1]} : vector<6x196xbf16> to vector<6x136xbf16>
    %c60_62 = arith.constant 60 : index
    %c0_63 = arith.constant 0 : index
    %87 = vector.load %arg16[%c60_62, %c0_63] : memref<150x136xbf16, #tpu.memory_space<vmem>>, vector<6x136xbf16>
    tpu.vector_store %arg16[%c60_62, %c0_63], %86 {strides = array<i32>} : memref<150x136xbf16, #tpu.memory_space<vmem>>, vector<6x136xbf16>,
    %88 = vector.extract_strided_slice %65 {offsets = [0, 29], sizes = [6, 136], strides = [1, 1]} : vector<6x196xbf16> to vector<6x136xbf16>
    %c66_64 = arith.constant 66 : index
    %c0_65 = arith.constant 0 : index
    %89 = vector.load %arg16[%c66_64, %c0_65] : memref<150x136xbf16, #tpu.memory_space<vmem>>, vector<6x136xbf16>
    tpu.vector_store %arg16[%c66_64, %c0_65], %88 {strides = array<i32>} : memref<150x136xbf16, #tpu.memory_space<vmem>>, vector<6x136xbf16>,
    %90 = vector.extract_strided_slice %65 {offsets = [0, 30], sizes = [6, 136], strides = [1, 1]} : vector<6x196xbf16> to vector<6x136xbf16>
    %c72_66 = arith.constant 72 : index
    %c0_67 = arith.constant 0 : index
    %91 = vector.load %arg16[%c72_66, %c0_67] : memref<150x136xbf16, #tpu.memory_space<vmem>>, vector<6x136xbf16>
    tpu.vector_store %arg16[%c72_66, %c0_67], %90 {strides = array<i32>} : memref<150x136xbf16, #tpu.memory_space<vmem>>, vector<6x136xbf16>,
    %92 = vector.extract_strided_slice %65 {offsets = [0, 31], sizes = [6, 136], strides = [1, 1]} : vector<6x196xbf16> to vector<6x136xbf16>
    %c78 = arith.constant 78 : index
    %c0_68 = arith.constant 0 : index
    %93 = vector.load %arg16[%c78, %c0_68] : memref<150x136xbf16, #tpu.memory_space<vmem>>, vector<6x136xbf16>
    tpu.vector_store %arg16[%c78, %c0_68], %92 {strides = array<i32>} : memref<150x136xbf16, #tpu.memory_space<vmem>>, vector<6x136xbf16>,
    %94 = vector.extract_strided_slice %65 {offsets = [0, 32], sizes = [6, 136], strides = [1, 1]} : vector<6x196xbf16> to vector<6x136xbf16>
    %c84 = arith.constant 84 : index
    %c0_69 = arith.constant 0 : index
    %95 = vector.load %arg16[%c84, %c0_69] : memref<150x136xbf16, #tpu.memory_space<vmem>>, vector<6x136xbf16>
    tpu.vector_store %arg16[%c84, %c0_69], %94 {strides = array<i32>} : memref<150x136xbf16, #tpu.memory_space<vmem>>, vector<6x136xbf16>,
    %96 = vector.extract_strided_slice %65 {offsets = [0, 42], sizes = [6, 136], strides = [1, 1]} : vector<6x196xbf16> to vector<6x136xbf16>
    %c90 = arith.constant 90 : index
    %c0_70 = arith.constant 0 : index
    %97 = vector.load %arg16[%c90, %c0_70] : memref<150x136xbf16, #tpu.memory_space<vmem>>, vector<6x136xbf16>
    tpu.vector_store %arg16[%c90, %c0_70], %96 {strides = array<i32>} : memref<150x136xbf16, #tpu.memory_space<vmem>>, vector<6x136xbf16>,
    %98 = vector.extract_strided_slice %65 {offsets = [0, 43], sizes = [6, 136], strides = [1, 1]} : vector<6x196xbf16> to vector<6x136xbf16>
    %c96 = arith.constant 96 : index
    %c0_71 = arith.constant 0 : index
    %99 = vector.load %arg16[%c96, %c0_71] : memref<150x136xbf16, #tpu.memory_space<vmem>>, vector<6x136xbf16>
    tpu.vector_store %arg16[%c96, %c0_71], %98 {strides = array<i32>} : memref<150x136xbf16, #tpu.memory_space<vmem>>, vector<6x136xbf16>,
    %100 = vector.extract_strided_slice %65 {offsets = [0, 44], sizes = [6, 136], strides = [1, 1]} : vector<6x196xbf16> to vector<6x136xbf16>
    %c102 = arith.constant 102 : index
    %c0_72 = arith.constant 0 : index
    %101 = vector.load %arg16[%c102, %c0_72] : memref<150x136xbf16, #tpu.memory_space<vmem>>, vector<6x136xbf16>
    tpu.vector_store %arg16[%c102, %c0_72], %100 {strides = array<i32>} : memref<150x136xbf16, #tpu.memory_space<vmem>>, vector<6x136xbf16>,
    %102 = vector.extract_strided_slice %65 {offsets = [0, 45], sizes = [6, 136], strides = [1, 1]} : vector<6x196xbf16> to vector<6x136xbf16>
    %c108 = arith.constant 108 : index
    %c0_73 = arith.constant 0 : index
    %103 = vector.load %arg16[%c108, %c0_73] : memref<150x136xbf16, #tpu.memory_space<vmem>>, vector<6x136xbf16>
    tpu.vector_store %arg16[%c108, %c0_73], %102 {strides = array<i32>} : memref<150x136xbf16, #tpu.memory_space<vmem>>, vector<6x136xbf16>,
    %104 = vector.extract_strided_slice %65 {offsets = [0, 46], sizes = [6, 136], strides = [1, 1]} : vector<6x196xbf16> to vector<6x136xbf16>
    %c114 = arith.constant 114 : index
    %c0_74 = arith.constant 0 : index
    %105 = vector.load %arg16[%c114, %c0_74] : memref<150x136xbf16, #tpu.memory_space<vmem>>, vector<6x136xbf16>
    tpu.vector_store %arg16[%c114, %c0_74], %104 {strides = array<i32>} : memref<150x136xbf16, #tpu.memory_space<vmem>>, vector<6x136xbf16>,
    %106 = vector.extract_strided_slice %65 {offsets = [0, 56], sizes = [6, 136], strides = [1, 1]} : vector<6x196xbf16> to vector<6x136xbf16>
    %c120 = arith.constant 120 : index
    %c0_75 = arith.constant 0 : index
    %107 = vector.load %arg16[%c120, %c0_75] : memref<150x136xbf16, #tpu.memory_space<vmem>>, vector<6x136xbf16>
    tpu.vector_store %arg16[%c120, %c0_75], %106 {strides = array<i32>} : memref<150x136xbf16, #tpu.memory_space<vmem>>, vector<6x136xbf16>,
    %108 = vector.extract_strided_slice %65 {offsets = [0, 57], sizes = [6, 136], strides = [1, 1]} : vector<6x196xbf16> to vector<6x136xbf16>
    %c126 = arith.constant 126 : index
    %c0_76 = arith.constant 0 : index
    %109 = vector.load %arg16[%c126, %c0_76] : memref<150x136xbf16, #tpu.memory_space<vmem>>, vector<6x136xbf16>
    tpu.vector_store %arg16[%c126, %c0_76], %108 {strides = array<i32>} : memref<150x136xbf16, #tpu.memory_space<vmem>>, vector<6x136xbf16>,
    %110 = vector.extract_strided_slice %65 {offsets = [0, 58], sizes = [6, 136], strides = [1, 1]} : vector<6x196xbf16> to vector<6x136xbf16>
    %c132 = arith.constant 132 : index
    %c0_77 = arith.constant 0 : index
    %111 = vector.load %arg16[%c132, %c0_77] : memref<150x136xbf16, #tpu.memory_space<vmem>>, vector<6x136xbf16>
    tpu.vector_store %arg16[%c132, %c0_77], %110 {strides = array<i32>} : memref<150x136xbf16, #tpu.memory_space<vmem>>, vector<6x136xbf16>,
    %112 = vector.extract_strided_slice %65 {offsets = [0, 59], sizes = [6, 136], strides = [1, 1]} : vector<6x196xbf16> to vector<6x136xbf16>
    %c138 = arith.constant 138 : index
    %c0_78 = arith.constant 0 : index
    %113 = vector.load %arg16[%c138, %c0_78] : memref<150x136xbf16, #tpu.memory_space<vmem>>, vector<6x136xbf16>
    tpu.vector_store %arg16[%c138, %c0_78], %112 {strides = array<i32>} : memref<150x136xbf16, #tpu.memory_space<vmem>>, vector<6x136xbf16>,
    %114 = vector.extract_strided_slice %65 {offsets = [0, 60], sizes = [6, 136], strides = [1, 1]} : vector<6x196xbf16> to vector<6x136xbf16>
    %c144 = arith.constant 144 : index
    %c0_79 = arith.constant 0 : index
    %115 = vector.load %arg16[%c144, %c0_79] : memref<150x136xbf16, #tpu.memory_space<vmem>>, vector<6x136xbf16>
    tpu.vector_store %arg16[%c144, %c0_79], %114 {strides = array<i32>} : memref<150x136xbf16, #tpu.memory_space<vmem>>, vector<6x136xbf16>,
    %c0_80 = arith.constant 0 : index
    %c0_81 = arith.constant 0 : index
    %116 = vector.load %arg16[%c0_80, %c0_81] : memref<150x136xbf16, #tpu.memory_space<vmem>>, vector<150x136xbf16>
    %cst_82 = arith.constant dense<0.000000e+00> : vector<16x136xf32>
    %117 = tpu.matmul %3, %116, %cst_82 {dimension_numbers = #tpu.dot_dimension_numbers<[1], [0], [0], [1], [0, 0, 1, 1], [], []>} : vector<16x150xbf16>, vector<150x136xbf16>, vector<16x136xf32> -> vector<16x136xf32>
    %118 = arith.truncf %117 : vector<16x136xf32> to vector<16x136xbf16>
    %cst_83 = arith.constant dense<0.000000e+00> : vector<16x25xf32>
    %119 = tpu.matmul %118, %5, %cst_83 {dimension_numbers = #tpu.dot_dimension_numbers<[1], [0], [0], [1], [0, 0, 1, 1], [], []>} : vector<16x136xbf16>, vector<136x25xbf16>, vector<16x25xf32> -> vector<16x25xf32>
    %120 = vector.broadcast %4 : vector<16x1xf32> to vector<16x25xf32>
    %121 = arith.addf %119, %120 : vector<16x25xf32>
    %122 = arith.truncf %121 : vector<16x25xf32> to vector<16x25xbf16>
    %123 = arith.index_cast %c0_i32 : i32 to index
    %c0_84 = arith.constant 0 : index
    %c0_85 = arith.constant 0 : index
    %124 = vector.load %arg17[%123, %c0_84, %c0_85] : memref<2x16x25xbf16, #tpu.memory_space<vmem>>, vector<1x16x25xbf16>
    %125 = vector.shape_cast %124 : vector<1x16x25xbf16> to vector<16x25xbf16>
    %126 = vector.shape_cast %122 : vector<16x25xbf16> to vector<1x16x25xbf16>
    tpu.vector_store %arg17[%123, %c0_84, %c0_85], %126 {strides = array<i32>} : memref<2x16x25xbf16, #tpu.memory_space<vmem>>, vector<1x16x25xbf16>,
    %c1_i32 = arith.constant 1 : i32
    %127 = arith.index_cast %c1_i32 : i32 to index
    %c0_86 = arith.constant 0 : index
    %c0_87 = arith.constant 0 : index
    %128 = vector.load %arg1[%127, %c0_86, %c0_87] : memref<2x3x1024xbf16, #tpu.memory_space<vmem>>, vector<1x3x1024xbf16>
    %129 = vector.shape_cast %128 : vector<1x3x1024xbf16> to vector<3x1024xbf16>
    %130 = vector.extract_strided_slice %129 {offsets = [0, 0], sizes = [3, 892], strides = [1, 1]} : vector<3x1024xbf16> to vector<3x892xbf16>
    %c0_88 = arith.constant 0 : index
    %c0_89 = arith.constant 0 : index
    %131 = vector.load %arg15[%c0_88, %c0_89] : memref<75x892xbf16, #tpu.memory_space<vmem>>, vector<3x892xbf16>
    tpu.vector_store %arg15[%c0_88, %c0_89], %130 {strides = array<i32>} : memref<75x892xbf16, #tpu.memory_space<vmem>>, vector<3x892xbf16>,
    %132 = vector.extract_strided_slice %129 {offsets = [0, 1], sizes = [3, 892], strides = [1, 1]} : vector<3x1024xbf16> to vector<3x892xbf16>
    %c3_90 = arith.constant 3 : index
    %c0_91 = arith.constant 0 : index
    %133 = vector.load %arg15[%c3_90, %c0_91] : memref<75x892xbf16, #tpu.memory_space<vmem>>, vector<3x892xbf16>
    tpu.vector_store %arg15[%c3_90, %c0_91], %132 {strides = array<i32>} : memref<75x892xbf16, #tpu.memory_space<vmem>>, vector<3x892xbf16>,
    %134 = vector.extract_strided_slice %129 {offsets = [0, 2], sizes = [3, 892], strides = [1, 1]} : vector<3x1024xbf16> to vector<3x892xbf16>
    %c6_92 = arith.constant 6 : index
    %c0_93 = arith.constant 0 : index
    %135 = vector.load %arg15[%c6_92, %c0_93] : memref<75x892xbf16, #tpu.memory_space<vmem>>, vector<3x892xbf16>
    tpu.vector_store %arg15[%c6_92, %c0_93], %134 {strides = array<i32>} : memref<75x892xbf16, #tpu.memory_space<vmem>>, vector<3x892xbf16>,
    %136 = vector.extract_strided_slice %129 {offsets = [0, 3], sizes = [3, 892], strides = [1, 1]} : vector<3x1024xbf16> to vector<3x892xbf16>
    %c9_94 = arith.constant 9 : index
    %c0_95 = arith.constant 0 : index
    %137 = vector.load %arg15[%c9_94, %c0_95] : memref<75x892xbf16, #tpu.memory_space<vmem>>, vector<3x892xbf16>
    tpu.vector_store %arg15[%c9_94, %c0_95], %136 {strides = array<i32>} : memref<75x892xbf16, #tpu.memory_space<vmem>>, vector<3x892xbf16>,
    %138 = vector.extract_strided_slice %129 {offsets = [0, 4], sizes = [3, 892], strides = [1, 1]} : vector<3x1024xbf16> to vector<3x892xbf16>
    %c12_96 = arith.constant 12 : index
    %c0_97 = arith.constant 0 : index
    %139 = vector.load %arg15[%c12_96, %c0_97] : memref<75x892xbf16, #tpu.memory_space<vmem>>, vector<3x892xbf16>
    tpu.vector_store %arg15[%c12_96, %c0_97], %138 {strides = array<i32>} : memref<75x892xbf16, #tpu.memory_space<vmem>>, vector<3x892xbf16>,
    %140 = vector.extract_strided_slice %129 {offsets = [0, 32], sizes = [3, 892], strides = [1, 1]} : vector<3x1024xbf16> to vector<3x892xbf16>
    %c15_98 = arith.constant 15 : index
    %c0_99 = arith.constant 0 : index
    %141 = vector.load %arg15[%c15_98, %c0_99] : memref<75x892xbf16, #tpu.memory_space<vmem>>, vector<3x892xbf16>
    tpu.vector_store %arg15[%c15_98, %c0_99], %140 {strides = array<i32>} : memref<75x892xbf16, #tpu.memory_space<vmem>>, vector<3x892xbf16>,
    %142 = vector.extract_strided_slice %129 {offsets = [0, 33], sizes = [3, 892], strides = [1, 1]} : vector<3x1024xbf16> to vector<3x892xbf16>
    %c18_100 = arith.constant 18 : index
    %c0_101 = arith.constant 0 : index
    %143 = vector.load %arg15[%c18_100, %c0_101] : memref<75x892xbf16, #tpu.memory_space<vmem>>, vector<3x892xbf16>
    tpu.vector_store %arg15[%c18_100, %c0_101], %142 {strides = array<i32>} : memref<75x892xbf16, #tpu.memory_space<vmem>>, vector<3x892xbf16>,
    %144 = vector.extract_strided_slice %129 {offsets = [0, 34], sizes = [3, 892], strides = [1, 1]} : vector<3x1024xbf16> to vector<3x892xbf16>
    %c21_102 = arith.constant 21 : index
    %c0_103 = arith.constant 0 : index
    %145 = vector.load %arg15[%c21_102, %c0_103] : memref<75x892xbf16, #tpu.memory_space<vmem>>, vector<3x892xbf16>
    tpu.vector_store %arg15[%c21_102, %c0_103], %144 {strides = array<i32>} : memref<75x892xbf16, #tpu.memory_space<vmem>>, vector<3x892xbf16>,
    %146 = vector.extract_strided_slice %129 {offsets = [0, 35], sizes = [3, 892], strides = [1, 1]} : vector<3x1024xbf16> to vector<3x892xbf16>
    %c24_104 = arith.constant 24 : index
    %c0_105 = arith.constant 0 : index
    %147 = vector.load %arg15[%c24_104, %c0_105] : memref<75x892xbf16, #tpu.memory_space<vmem>>, vector<3x892xbf16>
    tpu.vector_store %arg15[%c24_104, %c0_105], %146 {strides = array<i32>} : memref<75x892xbf16, #tpu.memory_space<vmem>>, vector<3x892xbf16>,
    %148 = vector.extract_strided_slice %129 {offsets = [0, 36], sizes = [3, 892], strides = [1, 1]} : vector<3x1024xbf16> to vector<3x892xbf16>
    %c27_106 = arith.constant 27 : index
    %c0_107 = arith.constant 0 : index
    %149 = vector.load %arg15[%c27_106, %c0_107] : memref<75x892xbf16, #tpu.memory_space<vmem>>, vector<3x892xbf16>
    tpu.vector_store %arg15[%c27_106, %c0_107], %148 {strides = array<i32>} : memref<75x892xbf16, #tpu.memory_space<vmem>>, vector<3x892xbf16>,
    %150 = vector.extract_strided_slice %129 {offsets = [0, 64], sizes = [3, 892], strides = [1, 1]} : vector<3x1024xbf16> to vector<3x892xbf16>
    %c30_108 = arith.constant 30 : index
    %c0_109 = arith.constant 0 : index
    %151 = vector.load %arg15[%c30_108, %c0_109] : memref<75x892xbf16, #tpu.memory_space<vmem>>, vector<3x892xbf16>
    tpu.vector_store %arg15[%c30_108, %c0_109], %150 {strides = array<i32>} : memref<75x892xbf16, #tpu.memory_space<vmem>>, vector<3x892xbf16>,
    %152 = vector.extract_strided_slice %129 {offsets = [0, 65], sizes = [3, 892], strides = [1, 1]} : vector<3x1024xbf16> to vector<3x892xbf16>
    %c33_110 = arith.constant 33 : index
    %c0_111 = arith.constant 0 : index
    %153 = vector.load %arg15[%c33_110, %c0_111] : memref<75x892xbf16, #tpu.memory_space<vmem>>, vector<3x892xbf16>
    tpu.vector_store %arg15[%c33_110, %c0_111], %152 {strides = array<i32>} : memref<75x892xbf16, #tpu.memory_space<vmem>>, vector<3x892xbf16>,
    %154 = vector.extract_strided_slice %129 {offsets = [0, 66], sizes = [3, 892], strides = [1, 1]} : vector<3x1024xbf16> to vector<3x892xbf16>
    %c36_112 = arith.constant 36 : index
    %c0_113 = arith.constant 0 : index
    %155 = vector.load %arg15[%c36_112, %c0_113] : memref<75x892xbf16, #tpu.memory_space<vmem>>, vector<3x892xbf16>
    tpu.vector_store %arg15[%c36_112, %c0_113], %154 {strides = array<i32>} : memref<75x892xbf16, #tpu.memory_space<vmem>>, vector<3x892xbf16>,
    %156 = vector.extract_strided_slice %129 {offsets = [0, 67], sizes = [3, 892], strides = [1, 1]} : vector<3x1024xbf16> to vector<3x892xbf16>
    %c39_114 = arith.constant 39 : index
    %c0_115 = arith.constant 0 : index
    %157 = vector.load %arg15[%c39_114, %c0_115] : memref<75x892xbf16, #tpu.memory_space<vmem>>, vector<3x892xbf16>
    tpu.vector_store %arg15[%c39_114, %c0_115], %156 {strides = array<i32>} : memref<75x892xbf16, #tpu.memory_space<vmem>>, vector<3x892xbf16>,
    %158 = vector.extract_strided_slice %129 {offsets = [0, 68], sizes = [3, 892], strides = [1, 1]} : vector<3x1024xbf16> to vector<3x892xbf16>
    %c42_116 = arith.constant 42 : index
    %c0_117 = arith.constant 0 : index
    %159 = vector.load %arg15[%c42_116, %c0_117] : memref<75x892xbf16, #tpu.memory_space<vmem>>, vector<3x892xbf16>
    tpu.vector_store %arg15[%c42_116, %c0_117], %158 {strides = array<i32>} : memref<75x892xbf16, #tpu.memory_space<vmem>>, vector<3x892xbf16>,
    %160 = vector.extract_strided_slice %129 {offsets = [0, 96], sizes = [3, 892], strides = [1, 1]} : vector<3x1024xbf16> to vector<3x892xbf16>
    %c45_118 = arith.constant 45 : index
    %c0_119 = arith.constant 0 : index
    %161 = vector.load %arg15[%c45_118, %c0_119] : memref<75x892xbf16, #tpu.memory_space<vmem>>, vector<3x892xbf16>
    tpu.vector_store %arg15[%c45_118, %c0_119], %160 {strides = array<i32>} : memref<75x892xbf16, #tpu.memory_space<vmem>>, vector<3x892xbf16>,
    %162 = vector.extract_strided_slice %129 {offsets = [0, 97], sizes = [3, 892], strides = [1, 1]} : vector<3x1024xbf16> to vector<3x892xbf16>
    %c48_120 = arith.constant 48 : index
    %c0_121 = arith.constant 0 : index
    %163 = vector.load %arg15[%c48_120, %c0_121] : memref<75x892xbf16, #tpu.memory_space<vmem>>, vector<3x892xbf16>
    tpu.vector_store %arg15[%c48_120, %c0_121], %162 {strides = array<i32>} : memref<75x892xbf16, #tpu.memory_space<vmem>>, vector<3x892xbf16>,
    %164 = vector.extract_strided_slice %129 {offsets = [0, 98], sizes = [3, 892], strides = [1, 1]} : vector<3x1024xbf16> to vector<3x892xbf16>
    %c51_122 = arith.constant 51 : index
    %c0_123 = arith.constant 0 : index
    %165 = vector.load %arg15[%c51_122, %c0_123] : memref<75x892xbf16, #tpu.memory_space<vmem>>, vector<3x892xbf16>
    tpu.vector_store %arg15[%c51_122, %c0_123], %164 {strides = array<i32>} : memref<75x892xbf16, #tpu.memory_space<vmem>>, vector<3x892xbf16>,
    %166 = vector.extract_strided_slice %129 {offsets = [0, 99], sizes = [3, 892], strides = [1, 1]} : vector<3x1024xbf16> to vector<3x892xbf16>
    %c54_124 = arith.constant 54 : index
    %c0_125 = arith.constant 0 : index
    %167 = vector.load %arg15[%c54_124, %c0_125] : memref<75x892xbf16, #tpu.memory_space<vmem>>, vector<3x892xbf16>
    tpu.vector_store %arg15[%c54_124, %c0_125], %166 {strides = array<i32>} : memref<75x892xbf16, #tpu.memory_space<vmem>>, vector<3x892xbf16>,
    %168 = vector.extract_strided_slice %129 {offsets = [0, 100], sizes = [3, 892], strides = [1, 1]} : vector<3x1024xbf16> to vector<3x892xbf16>
    %c57_126 = arith.constant 57 : index
    %c0_127 = arith.constant 0 : index
    %169 = vector.load %arg15[%c57_126, %c0_127] : memref<75x892xbf16, #tpu.memory_space<vmem>>, vector<3x892xbf16>
    tpu.vector_store %arg15[%c57_126, %c0_127], %168 {strides = array<i32>} : memref<75x892xbf16, #tpu.memory_space<vmem>>, vector<3x892xbf16>,
    %170 = vector.extract_strided_slice %129 {offsets = [0, 128], sizes = [3, 892], strides = [1, 1]} : vector<3x1024xbf16> to vector<3x892xbf16>
    %c60_128 = arith.constant 60 : index
    %c0_129 = arith.constant 0 : index
    %171 = vector.load %arg15[%c60_128, %c0_129] : memref<75x892xbf16, #tpu.memory_space<vmem>>, vector<3x892xbf16>
    tpu.vector_store %arg15[%c60_128, %c0_129], %170 {strides = array<i32>} : memref<75x892xbf16, #tpu.memory_space<vmem>>, vector<3x892xbf16>,
    %172 = vector.extract_strided_slice %129 {offsets = [0, 129], sizes = [3, 892], strides = [1, 1]} : vector<3x1024xbf16> to vector<3x892xbf16>
    %c63_130 = arith.constant 63 : index
    %c0_131 = arith.constant 0 : index
    %173 = vector.load %arg15[%c63_130, %c0_131] : memref<75x892xbf16, #tpu.memory_space<vmem>>, vector<3x892xbf16>
    tpu.vector_store %arg15[%c63_130, %c0_131], %172 {strides = array<i32>} : memref<75x892xbf16, #tpu.memory_space<vmem>>, vector<3x892xbf16>,
    %174 = vector.extract_strided_slice %129 {offsets = [0, 130], sizes = [3, 892], strides = [1, 1]} : vector<3x1024xbf16> to vector<3x892xbf16>
    %c66_132 = arith.constant 66 : index
    %c0_133 = arith.constant 0 : index
    %175 = vector.load %arg15[%c66_132, %c0_133] : memref<75x892xbf16, #tpu.memory_space<vmem>>, vector<3x892xbf16>
    tpu.vector_store %arg15[%c66_132, %c0_133], %174 {strides = array<i32>} : memref<75x892xbf16, #tpu.memory_space<vmem>>, vector<3x892xbf16>,
    %176 = vector.extract_strided_slice %129 {offsets = [0, 131], sizes = [3, 892], strides = [1, 1]} : vector<3x1024xbf16> to vector<3x892xbf16>
    %c69_134 = arith.constant 69 : index
    %c0_135 = arith.constant 0 : index
    %177 = vector.load %arg15[%c69_134, %c0_135] : memref<75x892xbf16, #tpu.memory_space<vmem>>, vector<3x892xbf16>
    tpu.vector_store %arg15[%c69_134, %c0_135], %176 {strides = array<i32>} : memref<75x892xbf16, #tpu.memory_space<vmem>>, vector<3x892xbf16>,
    %178 = vector.extract_strided_slice %129 {offsets = [0, 132], sizes = [3, 892], strides = [1, 1]} : vector<3x1024xbf16> to vector<3x892xbf16>
    %c72_136 = arith.constant 72 : index
    %c0_137 = arith.constant 0 : index
    %179 = vector.load %arg15[%c72_136, %c0_137] : memref<75x892xbf16, #tpu.memory_space<vmem>>, vector<3x892xbf16>
    tpu.vector_store %arg15[%c72_136, %c0_137], %178 {strides = array<i32>} : memref<75x892xbf16, #tpu.memory_space<vmem>>, vector<3x892xbf16>,
    %c0_138 = arith.constant 0 : index
    %c0_139 = arith.constant 0 : index
    %180 = vector.load %arg15[%c0_138, %c0_139] : memref<75x892xbf16, #tpu.memory_space<vmem>>, vector<75x892xbf16>
    %cst_140 = arith.constant dense<0.000000e+00> : vector<6x892xf32>
    %181 = tpu.matmul %0, %180, %cst_140 {dimension_numbers = #tpu.dot_dimension_numbers<[1], [0], [0], [1], [0, 0, 1, 1], [], []>} : vector<6x75xbf16>, vector<75x892xbf16>, vector<6x892xf32> -> vector<6x892xf32>
    %182 = arith.truncf %181 : vector<6x892xf32> to vector<6x892xbf16>
    %cst_141 = arith.constant dense<0.000000e+00> : vector<6x196xf32>
    %183 = tpu.matmul %182, %2, %cst_141 {dimension_numbers = #tpu.dot_dimension_numbers<[1], [0], [0], [1], [0, 0, 1, 1], [], []>} : vector<6x892xbf16>, vector<892x196xbf16>, vector<6x196xf32> -> vector<6x196xf32>
    %184 = vector.broadcast %1 : vector<6x1xf32> to vector<6x196xf32>
    %185 = arith.addf %183, %184 : vector<6x196xf32>
    %186 = arith.truncf %185 : vector<6x196xf32> to vector<6x196xbf16>
    %187 = vector.extract_strided_slice %186 {offsets = [0, 0], sizes = [6, 136], strides = [1, 1]} : vector<6x196xbf16> to vector<6x136xbf16>
    %c0_142 = arith.constant 0 : index
    %c0_143 = arith.constant 0 : index
    %188 = vector.load %arg16[%c0_142, %c0_143] : memref<150x136xbf16, #tpu.memory_space<vmem>>, vector<6x136xbf16>
    tpu.vector_store %arg16[%c0_142, %c0_143], %187 {strides = array<i32>} : memref<150x136xbf16, #tpu.memory_space<vmem>>, vector<6x136xbf16>,
    %189 = vector.extract_strided_slice %186 {offsets = [0, 1], sizes = [6, 136], strides = [1, 1]} : vector<6x196xbf16> to vector<6x136xbf16>
    %c6_144 = arith.constant 6 : index
    %c0_145 = arith.constant 0 : index
    %190 = vector.load %arg16[%c6_144, %c0_145] : memref<150x136xbf16, #tpu.memory_space<vmem>>, vector<6x136xbf16>
    tpu.vector_store %arg16[%c6_144, %c0_145], %189 {strides = array<i32>} : memref<150x136xbf16, #tpu.memory_space<vmem>>, vector<6x136xbf16>,
    %191 = vector.extract_strided_slice %186 {offsets = [0, 2], sizes = [6, 136], strides = [1, 1]} : vector<6x196xbf16> to vector<6x136xbf16>
    %c12_146 = arith.constant 12 : index
    %c0_147 = arith.constant 0 : index
    %192 = vector.load %arg16[%c12_146, %c0_147] : memref<150x136xbf16, #tpu.memory_space<vmem>>, vector<6x136xbf16>
    tpu.vector_store %arg16[%c12_146, %c0_147], %191 {strides = array<i32>} : memref<150x136xbf16, #tpu.memory_space<vmem>>, vector<6x136xbf16>,
    %193 = vector.extract_strided_slice %186 {offsets = [0, 3], sizes = [6, 136], strides = [1, 1]} : vector<6x196xbf16> to vector<6x136xbf16>
    %c18_148 = arith.constant 18 : index
    %c0_149 = arith.constant 0 : index
    %194 = vector.load %arg16[%c18_148, %c0_149] : memref<150x136xbf16, #tpu.memory_space<vmem>>, vector<6x136xbf16>
    tpu.vector_store %arg16[%c18_148, %c0_149], %193 {strides = array<i32>} : memref<150x136xbf16, #tpu.memory_space<vmem>>, vector<6x136xbf16>,
    %195 = vector.extract_strided_slice %186 {offsets = [0, 4], sizes = [6, 136], strides = [1, 1]} : vector<6x196xbf16> to vector<6x136xbf16>
    %c24_150 = arith.constant 24 : index
    %c0_151 = arith.constant 0 : index
    %196 = vector.load %arg16[%c24_150, %c0_151] : memref<150x136xbf16, #tpu.memory_space<vmem>>, vector<6x136xbf16>
    tpu.vector_store %arg16[%c24_150, %c0_151], %195 {strides = array<i32>} : memref<150x136xbf16, #tpu.memory_space<vmem>>, vector<6x136xbf16>,
    %197 = vector.extract_strided_slice %186 {offsets = [0, 14], sizes = [6, 136], strides = [1, 1]} : vector<6x196xbf16> to vector<6x136xbf16>
    %c30_152 = arith.constant 30 : index
    %c0_153 = arith.constant 0 : index
    %198 = vector.load %arg16[%c30_152, %c0_153] : memref<150x136xbf16, #tpu.memory_space<vmem>>, vector<6x136xbf16>
    tpu.vector_store %arg16[%c30_152, %c0_153], %197 {strides = array<i32>} : memref<150x136xbf16, #tpu.memory_space<vmem>>, vector<6x136xbf16>,
    %199 = vector.extract_strided_slice %186 {offsets = [0, 15], sizes = [6, 136], strides = [1, 1]} : vector<6x196xbf16> to vector<6x136xbf16>
    %c36_154 = arith.constant 36 : index
    %c0_155 = arith.constant 0 : index
    %200 = vector.load %arg16[%c36_154, %c0_155] : memref<150x136xbf16, #tpu.memory_space<vmem>>, vector<6x136xbf16>
    tpu.vector_store %arg16[%c36_154, %c0_155], %199 {strides = array<i32>} : memref<150x136xbf16, #tpu.memory_space<vmem>>, vector<6x136xbf16>,
    %201 = vector.extract_strided_slice %186 {offsets = [0, 16], sizes = [6, 136], strides = [1, 1]} : vector<6x196xbf16> to vector<6x136xbf16>
    %c42_156 = arith.constant 42 : index
    %c0_157 = arith.constant 0 : index
    %202 = vector.load %arg16[%c42_156, %c0_157] : memref<150x136xbf16, #tpu.memory_space<vmem>>, vector<6x136xbf16>
    tpu.vector_store %arg16[%c42_156, %c0_157], %201 {strides = array<i32>} : memref<150x136xbf16, #tpu.memory_space<vmem>>, vector<6x136xbf16>,
    %203 = vector.extract_strided_slice %186 {offsets = [0, 17], sizes = [6, 136], strides = [1, 1]} : vector<6x196xbf16> to vector<6x136xbf16>
    %c48_158 = arith.constant 48 : index
    %c0_159 = arith.constant 0 : index
    %204 = vector.load %arg16[%c48_158, %c0_159] : memref<150x136xbf16, #tpu.memory_space<vmem>>, vector<6x136xbf16>
    tpu.vector_store %arg16[%c48_158, %c0_159], %203 {strides = array<i32>} : memref<150x136xbf16, #tpu.memory_space<vmem>>, vector<6x136xbf16>,
    %205 = vector.extract_strided_slice %186 {offsets = [0, 18], sizes = [6, 136], strides = [1, 1]} : vector<6x196xbf16> to vector<6x136xbf16>
    %c54_160 = arith.constant 54 : index
    %c0_161 = arith.constant 0 : index
    %206 = vector.load %arg16[%c54_160, %c0_161] : memref<150x136xbf16, #tpu.memory_space<vmem>>, vector<6x136xbf16>
    tpu.vector_store %arg16[%c54_160, %c0_161], %205 {strides = array<i32>} : memref<150x136xbf16, #tpu.memory_space<vmem>>, vector<6x136xbf16>,
    %207 = vector.extract_strided_slice %186 {offsets = [0, 28], sizes = [6, 136], strides = [1, 1]} : vector<6x196xbf16> to vector<6x136xbf16>
    %c60_162 = arith.constant 60 : index
    %c0_163 = arith.constant 0 : index
    %208 = vector.load %arg16[%c60_162, %c0_163] : memref<150x136xbf16, #tpu.memory_space<vmem>>, vector<6x136xbf16>
    tpu.vector_store %arg16[%c60_162, %c0_163], %207 {strides = array<i32>} : memref<150x136xbf16, #tpu.memory_space<vmem>>, vector<6x136xbf16>,
    %209 = vector.extract_strided_slice %186 {offsets = [0, 29], sizes = [6, 136], strides = [1, 1]} : vector<6x196xbf16> to vector<6x136xbf16>
    %c66_164 = arith.constant 66 : index
    %c0_165 = arith.constant 0 : index
    %210 = vector.load %arg16[%c66_164, %c0_165] : memref<150x136xbf16, #tpu.memory_space<vmem>>, vector<6x136xbf16>
    tpu.vector_store %arg16[%c66_164, %c0_165], %209 {strides = array<i32>} : memref<150x136xbf16, #tpu.memory_space<vmem>>, vector<6x136xbf16>,
    %211 = vector.extract_strided_slice %186 {offsets = [0, 30], sizes = [6, 136], strides = [1, 1]} : vector<6x196xbf16> to vector<6x136xbf16>
    %c72_166 = arith.constant 72 : index
    %c0_167 = arith.constant 0 : index
    %212 = vector.load %arg16[%c72_166, %c0_167] : memref<150x136xbf16, #tpu.memory_space<vmem>>, vector<6x136xbf16>
    tpu.vector_store %arg16[%c72_166, %c0_167], %211 {strides = array<i32>} : memref<150x136xbf16, #tpu.memory_space<vmem>>, vector<6x136xbf16>,
    %213 = vector.extract_strided_slice %186 {offsets = [0, 31], sizes = [6, 136], strides = [1, 1]} : vector<6x196xbf16> to vector<6x136xbf16>
    %c78_168 = arith.constant 78 : index
    %c0_169 = arith.constant 0 : index
    %214 = vector.load %arg16[%c78_168, %c0_169] : memref<150x136xbf16, #tpu.memory_space<vmem>>, vector<6x136xbf16>
    tpu.vector_store %arg16[%c78_168, %c0_169], %213 {strides = array<i32>} : memref<150x136xbf16, #tpu.memory_space<vmem>>, vector<6x136xbf16>,
    %215 = vector.extract_strided_slice %186 {offsets = [0, 32], sizes = [6, 136], strides = [1, 1]} : vector<6x196xbf16> to vector<6x136xbf16>
    %c84_170 = arith.constant 84 : index
    %c0_171 = arith.constant 0 : index
    %216 = vector.load %arg16[%c84_170, %c0_171] : memref<150x136xbf16, #tpu.memory_space<vmem>>, vector<6x136xbf16>
    tpu.vector_store %arg16[%c84_170, %c0_171], %215 {strides = array<i32>} : memref<150x136xbf16, #tpu.memory_space<vmem>>, vector<6x136xbf16>,
    %217 = vector.extract_strided_slice %186 {offsets = [0, 42], sizes = [6, 136], strides = [1, 1]} : vector<6x196xbf16> to vector<6x136xbf16>
    %c90_172 = arith.constant 90 : index
    %c0_173 = arith.constant 0 : index
    %218 = vector.load %arg16[%c90_172, %c0_173] : memref<150x136xbf16, #tpu.memory_space<vmem>>, vector<6x136xbf16>
    tpu.vector_store %arg16[%c90_172, %c0_173], %217 {strides = array<i32>} : memref<150x136xbf16, #tpu.memory_space<vmem>>, vector<6x136xbf16>,
    %219 = vector.extract_strided_slice %186 {offsets = [0, 43], sizes = [6, 136], strides = [1, 1]} : vector<6x196xbf16> to vector<6x136xbf16>
    %c96_174 = arith.constant 96 : index
    %c0_175 = arith.constant 0 : index
    %220 = vector.load %arg16[%c96_174, %c0_175] : memref<150x136xbf16, #tpu.memory_space<vmem>>, vector<6x136xbf16>
    tpu.vector_store %arg16[%c96_174, %c0_175], %219 {strides = array<i32>} : memref<150x136xbf16, #tpu.memory_space<vmem>>, vector<6x136xbf16>,
    %221 = vector.extract_strided_slice %186 {offsets = [0, 44], sizes = [6, 136], strides = [1, 1]} : vector<6x196xbf16> to vector<6x136xbf16>
    %c102_176 = arith.constant 102 : index
    %c0_177 = arith.constant 0 : index
    %222 = vector.load %arg16[%c102_176, %c0_177] : memref<150x136xbf16, #tpu.memory_space<vmem>>, vector<6x136xbf16>
    tpu.vector_store %arg16[%c102_176, %c0_177], %221 {strides = array<i32>} : memref<150x136xbf16, #tpu.memory_space<vmem>>, vector<6x136xbf16>,
    %223 = vector.extract_strided_slice %186 {offsets = [0, 45], sizes = [6, 136], strides = [1, 1]} : vector<6x196xbf16> to vector<6x136xbf16>
    %c108_178 = arith.constant 108 : index
    %c0_179 = arith.constant 0 : index
    %224 = vector.load %arg16[%c108_178, %c0_179] : memref<150x136xbf16, #tpu.memory_space<vmem>>, vector<6x136xbf16>
    tpu.vector_store %arg16[%c108_178, %c0_179], %223 {strides = array<i32>} : memref<150x136xbf16, #tpu.memory_space<vmem>>, vector<6x136xbf16>,
    %225 = vector.extract_strided_slice %186 {offsets = [0, 46], sizes = [6, 136], strides = [1, 1]} : vector<6x196xbf16> to vector<6x136xbf16>
    %c114_180 = arith.constant 114 : index
    %c0_181 = arith.constant 0 : index
    %226 = vector.load %arg16[%c114_180, %c0_181] : memref<150x136xbf16, #tpu.memory_space<vmem>>, vector<6x136xbf16>
    tpu.vector_store %arg16[%c114_180, %c0_181], %225 {strides = array<i32>} : memref<150x136xbf16, #tpu.memory_space<vmem>>, vector<6x136xbf16>,
    %227 = vector.extract_strided_slice %186 {offsets = [0, 56], sizes = [6, 136], strides = [1, 1]} : vector<6x196xbf16> to vector<6x136xbf16>
    %c120_182 = arith.constant 120 : index
    %c0_183 = arith.constant 0 : index
    %228 = vector.load %arg16[%c120_182, %c0_183] : memref<150x136xbf16, #tpu.memory_space<vmem>>, vector<6x136xbf16>
    tpu.vector_store %arg16[%c120_182, %c0_183], %227 {strides = array<i32>} : memref<150x136xbf16, #tpu.memory_space<vmem>>, vector<6x136xbf16>,
    %229 = vector.extract_strided_slice %186 {offsets = [0, 57], sizes = [6, 136], strides = [1, 1]} : vector<6x196xbf16> to vector<6x136xbf16>
    %c126_184 = arith.constant 126 : index
    %c0_185 = arith.constant 0 : index
    %230 = vector.load %arg16[%c126_184, %c0_185] : memref<150x136xbf16, #tpu.memory_space<vmem>>, vector<6x136xbf16>
    tpu.vector_store %arg16[%c126_184, %c0_185], %229 {strides = array<i32>} : memref<150x136xbf16, #tpu.memory_space<vmem>>, vector<6x136xbf16>,
    %231 = vector.extract_strided_slice %186 {offsets = [0, 58], sizes = [6, 136], strides = [1, 1]} : vector<6x196xbf16> to vector<6x136xbf16>
    %c132_186 = arith.constant 132 : index
    %c0_187 = arith.constant 0 : index
    %232 = vector.load %arg16[%c132_186, %c0_187] : memref<150x136xbf16, #tpu.memory_space<vmem>>, vector<6x136xbf16>
    tpu.vector_store %arg16[%c132_186, %c0_187], %231 {strides = array<i32>} : memref<150x136xbf16, #tpu.memory_space<vmem>>, vector<6x136xbf16>,
    %233 = vector.extract_strided_slice %186 {offsets = [0, 59], sizes = [6, 136], strides = [1, 1]} : vector<6x196xbf16> to vector<6x136xbf16>
    %c138_188 = arith.constant 138 : index
    %c0_189 = arith.constant 0 : index
    %234 = vector.load %arg16[%c138_188, %c0_189] : memref<150x136xbf16, #tpu.memory_space<vmem>>, vector<6x136xbf16>
    tpu.vector_store %arg16[%c138_188, %c0_189], %233 {strides = array<i32>} : memref<150x136xbf16, #tpu.memory_space<vmem>>, vector<6x136xbf16>,
    %235 = vector.extract_strided_slice %186 {offsets = [0, 60], sizes = [6, 136], strides = [1, 1]} : vector<6x196xbf16> to vector<6x136xbf16>
    %c144_190 = arith.constant 144 : index
    %c0_191 = arith.constant 0 : index
    %236 = vector.load %arg16[%c144_190, %c0_191] : memref<150x136xbf16, #tpu.memory_space<vmem>>, vector<6x136xbf16>
    tpu.vector_store %arg16[%c144_190, %c0_191], %235 {strides = array<i32>} : memref<150x136xbf16, #tpu.memory_space<vmem>>, vector<6x136xbf16>,
    %c0_192 = arith.constant 0 : index
    %c0_193 = arith.constant 0 : index
    %237 = vector.load %arg16[%c0_192, %c0_193] : memref<150x136xbf16, #tpu.memory_space<vmem>>, vector<150x136xbf16>
    %cst_194 = arith.constant dense<0.000000e+00> : vector<16x136xf32>
    %238 = tpu.matmul %3, %237, %cst_194 {dimension_numbers = #tpu.dot_dimension_numbers<[1], [0], [0], [1], [0, 0, 1, 1], [], []>} : vector<16x150xbf16>, vector<150x136xbf16>, vector<16x136xf32> -> vector<16x136xf32>
    %239 = arith.truncf %238 : vector<16x136xf32> to vector<16x136xbf16>
    %cst_195 = arith.constant dense<0.000000e+00> : vector<16x25xf32>
    %240 = tpu.matmul %239, %5, %cst_195 {dimension_numbers = #tpu.dot_dimension_numbers<[1], [0], [0], [1], [0, 0, 1, 1], [], []>} : vector<16x136xbf16>, vector<136x25xbf16>, vector<16x25xf32> -> vector<16x25xf32>
    %241 = vector.broadcast %4 : vector<16x1xf32> to vector<16x25xf32>
    %242 = arith.addf %240, %241 : vector<16x25xf32>
    %243 = arith.truncf %242 : vector<16x25xf32> to vector<16x25xbf16>
    %244 = arith.index_cast %c1_i32 : i32 to index
    %c0_196 = arith.constant 0 : index
    %c0_197 = arith.constant 0 : index
    %245 = vector.load %arg17[%244, %c0_196, %c0_197] : memref<2x16x25xbf16, #tpu.memory_space<vmem>>, vector<1x16x25xbf16>
    %246 = vector.shape_cast %245 : vector<1x16x25xbf16> to vector<16x25xbf16>
    %247 = vector.shape_cast %243 : vector<16x25xbf16> to vector<1x16x25xbf16>
    tpu.vector_store %arg17[%244, %c0_196, %c0_197], %247 {strides = array<i32>} : memref<2x16x25xbf16, #tpu.memory_space<vmem>>, vector<1x16x25xbf16>,
    %c2_i32 = arith.constant 2 : i32
    %c0_198 = arith.constant 0 : index
    %c0_199 = arith.constant 0 : index
    %c0_200 = arith.constant 0 : index
    %248 = vector.load %arg17[%c0_198, %c0_199, %c0_200] : memref<2x16x25xbf16, #tpu.memory_space<vmem>>, vector<2x16x25xbf16>
    %cst_201 = arith.constant 0.000000e+00 : f32
    %249 = vector.broadcast %cst_201 : f32 to vector<2x120xf32>
    %250 = vector.extract_strided_slice %248 {offsets = [0, 0, 0], sizes = [2, 1, 25], strides = [1, 1, 1]} : vector<2x16x25xbf16> to vector<2x1x25xbf16>
    %251 = vector.shape_cast %250 : vector<2x1x25xbf16> to vector<2x25xbf16>
    %c0_202 = arith.constant 0 : index
    %c0_203 = arith.constant 0 : index
    %c0_204 = arith.constant 0 : index
    %252 = vector.load %arg8[%c0_202, %c0_203, %c0_204] : memref<16x25x120xbf16, #tpu.memory_space<vmem>>, vector<1x25x120xbf16>
    %253 = vector.shape_cast %252 : vector<1x25x120xbf16> to vector<25x120xbf16>
    %cst_205 = arith.constant dense<0.000000e+00> : vector<2x120xf32>
    %254 = tpu.matmul %251, %253, %cst_205 {dimension_numbers = #tpu.dot_dimension_numbers<[1], [0], [0], [1], [0, 0, 1, 1], [], []>} : vector<2x25xbf16>, vector<25x120xbf16>, vector<2x120xf32> -> vector<2x120xf32>
    %255 = arith.addf %249, %254 : vector<2x120xf32>
    %256 = vector.extract_strided_slice %248 {offsets = [0, 1, 0], sizes = [2, 1, 25], strides = [1, 1, 1]} : vector<2x16x25xbf16> to vector<2x1x25xbf16>
    %257 = vector.shape_cast %256 : vector<2x1x25xbf16> to vector<2x25xbf16>
    %c1 = arith.constant 1 : index
    %c0_206 = arith.constant 0 : index
    %c0_207 = arith.constant 0 : index
    %258 = vector.load %arg8[%c1, %c0_206, %c0_207] : memref<16x25x120xbf16, #tpu.memory_space<vmem>>, vector<1x25x120xbf16>
    %259 = vector.shape_cast %258 : vector<1x25x120xbf16> to vector<25x120xbf16>
    %cst_208 = arith.constant dense<0.000000e+00> : vector<2x120xf32>
    %260 = tpu.matmul %257, %259, %cst_208 {dimension_numbers = #tpu.dot_dimension_numbers<[1], [0], [0], [1], [0, 0, 1, 1], [], []>} : vector<2x25xbf16>, vector<25x120xbf16>, vector<2x120xf32> -> vector<2x120xf32>
    %261 = arith.addf %255, %260 : vector<2x120xf32>
    %262 = vector.extract_strided_slice %248 {offsets = [0, 2, 0], sizes = [2, 1, 25], strides = [1, 1, 1]} : vector<2x16x25xbf16> to vector<2x1x25xbf16>
    %263 = vector.shape_cast %262 : vector<2x1x25xbf16> to vector<2x25xbf16>
    %c2 = arith.constant 2 : index
    %c0_209 = arith.constant 0 : index
    %c0_210 = arith.constant 0 : index
    %264 = vector.load %arg8[%c2, %c0_209, %c0_210] : memref<16x25x120xbf16, #tpu.memory_space<vmem>>, vector<1x25x120xbf16>
    %265 = vector.shape_cast %264 : vector<1x25x120xbf16> to vector<25x120xbf16>
    %cst_211 = arith.constant dense<0.000000e+00> : vector<2x120xf32>
    %266 = tpu.matmul %263, %265, %cst_211 {dimension_numbers = #tpu.dot_dimension_numbers<[1], [0], [0], [1], [0, 0, 1, 1], [], []>} : vector<2x25xbf16>, vector<25x120xbf16>, vector<2x120xf32> -> vector<2x120xf32>
    %267 = arith.addf %261, %266 : vector<2x120xf32>
    %268 = vector.extract_strided_slice %248 {offsets = [0, 3, 0], sizes = [2, 1, 25], strides = [1, 1, 1]} : vector<2x16x25xbf16> to vector<2x1x25xbf16>
    %269 = vector.shape_cast %268 : vector<2x1x25xbf16> to vector<2x25xbf16>
    %c3_212 = arith.constant 3 : index
    %c0_213 = arith.constant 0 : index
    %c0_214 = arith.constant 0 : index
    %270 = vector.load %arg8[%c3_212, %c0_213, %c0_214] : memref<16x25x120xbf16, #tpu.memory_space<vmem>>, vector<1x25x120xbf16>
    %271 = vector.shape_cast %270 : vector<1x25x120xbf16> to vector<25x120xbf16>
    %cst_215 = arith.constant dense<0.000000e+00> : vector<2x120xf32>
    %272 = tpu.matmul %269, %271, %cst_215 {dimension_numbers = #tpu.dot_dimension_numbers<[1], [0], [0], [1], [0, 0, 1, 1], [], []>} : vector<2x25xbf16>, vector<25x120xbf16>, vector<2x120xf32> -> vector<2x120xf32>
    %273 = arith.addf %267, %272 : vector<2x120xf32>
    %274 = vector.extract_strided_slice %248 {offsets = [0, 4, 0], sizes = [2, 1, 25], strides = [1, 1, 1]} : vector<2x16x25xbf16> to vector<2x1x25xbf16>
    %275 = vector.shape_cast %274 : vector<2x1x25xbf16> to vector<2x25xbf16>
    %c4 = arith.constant 4 : index
    %c0_216 = arith.constant 0 : index
    %c0_217 = arith.constant 0 : index
    %276 = vector.load %arg8[%c4, %c0_216, %c0_217] : memref<16x25x120xbf16, #tpu.memory_space<vmem>>, vector<1x25x120xbf16>
    %277 = vector.shape_cast %276 : vector<1x25x120xbf16> to vector<25x120xbf16>
    %cst_218 = arith.constant dense<0.000000e+00> : vector<2x120xf32>
    %278 = tpu.matmul %275, %277, %cst_218 {dimension_numbers = #tpu.dot_dimension_numbers<[1], [0], [0], [1], [0, 0, 1, 1], [], []>} : vector<2x25xbf16>, vector<25x120xbf16>, vector<2x120xf32> -> vector<2x120xf32>
    %279 = arith.addf %273, %278 : vector<2x120xf32>
    %280 = vector.extract_strided_slice %248 {offsets = [0, 5, 0], sizes = [2, 1, 25], strides = [1, 1, 1]} : vector<2x16x25xbf16> to vector<2x1x25xbf16>
    %281 = vector.shape_cast %280 : vector<2x1x25xbf16> to vector<2x25xbf16>
    %c5 = arith.constant 5 : index
    %c0_219 = arith.constant 0 : index
    %c0_220 = arith.constant 0 : index
    %282 = vector.load %arg8[%c5, %c0_219, %c0_220] : memref<16x25x120xbf16, #tpu.memory_space<vmem>>, vector<1x25x120xbf16>
    %283 = vector.shape_cast %282 : vector<1x25x120xbf16> to vector<25x120xbf16>
    %cst_221 = arith.constant dense<0.000000e+00> : vector<2x120xf32>
    %284 = tpu.matmul %281, %283, %cst_221 {dimension_numbers = #tpu.dot_dimension_numbers<[1], [0], [0], [1], [0, 0, 1, 1], [], []>} : vector<2x25xbf16>, vector<25x120xbf16>, vector<2x120xf32> -> vector<2x120xf32>
    %285 = arith.addf %279, %284 : vector<2x120xf32>
    %286 = vector.extract_strided_slice %248 {offsets = [0, 6, 0], sizes = [2, 1, 25], strides = [1, 1, 1]} : vector<2x16x25xbf16> to vector<2x1x25xbf16>
    %287 = vector.shape_cast %286 : vector<2x1x25xbf16> to vector<2x25xbf16>
    %c6_222 = arith.constant 6 : index
    %c0_223 = arith.constant 0 : index
    %c0_224 = arith.constant 0 : index
    %288 = vector.load %arg8[%c6_222, %c0_223, %c0_224] : memref<16x25x120xbf16, #tpu.memory_space<vmem>>, vector<1x25x120xbf16>
    %289 = vector.shape_cast %288 : vector<1x25x120xbf16> to vector<25x120xbf16>
    %cst_225 = arith.constant dense<0.000000e+00> : vector<2x120xf32>
    %290 = tpu.matmul %287, %289, %cst_225 {dimension_numbers = #tpu.dot_dimension_numbers<[1], [0], [0], [1], [0, 0, 1, 1], [], []>} : vector<2x25xbf16>, vector<25x120xbf16>, vector<2x120xf32> -> vector<2x120xf32>
    %291 = arith.addf %285, %290 : vector<2x120xf32>
    %292 = vector.extract_strided_slice %248 {offsets = [0, 7, 0], sizes = [2, 1, 25], strides = [1, 1, 1]} : vector<2x16x25xbf16> to vector<2x1x25xbf16>
    %293 = vector.shape_cast %292 : vector<2x1x25xbf16> to vector<2x25xbf16>
    %c7 = arith.constant 7 : index
    %c0_226 = arith.constant 0 : index
    %c0_227 = arith.constant 0 : index
    %294 = vector.load %arg8[%c7, %c0_226, %c0_227] : memref<16x25x120xbf16, #tpu.memory_space<vmem>>, vector<1x25x120xbf16>
    %295 = vector.shape_cast %294 : vector<1x25x120xbf16> to vector<25x120xbf16>
    %cst_228 = arith.constant dense<0.000000e+00> : vector<2x120xf32>
    %296 = tpu.matmul %293, %295, %cst_228 {dimension_numbers = #tpu.dot_dimension_numbers<[1], [0], [0], [1], [0, 0, 1, 1], [], []>} : vector<2x25xbf16>, vector<25x120xbf16>, vector<2x120xf32> -> vector<2x120xf32>
    %297 = arith.addf %291, %296 : vector<2x120xf32>
    %298 = vector.extract_strided_slice %248 {offsets = [0, 8, 0], sizes = [2, 1, 25], strides = [1, 1, 1]} : vector<2x16x25xbf16> to vector<2x1x25xbf16>
    %299 = vector.shape_cast %298 : vector<2x1x25xbf16> to vector<2x25xbf16>
    %c8 = arith.constant 8 : index
    %c0_229 = arith.constant 0 : index
    %c0_230 = arith.constant 0 : index
    %300 = vector.load %arg8[%c8, %c0_229, %c0_230] : memref<16x25x120xbf16, #tpu.memory_space<vmem>>, vector<1x25x120xbf16>
    %301 = vector.shape_cast %300 : vector<1x25x120xbf16> to vector<25x120xbf16>
    %cst_231 = arith.constant dense<0.000000e+00> : vector<2x120xf32>
    %302 = tpu.matmul %299, %301, %cst_231 {dimension_numbers = #tpu.dot_dimension_numbers<[1], [0], [0], [1], [0, 0, 1, 1], [], []>} : vector<2x25xbf16>, vector<25x120xbf16>, vector<2x120xf32> -> vector<2x120xf32>
    %303 = arith.addf %297, %302 : vector<2x120xf32>
    %304 = vector.extract_strided_slice %248 {offsets = [0, 9, 0], sizes = [2, 1, 25], strides = [1, 1, 1]} : vector<2x16x25xbf16> to vector<2x1x25xbf16>
    %305 = vector.shape_cast %304 : vector<2x1x25xbf16> to vector<2x25xbf16>
    %c9_232 = arith.constant 9 : index
    %c0_233 = arith.constant 0 : index
    %c0_234 = arith.constant 0 : index
    %306 = vector.load %arg8[%c9_232, %c0_233, %c0_234] : memref<16x25x120xbf16, #tpu.memory_space<vmem>>, vector<1x25x120xbf16>
    %307 = vector.shape_cast %306 : vector<1x25x120xbf16> to vector<25x120xbf16>
    %cst_235 = arith.constant dense<0.000000e+00> : vector<2x120xf32>
    %308 = tpu.matmul %305, %307, %cst_235 {dimension_numbers = #tpu.dot_dimension_numbers<[1], [0], [0], [1], [0, 0, 1, 1], [], []>} : vector<2x25xbf16>, vector<25x120xbf16>, vector<2x120xf32> -> vector<2x120xf32>
    %309 = arith.addf %303, %308 : vector<2x120xf32>
    %310 = vector.extract_strided_slice %248 {offsets = [0, 10, 0], sizes = [2, 1, 25], strides = [1, 1, 1]} : vector<2x16x25xbf16> to vector<2x1x25xbf16>
    %311 = vector.shape_cast %310 : vector<2x1x25xbf16> to vector<2x25xbf16>
    %c10 = arith.constant 10 : index
    %c0_236 = arith.constant 0 : index
    %c0_237 = arith.constant 0 : index
    %312 = vector.load %arg8[%c10, %c0_236, %c0_237] : memref<16x25x120xbf16, #tpu.memory_space<vmem>>, vector<1x25x120xbf16>
    %313 = vector.shape_cast %312 : vector<1x25x120xbf16> to vector<25x120xbf16>
    %cst_238 = arith.constant dense<0.000000e+00> : vector<2x120xf32>
    %314 = tpu.matmul %311, %313, %cst_238 {dimension_numbers = #tpu.dot_dimension_numbers<[1], [0], [0], [1], [0, 0, 1, 1], [], []>} : vector<2x25xbf16>, vector<25x120xbf16>, vector<2x120xf32> -> vector<2x120xf32>
    %315 = arith.addf %309, %314 : vector<2x120xf32>
    %316 = vector.extract_strided_slice %248 {offsets = [0, 11, 0], sizes = [2, 1, 25], strides = [1, 1, 1]} : vector<2x16x25xbf16> to vector<2x1x25xbf16>
    %317 = vector.shape_cast %316 : vector<2x1x25xbf16> to vector<2x25xbf16>
    %c11 = arith.constant 11 : index
    %c0_239 = arith.constant 0 : index
    %c0_240 = arith.constant 0 : index
    %318 = vector.load %arg8[%c11, %c0_239, %c0_240] : memref<16x25x120xbf16, #tpu.memory_space<vmem>>, vector<1x25x120xbf16>
    %319 = vector.shape_cast %318 : vector<1x25x120xbf16> to vector<25x120xbf16>
    %cst_241 = arith.constant dense<0.000000e+00> : vector<2x120xf32>
    %320 = tpu.matmul %317, %319, %cst_241 {dimension_numbers = #tpu.dot_dimension_numbers<[1], [0], [0], [1], [0, 0, 1, 1], [], []>} : vector<2x25xbf16>, vector<25x120xbf16>, vector<2x120xf32> -> vector<2x120xf32>
    %321 = arith.addf %315, %320 : vector<2x120xf32>
    %322 = vector.extract_strided_slice %248 {offsets = [0, 12, 0], sizes = [2, 1, 25], strides = [1, 1, 1]} : vector<2x16x25xbf16> to vector<2x1x25xbf16>
    %323 = vector.shape_cast %322 : vector<2x1x25xbf16> to vector<2x25xbf16>
    %c12_242 = arith.constant 12 : index
    %c0_243 = arith.constant 0 : index
    %c0_244 = arith.constant 0 : index
    %324 = vector.load %arg8[%c12_242, %c0_243, %c0_244] : memref<16x25x120xbf16, #tpu.memory_space<vmem>>, vector<1x25x120xbf16>
    %325 = vector.shape_cast %324 : vector<1x25x120xbf16> to vector<25x120xbf16>
    %cst_245 = arith.constant dense<0.000000e+00> : vector<2x120xf32>
    %326 = tpu.matmul %323, %325, %cst_245 {dimension_numbers = #tpu.dot_dimension_numbers<[1], [0], [0], [1], [0, 0, 1, 1], [], []>} : vector<2x25xbf16>, vector<25x120xbf16>, vector<2x120xf32> -> vector<2x120xf32>
    %327 = arith.addf %321, %326 : vector<2x120xf32>
    %328 = vector.extract_strided_slice %248 {offsets = [0, 13, 0], sizes = [2, 1, 25], strides = [1, 1, 1]} : vector<2x16x25xbf16> to vector<2x1x25xbf16>
    %329 = vector.shape_cast %328 : vector<2x1x25xbf16> to vector<2x25xbf16>
    %c13 = arith.constant 13 : index
    %c0_246 = arith.constant 0 : index
    %c0_247 = arith.constant 0 : index
    %330 = vector.load %arg8[%c13, %c0_246, %c0_247] : memref<16x25x120xbf16, #tpu.memory_space<vmem>>, vector<1x25x120xbf16>
    %331 = vector.shape_cast %330 : vector<1x25x120xbf16> to vector<25x120xbf16>
    %cst_248 = arith.constant dense<0.000000e+00> : vector<2x120xf32>
    %332 = tpu.matmul %329, %331, %cst_248 {dimension_numbers = #tpu.dot_dimension_numbers<[1], [0], [0], [1], [0, 0, 1, 1], [], []>} : vector<2x25xbf16>, vector<25x120xbf16>, vector<2x120xf32> -> vector<2x120xf32>
    %333 = arith.addf %327, %332 : vector<2x120xf32>
    %334 = vector.extract_strided_slice %248 {offsets = [0, 14, 0], sizes = [2, 1, 25], strides = [1, 1, 1]} : vector<2x16x25xbf16> to vector<2x1x25xbf16>
    %335 = vector.shape_cast %334 : vector<2x1x25xbf16> to vector<2x25xbf16>
    %c14 = arith.constant 14 : index
    %c0_249 = arith.constant 0 : index
    %c0_250 = arith.constant 0 : index
    %336 = vector.load %arg8[%c14, %c0_249, %c0_250] : memref<16x25x120xbf16, #tpu.memory_space<vmem>>, vector<1x25x120xbf16>
    %337 = vector.shape_cast %336 : vector<1x25x120xbf16> to vector<25x120xbf16>
    %cst_251 = arith.constant dense<0.000000e+00> : vector<2x120xf32>
    %338 = tpu.matmul %335, %337, %cst_251 {dimension_numbers = #tpu.dot_dimension_numbers<[1], [0], [0], [1], [0, 0, 1, 1], [], []>} : vector<2x25xbf16>, vector<25x120xbf16>, vector<2x120xf32> -> vector<2x120xf32>
    %339 = arith.addf %333, %338 : vector<2x120xf32>
    %340 = vector.extract_strided_slice %248 {offsets = [0, 15, 0], sizes = [2, 1, 25], strides = [1, 1, 1]} : vector<2x16x25xbf16> to vector<2x1x25xbf16>
    %341 = vector.shape_cast %340 : vector<2x1x25xbf16> to vector<2x25xbf16>
    %c15_252 = arith.constant 15 : index
    %c0_253 = arith.constant 0 : index
    %c0_254 = arith.constant 0 : index
    %342 = vector.load %arg8[%c15_252, %c0_253, %c0_254] : memref<16x25x120xbf16, #tpu.memory_space<vmem>>, vector<1x25x120xbf16>
    %343 = vector.shape_cast %342 : vector<1x25x120xbf16> to vector<25x120xbf16>
    %cst_255 = arith.constant dense<0.000000e+00> : vector<2x120xf32>
    %344 = tpu.matmul %341, %343, %cst_255 {dimension_numbers = #tpu.dot_dimension_numbers<[1], [0], [0], [1], [0, 0, 1, 1], [], []>} : vector<2x25xbf16>, vector<25x120xbf16>, vector<2x120xf32> -> vector<2x120xf32>
    %345 = arith.addf %339, %344 : vector<2x120xf32>
    %c0_256 = arith.constant 0 : index
    %c0_257 = arith.constant 0 : index
    %346 = vector.load %arg9[%c0_256, %c0_257] : memref<1x120xf32, #tpu.memory_space<vmem>>, vector<1x120xf32>
    %347 = vector.broadcast %346 : vector<1x120xf32> to vector<2x120xf32>
    %348 = arith.addf %345, %347 : vector<2x120xf32>
    %cst_258 = arith.constant 0.000000e+00 : f32
    %349 = vector.broadcast %cst_258 : f32 to vector<2x120xf32>
    %350 = arith.maximumf %348, %349 : vector<2x120xf32>
    %351 = arith.truncf %350 : vector<2x120xf32> to vector<2x120xbf16>
    %c0_259 = arith.constant 0 : index
    %c0_260 = arith.constant 0 : index
    %352 = vector.load %arg10[%c0_259, %c0_260] : memref<120x84xbf16, #tpu.memory_space<vmem>>, vector<120x84xbf16>
    %cst_261 = arith.constant dense<0.000000e+00> : vector<2x84xf32>
    %353 = tpu.matmul %351, %352, %cst_261 {dimension_numbers = #tpu.dot_dimension_numbers<[1], [0], [0], [1], [0, 0, 1, 1], [], []>} : vector<2x120xbf16>, vector<120x84xbf16>, vector<2x84xf32> -> vector<2x84xf32>
    %c0_262 = arith.constant 0 : index
    %c0_263 = arith.constant 0 : index
    %354 = vector.load %arg11[%c0_262, %c0_263] : memref<1x84xf32, #tpu.memory_space<vmem>>, vector<1x84xf32>
    %355 = vector.broadcast %354 : vector<1x84xf32> to vector<2x84xf32>
    %356 = arith.addf %353, %355 : vector<2x84xf32>
    %cst_264 = arith.constant 0.000000e+00 : f32
    %357 = vector.broadcast %cst_264 : f32 to vector<2x84xf32>
    %358 = arith.maximumf %356, %357 : vector<2x84xf32>
    %359 = arith.truncf %358 : vector<2x84xf32> to vector<2x84xbf16>
    %c0_265 = arith.constant 0 : index
    %c0_266 = arith.constant 0 : index
    %360 = vector.load %arg12[%c0_265, %c0_266] : memref<84x10xbf16, #tpu.memory_space<vmem>>, vector<84x10xbf16>
    %cst_267 = arith.constant dense<0.000000e+00> : vector<2x10xf32>
    %361 = tpu.matmul %359, %360, %cst_267 {dimension_numbers = #tpu.dot_dimension_numbers<[1], [0], [0], [1], [0, 0, 1, 1], [], []>} : vector<2x84xbf16>, vector<84x10xbf16>, vector<2x10xf32> -> vector<2x10xf32>
    %c0_268 = arith.constant 0 : index
    %c0_269 = arith.constant 0 : index
    %362 = vector.load %arg13[%c0_268, %c0_269] : memref<1x10xf32, #tpu.memory_space<vmem>>, vector<1x10xf32>
    %363 = vector.broadcast %362 : vector<1x10xf32> to vector<2x10xf32>
    %364 = arith.addf %361, %363 : vector<2x10xf32>
    %c0_270 = arith.constant 0 : index
    %c0_271 = arith.constant 0 : index
    %365 = vector.load %arg14[%c0_270, %c0_271] : memref<2x10xf32, #tpu.memory_space<vmem>>, vector<2x10xf32>
    tpu.vector_store %arg14[%c0_270, %c0_271], %364 {strides = array<i32>} : memref<2x10xf32, #tpu.memory_space<vmem>>, vector<2x10xf32>,
    return
  }
  func.func @transform_0(%arg0: i32) -> (i32, i32, i32) {
    %c0_i32 = arith.constant 0 : i32
    %c0_i32_0 = arith.constant 0 : i32
    %c0_i32_1 = arith.constant 0 : i32
    return %arg0, %c0_i32, %c0_i32_0 : i32, i32, i32
  }
  func.func @transform_1(%arg0: i32) -> (i32, i32) {
    %c0_i32 = arith.constant 0 : i32
    %c0_i32_0 = arith.constant 0 : i32
    %c0_i32_1 = arith.constant 0 : i32
    return %c0_i32, %c0_i32_0 : i32, i32
  }
  func.func @transform_2(%arg0: i32) -> (i32, i32) {
    %c0_i32 = arith.constant 0 : i32
    %c0_i32_0 = arith.constant 0 : i32
    %c0_i32_1 = arith.constant 0 : i32
    return %c0_i32, %c0_i32_0 : i32, i32
  }
  func.func @transform_3(%arg0: i32) -> (i32, i32) {
    %c0_i32 = arith.constant 0 : i32
    %c0_i32_0 = arith.constant 0 : i32
    %c0_i32_1 = arith.constant 0 : i32
    return %c0_i32, %c0_i32_0 : i32, i32
  }
  func.func @transform_4(%arg0: i32) -> (i32, i32) {
    %c0_i32 = arith.constant 0 : i32
    %c0_i32_0 = arith.constant 0 : i32
    %c0_i32_1 = arith.constant 0 : i32
    return %c0_i32, %c0_i32_0 : i32, i32
  }
  func.func @transform_5(%arg0: i32) -> (i32, i32) {
    %c0_i32 = arith.constant 0 : i32
    %c0_i32_0 = arith.constant 0 : i32
    %c0_i32_1 = arith.constant 0 : i32
    return %c0_i32, %c0_i32_0 : i32, i32
  }
  func.func @transform_6(%arg0: i32) -> (i32, i32) {
    %c0_i32 = arith.constant 0 : i32
    %c0_i32_0 = arith.constant 0 : i32
    %c0_i32_1 = arith.constant 0 : i32
    return %c0_i32, %c0_i32_0 : i32, i32
  }
  func.func @transform_7(%arg0: i32) -> (i32, i32, i32) {
    %c0_i32 = arith.constant 0 : i32
    %c0_i32_0 = arith.constant 0 : i32
    %c0_i32_1 = arith.constant 0 : i32
    %c0_i32_2 = arith.constant 0 : i32
    return %c0_i32, %c0_i32_0, %c0_i32_1 : i32, i32, i32
  }
  func.func @transform_8(%arg0: i32) -> (i32, i32) {
    %c0_i32 = arith.constant 0 : i32
    %c0_i32_0 = arith.constant 0 : i32
    %c0_i32_1 = arith.constant 0 : i32
    return %c0_i32, %c0_i32_0 : i32, i32
  }
  func.func @transform_9(%arg0: i32) -> (i32, i32) {
    %c0_i32 = arith.constant 0 : i32
    %c0_i32_0 = arith.constant 0 : i32
    %c0_i32_1 = arith.constant 0 : i32
    return %c0_i32, %c0_i32_0 : i32, i32
  }
  func.func @transform_10(%arg0: i32) -> (i32, i32) {
    %c0_i32 = arith.constant 0 : i32
    %c0_i32_0 = arith.constant 0 : i32
    %c0_i32_1 = arith.constant 0 : i32
    return %c0_i32, %c0_i32_0 : i32, i32
  }
  func.func @transform_11(%arg0: i32) -> (i32, i32) {
    %c0_i32 = arith.constant 0 : i32
    %c0_i32_0 = arith.constant 0 : i32
    %c0_i32_1 = arith.constant 0 : i32
    return %c0_i32, %c0_i32_0 : i32, i32
  }
  func.func @transform_12(%arg0: i32) -> (i32, i32) {
    %c0_i32 = arith.constant 0 : i32
    %c0_i32_0 = arith.constant 0 : i32
    %c0_i32_1 = arith.constant 0 : i32
    return %c0_i32, %c0_i32_0 : i32, i32
  }
  func.func @transform_13(%arg0: i32) -> (i32, i32) {
    %c0_i32 = arith.constant 0 : i32
    %c0_i32_0 = arith.constant 0 : i32
    return %arg0, %c0_i32 : i32, i32
  }
}

</mosaic_0001>

<bundles_post_ra>
// kernel: lenet5_forward.1
= control target key start
LH: loop header
LB: loop body
LE: loop exit
PB: predicated region body
PF: predicated region fallthrough
CT: control target
= control target key end

     0   :  { %s13364_s0 = inlined_call_operand.vmem [shape: bf16[2,3,1024], index: 0, kind: input, shape index: {}]   ;;  %s13365_s1 = inlined_call_operand.vmem [shape: bf16[6,75], index: 1, kind: input, shape index: {}]   ;;  %s13366_s2 = inlined_call_operand.vmem [shape: f32[6,1], index: 2, kind: input, shape index: {}]   ;;  %s13367_s3 = inlined_call_operand.vmem [shape: bf16[892,196], index: 3, kind: input, shape index: {}]   ;;  %s13368_s4 = inlined_call_operand.vmem [shape: bf16[16,150], index: 4, kind: input, shape index: {}]   ;;  %s13369_s5 = inlined_call_operand.vmem [shape: f32[16,1], index: 5, kind: input, shape index: {}]   ;;  %s13370_s6 = inlined_call_operand.vmem [shape: bf16[136,25], index: 6, kind: input, shape index: {}]   ;;  %s13371_s7 = inlined_call_operand.vmem [shape: bf16[16,25,120], index: 7, kind: input, shape index: {}]   ;;  %s13372_s8 = inlined_call_operand.vmem [shape: f32[1,120], index: 8, kind: input, shape index: {}]   ;;  %s13373_s9 = inlined_call_operand.vmem [shape: bf16[120,84], index: 9, kind: input, shape index: {}]   ;;  %s13374_s10 = inlined_call_operand.vmem [shape: f32[1,84], index: 10, kind: input, shape index: {}]   ;;  %s13375_s11 = inlined_call_operand.vmem [shape: bf16[84,10], index: 11, kind: input, shape index: {}]   ;;  %s13376_s12 = inlined_call_operand.vmem [shape: f32[1,10], index: 12, kind: input, shape index: {}]   ;;  %s13377_s13 = inlined_call_operand.hbm [shape: f32[2,10], index: 13, kind: output, shape index: {}]  }
   0x1   :  { %v8631_v0 = vld [vmem:[%s13364_s0] sm:$0xff]  ;;  %v8636_v1 = vld [vmem:[%s13364_s0 + $0x8] sm:$0xff] }
   0x2   :  { %184 = vst [vmem:[#allocation1] ss:$2 sm:$0xff] %v8631_v0 }
   0x3   :  { %187 = vst [vmem:[#allocation1 + $0x10] ss:$2 sm:$0xff] %v8636_v1 }
   0x4   :  { %18 = vsyncpa [#allocation6], 0  ;;  %s13592_s29 = smov 127   ;;  %s8518_s30 = smov 126   ;;  %vm13390_vm0 = vcmask 1041408   ;;  %vm13389_vm2 = vcmask 1045508  }
   0x5   :  { %s8519_s14 = smov 125   ;;  %s13737_s15 = smov 124   ;;  %vm13388_vm1 = vsmask.f32 1280  ;;  %vm200_vm3 = vsmask.f32 5376 }
   0x6   :  { %s13513_s16 = smov 96   ;;  %s13586_s17 = smov 95   ;;  %vm198_vm4 = vmand %vm13390_vm0, %vm13388_vm1  ;;  %vm276_vm7 = vcmask 1042433   ;;  %vm13378_vm8 = vsmask.f32 7942  ;;  %vm279_vm9 = vcmask 1046533  }
   0x7   :  { %s13433_s18 = smov 94   ;;  %s13588_s19 = smov 93   ;;  %vm201_vm5 = vmand %vm13389_vm2, %vm200_vm3  ;;  %vm280_vm10 = vsmask.f32 7958  ;;  %vm13556_vm13 = vcmask 1043456   ;;  %vm13385_vm14 = vcmask 1039360  }
   0x8   :  { %s13435_s20 = smov 92   ;;  %s13590_s21 = smov 64   ;;  %vm8795_vm6 = vmor %vm201_vm5, %vm198_vm4  ;;  %vm13383_vm3 = vcmask 1040384   ;;  %vm367_vm4 = vsmask.f32 256  ;;  %vm369_vm5 = vcmask 1044484  }
   0x9   :  { %v8640_v2 = vld.sshfl [vmem:[#allocation1] sm:$0xff pattern:$0x75643120]  ;;  %v8642_v3 = vld.sshfl [vmem:[#allocation1 + $0x8] sm:$0xff pattern:$0x75643120]  ;;  %vm8817_vm11 = vmand %vm276_vm7, %vm13378_vm8 }
   0xa   :  { %13845 = vst [vmem:[#allocation8_spill] sm:$0xff] %v8642_v3  ;;  %v8645_v4 = vld.sshfl [vmem:[#allocation1 + $0x10] sm:$0xff pattern:$0x75643120]  ;;  %s13578_s22 = smov 63   ;;  %s13429_s23 = smov 62   ;;  %vm281_vm12 = vmand %vm279_vm9, %vm280_vm10 }
   0xb   :  { %217 = vst [vmem:[#allocation1] ss:$2 sm:$0xff] %v8631_v0  ;;  %v8647_v5 = vld.sshfl [vmem:[#allocation1 + $0x18] sm:$0xff pattern:$0x75643120]  ;;  %s13580_s24 = smov 61   ;;  %vm8838_vm15 = vmor %vm281_vm12, %vm8817_vm11 }
   0xc   :  { %13846 = vst [vmem:[#allocation9_spill] sm:$0xff] %v8645_v4  ;;  %s13386_s25 = smov 60   ;;  %s13582_s26 = smov 32   ;;  %vm370_vm10 = vsmask.f32 4352  ;;  %vm8856_vm11 = vmand %vm13383_vm3, %vm367_vm4  ;;  %vm13384_vm8 = vcmask 1031168  }
   0xd   :  { %13847 = vst [vmem:[#allocation10_spill] sm:$0xff] %v8647_v5  ;;  %s13405_s27 = smov 31   ;;  %vm371_vm12 = vmand %vm369_vm5, %vm370_vm10  ;;  %s13572_s28 = smov 30   ;;  %vm13437_vm10 = vcmask 1043458   ;;  %vm498_vm3 = vsmask.f32 7424 }
   0xe   :  { %219 = vst [vmem:[#allocation1 + $0x10] ss:$2 sm:$0xff] %v8636_v1  ;;  %vm8871_vm5 = vmor %vm371_vm12, %vm8856_vm11  ;;  %vm495_vm11 = vsmask.f32 3328  ;;  %vm497_vm12 = vcmask 1047558   ;;  %vm13419_vm1 = vcmask 1014784  }
   0xf   :  { %vm13462_vm2 = vsmask.f32 2304 }
  0x12   :  { %v220_v6 = vld.sshfl [vmem:[#allocation1] sm:$0xff pattern:$0x75643120]  ;;  %v221_v7 = vld.sshfl [vmem:[#allocation1 + $0x8] sm:$0xff pattern:$0x75643120] }
  0x13   :  { %v224_v8 = vshrl.u32 %v220_v6, 16  ;;  %v227_v9 = vshll.u32 %v220_v6, 16  ;;  %297 = vst [vmem:[#allocation1] ss:$2 sm:$0xff] %v8631_v0  ;;  %v231_v10 = vshrl.u32 %v221_v7, 16  ;;  %v234_v11 = vshll.u32 %v221_v7, 16 }
  0x15   :  { %v8651_v12 = vld.sshfl [vmem:[#allocation1 + $0x10] sm:$0xff pattern:$0x75643120]  ;;  %v8653_v13 = vld.sshfl [vmem:[#allocation1 + $0x18] sm:$0xff pattern:$0x75643120] }
  0x16   :  { %13848 = vst [vmem:[#allocation11_spill] sm:$0xff] %v8651_v12  ;;  %v226_v14 = vrot.slane %v224_v8, 6  ;;  %v229_v15 = vrot.slane %v227_v9, 7  ;;  %v233_v16 = vrot.slane %v231_v10, 6  ;;  %v236_v17 = vrot.slane %v234_v11, 7 }
  0x17   :  { %13849 = vst [vmem:[#allocation12_spill] sm:$0xff] %v8653_v13 }
  0x18   :  { %299 = vst [vmem:[#allocation1 + $0x10] ss:$2 sm:$0xff] %v8636_v1  ;;  %v230_v18 = vor.u32 %v229_v15, %v226_v14  ;;  %v237_v19 = vor.u32 %v236_v17, %v233_v16 }
  0x1a   :  { %252 = vrot.lane.b32.xlu2 %v230_v18, %s13592_s29  ;;  %254 = vrot.lane.b32.xlu0 %v237_v19, %s13592_s29  ;;  %v8658_v20 = vld.sshfl [vmem:[#allocation1] sm:$0xff pattern:$0x75643120]  ;;  %v8660_v21 = vld.sshfl [vmem:[#allocation1 + $0x8] sm:$0xff pattern:$0x75643120] }
  0x1b   :  { %v13392_v22 = vrot.slane %v8658_v20, 5  ;;  %387 = vst [vmem:[#allocation1] ss:$2 sm:$0xff] %v8631_v0  ;;  %v13393_v23 = vrot.slane %v8660_v21, 5 }
  0x1d   :  { %v312_v26 = vrot.slane %v13392_v22, 4  ;;  %v313_v27 = vrot.slane %v13393_v23, 4 }
  0x1f   :  { %v8665_v24 = vld.sshfl [vmem:[#allocation1 + $0x10] sm:$0xff pattern:$0x75643120]  ;;  %v8667_v25 = vld.sshfl [vmem:[#allocation1 + $0x18] sm:$0xff pattern:$0x75643120] }
  0x20   :  { %13850 = vst [vmem:[#allocation13_spill] sm:$0xff] %v8665_v24  ;;  %v13381_v28 = vrot.slane %v8665_v24, 5 }
  0x21   :  { %389 = vst [vmem:[#allocation1 + $0x10] ss:$2 sm:$0xff] %v8636_v1 }
  0x22   :  { %324 = vrot.lane.b32.xlu2 %v312_v26, %s8518_s30  ;;  %326 = vrot.lane.b32.xlu0 %v313_v27, %s8518_s30  ;;  %v390_v29 = vld.sshfl [vmem:[#allocation1] sm:$0xff pattern:$0x75643120]  ;;  %v8677_v30 = vld.sshfl [vmem:[#allocation1 + $0x8] sm:$0xff pattern:$0x75643120] }
  0x23   :  { %v394_v31 = vshrl.u32 %v390_v29, 16  ;;  %v397_v32 = vshll.u32 %v390_v29, 16  ;;  %460 = vst [vmem:[#allocation1 + $0x1] ss:$2 sm:$0xff] %v8631_v0  ;;  %v314_v36 = vrot.slane %v13381_v28, 4 }
  0x24   :  { %v376_v28 = vld [vmem:[#allocation2 + $0x24] sm:$0x11] }
  0x25   :  { %v396_v35 = vrot.slane %v394_v31, 7 }
  0x27   :  { %v399_v37 = vor.u32 %v397_v32, %v396_v35 }
  0x28   :  { %v8680_v33 = vld.sshfl [vmem:[#allocation1 + $0x10] sm:$0xff pattern:$0x75643120]  ;;  %v8682_v34 = vld.sshfl [vmem:[#allocation1 + $0x18] sm:$0xff pattern:$0x75643120] }
  0x29   :  { %13851 = vst [vmem:[#allocation14_spill] sm:$0xff] %v8680_v33  ;;  %418 = vrot.lane.b32.xlu1 %v399_v37, %s8519_s14 }
  0x2a   :  { %13852 = vst [vmem:[#allocation15_spill] sm:$0xff] %v8682_v34  ;;  %328 = vrot.lane.b32.xlu2 %v314_v36, %s8518_s30  ;;  %v463_v38 = vld.sshfl [vmem:[#allocation1] sm:$0xff pattern:$0x75643120] }
  0x2b   :  { %462 = vst [vmem:[#allocation1 + $0x11] ss:$2 sm:$0xff] %v8636_v1  ;;  %v465_v39 = vld.sshfl [vmem:[#allocation1 + $0x8] sm:$0xff pattern:$0x75643120] }
  0x2c   :  { %515 = vst [vmem:[#allocation1] ss:$2 sm:$0xff] %v8631_v0 }
  0x31   :  { %471 = vrot.lane.b32.xlu1 %v463_v38, %s13737_s15 }
  0x32   :  { %v467_v40 = vld.sshfl [vmem:[#allocation1 + $0x10] sm:$0xff pattern:$0x75643120]  ;;  %v8690_v41 = vld.sshfl [vmem:[#allocation1 + $0x18] sm:$0xff pattern:$0x75643120]  ;;  %473 = vrot.lane.b32.xlu2 %v465_v39, %s13737_s15 }
  0x33   :  { %475 = vrot.lane.b32.xlu0 %v467_v40, %s13737_s15  ;;  %517 = vst [vmem:[#allocation1 + $0x10] ss:$2 sm:$0xff] %v8636_v1  ;;  %v518_v42 = vld.sshfl [vmem:[#allocation1] sm:$0xff pattern:$0x75643120] }
  0x34   :  { %v519_v43 = vld.sshfl [vmem:[#allocation1 + $0x8] sm:$0xff pattern:$0x75643120]  ;;  %v522_v44 = vshll.u32 %v518_v42, 16  ;;  %v534_v45 = vshrl.u32 %v518_v42, 16 }
  0x35   :  { %v525_v46 = vshll.u32 %v519_v43, 16  ;;  %v539_v47 = vshrl.u32 %v519_v43, 16  ;;  %627 = vst [vmem:[#allocation1] ss:$2 sm:$0xff] %v8631_v0 }
  0x36   :  { %v8701_v50 = vrot.slane %v522_v44, 5  ;;  %v536_v51 = vrot.slane %v534_v45, 4 }
  0x37   :  { %v8703_v52 = vrot.slane %v525_v46, 5  ;;  %v541_v53 = vrot.slane %v539_v47, 4 }
  0x38   :  { %v537_v54 = vor.u32 %v536_v51, %v8701_v50 }
  0x39   :  { %v542_v55 = vor.u32 %v541_v53, %v8703_v52 }
  0x3a   :  { %v8697_v48 = vld.sshfl [vmem:[#allocation1 + $0x10] sm:$0xff pattern:$0x75643120]  ;;  %v8699_v49 = vld.sshfl [vmem:[#allocation1 + $0x18] sm:$0xff pattern:$0x75643120] }
  0x3b   :  { %13853 = vst [vmem:[#allocation16_spill] sm:$0xff] %v8699_v49  ;;  %v538_v56 = vrot.slane %v537_v54, 4  ;;  %v543_v57 = vrot.slane %v542_v55, 4 }
  0x3c   :  { %629 = vst [vmem:[#allocation1 + $0x10] ss:$2 sm:$0xff] %v8636_v1  ;;  %v630_v58 = vld.sshfl [vmem:[#allocation1] sm:$0xff pattern:$0x75643120] }
  0x3d   :  { %v632_v59 = vld.sshfl [vmem:[#allocation1 + $0x8] sm:$0xff pattern:$0x75643120]  ;;  %562 = vrot.lane.b32.xlu1 %v538_v56, %s13513_s16  ;;  %564 = vrot.lane.b32.xlu2 %v543_v57, %s13513_s16  ;;  %v638_v62 = vrot.slane %v630_v58, 7 }
  0x3e   :  { %684 = vst [vmem:[#allocation1] ss:$2 sm:$0xff] %v8631_v0  ;;  %v639_v63 = vrot.slane %v632_v59, 7 }
  0x43   :  { %v634_v60 = vld.sshfl [vmem:[#allocation1 + $0x10] sm:$0xff pattern:$0x75643120]  ;;  %v8711_v61 = vld.sshfl [vmem:[#allocation1 + $0x18] sm:$0xff pattern:$0x75643120] }
  0x44   :  { %686 = vst [vmem:[#allocation1 + $0x10] ss:$2 sm:$0xff] %v8636_v1  ;;  %v640_v29 = vrot.slane %v634_v60, 7 }
  0x45   :  { %v687_v6 = vld.sshfl [vmem:[#allocation1] sm:$0xff pattern:$0x75643120]  ;;  %v688_v7 = vld.sshfl [vmem:[#allocation1 + $0x8] sm:$0xff pattern:$0x75643120]  ;;  %642 = vrot.lane.b32.xlu1 %v638_v62, %s13586_s17  ;;  %644 = vrot.lane.b32.xlu2 %v639_v63, %s13586_s17 }
  0x46   :  { %v691_v8 = vshrl.u32 %v687_v6, 16  ;;  %v694_v9 = vshll.u32 %v687_v6, 16  ;;  %v698_v10 = vshrl.u32 %v688_v7, 16  ;;  %v701_v11 = vshll.u32 %v688_v7, 16  ;;  %761 = vst [vmem:[#allocation1] ss:$2 sm:$0xff] %v8631_v0 }
  0x48   :  { %v693_v16 = vrot.slane %v691_v8, 5  ;;  %v696_v17 = vrot.slane %v694_v9, 6  ;;  %v700_v18 = vrot.slane %v698_v10, 5  ;;  %v703_v19 = vrot.slane %v701_v11, 6 }
  0x4a   :  { %v697_v26 = vor.u32 %v696_v17, %v693_v16  ;;  %v704_v27 = vor.u32 %v703_v19, %v700_v18 }
  0x4b   :  { %v8717_v14 = vld.sshfl [vmem:[#allocation1 + $0x10] sm:$0xff pattern:$0x75643120]  ;;  %v8719_v15 = vld.sshfl [vmem:[#allocation1 + $0x18] sm:$0xff pattern:$0x75643120] }
  0x4c   :  { %13854 = vst [vmem:[#allocation17_spill] sm:$0xff] %v8719_v15  ;;  %719 = vrot.lane.b32.xlu0 %v697_v26, %s13433_s18 }
  0x4d   :  { %763 = vst [vmem:[#allocation1 + $0x10] ss:$2 sm:$0xff] %v8636_v1  ;;  %v764_v31 = vld.sshfl [vmem:[#allocation1] sm:$0xff pattern:$0x75643120]  ;;  %721 = vrot.lane.b32.xlu1 %v704_v27, %s13433_s18  ;;  %646 = vrot.lane.b32.xlu2 %v640_v29, %s13586_s17  ;;  %s13962_s18 = smov 94  }
  0x4e   :  { %v766_v32 = vld.sshfl [vmem:[#allocation1 + $0x8] sm:$0xff pattern:$0x75643120] }
  0x4f   :  { %808 = vst [vmem:[#allocation1] ss:$2 sm:$0xff] %v8631_v0 }
  0x54   :  { %v768_v35 = vld.sshfl [vmem:[#allocation1 + $0x10] sm:$0xff pattern:$0x75643120]  ;;  %v8726_v36 = vld.sshfl [vmem:[#allocation1 + $0x18] sm:$0xff pattern:$0x75643120]  ;;  %772 = vrot.lane.b32.xlu0 %v764_v31, %s13588_s19 }
  0x55   :  { %810 = vst [vmem:[#allocation1 + $0x10] ss:$2 sm:$0xff] %v8636_v1  ;;  %774 = vrot.lane.b32.xlu1 %v766_v32, %s13588_s19 }
  0x56   :  { %v811_v37 = vld.sshfl [vmem:[#allocation1] sm:$0xff pattern:$0x75643120]  ;;  %v812_v38 = vld.sshfl [vmem:[#allocation1 + $0x8] sm:$0xff pattern:$0x75643120] }
  0x57   :  { %v815_v39 = vshrl.u32 %v811_v37, 16  ;;  %v818_v40 = vshll.u32 %v811_v37, 16  ;;  %879 = vst [vmem:[#allocation1] ss:$2 sm:$0xff] %v8631_v0  ;;  %v822_v46 = vshrl.u32 %v812_v38, 16  ;;  %v825_v47 = vshll.u32 %v812_v38, 16 }
  0x59   :  { %v817_v44 = vrot.slane %v815_v39, 6  ;;  %v820_v45 = vrot.slane %v818_v40, 7  ;;  %v824_v53 = vrot.slane %v822_v46, 6  ;;  %v827_v54 = vrot.slane %v825_v47, 7 }
  0x5b   :  { %v821_v51 = vor.u32 %v820_v45, %v817_v44  ;;  %v828_v62 = vor.u32 %v827_v54, %v824_v53 }
  0x5c   :  { %v8732_v42 = vld.sshfl [vmem:[#allocation1 + $0x10] sm:$0xff pattern:$0x75643120]  ;;  %v8734_v43 = vld.sshfl [vmem:[#allocation1 + $0x18] sm:$0xff pattern:$0x75643120]  ;;  %776 = vrot.lane.b32.xlu0 %v768_v35, %s13588_s19 }
  0x5d   :  { %13855 = vst [vmem:[#allocation18_spill] sm:$0xff] %v8734_v43  ;;  %843 = vrot.lane.b32.xlu2 %v821_v51, %s13435_s20 }
  0x5e   :  { %881 = vst [vmem:[#allocation1 + $0x10] ss:$2 sm:$0xff] %v8636_v1  ;;  %v884_v55 = vld.sshfl [vmem:[#allocation1 + $0x8] sm:$0xff pattern:$0x75643120] }
  0x5f   :  { %v882_v56 = vld.sshfl [vmem:[#allocation1] sm:$0xff pattern:$0x75643120]  ;;  %v891_v57 = vrot.slane %v884_v55, 5 }
  0x60   :  { %v890_v58 = vrot.slane %v882_v56, 5  ;;  %961 = vst [vmem:[#allocation1] ss:$2 sm:$0xff] %v8631_v0 }
  0x61   :  { %900 = vrot.lane.b32.xlu1 %v891_v57, %s13590_s21  ;;  %v895_v39 = vrot.slane %v891_v57, 4 }
  0x62   :  { %v894_v63 = vrot.slane %v890_v58, 4 }
  0x64   :  { %845 = vrot.lane.b32.xlu0 %v828_v62, %s13435_s20  ;;  %s13982_s20 = smov 29  }
  0x65   :  { %v8740_v59 = vld.sshfl [vmem:[#allocation1 + $0x18] sm:$0xff pattern:$0x75643120]  ;;  %v8742_v60 = vld.sshfl [vmem:[#allocation1 + $0x10] sm:$0xff pattern:$0x75643120]  ;;  %906 = vrot.lane.b32.xlu2 %v894_v63, %s13590_s21 }
  0x66   :  { %13856 = vst [vmem:[#allocation19_spill] sm:$0xff] %v8740_v59  ;;  %v13380_v6 = vrot.slane %v8740_v59, 5  ;;  %v13382_v40 = vrot.slane %v8742_v60, 5 }
  0x67   :  { %963 = vst [vmem:[#allocation1 + $0x10] ss:$2 sm:$0xff] %v8636_v1  ;;  %v965_v8 = vld.sshfl [vmem:[#allocation1 + $0x8] sm:$0xff pattern:$0x75643120] }
  0x68   :  { %v897_v7 = vrot.slane %v13380_v6, 4  ;;  %v964_v9 = vld.sshfl [vmem:[#allocation1] sm:$0xff pattern:$0x75643120]  ;;  %v974_v10 = vshrl.u32 %v965_v8, 16  ;;  %v977_v11 = vshll.u32 %v965_v8, 16 }
  0x69   :  { %v968_v16 = vshrl.u32 %v964_v9, 16  ;;  %1029 = vst [vmem:[#allocation1 + $0x1] ss:$2 sm:$0xff] %v8631_v0  ;;  %v971_v27 = vshll.u32 %v964_v9, 16  ;;  %v896_v53 = vrot.slane %v13382_v40, 4 }
  0x6a   :  { %912 = vrot.lane.b32.xlu1 %v897_v7, %s13590_s21  ;;  %v976_v19 = vrot.slane %v974_v10, 7 }
  0x6b   :  { %v970_v26 = vrot.slane %v968_v16, 7 }
  0x6c   :  { %v979_v29 = vor.u32 %v977_v11, %v976_v19  ;;  %898 = vrot.lane.b32.xlu0 %v890_v58, %s13590_s21 }
  0x6d   :  { %v973_v31 = vor.u32 %v971_v27, %v970_v26 }
  0x6e   :  { %v8752_v17 = vld.sshfl [vmem:[#allocation1 + $0x10] sm:$0xff pattern:$0x75643120]  ;;  %v8754_v18 = vld.sshfl [vmem:[#allocation1 + $0x18] sm:$0xff pattern:$0x75643120]  ;;  %994 = vrot.lane.b32.xlu2 %v979_v29, %s13578_s22 }
  0x6f   :  { %13857 = vst [vmem:[#allocation20_spill] sm:$0xff] %v8754_v18  ;;  %v203_v29 = vld [vmem:[#allocation2] sm:$0x33] }
  0x70   :  { %1031 = vst [vmem:[#allocation1 + $0x11] ss:$2 sm:$0xff] %v8636_v1  ;;  %v1034_v32 = vld.sshfl [vmem:[#allocation1 + $0x8] sm:$0xff pattern:$0x75643120] }
  0x71   :  { %v1032_v35 = vld.sshfl [vmem:[#allocation1] sm:$0xff pattern:$0x75643120] }
  0x72   :  { %1076 = vst [vmem:[#allocation1] ss:$2 sm:$0xff] %v8631_v0  ;;  %992 = vrot.lane.b32.xlu1 %v973_v31, %s13578_s22 }
  0x74   :  { %908 = vrot.lane.b32.xlu0 %v895_v39, %s13590_s21  ;;  %v8766_v46 = vpop.permute.xlu2 %252  ;;  %v204_v39 = vsel %vm8795_vm6, %v8640_v2, %v203_v29 }
  0x75   :  { %205 = vst [vmem:[#allocation2] sm:$0x33] %v204_v39 }
  0x76   :  { %1042 = vrot.lane.b32.xlu2 %v1034_v32, %s13429_s23 }
  0x77   :  { %v1036_v37 = vld.sshfl [vmem:[#allocation1 + $0x10] sm:$0xff pattern:$0x75643120]  ;;  %v1038_v38 = vld.sshfl [vmem:[#allocation1 + $0x18] sm:$0xff pattern:$0x75643120] }
  0x78   :  { %1078 = vst [vmem:[#allocation1 + $0x10] ss:$2 sm:$0xff] %v8636_v1 }
  0x79   :  { %v1079_v44 = vld.sshfl [vmem:[#allocation1] sm:$0xff pattern:$0x75643120]  ;;  %v1080_v45 = vld.sshfl [vmem:[#allocation1 + $0x8] sm:$0xff pattern:$0x75643120] }
  0x7a   :  { %1178 = vst [vmem:[#allocation1] ss:$2 sm:$0xff] %v8631_v0  ;;  %1040 = vrot.lane.b32.xlu1 %v1032_v35, %s13429_s23  ;;  %v1083_v54 = vshll.u32 %v1079_v44, 16  ;;  %v1086_v55 = vshll.u32 %v1080_v45, 16  ;;  %v1100_v56 = vshrl.u32 %v1080_v45, 16  ;;  %v1095_v57 = vshrl.u32 %v1079_v44, 16 }
  0x7c   :  { %910 = vrot.lane.b32.xlu0 %v896_v53, %s13590_s21  ;;  %v1085_v58 = vrot.slane %v1083_v54, 5  ;;  %v1088_v62 = vrot.slane %v1086_v55, 5  ;;  %v1102_v63 = vrot.slane %v1100_v56, 4  ;;  %v8784_v9 = vpop.permute.xlu2 %324  ;;  %v1097_v10 = vrot.slane %v1095_v57, 4  ;;  %v283_v39 = vld [vmem:[#allocation2] sm:$0x66] }
  0x7e   :  { %1046 = vrot.lane.b32.xlu2 %v1038_v38, %s13429_s23  ;;  %v8421_v19 = vpack.i.bf16 %v1088_v62, %v1085_v58  ;;  %v1103_v27 = vor.u32 %v1102_v63, %v1088_v62  ;;  %v1098_v32 = vor.u32 %v1097_v10, %v1085_v58  ;;  %v260_v10 = vrot.slane %v8766_v46, 4 }
  0x7f   :  { %v8769_v47 = vld.sshfl [vmem:[#allocation1 + $0x10] sm:$0xff pattern:$0x75643120]  ;;  %v8771_v51 = vld.sshfl [vmem:[#allocation1 + $0x18] sm:$0xff pattern:$0x75643120] }
  0x80   :  { %13858 = vst [vmem:[#allocation21_spill] sm:$0xff] %v8771_v51  ;;  %v1104_v31 = vrot.slane %v1103_v27, 4  ;;  %v1099_v55 = vrot.slane %v1098_v32, 4 }
  0x81   :  { %1180 = vst [vmem:[#allocation1 + $0x10] ss:$2 sm:$0xff] %v8636_v1  ;;  %v8779_v7 = vld.sshfl [vmem:[#allocation1] sm:$0xff pattern:$0x75643120] }
  0x82   :  { %v8781_v8 = vld.sshfl [vmem:[#allocation1 + $0x8] sm:$0xff pattern:$0x75643120]  ;;  %1044 = vrot.lane.b32.xlu1 %v1036_v37, %s13429_s23  ;;  %v1189_v29 = vrot.slane %v8779_v7, 7  ;;  %v13866_v7 = vmov 0  ;;  %s14026_s23 = smov 62  }
  0x83   :  { %1229 = vst [vmem:[#allocation1] ss:$2 sm:$0xff] %v8631_v0  ;;  %v13867_v7 = vsel %vm8838_vm15, 4294967295, %v13866_v7 }
  0x84   :  { %8422 = vrot.lane.b32.xlu0 %v8421_v19, %s13580_s24  ;;  %v8802_v53 = vpop.permute.xlu2 %328  ;;  %13868 = vst [vmem:[#allocation25_spill] sm:$0xff] %v13867_v7 }
  0x85   :  { %13861 = vst [vmem:[#allocation22_spill] sm:$0xff] %v8802_v53 }
  0x88   :  { %v1185_v11 = vld.sshfl [vmem:[#allocation1 + $0x10] sm:$0xff pattern:$0x75643120]  ;;  %v8786_v16 = vld.sshfl [vmem:[#allocation1 + $0x18] sm:$0xff pattern:$0x75643120] }
  0x89   :  { %v1191_v26 = vrot.slane %v1185_v11, 7  ;;  %1231 = vst [vmem:[#allocation1 + $0x10] ss:$2 sm:$0xff] %v8636_v1  ;;  %v1190_v11 = vrot.slane %v8781_v8, 7 }
  0x8a   :  { %v1233_v37 = vld.sshfl [vmem:[#allocation1 + $0x8] sm:$0xff pattern:$0x75643120]  ;;  %v1232_v38 = vld.sshfl [vmem:[#allocation1] sm:$0xff pattern:$0x75643120]  ;;  %1125 = vrot.lane.b32.xlu1 %v1104_v31, %s13580_s24 }
  0x8b   :  { %1197 = vrot.lane.b32.xlu2 %v1191_v26, %s13386_s25  ;;  %v1243_v44 = vshrl.u32 %v1233_v37, 16  ;;  %v1246_v45 = vshll.u32 %v1233_v37, 16  ;;  %1300 = vst [vmem:[#allocation1] ss:$2 sm:$0xff] %v8631_v0  ;;  %v1236_v62 = vshrl.u32 %v1232_v38, 16  ;;  %v1239_v63 = vshll.u32 %v1232_v38, 16 }
  0x8c   :  { %1123 = vrot.lane.b32.xlu0 %v1099_v55, %s13580_s24  ;;  %v8827_v31 = vpop.permute.xlu2 %473  ;;  %v8830_v8 = vpop.permute.xlu0 %254 }
  0x8d   :  { %v1245_v56 = vrot.slane %v1243_v44, 5  ;;  %v1248_v57 = vrot.slane %v1246_v45, 6  ;;  %13865 = vst [vmem:[#allocation24_spill] sm:$0xff] %v8830_v8  ;;  %v1238_v32 = vrot.slane %v1236_v62, 5  ;;  %v1241_v37 = vrot.slane %v1239_v63, 6 }
  0x8e   :  { %v13379_v38 = vrot.slane %v8830_v8, 4  ;;  %v13391_v62 = vrot.slane %v8802_v53, 4 }
  0x8f   :  { %v1249_v2 = vor.u32 %v1248_v57, %v1245_v56  ;;  %v1242_v63 = vor.u32 %v1241_v37, %v1238_v32  ;;  %v1192_v32 = vrot.slane %v8786_v16, 7 }
  0x90   :  { %v8805_v54 = vld.sshfl [vmem:[#allocation1 + $0x10] sm:$0xff pattern:$0x75643120]  ;;  %v8808_v58 = vld.sshfl [vmem:[#allocation1 + $0x18] sm:$0xff pattern:$0x75643120]  ;;  %v265_v55 = vsel %vm13556_vm13, %v260_v10, %v13379_v38 }
  0x91   :  { %13862 = vst [vmem:[#allocation23_spill] sm:$0xff] %v8808_v58  ;;  %v267_v56 = vsel %vm13385_vm14, %v8766_v46, %v265_v55  ;;  %v373_v55 = vld [vmem:[#allocation2 + $0x1c] sm:$0x11]  ;;  %vm499_vm14 = vmand %vm497_vm12, %vm498_vm3  ;;  %vm668_vm3 = vsmask.f32 6400 }
  0x92   :  { %1302 = vst [vmem:[#allocation1 + $0x10] ss:$2 sm:$0xff] %v8636_v1  ;;  %v8821_v26 = vld.sshfl [vmem:[#allocation1] sm:$0xff pattern:$0x75643120]  ;;  %1195 = vrot.lane.b32.xlu1 %v1190_v11, %s13386_s25  ;;  %v284_v57 = vsel %vm8838_vm15, %v267_v56, %v283_v39 }
  0x93   :  { %1266 = vrot.lane.b32.xlu2 %v1249_v2, %s13582_s26  ;;  %v8823_v27 = vld.sshfl [vmem:[#allocation1 + $0x8] sm:$0xff pattern:$0x75643120]  ;;  %v336_v2 = vrot.slane %v8784_v9, 4  ;;  %285 = vst [vmem:[#allocation2] sm:$0x66] %v284_v57 }
  0x94   :  { %1347 = vst [vmem:[#allocation1] ss:$2 sm:$0xff] %v8631_v0  ;;  %1193 = vrot.lane.b32.xlu0 %v1189_v29, %s13386_s25  ;;  %v327_v29 = vpop.permute.xlu0 %326 }
  0x97   :  { %v8865_v57 = vpop.permute.xlu2 %564 }
  0x98   :  { %13871 = vst [vmem:[#allocation26_spill] sm:$0xff] %v8865_v57 }
  0x99   :  { %v1307_v44 = vld.sshfl [vmem:[#allocation1 + $0x10] sm:$0xff pattern:$0x75643120]  ;;  %v8834_v45 = vld.sshfl [vmem:[#allocation1 + $0x18] sm:$0xff pattern:$0x75643120] }
  0x9a   :  { %1349 = vst [vmem:[#allocation1 + $0x10] ss:$2 sm:$0xff] %v8636_v1  ;;  %1264 = vrot.lane.b32.xlu1 %v1242_v63, %s13582_s26 }
  0x9b   :  { %1315 = vrot.lane.b32.xlu2 %v1307_v44, %s13405_s27  ;;  %v8860_v10 = vld.sshfl [vmem:[#allocation1] sm:$0xff pattern:$0x75643120]  ;;  %v1351_v11 = vld.sshfl [vmem:[#allocation1 + $0x8] sm:$0xff pattern:$0x75643120] }
  0x9c   :  { %v1361_v19 = vshrl.u32 %v1351_v11, 16  ;;  %v1364_v39 = vshll.u32 %v1351_v11, 16  ;;  %1418 = vst [vmem:[#allocation1] ss:$2 sm:$0xff] %v8631_v0  ;;  %v337_v44 = vrot.slane %v327_v29, 4  ;;  %v13872_v11 = vmov 0  ;;  %1199 = vrot.lane.b32.xlu0 %v1192_v32, %s13386_s25 }
  0x9d   :  { %v13873_v11 = vsel %vm8871_vm5, 4294967295, %v13872_v11  ;;  %s13431_s25 = smov 29  }
  0x9e   :  { %v1363_v37 = vrot.slane %v1361_v19, 6  ;;  %v1366_v56 = vrot.slane %v1364_v39, 7  ;;  %v347_v40 = vsel %vm13556_vm13, %v336_v2, %v337_v44  ;;  %v349_v16 = vsel %vm13556_vm13, %v337_v44, %v13391_v62  ;;  %v501_v62 = vld [vmem:[#allocation2 + $0x1c] sm:$0xcc] }
  0x9f   :  { %v348_v19 = vsel %vm13384_vm8, %v8784_v9, %v347_v40  ;;  %v350_v46 = vsel %vm13384_vm8, %v327_v29, %v349_v16  ;;  %v8898_v9 = vpop.permute.xlu2 %644  ;;  %vm496_vm8 = vmand %vm13437_vm10, %vm495_vm11  ;;  %v480_v16 = vrot.slane %v8827_v31, 4 }
  0xa0   :  { %v1367_v63 = vor.u32 %v1366_v56, %v1363_v37  ;;  %v374_v39 = vsel %vm8871_vm5, %v348_v19, %v373_v55  ;;  %v377_v2 = vsel %vm8871_vm5, %v350_v46, %v376_v28  ;;  %v8893_v56 = vpop.permute.xlu1 %418  ;;  %vm8917_vm0 = vmor %vm499_vm14, %vm496_vm8 }
  0xa1   :  { %v8867_v38 = vld.sshfl [vmem:[#allocation1 + $0x10] sm:$0xff pattern:$0x75643120]  ;;  %v8875_v6 = vld.sshfl [vmem:[#allocation1 + $0x18] sm:$0xff pattern:$0x75643120]  ;;  %vm8930_vm8 = vmand %vm276_vm7, %vm13462_vm2 }
  0xa2   :  { %1420 = vst [vmem:[#allocation1 + $0x10] ss:$2 sm:$0xff] %v8636_v1  ;;  %1311 = vrot.lane.b32.xlu1 %v8821_v26, %s13405_s27  ;;  %vm8940_vm14 = vmand %vm279_vm9, %vm668_vm3  ;;  %vm13417_vm7 = vcmask 777216   ;;  %vm13418_vm3 = vcmask 785408  }
  0xa3   :  { %1384 = vrot.lane.b32.xlu2 %v1367_v63, %s13572_s28  ;;  %375 = vst [vmem:[#allocation2 + $0x1c] sm:$0x11] %v374_v39  ;;  %v1421_v44 = vld.sshfl [vmem:[#allocation1] sm:$0xff pattern:$0x75643120]  ;;  %vm8966_vm9 = vmor %vm8940_vm14, %vm8930_vm8 }
  0xa4   :  { %v8891_v37 = vld.sshfl [vmem:[#allocation1 + $0x8] sm:$0xff pattern:$0x75643120]  ;;  %13874 = vst [vmem:[#allocation27_spill] sm:$0xff] %v8893_v56  ;;  %v1429_v40 = vrot.slane %v1421_v44, 5 }
  0xa5   :  { %1500 = vst [vmem:[#allocation1] ss:$2 sm:$0xff] %v8631_v0  ;;  %v8905_v32 = vpop.permute.xlu0 %475  ;;  %v504_v63 = vld [vmem:[#allocation2 + $0x24] sm:$0xcc]  ;;  %vm743_vm8 = vsmask.f32 7946 }
  0xa6   :  { %378 = vst [vmem:[#allocation2 + $0x24] sm:$0x11] %v377_v2  ;;  %v13394_v26 = vrot.slane %v8905_v32, 4  ;;  %1437 = vrot.lane.b32.xlu0 %v1429_v40, %s13431_s25  ;;  %v13877_v2 = vmov 0  ;;  %v1433_v8 = vrot.slane %v1429_v40, 4 }
  0xa7   :  { %13876 = vst [vmem:[#allocation29_spill] sm:$0xff] %v8905_v32  ;;  %v13878_v2 = vsel %vm8917_vm0, 4294967295, %v13877_v2  ;;  %v8934_v3 = vpop.permute.xlu2 %646  ;;  %v1357_v32 = vshll.u32 %v8860_v10, 16  ;;  %vm745_vm14 = vsmask.f32 7962 }
  0xa8   :  { %v486_v39 = vsel %vm13556_vm13, %v480_v16, %v13394_v26  ;;  %v472_v44 = vpop.permute.xlu1 %471  ;;  %13881 = vst [vmem:[#allocation30_spill] sm:$0xff] %v8934_v3  ;;  %v13401_v40 = vrot.slane %v8934_v3, 4  ;;  %v13886_v3 = vrot.slane %v8865_v57, 4 }
  0xa9   :  { %v1425_v29 = vld.sshfl [vmem:[#allocation1 + $0x10] sm:$0xff pattern:$0x75643120]  ;;  %v8900_v28 = vld.sshfl [vmem:[#allocation1 + $0x18] sm:$0xff pattern:$0x75643120] }
  0xaa   :  { %13875 = vst [vmem:[#allocation28_spill] sm:$0xff] %v8900_v28  ;;  %v1431_v55 = vrot.slane %v1425_v29, 5  ;;  %v487_v29 = vsel %vm13419_vm1, %v8827_v31, %v486_v39  ;;  %v479_v22 = vrot.slane %v472_v44, 4  ;;  %1313 = vrot.lane.b32.xlu1 %v8823_v27, %s13405_s27  ;;  %v13402_v31 = vrot.slane %v8898_v9, 4 }
  0xab   :  { %1502 = vst [vmem:[#allocation1 + $0x10] ss:$2 sm:$0xff] %v8636_v1  ;;  %v505_v23 = vsel %vm8917_vm0, %v487_v29, %v504_v63  ;;  %v674_v29 = vld [vmem:[#allocation2 + $0x40] sm:$0x66] }
  0xac   :  { %1441 = vrot.lane.b32.xlu2 %v1431_v55, %s13431_s25  ;;  %v1503_v19 = vld.sshfl [vmem:[#allocation1] sm:$0xff pattern:$0x75643120]  ;;  %v8912_v46 = vld.sshfl [vmem:[#allocation1 + $0x8] sm:$0xff pattern:$0x75643120]  ;;  %v483_v39 = vsel %vm13556_vm13, %v479_v22, %v480_v16  ;;  %v657_v22 = vsel %vm13556_vm13, %v13402_v31, %v13401_v40 }
  0xad   :  { %1568 = vst [vmem:[#allocation1 + $0x1] ss:$2 sm:$0xff] %v8631_v0  ;;  %v1435_v26 = vrot.slane %v1431_v55, 4  ;;  %v1507_v53 = vshrl.u32 %v1503_v19, 16  ;;  %v485_v63 = vsel %vm13419_vm1, %v472_v44, %v483_v39  ;;  %v1354_v16 = vshrl.u32 %v8860_v10, 16  ;;  %vm746_vm1 = vmand %vm497_vm12, %vm745_vm14 }
  0xae   :  { %506 = vst [vmem:[#allocation2 + $0x24] sm:$0xcc] %v505_v23  ;;  %v502_v23 = vsel %vm8917_vm0, %v485_v63, %v501_v62  ;;  %v13884_v62 = vmov 0  ;;  %v658_v44 = vsel %vm13417_vm7, %v8898_v9, %v657_v22  ;;  %v1510_v10 = vshll.u32 %v1503_v19, 16 }
  0xaf   :  { %503 = vst [vmem:[#allocation2 + $0x1c] sm:$0xcc] %v502_v23  ;;  %1449 = vrot.lane.b32.xlu0 %v1435_v26, %s13431_s25  ;;  %v13885_v62 = vsel %vm8966_vm9, 4294967295, %v13884_v62  ;;  %v1509_v39 = vrot.slane %v1507_v53, 7  ;;  %v13407_v63 = vrot.slane %v8891_v37, 5  ;;  %v675_v26 = vsel %vm8966_vm9, %v658_v44, %v674_v29 }
  0xb0   :  { %676 = vst [vmem:[#allocation2 + $0x40] sm:$0x66] %v675_v26  ;;  %v563_v27 = vpop.permute.xlu1 %562  ;;  %v1356_v22 = vrot.slane %v1354_v16, 6  ;;  %v1359_v40 = vrot.slane %v1357_v32, 7  ;;  %v1368_v44 = vshrl.u32 %v8867_v38, 16  ;;  %v1371_v26 = vshll.u32 %v8867_v38, 16 }
  0xb1   :  { %v1512_v53 = vor.u32 %v1510_v10, %v1509_v39  ;;  %v1434_v19 = vrot.slane %v13407_v63, 4  ;;  %v574_v29 = vrot.slane %v563_v27, 4  ;;  %v13413_v38 = vrot.slane %v8900_v28, 5 }
  0xb2   :  { %v8945_v55 = vld.sshfl [vmem:[#allocation1 + $0x10] sm:$0xff pattern:$0x75643120]  ;;  %v8948_v5 = vld.sshfl [vmem:[#allocation1 + $0x18] sm:$0xff pattern:$0x75643120]  ;;  %1317 = vrot.lane.b32.xlu1 %v8834_v45, %s13405_s27  ;;  %v1360_v32 = vor.u32 %v1359_v40, %v1356_v22 }
  0xb3   :  { %1570 = vst [vmem:[#allocation1 + $0x11] ss:$2 sm:$0xff] %v8636_v1  ;;  %v586_v45 = vsel %vm13556_vm13, %v574_v29, %v13886_v3  ;;  %s13584_s27 = smov 28   ;;  %v1370_v16 = vrot.slane %v1368_v44, 6  ;;  %v1373_v10 = vrot.slane %v1371_v26, 7  ;;  %v1519_v40 = vshrl.u32 %v8945_v55, 16 }
  0xb4   :  { %1445 = vrot.lane.b32.xlu2 %v1433_v8, %s13431_s25  ;;  %v8975_v23 = vld.sshfl [vmem:[#allocation1] sm:$0xff pattern:$0x75643120]  ;;  %v8977_v8 = vld.sshfl [vmem:[#allocation1 + $0x8] sm:$0xff pattern:$0x75643120]  ;;  %v587_v39 = vsel %vm13418_vm3, %v563_v27, %v586_v45 }
  0xb5   :  { %1602 = vst [vmem:[#allocation1] ss:$2 sm:$0xff] %v8631_v0  ;;  %v1436_v27 = vrot.slane %v13413_v38, 4  ;;  %v1374_v45 = vor.u32 %v1373_v10, %v1370_v16  ;;  %v1522_v15 = vshll.u32 %v8945_v55, 16  ;;  %vm13438_vm3 = vcmask 769024  }
  0xb6   :  { %622 = vst [vmem:[#allocation2 + $0x38] sm:$0x11] %v587_v39  ;;  %v13887_v39 = vrot.slane %v8898_v9, 4  ;;  %vm13455_vm14 = vcmask 752640  }
  0xb7   :  { %1531 = vrot.lane.b32.xlu0 %v1512_v53, %s13584_s27  ;;  %v8999_v63 = vpop.permute.xlu2 %843 }
  0xb8   :  { %v643_v3 = vpop.permute.xlu1 %642 }
  0xb9   :  { %v650_v22 = vrot.slane %v643_v3, 4 }
  0xba   :  { %v8987_v31 = vld.sshfl [vmem:[#allocation1 + $0x10] sm:$0xff pattern:$0x75643120]  ;;  %v8989_v4 = vld.sshfl [vmem:[#allocation1 + $0x18] sm:$0xff pattern:$0x75643120]  ;;  %1382 = vrot.lane.b32.xlu1 %v1360_v32, %s13572_s28 }
  0xbb   :  { %1604 = vst [vmem:[#allocation1 + $0x10] ss:$2 sm:$0xff] %v8636_v1  ;;  %v654_v59 = vsel %vm13556_vm13, %v650_v22, %v13887_v39 }
  0xbc   :  { %1447 = vrot.lane.b32.xlu2 %v1434_v19, %s13431_s25  ;;  %v1606_v57 = vld.sshfl [vmem:[#allocation1 + $0x8] sm:$0xff pattern:$0x75643120]  ;;  %v9001_v34 = vld.sshfl [vmem:[#allocation1] sm:$0xff pattern:$0x75643120]  ;;  %v656_v38 = vsel %vm13417_vm7, %v643_v3, %v654_v59  ;;  %vm9034_vm7 = vmand %vm13437_vm10, %vm743_vm8 }
  0xbd   :  { %1701 = vst [vmem:[#allocation1] ss:$2 sm:$0xff] %v8631_v0  ;;  %v1612_v53 = vshll.u32 %v1606_v57, 16  ;;  %v671_v19 = vld [vmem:[#allocation2 + $0x38] sm:$0x66]  ;;  %v1626_v29 = vshrl.u32 %v1606_v57, 16  ;;  %vm9057_vm12 = vmor %vm746_vm1, %vm9034_vm7 }
  0xbe   :  { %v1521_v57 = vrot.slane %v1519_v40, 7  ;;  %v672_v9 = vsel %vm8966_vm9, %v656_v38, %v671_v19  ;;  %v720_v39 = vpop.permute.xlu0 %719  ;;  %vm13439_vm1 = vcmask 760832   ;;  %vm510_vm7 = vcmask 1010690  }
  0xbf   :  { %v9017_v49 = vrot.slane %v1612_v53, 5  ;;  %v1628_v22 = vrot.slane %v1626_v29, 4  ;;  %673 = vst [vmem:[#allocation2 + $0x38] sm:$0x66] %v672_v9  ;;  %v9026_v18 = vpop.permute.xlu2 %906  ;;  %v1609_v53 = vshll.u32 %v9001_v34, 16  ;;  %v727_v40 = vrot.slane %v720_v39, 4  ;;  %vm9133_vm10 = vmand %vm510_vm7, %vm743_vm8 }
  0xc0   :  { %vm13464_vm8 = vcmask 506880  }
  0xc1   :  { %v1629_v29 = vor.u32 %v1628_v22, %v9017_v49  ;;  %v1611_v28 = vrot.slane %v1609_v53, 5 }
  0xc2   :  { %v1607_v44 = vld.sshfl [vmem:[#allocation1 + $0x10] sm:$0xff pattern:$0x75643120]  ;;  %v9008_v26 = vld.sshfl [vmem:[#allocation1 + $0x18] sm:$0xff pattern:$0x75643120]  ;;  %1386 = vrot.lane.b32.xlu1 %v1374_v45, %s13572_s28 }
  0xc3   :  { %v1615_v32 = vshll.u32 %v1607_v44, 16  ;;  %v1618_v56 = vshll.u32 %v9008_v26, 16  ;;  %1703 = vst [vmem:[#allocation1 + $0x10] ss:$2 sm:$0xff] %v8636_v1  ;;  %v1630_v58 = vrot.slane %v1629_v29, 4  ;;  %v8426_v29 = vpack.i.bf16 %v9017_v49, %v1611_v28 }
  0xc4   :  { %1451 = vrot.lane.b32.xlu2 %v1436_v27, %s13431_s25  ;;  %v9028_v59 = vld.sshfl [vmem:[#allocation1] sm:$0xff pattern:$0x75643120]  ;;  %v9038_v38 = vld.sshfl [vmem:[#allocation1 + $0x8] sm:$0xff pattern:$0x75643120]  ;;  %v1524_v27 = vor.u32 %v1522_v15, %v1521_v57 }
  0xc5   :  { %v9022_v16 = vrot.slane %v1615_v32, 5  ;;  %v9024_v10 = vrot.slane %v1618_v56, 5  ;;  %v9043_v56 = vpop.permute.xlu1 %721  ;;  %1750 = vst [vmem:[#allocation1] ss:$2 sm:$0xff] %v8631_v0  ;;  %v1631_v32 = vshrl.u32 %v1607_v44, 16  ;;  %v1621_v44 = vshrl.u32 %v9001_v34, 16 }
  0xc6   :  { %13890 = vst [vmem:[#allocation31_spill] sm:$0xff] %v9043_v56  ;;  %v13426_v19 = vrot.slane %v9043_v56, 4  ;;  %v748_v13 = vld [vmem:[#allocation2 + $0x38] sm:$0xcc]  ;;  %v773_v12 = vpop.permute.xlu0 %772 }
  0xc7   :  { %v8431_v3 = vpack.i.bf16 %v9024_v10, %v9022_v16  ;;  %v1633_v55 = vrot.slane %v1631_v32, 4  ;;  %v1623_v34 = vrot.slane %v1621_v44, 4 }
  0xc8   :  { %v731_v57 = vsel %vm13556_vm13, %v727_v40, %v13426_v19  ;;  %v9070_v43 = vpop.permute.xlu2 %994  ;;  %v1516_v19 = vshll.u32 %v8912_v46, 16 }
  0xc9   :  { %8432 = vrot.lane.b32.xlu0 %v8431_v3, %s13592_s29  ;;  %v1513_v3 = vshrl.u32 %v8912_v46, 16  ;;  %v733_v22 = vsel %vm13438_vm3, %v720_v39, %v731_v57  ;;  %v1636_v39 = vshrl.u32 %v9008_v26, 16  ;;  %v780_v57 = vrot.slane %v773_v12, 4 }
  0xca   :  { %v9050_v45 = vld.sshfl [vmem:[#allocation1 + $0x10] sm:$0xff pattern:$0x75643120]  ;;  %v9052_v9 = vld.sshfl [vmem:[#allocation1 + $0x18] sm:$0xff pattern:$0x75643120]  ;;  %v749_v24 = vsel %vm9057_vm12, %v733_v22, %v748_v13  ;;  %v1634_v46 = vor.u32 %v1633_v55, %v9022_v16 }
  0xcb   :  { %1752 = vst [vmem:[#allocation1 + $0x10] ss:$2 sm:$0xff] %v8636_v1  ;;  %v1515_v40 = vrot.slane %v1513_v3, 7  ;;  %vm13461_vm3 = vcmask 1007616  }
  0xcc   :  { %1535 = vrot.lane.b32.xlu2 %v1524_v27, %s13584_s27  ;;  %750 = vst [vmem:[#allocation2 + $0x38] sm:$0xcc] %v749_v24  ;;  %v13893_v27 = vrot.slane %v8891_v37, 5  ;;  %v1753_v32 = vld.sshfl [vmem:[#allocation1] sm:$0xff pattern:$0x75643120]  ;;  %v1624_v37 = vor.u32 %v1623_v34, %v1611_v28 }
  0xcd   :  { %v775_v53 = vpop.permute.xlu1 %774  ;;  %v9078_v13 = vld.sshfl [vmem:[#allocation1 + $0x8] sm:$0xff pattern:$0x75643120]  ;;  %v796_v24 = vld [vmem:[#allocation2 + $0x54] sm:$0x33]  ;;  %v1635_v55 = vrot.slane %v1634_v46, 4 }
  0xce   :  { %1439 = vrot.lane.b32.xlu1 %v13893_v27, %s13431_s25  ;;  %v781_v3 = vrot.slane %v775_v53, 4  ;;  %1819 = vst [vmem:[#allocation1] ss:$2 sm:$0xff] %v8631_v0  ;;  %v1638_v27 = vrot.slane %v1636_v39, 4  ;;  %v9093_v0 = vpop.permute.xlu0 %776  ;;  %v799_v28 = vld [vmem:[#allocation2 + $0x5c] sm:$0x33] }
  0xcf   :  { %13894 = vst [vmem:[#allocation32_spill] sm:$0xff] %v9093_v0  ;;  %v1760_v46 = vshll.u32 %v1753_v32, 16  ;;  %s14384_s25 = smov 96  }
  0xd0   :  { %v784_v49 = vsel %vm13556_vm13, %v780_v57, %v781_v3  ;;  %v9095_v56 = vpop.permute.xlu2 %1042  ;;  %v1639_v34 = vor.u32 %v1638_v27, %v9024_v10  ;;  %v1712_v27 = vrot.slane %v9028_v59, 7  ;;  %v13900_v59 = vmov 0 }
  0xd1   :  { %1651 = vrot.lane.b32.xlu0 %v1630_v58, %s13592_s29  ;;  %v786_v22 = vsel %vm13439_vm1, %v773_v12, %v784_v49  ;;  %v1518_v58 = vor.u32 %v1516_v19, %v1515_v40  ;;  %v9105_v12 = vld [vmem:[%s13364_s0 + $0x18] sm:$0xff]  ;;  %v13440_v19 = vrot.slane %v9093_v0, 4  ;;  %v1625_v40 = vrot.slane %v1624_v37, 4 }
  0xd2   :  { %v9083_v26 = vld.sshfl [vmem:[#allocation1 + $0x10] sm:$0xff pattern:$0x75643120]  ;;  %v9085_v44 = vld.sshfl [vmem:[#allocation1 + $0x18] sm:$0xff pattern:$0x75643120]  ;;  %v797_v16 = vsel %vm8795_vm6, %v786_v22, %v796_v24 }
  0xd3   :  { %1821 = vst [vmem:[#allocation1 + $0x10] ss:$2 sm:$0xff] %v8636_v1  ;;  %v9100_v1 = vld [vmem:[%s13364_s0 + $0x10] sm:$0xff]  ;;  %v787_v57 = vsel %vm13556_vm13, %v781_v3, %v13440_v19  ;;  %v1757_v24 = vshrl.u32 %v1753_v32, 16  ;;  %v1640_v32 = vrot.slane %v1639_v34, 4  ;;  %v851_v3 = vrot.slane %v8999_v63, 4 }
  0xd4   :  { %8427 = vrot.lane.b32.xlu2 %v8426_v29, %s13592_s29  ;;  %798 = vst [vmem:[#allocation2 + $0x54] sm:$0x33] %v797_v16  ;;  %v788_v10 = vsel %vm13439_vm1, %v775_v53, %v787_v57  ;;  %v13896_v53 = vmov 0  ;;  %v1762_v57 = vrot.slane %v1760_v46, 6  ;;  %v1764_v34 = vshrl.u32 %v9078_v13, 16  ;;  %vm9145_vm1 = vmand %vm510_vm7, %vm495_vm11  ;;  %s13959_s0 = smov 92  }
  0xd5   :  { %v9110_v39 = vld.sshfl [vmem:[#allocation1] sm:$0xff pattern:$0x75643120]  ;;  %v9112_v29 = vld.sshfl [vmem:[#allocation1 + $0x8] sm:$0xff pattern:$0x75643120]  ;;  %v9124_v22 = vpop.permute.xlu1 %900  ;;  %vm9180_vm7 = vmand %vm13461_vm3, %vm367_vm4 }
  0xd6   :  { %1533 = vrot.lane.b32.xlu1 %v1518_v58, %s13584_s27  ;;  %3517 = vst [vmem:[#allocation1] ss:$2 sm:$0xff] %v9100_v1  ;;  %v800_v58 = vsel %vm8795_vm6, %v788_v10, %v799_v28  ;;  %v13897_v53 = vsel %vm9133_vm10, 4294967295, %v13896_v53  ;;  %v9137_v16 = vpop.permute.xlu0 %845  ;;  %v1715_v28 = vrot.slane %v9052_v9, 7  ;;  %v13901_v59 = vsel %vm9145_vm1, 4294967295, %v13900_v59 }
  0xd7   :  { %13895 = vst [vmem:[#allocation33_spill] sm:$0xff] %v9124_v22  ;;  %v13446_v10 = vrot.slane %v9137_v16, 4  ;;  %vm13463_vm11 = vcmask 523264   ;;  %vm13473_vm4 = vsmask.f32 7938  ;;  %vm13917_vm3 = vcmask 1041408  }
  0xd8   :  { %801 = vst [vmem:[#allocation2 + $0x5c] sm:$0x33] %v800_v58  ;;  %v1073_v58 = vld [vmem:[#allocation2 + $0x88] sm:$0xc]  ;;  %vm9258_vm2 = vmand %vm13917_vm3, %vm13473_vm4  ;;  %vm13481_vm3 = vsmask.f32 7950 }
  0xd9   :  { %1653 = vrot.lane.b32.xlu0 %v1635_v55, %s13592_s29  ;;  %13898 = vst [vmem:[#allocation34_spill] sm:$0xff] %v13897_v53  ;;  %v9139_v55 = vpop.permute.xlu2 %1046  ;;  %v1767_v53 = vshll.u32 %v9078_v13, 16  ;;  %v855_v46 = vsel %vm13556_vm13, %v851_v3, %v13446_v10  ;;  %vm605_vm4 = vsmask.f32 7966 }
  0xda   :  { %v9119_v49 = vld.sshfl [vmem:[#allocation1 + $0x10] sm:$0xff pattern:$0x75643120]  ;;  %v9121_v37 = vld.sshfl [vmem:[#allocation1 + $0x18] sm:$0xff pattern:$0x75643120] }
  0xdb   :  { %3520 = vst [vmem:[#allocation1 + $0x10] ss:$2 sm:$0xff] %v9105_v12  ;;  %v13447_v19 = vrot.slane %v9139_v55, 4  ;;  %v867_v0 = vld [vmem:[#allocation2 + $0x54] sm:$0x66] }
  0xdc   :  { %1649 = vrot.lane.b32.xlu2 %v1625_v40, %s13592_s29  ;;  %13899 = vst [vmem:[#allocation35_spill] sm:$0xff] %v9137_v16  ;;  %v1759_v40 = vrot.slane %v1757_v24, 5 }
  0xdd   :  { %v9152_v9 = vld.sshfl [vmem:[#allocation1] sm:$0xff pattern:$0x75643120]  ;;  %v9154_v24 = vld.sshfl [vmem:[#allocation1 + $0x8] sm:$0xff pattern:$0x75643120]  ;;  %v1059_v33 = vsel %vm13464_vm8, %v9139_v55, %v13447_v19  ;;  %v9173_v3 = vpop.permute.xlu1 %912 }
  0xde   :  { %1655 = vrot.lane.b32.xlu1 %v1640_v32, %s13592_s29  ;;  %13902 = vst [vmem:[#allocation36_spill] sm:$0xff] %v9152_v9  ;;  %v13906_v19 = vmov 0  ;;  %v899_v9 = vpop.permute.xlu0 %898  ;;  %vm13921_vm8 = vcmask 1045508  }
  0xdf   :  { %13903 = vst [vmem:[#allocation37_spill] sm:$0xff] %v9154_v24  ;;  %v1074_v24 = vsel %vm9145_vm1, %v1059_v33, %v1073_v58  ;;  %v13907_v19 = vsel %vm9180_vm7, 4294967295, %v13906_v19  ;;  %v1763_v33 = vor.u32 %v1762_v57, %v1759_v40  ;;  %v1769_v58 = vrot.slane %v1767_v53, 6 }
  0xe0   :  { %3541 = vst [vmem:[#allocation1] ss:$2 sm:$0xff] %v9100_v1  ;;  %v400_v53 = vshrl.u32 %v8677_v30, 16 }
  0xe1   :  { %1716 = vrot.lane.b32.xlu0 %v1712_v27, %s8518_s30  ;;  %v857_v27 = vsel %vm13455_vm14, %v8999_v63, %v855_v46  ;;  %13908 = vst [vmem:[#allocation40_spill] sm:$0xff] %v13907_v19  ;;  %v1766_v63 = vrot.slane %v1764_v34, 5  ;;  %v1713_v46 = vrot.slane %v9038_v38, 7  ;;  %vm443_vm14 = vsmask.f32 7954 }
  0xe2   :  { %v9165_v13 = vld.sshfl [vmem:[#allocation1 + $0x10] sm:$0xff pattern:$0x75643120]  ;;  %v9167_v32 = vld.sshfl [vmem:[#allocation1 + $0x18] sm:$0xff pattern:$0x75643120]  ;;  %v868_v10 = vsel %vm8838_vm15, %v857_v27, %v867_v0  ;;  %vm9267_vm10 = vmand %vm13921_vm8, %vm443_vm14 }
  0xe3   :  { %13904 = vst [vmem:[#allocation38_spill] sm:$0xff] %v9165_v13  ;;  %v958_v13 = vld [vmem:[#allocation2 + $0x88] sm:$0x1]  ;;  %v1770_v40 = vor.u32 %v1769_v58, %v1766_v63  ;;  %vm13924_vm15 = vcmask 506880   ;;  %vm9287_vm14 = vmor %vm9267_vm10, %vm9258_vm2  ;;  %vm604_vm8 = vcmask 1047559   ;;  %vm13937_vm10 = vcmask 506880  }
  0xe4   :  { %13905 = vst [vmem:[#allocation39_spill] sm:$0xff] %v9167_v32  ;;  %v13451_v32 = vrot.slane %v9173_v3, 4  ;;  %1722 = vrot.lane.b32.xlu2 %v1715_v28, %s8518_s30  ;;  %v914_v28 = vrot.slane %v899_v9, 4 }
  0xe5   :  { %3543 = vst [vmem:[#allocation1 + $0x10] ss:$2 sm:$0xff] %v9105_v12  ;;  %v9193_v16 = vpop.permute.xlu2 %1197  ;;  %v9214_v58 = vpop.permute.xlu1 %992 }
  0xe6   :  { %869 = vst [vmem:[#allocation2 + $0x54] sm:$0x66] %v868_v10  ;;  %v936_v0 = vsel %vm13463_vm11, %v9173_v3, %v13451_v32  ;;  %v13450_v10 = vrot.slane %v9124_v22, 4  ;;  %1785 = vrot.lane.b32.xlu1 %v1763_v33, %s8519_s14  ;;  %v1778_v22 = vshrl.u32 %v9085_v44, 16 }
  0xe7   :  { %1075 = vst [vmem:[#allocation2 + $0x88] sm:$0xc] %v1074_v24  ;;  %v959_v27 = vsel %vm9180_vm7, %v936_v0, %v958_v13  ;;  %v9198_v57 = vld.sshfl [vmem:[#allocation1] sm:$0xff pattern:$0x75643120]  ;;  %v1771_v24 = vshrl.u32 %v9083_v26, 16 }
  0xe8   :  { %960 = vst [vmem:[#allocation2 + $0x88] sm:$0x1] %v959_v27  ;;  %v9200_v34 = vld.sshfl [vmem:[#allocation1 + $0x8] sm:$0xff pattern:$0x75643120]  ;;  %v922_v38 = vsel %vm13556_vm13, %v914_v28, %v13450_v10  ;;  %v1774_v13 = vshll.u32 %v9083_v26, 16  ;;  %v9221_v10 = vpop.permute.xlu0 %908 }
  0xe9   :  { %13909 = vst [vmem:[#allocation41_spill] sm:$0xff] %v9198_v57  ;;  %1718 = vrot.lane.b32.xlu0 %v1713_v46, %s8518_s30  ;;  %v924_v63 = vsel %vm13463_vm11, %v899_v9, %v922_v38  ;;  %v402_v46 = vrot.slane %v400_v53, 7  ;;  %v403_v27 = vshll.u32 %v8677_v30, 16  ;;  %v918_v26 = vrot.slane %v9026_v18, 4 }
  0xea   :  { %13910 = vst [vmem:[#allocation42_spill] sm:$0xff] %v9200_v34  ;;  %v1714_v28 = vrot.slane %v9050_v45, 7  ;;  %v1776_v9 = vrot.slane %v1774_v13, 6  ;;  %v1092_v53 = vshll.u32 %v8771_v51, 16  ;;  %v955_v51 = vld [vmem:[#allocation2 + $0x80] sm:$0x11] }
  0xeb   :  { %3610 = vst [vmem:[#allocation1] ss:$2 sm:$0xff] %v9100_v1  ;;  %v405_v30 = vor.u32 %v403_v27, %v402_v46  ;;  %v1064_v46 = vld [vmem:[#allocation2 + $0x70] sm:$0xcc] }
  0xec   :  { %v9209_v0 = vld.sshfl [vmem:[#allocation1 + $0x10] sm:$0xff pattern:$0x75643120]  ;;  %v9211_v33 = vld.sshfl [vmem:[#allocation1 + $0x18] sm:$0xff pattern:$0x75643120]  ;;  %1787 = vrot.lane.b32.xlu2 %v1770_v40, %s8519_s14 }
  0xed   :  { %13911 = vst [vmem:[#allocation43_spill] sm:$0xff] %v9209_v0  ;;  %v9223_v32 = vpop.permute.xlu2 %1266  ;;  %v949_v0 = vld [vmem:[#allocation2 + $0x70] sm:$0x11]  ;;  %v1089_v40 = vshll.u32 %v8769_v47, 16  ;;  %v1041_v27 = vpop.permute.xlu1 %1040 }
  0xee   :  { %13912 = vst [vmem:[#allocation44_spill] sm:$0xff] %v9211_v33  ;;  %v1773_v33 = vrot.slane %v1771_v24, 5  ;;  %1832 = vrot.lane.b32.xlu1 %v9112_v29, %s13737_s15  ;;  %v1048_v57 = vrot.slane %v1041_v27, 4 }
  0xef   :  { %3612 = vst [vmem:[#allocation1 + $0x10] ss:$2 sm:$0xff] %v9105_v12 }
  0xf0   :  { %945 = vst [vmem:[#allocation2 + $0x54] sm:$0x88] %v924_v63  ;;  %v919_v63 = vrot.slane %v9221_v10, 4 }
  0xf1   :  { %1720 = vrot.lane.b32.xlu0 %v1714_v28, %s8518_s30 }
  0xf2   :  { %v9231_v45 = vld.sshfl [vmem:[#allocation1] sm:$0xff pattern:$0x75643120]  ;;  %v9233_v34 = vld.sshfl [vmem:[#allocation1 + $0x8] sm:$0xff pattern:$0x75643120]  ;;  %v930_v24 = vsel %vm13556_vm13, %v918_v26, %v919_v63 }
  0xf3   :  { %13913 = vst [vmem:[#allocation45_spill] sm:$0xff] %v9231_v45  ;;  %v931_v29 = vsel %vm13463_vm11, %v9026_v18, %v930_v24  ;;  %v1781_v26 = vshll.u32 %v9085_v44, 16  ;;  %v9252_v18 = vrot.slane %v1089_v40, 5  ;;  %v9254_v24 = vrot.slane %v1092_v53, 5  ;;  %v952_v53 = vld [vmem:[#allocation2 + $0x78] sm:$0x11] }
  0xf4   :  { %13914 = vst [vmem:[#allocation46_spill] sm:$0xff] %v9233_v34  ;;  %v950_v28 = vsel %vm8871_vm5, %v931_v29, %v949_v0  ;;  %420 = vrot.lane.b32.xlu2 %v405_v30, %s8519_s14  ;;  %v13920_v29 = vrot.slane %v9095_v56, 4  ;;  %v1777_v34 = vor.u32 %v1776_v9, %v1773_v33  ;;  %vm13474_vm11 = vcmask 515072   ;;  %v1067_v30 = vld [vmem:[#allocation2 + $0x78] sm:$0xcc] }
  0xf5   :  { %3689 = vst [vmem:[#allocation1] ss:$2 sm:$0xff] %v9100_v1  ;;  %v1783_v33 = vrot.slane %v1781_v26, 6  ;;  %v13925_v9 = vrot.slane %v9070_v43, 4 }
  0xf6   :  { %v9238_v13 = vld.sshfl [vmem:[#allocation1 + $0x10] sm:$0xff pattern:$0x75643120]  ;;  %v9240_v38 = vld.sshfl [vmem:[#allocation1 + $0x18] sm:$0xff pattern:$0x75643120]  ;;  %v1052_v44 = vsel %vm13556_vm13, %v1048_v57, %v13920_v29  ;;  %1834 = vrot.lane.b32.xlu1 %v9119_v49, %s13737_s15 }
  0xf7   :  { %13915 = vst [vmem:[#allocation47_spill] sm:$0xff] %v9238_v13  ;;  %v1000_v13 = vrot.slane %v9214_v58, 4  ;;  %v1054_v40 = vsel %vm13924_vm15, %v1041_v27, %v1052_v44  ;;  %v1780_v57 = vrot.slane %v1778_v22, 5  ;;  %v8441_v27 = vpack.i.bf16 %v9254_v24, %v9252_v18 }
  0xf8   :  { %13916 = vst [vmem:[#allocation48_spill] sm:$0xff] %v9240_v38  ;;  %v9272_v38 = vpop.permute.xlu2 %1315  ;;  %v1065_v45 = vsel %vm8917_vm0, %v1054_v40, %v1064_v46  ;;  %vm13931_vm15 = vcmask 523264   ;;  %v1070_v40 = vld [vmem:[#allocation2 + $0x80] sm:$0xcc] }
  0xf9   :  { %3691 = vst [vmem:[#allocation1 + $0x10] ss:$2 sm:$0xff] %v9105_v12  ;;  %v1004_v29 = vsel %vm13556_vm13, %v1000_v13, %v13925_v9  ;;  %1789 = vrot.lane.b32.xlu0 %v1777_v34, %s8519_s14  ;;  %v13928_v13 = vrot.slane %v9173_v3, 4  ;;  %vm13932_vm2 = vmmov %vm13931_vm15  ;;  %v1045_v34 = vpop.permute.xlu1 %1044 }
  0xfa   :  { %951 = vst [vmem:[#allocation2 + $0x70] sm:$0x11] %v950_v28  ;;  %v911_v28 = vpop.permute.xlu0 %910 }
  0xfb   :  { %v920_v7 = vrot.slane %v911_v28, 4  ;;  %1066 = vst [vmem:[#allocation2 + $0x70] sm:$0xcc] %v1065_v45 }
  0xfc   :  { %v9303_v9 = vld.sshfl [vmem:[#allocation1] sm:$0xff pattern:$0x75643120]  ;;  %8442 = vrot.lane.b32.xlu2 %v8441_v27, %s13580_s24 }
  0xfd   :  { %v932_v45 = vsel %vm13556_vm13, %v919_v63, %v920_v7  ;;  %v934_v49 = vsel %vm13556_vm13, %v920_v7, %v13928_v13  ;;  %13933 = vst [vmem:[#allocation51_spill] sm:$0xff] %v9303_v9  ;;  %v1006_v7 = vsel %vm13474_vm11, %v9214_v58, %v1004_v29  ;;  %v13935_v58 = vrot.slane %v9095_v56, 4  ;;  %v1747_v9 = vld [vmem:[#allocation2 + $0xf8] sm:$0x6] }
  0xfe   :  { %v933_v0 = vsel %vm13931_vm15, %v9221_v10, %v932_v45  ;;  %v935_v44 = vsel %vm13932_vm2, %v911_v28, %v934_v49  ;;  %v1050_v10 = vrot.slane %v1045_v34, 4  ;;  %v980_v45 = vshrl.u32 %v8752_v17, 16  ;;  %v9316_v49 = vld.sshfl [vmem:[#allocation1 + $0x8] sm:$0xff pattern:$0x75643120]  ;;  %vm13938_vm15 = vmmov %vm13937_vm10  ;;  %1836 = vrot.lane.b32.xlu1 %v9121_v37, %s13737_s15 }
  0xff   :  { %v953_v63 = vsel %vm8871_vm5, %v933_v0, %v952_v53  ;;  %v956_v13 = vsel %vm8871_vm5, %v935_v44, %v955_v51  ;;  %13934 = vst [vmem:[#allocation52_spill] sm:$0xff] %v9316_v49  ;;  %v13936_v53 = vrot.slane %v9139_v55, 4  ;;  %v1784_v0 = vor.u32 %v1783_v33, %v1780_v57 }
 0x100   :  { %v9296_v46 = vld.sshfl [vmem:[#allocation1 + $0x10] sm:$0xff pattern:$0x75643120]  ;;  %v9298_v26 = vld.sshfl [vmem:[#allocation1 + $0x18] sm:$0xff pattern:$0x75643120]  ;;  %v1055_v29 = vsel %vm13556_vm13, %v13935_v58, %v1050_v10 }
 0x101   :  { %13929 = vst [vmem:[#allocation49_spill] sm:$0xff] %v9296_v46  ;;  %v1016_v3 = vld [vmem:[#allocation2 + $0x70] sm:$0x33]  ;;  %v1057_v51 = vsel %vm13556_vm13, %v1050_v10, %v13936_v53  ;;  %v1056_v44 = vsel %vm13937_vm10, %v9095_v56, %v1055_v29  ;;  %vm13939_vm2 = vcmask 1043459   ;;  %vm606_vm10 = vmand %vm604_vm8, %vm605_vm4  ;;  %1791 = vrot.lane.b32.xlu0 %v1784_v0, %s8519_s14  ;;  %v13944_v58 = vrot.slane %v8660_v21, 5 }
 0x102   :  { %13930 = vst [vmem:[#allocation50_spill] sm:$0xff] %v9298_v26  ;;  %v1017_v28 = vsel %vm9287_vm14, %v1006_v7, %v1016_v3  ;;  %v1058_v27 = vsel %vm13938_vm15, %v1045_v34, %v1057_v51  ;;  %vm9329_vm11 = vmand %vm13939_vm2, %vm13481_vm3  ;;  %v9333_v3 = vpop.permute.xlu0 %8422  ;;  %v1068_v55 = vsel %vm8917_vm0, %v1056_v44, %v1067_v30  ;;  %v982_v34 = vrot.slane %v980_v45, 7  ;;  %v1162_v45 = vld [vmem:[#allocation2 + $0x70] sm:$0x88]  ;;  %v1590_v46 = vld [vmem:[#allocation2 + $0xc4] sm:$0xcc] }
 0x103   :  { %3757 = vst [vmem:[#allocation1 + $0x11] ss:$2 sm:$0xff] %v9105_v12  ;;  %v1071_v57 = vsel %vm8917_vm0, %v1058_v27, %v1070_v40  ;;  %v13476_v56 = vunpack.i.h.bf16 %v9333_v3  ;;  %v8424_v33 = vunpack.i.l.bf16 %v9333_v3  ;;  %vm13480_vm15 = vcmask 498688   ;;  %vm9356_vm4 = vmor %vm606_vm10, %vm9329_vm11 }
 0x104   :  { %954 = vst [vmem:[#allocation2 + $0x78] sm:$0x11] %v953_v63  ;;  %v9335_v63 = vpop.permute.xlu2 %1384  ;;  %318 = vrot.lane.b32.xlu2 %v13944_v58, %s8518_s30  ;;  %v1375_v7 = vshrl.u32 %v8875_v6, 16  ;;  %vm13484_vm11 = vcmask 490496   ;;  %v829_v26 = vshrl.u32 %v8732_v42, 16  ;;  %vm13485_vm8 = vcmask 261120  }
 0x105   :  { %1018 = vst [vmem:[#allocation2 + $0x70] sm:$0x33] %v1017_v28  ;;  %v9352_v30 = vrot.slane %v13476_v56, 4  ;;  %v1131_v40 = vrot.slane %v8424_v33, 4  ;;  %v9360_v28 = vpop.permute.xlu1 %1125  ;;  %vm13486_vm2 = vcmask 1009665   ;;  %vm13493_vm10 = vcmask 236544  }
 0x106   :  { %957 = vst [vmem:[#allocation2 + $0x80] sm:$0x11] %v956_v13  ;;  %v983_v13 = vshll.u32 %v8752_v17, 16  ;;  %v13475_v51 = vrot.slane %v9360_v28, 4 }
 0x107   :  { %3755 = vst [vmem:[#allocation1 + $0x1] ss:$2 sm:$0xff] %v9100_v1  ;;  %v1139_v17 = vsel %vm13556_vm13, %v1131_v40, %v9352_v30 }
 0x108   :  { %1069 = vst [vmem:[#allocation2 + $0x78] sm:$0xcc] %v1068_v55  ;;  %v1141_v37 = vsel %vm13480_vm15, %v8424_v33, %v1139_v17  ;;  %v985_v29 = vor.u32 %v983_v13, %v982_v34  ;;  %v1378_v55 = vshll.u32 %v8875_v6, 16  ;;  %v13478_v33 = vrot.slane %v9193_v16, 4 }
 0x109   :  { %1072 = vst [vmem:[#allocation2 + $0x80] sm:$0xcc] %v1071_v57  ;;  %v1163_v53 = vsel %vm9356_vm4, %v1141_v37, %v1162_v45  ;;  %1830 = vrot.lane.b32.xlu0 %v9110_v39, %s13737_s15  ;;  %v1250_v17 = vshrl.u32 %v8805_v54, 16  ;;  %v1220_v45 = vld [vmem:[#allocation2 + $0x94] sm:$0x66]  ;;  %v1253_v39 = vshll.u32 %v8805_v54, 16 }
 0x10a   :  { %1164 = vst [vmem:[#allocation2 + $0x70] sm:$0x88] %v1163_v53  ;;  %v1124_v0 = vpop.permute.xlu0 %1123  ;;  %996 = vrot.lane.b32.xlu1 %v985_v29, %s13578_s22  ;;  %v9387_v13 = vld.sshfl [vmem:[#allocation1 + $0x10] sm:$0xff pattern:$0x75643120]  ;;  %v1377_v29 = vrot.slane %v1375_v7, 6 }
 0x10b   :  { %v1135_v27 = vrot.slane %v1124_v0, 4  ;;  %13945 = vst [vmem:[#allocation53_spill] sm:$0xff] %v9387_v13  ;;  %v9391_v37 = vld.sshfl [vmem:[#allocation1 + $0x18] sm:$0xff pattern:$0x75643120]  ;;  %v1380_v53 = vrot.slane %v1378_v55, 7 }
 0x10c   :  { %v9371_v44 = vpop.permute.xlu2 %1441  ;;  %13946 = vst [vmem:[#allocation54_spill] sm:$0xff] %v9391_v37  ;;  %778 = vrot.lane.b32.xlu2 %v8726_v36, %s13588_s19  ;;  %v1252_v36 = vrot.slane %v1250_v17, 5  ;;  %v1217_v7 = vld [vmem:[#allocation2 + $0x8c] sm:$0x66] }
 0x10d   :  { %v1147_v34 = vsel %vm13556_vm13, %v1135_v27, %v13475_v51  ;;  %v1196_v40 = vpop.permute.xlu1 %1195  ;;  %3802 = vst [vmem:[#allocation1 + $0x10] ss:$2 sm:$0xff] %v9105_v12  ;;  %v8436_v27 = vpack.i.bf16 %v8703_v52, %v8701_v50  ;;  %v13947_v50 = vrot.slane %v8658_v20, 5  ;;  %v1255_v52 = vrot.slane %v1253_v39, 6 }
 0x10e   :  { %v9376_v57 = vld.sshfl [vmem:[#allocation1] sm:$0xff pattern:$0x75643120]  ;;  %v9378_v21 = vld.sshfl [vmem:[#allocation1 + $0x8] sm:$0xff pattern:$0x75643120]  ;;  %v1148_v6 = vsel %vm13480_vm15, %v1124_v0, %v1147_v34 }
 0x10f   :  { %3800 = vst [vmem:[#allocation1] ss:$2 sm:$0xff] %v9100_v1  ;;  %v1202_v58 = vrot.slane %v1196_v40, 4  ;;  %v1105_v34 = vshrl.u32 %v8769_v47, 16  ;;  %v1381_v47 = vor.u32 %v1380_v53, %v1377_v29  ;;  %v641_v39 = vrot.slane %v8711_v61, 7 }
 0x110   :  { %1174 = vst [vmem:[#allocation2 + $0x8c] sm:$0x11] %v1148_v6  ;;  %vm13951_vm15 = vsmask.f32 2304 }
 0x111   :  { %v1208_v0 = vsel %vm13556_vm13, %v1202_v58, %v13478_v33  ;;  %v832_v33 = vshll.u32 %v8732_v42, 16  ;;  %8437 = vrot.lane.b32.xlu0 %v8436_v27, %s13513_s16  ;;  %v13482_v42 = vrot.slane %v9223_v32, 4  ;;  %vm9445_vm3 = vmand %vm13486_vm2, %vm13951_vm15  ;;  %vm13487_vm15 = vcmask 252928  }
 0x112   :  { %v1209_v6 = vsel %vm13484_vm11, %v1196_v40, %v1208_v0  ;;  %v1194_v51 = vpop.permute.xlu0 %1193  ;;  %316 = vrot.lane.b32.xlu1 %v13947_v50, %s8518_s30  ;;  %v1579_v0 = vrot.slane %v8975_v23, 4 }
 0x113   :  { %v1221_v54 = vsel %vm8966_vm9, %v1209_v6, %v1220_v45  ;;  %v1201_v55 = vrot.slane %v1194_v51, 4  ;;  %v1107_v45 = vrot.slane %v1105_v34, 4  ;;  %v1580_v6 = vrot.slane %v8977_v8, 4 }
 0x114   :  { %v9404_v56 = vpop.permute.xlu2 %1445  ;;  %1222 = vst [vmem:[#allocation2 + $0x94] sm:$0x66] %v1221_v54  ;;  %v9428_v27 = vrot.slane %v832_v33, 7  ;;  %1388 = vrot.lane.b32.xlu2 %v1381_v47, %s13572_s28  ;;  %v1256_v34 = vor.u32 %v1255_v52, %v1252_v36  ;;  %v1581_v47 = vrot.slane %v8987_v31, 4 }
 0x115   :  { %v1205_v17 = vsel %vm13556_vm13, %v1201_v55, %v1202_v58  ;;  %v1265_v20 = vpop.permute.xlu1 %1264  ;;  %v9426_v58 = vrot.slane %v829_v26, 6  ;;  %v1583_v23 = vsel %vm13556_vm13, %v1579_v0, %v1580_v6  ;;  %v1226_v26 = vld [vmem:[#allocation2 + $0xa4] sm:$0x6]  ;;  %v1108_v33 = vor.u32 %v1107_v45, %v9252_v18  ;;  %v1223_v55 = vld [vmem:[#allocation2 + $0x9c] sm:$0x66] }
 0x116   :  { %v9413_v40 = vld.sshfl [vmem:[#allocation1] sm:$0xff pattern:$0x75643120]  ;;  %v1207_v54 = vsel %vm13484_vm11, %v1194_v51, %v1205_v17  ;;  %v9422_v29 = vld.sshfl [vmem:[#allocation1 + $0x8] sm:$0xff pattern:$0x75643120]  ;;  %v1591_v61 = vsel %vm8917_vm0, %v1583_v23, %v1590_v46  ;;  %v1584_v18 = vsel %vm13556_vm13, %v1580_v6, %v1581_v47 }
 0x117   :  { %13948 = vst [vmem:[#allocation55_spill] sm:$0xff] %v9413_v40  ;;  %v1218_v53 = vsel %vm8966_vm9, %v1207_v54, %v1217_v7  ;;  %v1272_v8 = vrot.slane %v1265_v20, 4  ;;  %v1457_v51 = vrot.slane %v9404_v56, 4  ;;  %v1582_v7 = vrot.slane %v8989_v4, 4  ;;  %v1599_v0 = vld [vmem:[#allocation2 + $0xdc] sm:$0xc] }
 0x118   :  { %13949 = vst [vmem:[#allocation56_spill] sm:$0xff] %v9422_v29  ;;  %v9441_v54 = vld.sshfl [vmem:[#allocation1 + $0x10] sm:$0xff pattern:$0x75643120]  ;;  %v13952_v46 = vmov 0  ;;  %v835_v4 = vor.u32 %v9428_v27, %v9426_v58  ;;  %v528_v23 = vshll.u32 %v8697_v48, 16 }
 0x119   :  { %3901 = vst [vmem:[#allocation1] ss:$2 sm:$0xff] %v9100_v1  ;;  %v13953_v46 = vsel %vm9445_vm3, 4294967295, %v13952_v46  ;;  %v1600_v52 = vsel %vm9145_vm1, %v1582_v7, %v1599_v0  ;;  %v9454_v45 = vld.sshfl [vmem:[#allocation1 + $0x18] sm:$0xff pattern:$0x75643120]  ;;  %v1276_v31 = vsel %vm13556_vm13, %v1272_v8, %v13482_v42  ;;  %1268 = vrot.lane.b32.xlu0 %v1256_v34, %s13582_s26 }
 0x11a   :  { %1219 = vst [vmem:[#allocation2 + $0x8c] sm:$0x66] %v1218_v53  ;;  %v1200_v50 = vpop.permute.xlu0 %1199  ;;  %v1488_v53 = vld [vmem:[#allocation2 + $0xc4] sm:$0x11]  ;;  %648 = vrot.lane.b32.xlu1 %v641_v39, %s13586_s17  ;;  %v13956_v58 = vrot.slane %v9193_v16, 4  ;;  %v1109_v39 = vrot.slane %v1108_v33, 4 }
 0x11b   :  { %1592 = vst [vmem:[#allocation2 + $0xc4] sm:$0xcc] %v1591_v61  ;;  %v1204_v36 = vrot.slane %v1200_v50, 4  ;;  %v544_v61 = vshrl.u32 %v8697_v48, 16 }
 0x11c   :  { %v9438_v17 = vpop.permute.xlu2 %1447  ;;  %13950 = vst [vmem:[#allocation57_spill] sm:$0xff] %v9441_v54  ;;  %v13978_v54 = vrot.slane %v9335_v63, 4 }
 0x11d   :  { %13954 = vst [vmem:[#allocation58_spill] sm:$0xff] %v13953_v46  ;;  %v1210_v27 = vsel %vm13556_vm13, %v13956_v58, %v1204_v36  ;;  %v1212_v0 = vsel %vm13484_vm11, %v1200_v50, %v1204_v36  ;;  %v13957_v8 = vrot.slane %v9438_v17, 4  ;;  %v1585_v50 = vsel %vm13556_vm13, %v1581_v47, %v1582_v7  ;;  %v1596_v36 = vld [vmem:[#allocation2 + $0xd4] sm:$0xcc] }
 0x11e   :  { %13955 = vst [vmem:[#allocation59_spill] sm:$0xff] %v9454_v45  ;;  %v1593_v45 = vld [vmem:[#allocation2 + $0xcc] sm:$0xcc]  ;;  %v1211_v48 = vsel %vm13484_vm11, %v9193_v16, %v1210_v27  ;;  %v1227_v6 = vsel %vm9445_vm3, %v1212_v0, %v1226_v26  ;;  %v705_v27 = vshrl.u32 %v8717_v14, 16  ;;  %v1597_v47 = vsel %vm8917_vm0, %v1585_v50, %v1596_v36  ;;  %v1335_v36 = vld [vmem:[#allocation2 + $0xa8] sm:$0x33] }
 0x11f   :  { %1601 = vst [vmem:[#allocation2 + $0xdc] sm:$0xc] %v1600_v52  ;;  %v1469_v42 = vsel %vm13556_vm13, %v1457_v51, %v13957_v8  ;;  %v1312_v52 = vpop.permute.xlu1 %1311  ;;  %v1278_v51 = vsel %vm13485_vm8, %v1265_v20, %v1276_v31  ;;  %v1224_v33 = vsel %vm8966_vm9, %v1211_v48, %v1223_v55  ;;  %v546_v20 = vrot.slane %v544_v61, 4 }
 0x120   :  { %3903 = vst [vmem:[#allocation1 + $0x10] ss:$2 sm:$0xff] %v9105_v12  ;;  %v1470_v34 = vsel %vm13493_vm10, %v9404_v56, %v1469_v42  ;;  %v13958_v56 = vrot.slane %v8742_v60, 5  ;;  %v9490_v42 = vrot.slane %v528_v23, 5  ;;  %v1594_v7 = vsel %vm8917_vm0, %v1584_v18, %v1593_v45  ;;  %v1497_v23 = vld [vmem:[#allocation2 + $0xdc] sm:$0x1] }
 0x121   :  { %v1288_v58 = vld [vmem:[#allocation2 + $0x8c] sm:$0xcc]  ;;  %1228 = vst [vmem:[#allocation2 + $0xa4] sm:$0x6] %v1227_v6  ;;  %v1489_v16 = vsel %vm8871_vm5, %v1470_v34, %v1488_v53  ;;  %v708_v55 = vshll.u32 %v8717_v14, 16  ;;  %1127 = vrot.lane.b32.xlu0 %v1109_v39, %s13580_s24  ;;  %v707_v45 = vrot.slane %v705_v27, 5 }
 0x122   :  { %v1289_v26 = vsel %vm9057_vm12, %v1278_v51, %v1288_v58  ;;  %1225 = vst [vmem:[#allocation2 + $0x9c] sm:$0x66] %v1224_v33  ;;  %902 = vrot.lane.b32.xlu2 %v13958_v56, %s13590_s21  ;;  %v9497_v31 = vld.sshfl [vmem:[#allocation1] sm:$0xff pattern:$0x75643120]  ;;  %v9499_v53 = vpop.permute.xlu0 %1437  ;;  %847 = vrot.lane.b32.xlu1 %v835_v4, %s13959_s0  ;;  %v547_v18 = vor.u32 %v546_v20, %v9490_v42  ;;  %v1321_v48 = vrot.slane %v9272_v38, 4 }
 0x123   :  { %1290 = vst [vmem:[#allocation2 + $0x8c] sm:$0xcc] %v1289_v26  ;;  %v9501_v60 = vld.sshfl [vmem:[#allocation1 + $0x8] sm:$0xff pattern:$0x75643120]  ;;  %v710_v61 = vrot.slane %v708_v55, 6 }
 0x124   :  { %1490 = vst [vmem:[#allocation2 + $0xc4] sm:$0x11] %v1489_v16  ;;  %v1452_v0 = vpop.permute.xlu2 %1451  ;;  %v1319_v4 = vrot.slane %v1312_v52, 4  ;;  %v1338_v39 = vld [vmem:[#allocation2 + $0xb0] sm:$0x33]  ;;  %v548_v51 = vrot.slane %v547_v18, 4 }
 0x125   :  { %v1460_v8 = vrot.slane %v1452_v0, 4  ;;  %1595 = vst [vmem:[#allocation2 + $0xcc] sm:$0xcc] %v1594_v7  ;;  %v711_v26 = vor.u32 %v710_v61, %v707_v45  ;;  %v1525_v56 = vshrl.u32 %v8948_v5, 16  ;;  %vm13492_vm11 = vcmask 1008640  }
 0x126   :  { %1598 = vst [vmem:[#allocation2 + $0xd4] sm:$0xcc] %v1597_v47  ;;  %v13963_v45 = vrot.slane %v9438_v17, 4  ;;  %vm13965_vm8 = vsmask.f32 1280 }
 0x127   :  { %v1475_v14 = vsel %vm13493_vm10, %v1452_v0, %v1460_v8  ;;  %3951 = vst [vmem:[#allocation1] ss:$2 sm:$0xff] %v9100_v1  ;;  %v1314_v34 = vpop.permute.xlu1 %1313  ;;  %v9511_v50 = vld.sshfl [vmem:[#allocation1 + $0x10] sm:$0xff pattern:$0x75643120]  ;;  %vm9548_vm2 = vmand %vm13492_vm11, %vm13965_vm8  ;;  %vm13494_vm8 = vcmask 244736  }
 0x128   :  { %v1498_v6 = vsel %vm9180_vm7, %v1475_v14, %v1497_v23  ;;  %13960 = vst [vmem:[#allocation60_spill] sm:$0xff] %v9511_v50  ;;  %v1320_v58 = vrot.slane %v1314_v34, 4  ;;  %v9515_v33 = vld.sshfl [vmem:[#allocation1 + $0x18] sm:$0xff pattern:$0x75643120]  ;;  %vm13504_vm11 = vcmask 1010691  }
 0x129   :  { %1499 = vst [vmem:[#allocation2 + $0xdc] sm:$0x1] %v1498_v6  ;;  %v1491_v23 = vld [vmem:[#allocation2 + $0xcc] sm:$0x11]  ;;  %v1494_v14 = vld [vmem:[#allocation2 + $0xd4] sm:$0x11]  ;;  %723 = vrot.lane.b32.xlu0 %v711_v26, %s13962_s18 }
 0x12a   :  { %477 = vrot.lane.b32.xlu2 %v8690_v41, %s13737_s15  ;;  %13961 = vst [vmem:[#allocation61_spill] sm:$0xff] %v9515_v33  ;;  %v1323_v16 = vsel %vm13556_vm13, %v1319_v4, %v1320_v58  ;;  %v1326_v27 = vsel %vm13556_vm13, %v1320_v58, %v1321_v48  ;;  %v1450_v55 = vpop.permute.xlu0 %1449  ;;  %566 = vrot.lane.b32.xlu1 %v548_v51, %s13513_s16  ;;  %v1528_v4 = vshll.u32 %v8948_v5, 16 }
 0x12b   :  { %3953 = vst [vmem:[#allocation1 + $0x10] ss:$2 sm:$0xff] %v9105_v12  ;;  %v1325_v20 = vsel %vm13487_vm15, %v1312_v52, %v1323_v16  ;;  %v1327_v7 = vsel %vm13487_vm15, %v1314_v34, %v1326_v27  ;;  %v1459_v18 = vrot.slane %v1450_v55, 4  ;;  %v13488_v52 = vrot.slane %v8667_v25, 5 }
 0x12c   :  { %v9523_v47 = vpop.permute.xlu2 %1535  ;;  %v1336_v41 = vsel %vm8795_vm6, %v1325_v20, %v1335_v36  ;;  %v1339_v0 = vsel %vm8795_vm6, %v1327_v7, %v1338_v39  ;;  %v1527_v34 = vrot.slane %v1525_v56, 7  ;;  %v1344_v39 = vld [vmem:[#allocation2 + $0xc0] sm:$0x3]  ;;  %v1341_v7 = vld [vmem:[#allocation2 + $0xb8] sm:$0x33] }
 0x12d   :  { %1337 = vst [vmem:[#allocation2 + $0xa8] sm:$0x33] %v1336_v41  ;;  %v1471_v61 = vsel %vm13556_vm13, %v13963_v45, %v1459_v18  ;;  %v1473_v6 = vsel %vm13556_vm13, %v1459_v18, %v1460_v8  ;;  %v13966_v8 = vmov 0  ;;  %v1688_v29 = vld [vmem:[#allocation2 + $0xcc] sm:$0x88] }
 0x12e   :  { %1340 = vst [vmem:[#allocation2 + $0xb0] sm:$0x33] %v1339_v0  ;;  %v1472_v36 = vsel %vm13493_vm10, %v9438_v17, %v1471_v61  ;;  %v1474_v58 = vsel %vm13493_vm10, %v1450_v55, %v1473_v6  ;;  %v9540_v16 = vld.sshfl [vmem:[#allocation1] sm:$0xff pattern:$0x75643120]  ;;  %v13967_v8 = vsel %vm9548_vm2, 4294967295, %v13966_v8 }
 0x12f   :  { %v1318_v51 = vpop.permute.xlu1 %1317  ;;  %13964 = vst [vmem:[#allocation62_spill] sm:$0xff] %v9540_v16  ;;  %v1492_v27 = vsel %vm8871_vm5, %v1472_v36, %v1491_v23  ;;  %v1495_v26 = vsel %vm8871_vm5, %v1474_v58, %v1494_v14  ;;  %v13968_v17 = vld [vmem:[#allocation14_spill] sm:$0xff]  ;;  %v9553_v20 = vld.sshfl [vmem:[#allocation1 + $0x8] sm:$0xff pattern:$0x75643120]  ;;  %v315_v55 = vrot.slane %v13488_v52, 4  ;;  %v1530_v23 = vor.u32 %v1528_v4, %v1527_v34 }
 0x130   :  { %v1322_v5 = vrot.slane %v1318_v51, 4  ;;  %v406_v56 = vshrl.u32 %v13968_v17, 16  ;;  %13969 = vst [vmem:[#allocation14_spill] sm:$0xff] %v9553_v20  ;;  %v409_v61 = vshll.u32 %v13968_v17, 16  ;;  %v13970_v6 = vld [vmem:[#allocation18_spill] sm:$0xff]  ;;  %v13977_v52 = vld [vmem:[#allocation23_spill] sm:$0xff] }
 0x131   :  { %1493 = vst [vmem:[#allocation2 + $0xcc] sm:$0x11] %v1492_v27  ;;  %1537 = vrot.lane.b32.xlu0 %v1530_v23, %s13584_s27  ;;  %v1685_v17 = vld [vmem:[#allocation2 + $0xc4] sm:$0x88]  ;;  %vm13989_vm10 = vsmask.f32 7950 }
 0x132   :  { %558 = vrot.lane.b32.xlu2 %v9490_v42, %s13513_s16  ;;  %1496 = vst [vmem:[#allocation2 + $0xd4] sm:$0x11] %v1495_v26  ;;  %v1328_v41 = vsel %vm13556_vm13, %v1321_v48, %v1322_v5  ;;  %v1330_v0 = vsel %vm13487_vm15, %v1318_v51, %v1322_v5  ;;  %v836_v42 = vshrl.u32 %v13970_v6, 16  ;;  %v408_v34 = vrot.slane %v406_v56, 7  ;;  %330 = vrot.lane.b32.xlu1 %v315_v55, %s8518_s30  ;;  %v9576_v51 = vpop.permute.xlu0 %1531  ;;  %v1691_v40 = vld [vmem:[#allocation2 + $0xd4] sm:$0x88] }
 0x133   :  { %v1329_v18 = vsel %vm13487_vm15, %v9272_v38, %v1328_v41  ;;  %v1345_v14 = vsel %vm9548_vm2, %v1330_v0, %v1344_v39  ;;  %4021 = vst [vmem:[#allocation1] ss:$2 sm:$0xff] %v9100_v1  ;;  %v9570_v4 = vld.sshfl [vmem:[#allocation1 + $0x10] sm:$0xff pattern:$0x75643120]  ;;  %v839_v39 = vshll.u32 %v13970_v6, 16 }
 0x134   :  { %v8428_v45 = vpop.permute.xlu2 %8427  ;;  %v1342_v36 = vsel %vm8795_vm6, %v1329_v18, %v1341_v7  ;;  %1346 = vst [vmem:[#allocation2 + $0xc0] sm:$0x3] %v1345_v14  ;;  %v9580_v5 = vld.sshfl [vmem:[#allocation1 + $0x18] sm:$0xff pattern:$0x75643120]  ;;  %v13973_v7 = vld [vmem:[#allocation11_spill] sm:$0xff]  ;;  %v411_v18 = vor.u32 %v409_v61, %v408_v34 }
 0x135   :  { %v8430_v48 = vunpack.i.h.bf16 %v8428_v45  ;;  %v8429_v58 = vunpack.i.l.bf16 %v8428_v45  ;;  %13971 = vst [vmem:[#allocation18_spill] sm:$0xff] %v9570_v4  ;;  %v238_v41 = vshrl.u32 %v13973_v7, 16  ;;  %v241_v0 = vshll.u32 %v13973_v7, 16  ;;  %v13975_v6 = vld [vmem:[#allocation13_spill] sm:$0xff] }
 0x136   :  { %1343 = vst [vmem:[#allocation2 + $0xb8] sm:$0x33] %v1342_v36  ;;  %v838_v14 = vrot.slane %v836_v42, 6  ;;  %vm13974_vm15 = vcmask 1039360   ;;  %v13976_v36 = vrot.slane %v13975_v6, 5  ;;  %v1257_v38 = vshrl.u32 %v13977_v52, 16 }
 0x137   :  { %v9578_v27 = vrot.slane %v8430_v48, 4  ;;  %v1657_v26 = vrot.slane %v8429_v58, 4  ;;  %13972 = vst [vmem:[#allocation63_spill] sm:$0xff] %v9580_v5  ;;  %v1383_v56 = vpop.permute.xlu1 %1382  ;;  %v841_v58 = vrot.slane %v839_v39, 7  ;;  %v1260_v5 = vshll.u32 %v13977_v52, 16  ;;  %v13979_v52 = vld [vmem:[#allocation25_spill] sm:$0xff] }
 0x138   :  { %4023 = vst [vmem:[#allocation1 + $0x10] ss:$2 sm:$0xff] %v9105_v12  ;;  %v1390_v23 = vrot.slane %v1383_v56, 4  ;;  %v243_v6 = vrot.slane %v241_v0, 7  ;;  %vm13995_vm5 = vcmask 244736  }
 0x139   :  { %v1665_v55 = vsel %vm13556_vm13, %v1657_v26, %v9578_v27 }
 0x13a   :  { %v1666_v45 = vsel %vm13974_vm15, %v1665_v55, %v8430_v48  ;;  %320 = vrot.lane.b32.xlu2 %v13976_v36, %s8518_s30  ;;  %v1394_v26 = vsel %vm13556_vm13, %v1390_v23, %v13978_v54  ;;  %v9598_v61 = vld.sshfl [vmem:[#allocation1] sm:$0xff pattern:$0x75643120]  ;;  %v9600_v42 = vld.sshfl [vmem:[#allocation1 + $0x8] sm:$0xff pattern:$0x75643120]  ;;  %vm13980_vm15 = vnez %v13979_v52  ;;  %422 = vrot.lane.b32.xlu1 %v411_v18, %s8519_s14  ;;  %v842_v54 = vor.u32 %v841_v58, %v838_v14 }
 0x13b   :  { %v1686_v7 = vsel %vm9356_vm4, %v1666_v45, %v1685_v17  ;;  %v1406_v48 = vld [vmem:[#allocation2 + $0xa8] sm:$0x66]  ;;  %v1396_v34 = vsel %vm13494_vm8, %v1383_v56, %v1394_v26  ;;  %v240_v55 = vrot.slane %v238_v41, 6  ;;  %4067 = vst [vmem:[#allocation1] ss:$2 sm:$0xff] %v9100_v1  ;;  %v1259_v23 = vrot.slane %v1257_v38, 5  ;;  %v8433_v38 = vpop.permute.xlu0 %8432  ;;  %vm9630_vm8 = vmand %vm13504_vm11, %vm13989_vm10 }
 0x13c   :  { %1687 = vst [vmem:[#allocation2 + $0xc4] sm:$0x88] %v1686_v7  ;;  %v9603_v39 = vpop.permute.xlu2 %1649  ;;  %v1407_v36 = vsel %vm13980_vm15, %v1396_v34, %v1406_v48  ;;  %v13981_v17 = vld [vmem:[#allocation12_spill] sm:$0xff]  ;;  %v1262_v7 = vrot.slane %v1260_v5, 6  ;;  %v8435_v13 = vunpack.i.h.bf16 %v8433_v38  ;;  %v8434_v33 = vunpack.i.l.bf16 %v8433_v38 }
 0x13d   :  { %v245_v45 = vshrl.u32 %v13981_v17, 16  ;;  %v248_v4 = vshll.u32 %v13981_v17, 16  ;;  %1408 = vst [vmem:[#allocation2 + $0xa8] sm:$0x66] %v1407_v36  ;;  %v13983_v56 = vld [vmem:[#allocation28_spill] sm:$0xff]  ;;  %v244_v36 = vor.u32 %v243_v6, %v240_v55  ;;  %v13990_v55 = vmov 0 }
 0x13e   :  { %v13984_v26 = vrot.slane %v13983_v56, 5  ;;  %v13985_v41 = vld [vmem:[#allocation20_spill] sm:$0xff]  ;;  %v13988_v56 = vld [vmem:[#allocation17_spill] sm:$0xff]  ;;  %v1263_v48 = vor.u32 %v1262_v7, %v1259_v23  ;;  %v13991_v55 = vsel %vm9630_vm8, 4294967295, %v13990_v55  ;;  %v1694_v6 = vld [vmem:[#allocation2 + $0xdc] sm:$0x8] }
 0x13f   :  { %v986_v0 = vshrl.u32 %v13985_v41, 16  ;;  %v9615_v37 = vld.sshfl [vmem:[#allocation1 + $0x10] sm:$0xff pattern:$0x75643120]  ;;  %v9619_v17 = vpop.permute.xlu1 %1386  ;;  %v247_v14 = vrot.slane %v245_v45, 6  ;;  %v250_v58 = vrot.slane %v248_v4, 7 }
 0x140   :  { %1443 = vrot.lane.b32.xlu0 %v13984_v26, %s13982_s20  ;;  %13986 = vst [vmem:[#allocation11_spill] sm:$0xff] %v9615_v37  ;;  %v9621_v18 = vld.sshfl [vmem:[#allocation1 + $0x18] sm:$0xff pattern:$0x75643120]  ;;  %v13502_v5 = vrot.slane %v9619_v17, 4  ;;  %v712_v26 = vshrl.u32 %v13988_v56, 16 }
 0x141   :  { %13987 = vst [vmem:[#allocation13_spill] sm:$0xff] %v9621_v18  ;;  %v715_v34 = vshll.u32 %v13988_v56, 16  ;;  %v13993_v4 = vrot.slane %v9335_v63, 4  ;;  %v988_v18 = vrot.slane %v986_v0, 7  ;;  %v989_v38 = vshll.u32 %v13985_v41, 16 }
 0x142   :  { %4069 = vst [vmem:[#allocation1 + $0x10] ss:$2 sm:$0xff] %v9105_v12  ;;  %849 = vrot.lane.b32.xlu2 %v842_v54, %s13959_s0  ;;  %v13994_v54 = vld [vmem:[#allocation21_spill] sm:$0xff]  ;;  %v1660_v7 = vrot.slane %v8435_v13, 4  ;;  %v1659_v56 = vrot.slane %v8434_v33, 4  ;;  %v714_v41 = vrot.slane %v712_v26, 5  ;;  %1270 = vrot.lane.b32.xlu1 %v1263_v48, %s13582_s26 }
 0x143   :  { %13992 = vst [vmem:[#allocation23_spill] sm:$0xff] %v13991_v55  ;;  %v1397_v45 = vsel %vm13556_vm13, %v13993_v4, %v13502_v5  ;;  %v1110_v23 = vshrl.u32 %v13994_v54, 16  ;;  %v1409_v37 = vld [vmem:[#allocation2 + $0xb0] sm:$0x66]  ;;  %v251_v4 = vor.u32 %v250_v58, %v247_v14  ;;  %vm14006_vm11 = vcmask 1039360  }
 0x144   :  { %v1398_v50 = vsel %vm13995_vm5, %v9335_v63, %v1397_v45  ;;  %v9643_v49 = vpop.permute.xlu2 %1722  ;;  %v1695_v54 = vsel %vm9630_vm8, %v1660_v7, %v1694_v6  ;;  %v1667_v5 = vsel %vm13556_vm13, %v9578_v27, %v1659_v56  ;;  %v1669_v63 = vsel %vm13556_vm13, %v1659_v56, %v1660_v7  ;;  %v9654_v20 = vld.sshfl [vmem:[#allocation1] sm:$0xff pattern:$0x75643120]  ;;  %v9663_v58 = vld.sshfl [vmem:[#allocation1 + $0x8] sm:$0xff pattern:$0x75643120] }
 0x145   :  { %v1410_v16 = vsel %vm13980_vm15, %v1398_v50, %v1409_v37  ;;  %v13510_v0 = vrot.slane %v9643_v49, 4  ;;  %v717_v45 = vrot.slane %v715_v34, 6  ;;  %13996 = vst [vmem:[#allocation25_spill] sm:$0xff] %v9654_v20  ;;  %vm13997_vm5 = vcmask 1039360  }
 0x146   :  { %1411 = vst [vmem:[#allocation2 + $0xb0] sm:$0x66] %v1410_v16  ;;  %v1668_v37 = vsel %vm13997_vm5, %v1667_v5, %v8434_v33  ;;  %vm13998_vm10 = vmmov %vm13997_vm5  ;;  %v1112_v14 = vrot.slane %v1110_v23, 4  ;;  %v1661_v33 = vrot.slane %v9603_v39, 4  ;;  %v14003_v39 = vrot.slane %v9371_v44, 4 }
 0x147   :  { %1696 = vst [vmem:[#allocation2 + $0xdc] sm:$0x8] %v1695_v54  ;;  %v1670_v50 = vsel %vm13998_vm10, %v1669_v63, %v8435_v13  ;;  %v1748_v27 = vsel %vm9445_vm3, %v13510_v0, %v1747_v9  ;;  %v1689_v16 = vsel %vm9356_vm4, %v1668_v37, %v1688_v29  ;;  %v1440_v13 = vpop.permute.xlu1 %1439  ;;  %v718_v6 = vor.u32 %v717_v45, %v714_v41 }
 0x148   :  { %256 = vrot.lane.b32.xlu0 %v244_v36, %s13592_s29  ;;  %13999 = vst [vmem:[#allocation12_spill] sm:$0xff] %v9663_v58  ;;  %v1692_v48 = vsel %vm9356_vm4, %v1670_v50, %v1691_v40  ;;  %v1652_v36 = vpop.permute.xlu0 %1651  ;;  %v1454_v5 = vrot.slane %v1440_v13, 4  ;;  %v14002_v29 = vrot.slane %v9499_v53, 4  ;;  %v991_v7 = vor.u32 %v989_v38, %v988_v18  ;;  %v14007_v18 = vld [vmem:[#allocation16_spill] sm:$0xff]  ;;  %v14008_v50 = vld [vmem:[#allocation27_spill] sm:$0xff] }
 0x149   :  { %1749 = vst [vmem:[#allocation2 + $0xf8] sm:$0x6] %v1748_v27  ;;  %v9670_v34 = vld.sshfl [vmem:[#allocation1 + $0x10] sm:$0xff pattern:$0x75643120]  ;;  %v1662_v9 = vrot.slane %v1652_v36, 4  ;;  %v1113_v45 = vor.u32 %v1112_v14, %v9254_v24 }
 0x14a   :  { %14000 = vst [vmem:[#allocation28_spill] sm:$0xff] %v9670_v34  ;;  %v9672_v26 = vld.sshfl [vmem:[#allocation1 + $0x18] sm:$0xff pattern:$0x75643120]  ;;  %258 = vrot.lane.b32.xlu2 %v251_v4, %s13592_s29  ;;  %v1461_v40 = vsel %vm13556_vm13, %v14002_v29, %v1454_v5  ;;  %v1464_v23 = vsel %vm13556_vm13, %v1454_v5, %v14003_v39  ;;  %vm14004_vm5 = vcmask 236544   ;;  %725 = vrot.lane.b32.xlu1 %v718_v6, %s13962_s18  ;;  %v531_v38 = vshll.u32 %v14007_v18, 16 }
 0x14b   :  { %1690 = vst [vmem:[#allocation2 + $0xcc] sm:$0x88] %v1689_v16  ;;  %v1671_v56 = vsel %vm13556_vm13, %v1661_v33, %v1662_v9  ;;  %v1463_v54 = vsel %vm14004_vm5, %v9499_v53, %v1461_v40  ;;  %vm14005_vm10 = vmmov %vm14004_vm5  ;;  %v549_v37 = vshrl.u32 %v14007_v18, 16  ;;  %v13507_v53 = vrot.slane %v9523_v47, 4  ;;  %v1558_v5 = vld [vmem:[#allocation2 + $0xcc] sm:$0x33] }
 0x14c   :  { %14001 = vst [vmem:[#allocation20_spill] sm:$0xff] %v9672_v26  ;;  %v1465_v63 = vsel %vm14005_vm10, %v1440_v13, %v1464_v23  ;;  %v9686_v4 = vpop.permute.xlu2 %1787  ;;  %v1672_v41 = vsel %vm14006_vm11, %v1671_v56, %v1652_v36  ;;  %v426_v27 = vrot.slane %v14008_v50, 4  ;;  %v1539_v16 = vrot.slane %v9576_v51, 4  ;;  %v1555_v36 = vld [vmem:[#allocation2 + $0xc4] sm:$0x33] }
 0x14d   :  { %1693 = vst [vmem:[#allocation2 + $0xd4] sm:$0x88] %v1692_v48  ;;  %vm13505_vm11 = vcmask 228352   ;;  %v1114_v14 = vrot.slane %v1113_v45, 4  ;;  %v14009_v6 = vrot.slane %v8667_v25, 5  ;;  %v533_v29 = vrot.slane %v531_v38, 5 }
 0x14e   :  { %4137 = vst [vmem:[#allocation1] ss:$2 sm:$0xff] %v9100_v1  ;;  %v551_v40 = vrot.slane %v549_v37, 4  ;;  %v8536_v23 = vmov 0   ;;  %vm13509_vm5 = vcmask 1022976   ;;  %vm14014_vm10 = vcmask 1039360  }
 0x14f   :  { %4139 = vst [vmem:[#allocation1 + $0x10] ss:$2 sm:$0xff] %v9105_v12  ;;  %v1534_v48 = vpop.permute.xlu1 %1533  ;;  %8446 = vset.pattern.permute.xlu0 %v8536_v23  ;;  %8478 = vset.pattern.permute.xlu2 %v8536_v23  ;;  %v13515_v0 = vrot.slane %v9686_v4, 4 }
 0x150   :  { %1484 = vst [vmem:[#allocation2 + $0xa8] sm:$0x88] %v1463_v54  ;;  %998 = vrot.lane.b32.xlu0 %v991_v7, %s13578_s22  ;;  %v1654_v33 = vpop.permute.xlu0 %1653  ;;  %v1540_v24 = vrot.slane %v1534_v48, 4  ;;  %8477 = vset.pattern.permute.xlu1 %v8536_v23 }
 0x151   :  { %1697 = vst [vmem:[#allocation2 + $0xe0] sm:$0x11] %v1672_v41  ;;  %v1663_v13 = vrot.slane %v1654_v33, 4 }
 0x152   :  { %1485 = vst [vmem:[#allocation2 + $0xb0] sm:$0x88] %v1465_v63  ;;  %322 = vrot.lane.b32.xlu2 %v14009_v6, %s8518_s30  ;;  %v1543_v7 = vsel %vm13556_vm13, %v1539_v16, %v1540_v24  ;;  %v1546_v56 = vsel %vm13556_vm13, %v1540_v24, %v13507_v53  ;;  %v552_v6 = vor.u32 %v551_v40, %v533_v29  ;;  %v1168_v53 = vld [vmem:[#allocation2 + $0x80] sm:$0x88] }
 0x153   :  { %v1673_v25 = vsel %vm13556_vm13, %v1662_v9, %v1663_v13  ;;  %v1545_v41 = vsel %vm13505_vm11, %v9576_v51, %v1543_v7  ;;  %v1547_v45 = vsel %vm13505_vm11, %v1534_v48, %v1546_v56  ;;  %v14015_v51 = vld [vmem:[#allocation19_spill] sm:$0xff]  ;;  %vm14019_vm11 = vcmask 1039360  }
 0x154   :  { %v9715_v18 = vpop.permute.xlu2 %420  ;;  %v1674_v37 = vsel %vm14014_vm10, %v1673_v25, %v1654_v33  ;;  %v1556_v16 = vsel %vm9287_vm14, %v1545_v41, %v1555_v36  ;;  %v1559_v9 = vsel %vm9287_vm14, %v1547_v45, %v1558_v5  ;;  %v14016_v48 = vrot.slane %v14015_v51, 5  ;;  %v446_v36 = vld [vmem:[#allocation2 + $0x1c] sm:$0x33] }
 0x155   :  { %v9701_v39 = vld.sshfl [vmem:[#allocation1] sm:$0xff pattern:$0x75643120]  ;;  %v9707_v54 = vld.sshfl [vmem:[#allocation1 + $0x8] sm:$0xff pattern:$0x75643120] }
 0x156   :  { %14010 = vst [vmem:[#allocation17_spill] sm:$0xff] %v9701_v39  ;;  %v9709_v63 = vld.sshfl [vmem:[#allocation1 + $0x10] sm:$0xff pattern:$0x75643120]  ;;  %v13506_v24 = vrot.slane %v9715_v18, 4  ;;  %904 = vrot.lane.b32.xlu1 %v14016_v48, %s13590_s21  ;;  %v553_v40 = vrot.slane %v552_v6, 4 }
 0x157   :  { %14011 = vst [vmem:[#allocation21_spill] sm:$0xff] %v9707_v54  ;;  %v9718_v38 = vld.sshfl [vmem:[#allocation1 + $0x18] sm:$0xff pattern:$0x75643120]  ;;  %v1656_v23 = vpop.permute.xlu1 %1655  ;;  %vm14017_vm10 = vcmask 1007616  }
 0x158   :  { %14012 = vst [vmem:[#allocation16_spill] sm:$0xff] %v9709_v63  ;;  %1129 = vrot.lane.b32.xlu0 %v1114_v14, %s13580_s24  ;;  %v430_v33 = vsel %vm13556_vm13, %v426_v27, %v13506_v24  ;;  %v1717_v7 = vpop.permute.xlu0 %1716  ;;  %v1664_v25 = vrot.slane %v1656_v23, 4  ;;  %v14018_v27 = vld [vmem:[#allocation15_spill] sm:$0xff] }
 0x159   :  { %4218 = vst [vmem:[#allocation1] ss:$2 sm:$0xff] %v9100_v1  ;;  %v432_v5 = vsel %vm13509_vm5, %v14008_v50, %v430_v33  ;;  %v412_v45 = vshrl.u32 %v14018_v27, 16  ;;  %v1165_v24 = vld [vmem:[#allocation2 + $0x78] sm:$0x88] }
 0x15a   :  { %14013 = vst [vmem:[#allocation27_spill] sm:$0xff] %v9718_v38  ;;  %v447_v56 = vsel %vm9287_vm14, %v432_v5, %v446_v36  ;;  %v1675_v41 = vsel %vm13556_vm13, %v1663_v13, %v1664_v25  ;;  %v415_v36 = vshll.u32 %v14018_v27, 16 }
 0x15b   :  { %4220 = vst [vmem:[#allocation1 + $0x10] ss:$2 sm:$0xff] %v9105_v12  ;;  %v414_v33 = vrot.slane %v412_v45, 7  ;;  %v14021_v45 = vunpack.i.h.bf16 %v9333_v3 }
 0x15c   :  { %1698 = vst [vmem:[#allocation2 + $0xe8] sm:$0x11] %v1674_v37  ;;  %v1676_v37 = vsel %vm14019_vm11, %v1675_v41, %v1656_v23  ;;  %v8443_v50 = vpop.permute.xlu2 %8442  ;;  %v1171_v41 = vld [vmem:[#allocation2 + $0x88] sm:$0x8]  ;;  %vm14020_vm11 = vcmask 498688  }
 0x15d   :  { %1557 = vst [vmem:[#allocation2 + $0xc4] sm:$0x33] %v1556_v16  ;;  %v8445_v51 = vunpack.i.h.bf16 %v8443_v50  ;;  %v8444_v48 = vunpack.i.l.bf16 %v8443_v50 }
 0x15e   :  { %1560 = vst [vmem:[#allocation2 + $0xcc] sm:$0x33] %v1559_v9  ;;  %v13508_v9 = vrot.slane %v9707_v54, 5  ;;  %560 = vrot.lane.b32.xlu1 %v533_v29, %s13513_s16 }
 0x15f   :  { %448 = vst [vmem:[#allocation2 + $0x1c] sm:$0x33] %v447_v56  ;;  %v1134_v13 = vrot.slane %v8445_v51, 4  ;;  %v1133_v6 = vrot.slane %v8444_v48, 4  ;;  %v1786_v5 = vpop.permute.xlu1 %1785  ;;  %v1724_v56 = vrot.slane %v1717_v7, 4 }
 0x160   :  { %1700 = vst.msk [vmem:[#allocation2 + $0xf8] sm:$0x1] %vm14017_vm10, %v1664_v25  ;;  %v9740_v14 = vld.sshfl [vmem:[#allocation1] sm:$0xff pattern:$0x75643120]  ;;  %568 = vrot.lane.b32.xlu0 %v553_v40, %s13513_s16  ;;  %v4153_v23 = vrot.slane %v13508_v9, 4  ;;  %v1719_v25 = vpop.permute.xlu0 %1718  ;;  %vm14022_vm10 = vmmov %vm14020_vm11 }
 0x161   :  { %v9744_v16 = vld.sshfl [vmem:[#allocation1 + $0x8] sm:$0xff pattern:$0x75643120]  ;;  %1699 = vst [vmem:[#allocation2 + $0xf0] sm:$0x11] %v1676_v37  ;;  %v1146_v37 = vsel %vm14020_vm11, %v8445_v51, %v1134_v13  ;;  %v1142_v50 = vsel %vm13556_vm13, %v9352_v30, %v1133_v6  ;;  %v1144_v29 = vsel %vm13556_vm13, %v1133_v6, %v1134_v13  ;;  %v1725_v40 = vrot.slane %v1719_v25, 4  ;;  %vm14023_vm5 = vmmov %vm14022_vm10 }
 0x162   :  { %4285 = vst [vmem:[#allocation1 + $0x1] ss:$2 sm:$0xff] %v9100_v1  ;;  %v1172_v27 = vsel %vm9630_vm8, %v1146_v37, %v1171_v41  ;;  %v1143_v9 = vsel %vm14022_vm10, %v14021_v45, %v1142_v50  ;;  %v1145_v7 = vsel %vm14023_vm5, %v8444_v48, %v1144_v29  ;;  %v1738_v51 = vld [vmem:[#allocation2 + $0xe0] sm:$0x66]  ;;  %v417_v13 = vor.u32 %v415_v36, %v414_v33  ;;  %s14068_s16 = smov 31  }
 0x163   :  { %1173 = vst [vmem:[#allocation2 + $0x88] sm:$0x8] %v1172_v27  ;;  %v1166_v30 = vsel %vm9356_vm4, %v1143_v9, %v1165_v24  ;;  %v1728_v6 = vsel %vm13556_vm13, %v1724_v56, %v1725_v40  ;;  %v1793_v26 = vrot.slane %v1786_v5, 4  ;;  %v9769_v41 = vld.sshfl [vmem:[#allocation1 + $0x10] sm:$0xff pattern:$0x75643120]  ;;  %v1169_v50 = vsel %vm9356_vm4, %v1145_v7, %v1168_v53 }
 0x164   :  { %1167 = vst [vmem:[#allocation2 + $0x78] sm:$0x88] %v1166_v30  ;;  %v9767_v34 = vpop.permute.xlu2 %318  ;;  %vm14025_vm5 = vcmask 1031168   ;;  %v9781_v9 = vld.sshfl [vmem:[#allocation1 + $0x18] sm:$0xff pattern:$0x75643120] }
 0x165   :  { %14024 = vst [vmem:[#allocation19_spill] sm:$0xff] %v9769_v41  ;;  %v1729_v48 = vsel %vm14025_vm5, %v1728_v6, %v1719_v25  ;;  %v1797_v53 = vsel %vm13556_vm13, %v1793_v26, %v13515_v0  ;;  %v3912_v5 = vrot.slane %v9497_v31, 7  ;;  %v1741_v25 = vld [vmem:[#allocation2 + $0xe8] sm:$0x66]  ;;  %vm14028_vm11 = vcmask 1022976   ;;  %vm14030_vm10 = vmmov %vm14025_vm5 }
 0x166   :  { %v1739_v24 = vsel %vm8966_vm9, %v1729_v48, %v1738_v51  ;;  %4166 = vrot.lane.b32.xlu1 %v4153_v23, %s13590_s21  ;;  %14027 = vst [vmem:[#allocation15_spill] sm:$0xff] %v9781_v9  ;;  %v1744_v23 = vld [vmem:[#allocation2 + $0xf0] sm:$0x66]  ;;  %v1798_v29 = vsel %vm14028_vm11, %v1797_v53, %v9686_v4  ;;  %v14029_v45 = vrot.slane %v9643_v49, 4  ;;  %v47_v26 = vld [vmem:[%s13366_s2] sm:$0x3f] }
 0x167   :  { %1740 = vst [vmem:[#allocation2 + $0xe0] sm:$0x66] %v1739_v24  ;;  %v9784_v33 = vpop.permute.xlu1 %1832  ;;  %v805_v51 = vld [vmem:[#allocation2 + $0x6c] sm:$0x3]  ;;  %vm14034_vm11 = vcmask 760832   ;;  %vm14043_vm8 = vcmask 1009665  }
 0x168   :  { %424 = vrot.lane.b32.xlu0 %v417_v13, %s8519_s14  ;;  %1170 = vst [vmem:[#allocation2 + $0x80] sm:$0x88] %v1169_v50  ;;  %v1721_v36 = vpop.permute.xlu0 %1720  ;;  %v14031_v53 = vld [vmem:[#allocation45_spill] sm:$0xff]  ;;  %s14057_s2 = smov 60  }
 0x169   :  { %v4288_v3 = vld.sshfl [vmem:[#allocation1] sm:$0xff pattern:$0x75643120]  ;;  %v9771_v37 = vld.sshfl [vmem:[#allocation1 + $0x8] sm:$0xff pattern:$0x75643120] }
 0x16a   :  { %4331 = vst [vmem:[#allocation1] ss:$2 sm:$0xff] %v9100_v1  ;;  %4296 = vrot.lane.b32.xlu2 %v4288_v3, %s14026_s23  ;;  %v1726_v56 = vrot.slane %v1721_v36, 4  ;;  %v1858_v9 = vld [vmem:[#allocation2 + $0x10c] sm:$0x33] }
 0x16b   :  { %4287 = vst [vmem:[#allocation1 + $0x11] ss:$2 sm:$0xff] %v9105_v12 }
 0x16c   :  { %v1730_v27 = vsel %vm13556_vm13, %v1725_v40, %v1726_v56  ;;  %v1732_v7 = vsel %vm13556_vm13, %v1726_v56, %v14029_v45  ;;  %v779_v30 = vpop.permute.xlu2 %778  ;;  %v802_v56 = vld [vmem:[#allocation2 + $0x64] sm:$0x33] }
 0x16d   :  { %v1731_v6 = vsel %vm14030_vm10, %v1730_v27, %v1721_v36  ;;  %v1733_v3 = vsel %vm14025_vm5, %v1732_v7, %v9643_v49  ;;  %v783_v24 = vrot.slane %v779_v30, 4  ;;  %v13521_v36 = vrot.slane %v14031_v53, 5  ;;  %v14032_v27 = vld [vmem:[#allocation32_spill] sm:$0xff]  ;;  %vm14035_vm10 = vmmov %vm14034_vm11 }
 0x16e   :  { %v1807_v40 = vld [vmem:[#allocation2 + $0xe0] sm:$0xcc]  ;;  %v1742_v48 = vsel %vm8966_vm9, %v1731_v6, %v1741_v25  ;;  %v1745_v50 = vsel %vm8966_vm9, %v1733_v3, %v1744_v23  ;;  %4032 = vrot.lane.b32.xlu1 %v9598_v61, %s13588_s19  ;;  %v13523_v25 = vrot.slane %v9784_v33, 4  ;;  %v14033_v45 = vrot.slane %v14032_v27, 4 }
 0x16f   :  { %v1808_v49 = vsel %vm9057_vm12, %v1798_v29, %v1807_v40  ;;  %1743 = vst [vmem:[#allocation2 + $0xe8] sm:$0x66] %v1742_v48  ;;  %v791_v7 = vsel %vm14034_vm11, %v779_v30, %v783_v24  ;;  %v1835_v61 = vpop.permute.xlu1 %1834  ;;  %v8537_v6 = vmov 65535   ;;  %v1855_v48 = vld [vmem:[#allocation2 + $0x104] sm:$0x33]  ;;  %vm13516_vm5 = vcmask 1044480  }
 0x170   :  { %2206 = vperm.xlu0 %8446, %v47_v26   ;;  %1809 = vst [vmem:[#allocation2 + $0xe0] sm:$0xcc] %v1808_v49  ;;  %v789_v23 = vsel %vm13556_vm13, %v14033_v45, %v783_v24  ;;  %v6107_v3 = vsel %vm13556_vm13, 4294967295, %v8537_v6  ;;  %v1790_v29 = vpop.permute.xlu0 %1789  ;;  %v806_v40 = vsel %vm9548_vm2, %v791_v7, %v805_v51  ;;  %v1840_v49 = vrot.slane %v1835_v61, 4 }
 0x171   :  { %v9800_v13 = vld.sshfl [vmem:[#allocation1] sm:$0xff pattern:$0x75643120]  ;;  %v9802_v31 = vld.sshfl [vmem:[#allocation1 + $0x8] sm:$0xff pattern:$0x75643120]  ;;  %v790_v26 = vsel %vm14035_vm10, %v14032_v27, %v789_v23 }
 0x172   :  { %4432 = vst [vmem:[#allocation1] ss:$2 sm:$0xff] %v9100_v1  ;;  %3916 = vrot.lane.b32.xlu2 %v3912_v5, %s13586_s17  ;;  %v13522_v5 = vrot.slane %v9701_v39, 5  ;;  %v1795_v0 = vrot.slane %v1790_v29, 4  ;;  %v803_v45 = vsel %vm8795_vm6, %v790_v26, %v802_v56  ;;  %v3625_v30 = vrot.slane %v13521_v36, 4 }
 0x173   :  { %1746 = vst [vmem:[#allocation2 + $0xf0] sm:$0x66] %v1745_v50  ;;  %v9834_v50 = vsel %vm13516_vm5, %v6107_v3, 0  ;;  %v1844_v24 = vsel %vm13556_vm13, %v13523_v25, %v1840_v49  ;;  %v14037_v27 = vrot.slane %v9686_v4, 4  ;;  %vm14038_vm11 = vcmask 1014784  }
 0x174   :  { %807 = vst [vmem:[#allocation2 + $0x6c] sm:$0x3] %v806_v40  ;;  %v4152_v51 = vrot.slane %v13522_v5, 4  ;;  %v1845_v56 = vsel %vm14038_vm11, %v1844_v24, %v1835_v61  ;;  %v1389_v7 = vpop.permute.xlu2 %1388  ;;  %v9845_v26 = vld.sshfl [vmem:[#allocation1 + $0x10] sm:$0xff pattern:$0x75643120] }
 0x175   :  { %14036 = vst [vmem:[#allocation32_spill] sm:$0xff] %v9834_v50  ;;  %v1799_v23 = vsel %vm13556_vm13, %v14037_v27, %v1795_v0  ;;  %v9847_v40 = vld.sshfl [vmem:[#allocation1 + $0x18] sm:$0xff pattern:$0x75643120]  ;;  %vm14041_vm10 = vcmask 1022976   ;;  %v14044_v36 = vmov 0 }
 0x176   :  { %804 = vst [vmem:[#allocation2 + $0x64] sm:$0x33] %v803_v45  ;;  %v1800_v3 = vsel %vm14041_vm10, %v1799_v23, %v1790_v29  ;;  %v1856_v45 = vsel %vm8795_vm6, %v1845_v56, %v1855_v48  ;;  %vm14042_vm5 = vsmask.f32 7942  ;;  %v1393_v4 = vrot.slane %v1389_v7, 4  ;;  %3637 = vrot.lane.b32.xlu1 %v3625_v30, %s8518_s30 }
 0x177   :  { %14039 = vst [vmem:[#allocation64_spill] sm:$0xff] %v9845_v26  ;;  %vm9854_vm7 = vmand %vm14043_vm8, %vm14042_vm5  ;;  %v1810_v61 = vld [vmem:[#allocation2 + $0xe8] sm:$0xcc]  ;;  %v1412_v24 = vld [vmem:[#allocation2 + $0xb8] sm:$0x66]  ;;  %v14047_v56 = vrot.slane %v9619_v17, 4  ;;  %v1837_v50 = vpop.permute.xlu1 %1836 }
 0x178   :  { %14040 = vst [vmem:[#allocation65_spill] sm:$0xff] %v9847_v40  ;;  %v14045_v36 = vsel %vm9854_vm7, 4294967295, %v14044_v36  ;;  %v1415_v27 = vld [vmem:[#allocation2 + $0xc0] sm:$0x6]  ;;  %v1811_v29 = vsel %vm9057_vm12, %v1800_v3, %v1810_v61  ;;  %4164 = vrot.lane.b32.xlu0 %v4152_v51, %s13590_s21  ;;  %v1816_v23 = vld [vmem:[#allocation2 + $0xf8] sm:$0xc]  ;;  %v1792_v61 = vpop.permute.xlu0 %1791 }
 0x179   :  { %14046 = vst [vmem:[#allocation66_spill] sm:$0xff] %v14045_v36  ;;  %v4437_v48 = vld.sshfl [vmem:[#allocation1 + $0x8] sm:$0xff pattern:$0x75643120]  ;;  %v1399_v5 = vsel %vm13556_vm13, %v14047_v56, %v1393_v4  ;;  %vm14048_vm8 = vcmask 244736   ;;  %v1841_v41 = vrot.slane %v1837_v50, 4 }
 0x17a   :  { %4333 = vst [vmem:[#allocation1 + $0x10] ss:$2 sm:$0xff] %v9105_v12  ;;  %4034 = vrot.lane.b32.xlu2 %v9600_v42, %s13588_s19  ;;  %v1401_v25 = vsel %vm14048_vm8, %v1389_v7, %v1393_v4  ;;  %v1861_v42 = vld [vmem:[#allocation2 + $0x114] sm:$0x3]  ;;  %vm14049_vm5 = vmmov %vm14048_vm8  ;;  %v4444_v56 = vrot.slane %v4437_v48, 7  ;;  %v1796_v40 = vrot.slane %v1792_v61, 4 }
 0x17b   :  { %1857 = vst [vmem:[#allocation2 + $0x104] sm:$0x33] %v1856_v45  ;;  %v1400_v45 = vsel %vm14049_vm5, %v9619_v17, %v1399_v5  ;;  %v1416_v30 = vsel %vm9854_vm7, %v1401_v25, %v1415_v27  ;;  %v4435_v3 = vld.sshfl [vmem:[#allocation1] sm:$0xff pattern:$0x75643120]  ;;  %v1846_v4 = vsel %vm13556_vm13, %v1840_v49, %v1841_v41  ;;  %v1862_v17 = vsel %vm9548_vm2, %v1841_v41, %v1861_v42  ;;  %s13735_s19 = smov 85  }
 0x17c   :  { %1812 = vst [vmem:[#allocation2 + $0xe8] sm:$0xcc] %v1811_v29  ;;  %v1413_v51 = vsel %vm13980_vm15, %v1400_v45, %v1412_v24  ;;  %v4443_v7 = vrot.slane %v4435_v3, 7  ;;  %vm13546_vm11 = vcmask 1045504   ;;  %vm14050_vm10 = vcmask 1044480   ;;  %v14051_v27 = vld [vmem:[#allocation34_spill] sm:$0xff]  ;;  %v9884_v45 = vpop.permute.xlu2 %902 }
 0x17d   :  { %1417 = vst [vmem:[#allocation2 + $0xc0] sm:$0x6] %v1416_v30  ;;  %v2083_v5 = vsel %vm14050_vm10, 4294967295, %v8537_v6  ;;  %v1801_v25 = vsel %vm13556_vm13, %v1795_v0, %v1796_v40  ;;  %v1813_v24 = vld [vmem:[#allocation2 + $0xf0] sm:$0xcc]  ;;  %vm14052_vm8 = vnez %v14051_v27  ;;  %vm14053_vm5 = vcmask 1014784  }
 0x17e   :  { %1414 = vst [vmem:[#allocation2 + $0xb8] sm:$0x66] %v1413_v51  ;;  %v1817_v29 = vsel %vm14052_vm8, %v1796_v40, %v1816_v23  ;;  %v1847_v48 = vsel %vm14053_vm5, %v1846_v4, %v1837_v50  ;;  %vm14054_vm7 = vcmask 1022976   ;;  %v14055_v42 = vld [vmem:[#allocation46_spill] sm:$0xff]  ;;  %v13529_v6 = vrot.slane %v9884_v45, 4  ;;  %4447 = vrot.lane.b32.xlu1 %v4443_v7, %s14057_s2  ;;  %s13734_s21 = smov 72  }
 0x17f   :  { %4482 = vst [vmem:[#allocation1] ss:$2 sm:$0xff] %v9100_v1  ;;  %v1802_v49 = vsel %vm14054_vm7, %v1801_v25, %v1792_v61  ;;  %v1859_v41 = vsel %vm8795_vm6, %v1847_v48, %v1858_v9  ;;  %v13530_v30 = vrot.slane %v14055_v42, 5  ;;  %v9898_v40 = vsel %vm13546_vm11, %v2083_v5, 0  ;;  %v14058_v9 = vld [vmem:[#allocation33_spill] sm:$0xff]  ;;  %v9909_v7 = vpop.permute.xlu1 %996 }
 0x180   :  { %1863 = vst [vmem:[#allocation2 + $0x114] sm:$0x3] %v1862_v17  ;;  %v1814_v50 = vsel %vm9057_vm12, %v1802_v49, %v1813_v24  ;;  %4298 = vrot.lane.b32.xlu0 %v9771_v37, %s14026_s23  ;;  %v14059_v61 = vrot.slane %v14058_v9, 4  ;;  %vm14060_vm7 = vcmask 523264   ;;  %v1831_v48 = vpop.permute.xlu0 %1830  ;;  %v13533_v49 = vrot.slane %v9909_v7, 4 }
 0x181   :  { %1818 = vst [vmem:[#allocation2 + $0xf8] sm:$0xc] %v1817_v29  ;;  %v9891_v3 = vld.sshfl [vmem:[#allocation1 + $0x10] sm:$0xff pattern:$0x75643120]  ;;  %v3626_v37 = vrot.slane %v13530_v30, 4  ;;  %vm14097_vm11 = vnez %v14045_v36 }
 0x182   :  { %v8253_v0 = vld [vmem:[#allocation2 + $0x100] sm:$0x30]  ;;  %14056 = vst [vmem:[#allocation34_spill] sm:$0xff] %v9891_v3  ;;  %4449 = vrot.lane.b32.xlu2 %v4444_v56, %s14057_s2  ;;  %v7027_v23 = vld [vmem:[#allocation2 + $0x104] sm:$0x30]  ;;  %v925_v51 = vsel %vm13556_vm13, %v14059_v61, %v13529_v6  ;;  %v1838_v61 = vrot.slane %v1831_v48, 4 }
 0x183   :  { %1860 = vst [vmem:[#allocation2 + $0x10c] sm:$0x33] %v1859_v41  ;;  %v7025_v56 = vld [vmem:[#allocation2 + $0xe8] sm:$0xf]  ;;  %v8250_v4 = vld [vmem:[#allocation2 + $0xec] sm:$0xf]  ;;  %v926_v17 = vsel %vm14060_vm7, %v14058_v9, %v925_v51  ;;  %vm14067_vm7 = vmmov %vm14053_vm5 }
 0x184   :  { %1815 = vst [vmem:[#allocation2 + $0xf0] sm:$0xcc] %v1814_v50  ;;  %v7026_v5 = vor.u32 %v8253_v0, %v7025_v56  ;;  %v7030_v25 = vor.u32 %v8250_v4, %v7027_v23  ;;  %v9911_v24 = vld.sshfl [vmem:[#allocation1 + $0x18] sm:$0xff pattern:$0x75643120]  ;;  %v14062_v51 = vrot.slane %v9070_v43, 4 }
 0x185   :  { %14061 = vst [vmem:[#allocation33_spill] sm:$0xff] %v9911_v24  ;;  %v1852_v29 = vld [vmem:[#allocation2 + $0xfc] sm:$0x33]  ;;  %v512_v41 = vld [vmem:[#allocation2 + $0x34] sm:$0xc]  ;;  %v3913_v4 = vrot.slane %v9501_v60, 7  ;;  %v478_v24 = vpop.permute.xlu2 %477 }
 0x186   :  { %946 = vst [vmem:[#allocation2 + $0x5c] sm:$0x88] %v926_v17  ;;  %v8246_v50 = vld [vmem:[#allocation2 + $0xc8] sm:$0xf0]  ;;  %v2092_v9 = vand.u32 %v7026_v5, %v9898_v40  ;;  %v2095_v0 = vand.u32 %v7030_v25, %v9898_v40  ;;  %v1007_v56 = vsel %vm13556_vm13, %v14062_v51, %v13533_v49  ;;  %v6999_v17 = vld [vmem:[#allocation2 + $0xcc] sm:$0xf0]  ;;  %v513_v49 = vsel %vm9145_vm1, %v478_v24, %v512_v41 }
 0x187   :  { %v9916_v6 = vld.sshfl [vmem:[#allocation1] sm:$0xff pattern:$0x75643120]  ;;  %4434 = vst [vmem:[#allocation1 + $0x10] ss:$2 sm:$0xff] %v9105_v12  ;;  %v14063_v48 = vrot.slane %v9784_v33, 4 }
 0x188   :  { %v9921_v23 = vld.sshfl [vmem:[#allocation1 + $0x8] sm:$0xff pattern:$0x75643120]  ;;  %v1019_v5 = vld [vmem:[#allocation2 + $0x78] sm:$0x33]  ;;  %vm14064_vm10 = vcmask 515072   ;;  %2135 = vmatpush.bf16.msra.mxu2 %v2092_v9  ;;  %2148 = vmatpush.bf16.msra.mxu3 %v2095_v0 }
 0x189   :  { %v1842_v30 = vsel %vm13556_vm13, %v1838_v61, %v14063_v48  ;;  %4552 = vst [vmem:[#allocation1] ss:$2 sm:$0xff] %v9100_v1  ;;  %v1008_v25 = vsel %vm14064_vm10, %v9070_v43, %v1007_v56  ;;  %v482_v51 = vrot.slane %v478_v24, 4  ;;  %v6997_v61 = vld [vmem:[#allocation2 + $0xb0] sm:$0xf]  ;;  %3918 = vrot.lane.b32.xlu0 %v3913_v4, %s13586_s17  ;;  %vm14069_vm10 = vcmask 1031168  }
 0x18a   :  { %v1843_v3 = vsel %vm14053_vm5, %v1842_v30, %v9784_v33  ;;  %v1020_v60 = vsel %vm9287_vm14, %v1008_v25, %v1019_v5  ;;  %v8243_v48 = vld [vmem:[#allocation2 + $0xb4] sm:$0xf]  ;;  %3639 = vrot.lane.b32.xlu2 %v3626_v37, %s8518_s30  ;;  %v507_v9 = vld [vmem:[#allocation2 + $0x2c] sm:$0xcc]  ;;  %v6998_v0 = vor.u32 %v8246_v50, %v6997_v61  ;;  %v13534_v33 = vrot.slane %v9767_v34, 4  ;;  %v8438_v37 = vpop.permute.xlu0 %8437  ;;  %s13739_s17 = smov 99  }
 0x18b   :  { %v1853_v43 = vsel %vm8795_vm6, %v1843_v3, %v1852_v29  ;;  %1021 = vst [vmem:[#allocation2 + $0x78] sm:$0x33] %v1020_v60  ;;  %v7002_v56 = vor.u32 %v8243_v48, %v6999_v17  ;;  %v14065_v30 = vld [vmem:[#allocation29_spill] sm:$0xff]  ;;  %v317_v3 = vpop.permute.xlu1 %316  ;;  %v8440_v17 = vunpack.i.h.bf16 %v8438_v37  ;;  %v8439_v25 = vunpack.i.l.bf16 %v8438_v37  ;;  %v8249_v37 = vld [vmem:[#allocation2 + $0xe4] sm:$0xf] }
 0x18c   :  { %1854 = vst [vmem:[#allocation2 + $0xfc] sm:$0x33] %v1853_v43  ;;  %v14066_v5 = vrot.slane %v14065_v30, 4  ;;  %2136 = vmatpush.bf16.msra.mxu2 %v6998_v0  ;;  %v332_v50 = vrot.slane %v317_v3, 4  ;;  %v608_v0 = vld [vmem:[#allocation2 + $0x1c] sm:$0x88] }
 0x18d   :  { %514 = vst [vmem:[#allocation2 + $0x34] sm:$0xc] %v513_v49  ;;  %2149 = vmatpush.bf16.msra.mxu3 %v7002_v56  ;;  %v571_v61 = vrot.slane %v8440_v17, 4  ;;  %v570_v48 = vrot.slane %v8439_v25, 4  ;;  %v9959_v43 = vpop.permute.xlu2 %558  ;;  %vm14071_vm5 = vcmask 785408  }
 0x18e   :  { %v488_v24 = vsel %vm13556_vm13, %v14066_v5, %v482_v51  ;;  %v340_v51 = vsel %vm13556_vm13, %v332_v50, %v13534_v33  ;;  %v13536_v56 = vrot.slane %v9959_v43, 4  ;;  %v9970_v33 = vld.sshfl [vmem:[#allocation1 + $0x18] sm:$0xff pattern:$0x75643120]  ;;  %v6989_v26 = vld [vmem:[#allocation2 + $0xa8] sm:$0xf] }
 0x18f   :  { %v489_v41 = vsel %vm14067_vm7, %v14065_v30, %v488_v24  ;;  %v342_v49 = vsel %vm14069_vm10, %v317_v3, %v340_v51  ;;  %v9962_v30 = vld.sshfl [vmem:[#allocation1 + $0x10] sm:$0xff pattern:$0x75643120]  ;;  %v578_v5 = vsel %vm13556_vm13, %v570_v48, %v571_v61  ;;  %14072 = vst [vmem:[#allocation67_spill] sm:$0xff] %v9970_v33  ;;  %vm14073_vm7 = vmmov %vm14071_vm5  ;;  %v14074_v33 = vld [vmem:[#allocation30_spill] sm:$0xff]  ;;  %vm14076_vm10 = vcmask 777216  }
 0x190   :  { %v508_v29 = vsel %vm8917_vm0, %v489_v41, %v507_v9  ;;  %v4557_v4 = vld.sshfl [vmem:[#allocation1 + $0x8] sm:$0xff pattern:$0x75643120]  ;;  %v4555_v60 = vld.sshfl [vmem:[#allocation1] sm:$0xff pattern:$0x75643120]  ;;  %v580_v50 = vsel %vm14071_vm5, %v8439_v25, %v578_v5  ;;  %v581_v3 = vsel %vm13556_vm13, %v571_v61, %v13536_v56 }
 0x191   :  { %509 = vst [vmem:[#allocation2 + $0x2c] sm:$0xcc] %v508_v29  ;;  %4563 = vrot.lane.b32.xlu1 %v4555_v60, %s14068_s16  ;;  %v7017_v9 = vld [vmem:[#allocation2 + $0xe0] sm:$0xf]  ;;  %v611_v24 = vld [vmem:[#allocation2 + $0x24] sm:$0x88]  ;;  %v582_v48 = vsel %vm14073_vm7, %v8440_v17, %v581_v3  ;;  %vm14080_vm7 = vmmov %vm14076_vm10 }
 0x192   :  { %4598 = vst [vmem:[#allocation1] ss:$2 sm:$0xff] %v9100_v1  ;;  %4565 = vrot.lane.b32.xlu2 %v4557_v4, %s14068_s16  ;;  %v609_v4 = vsel %vm9356_vm4, %v580_v50, %v608_v0  ;;  %v9976_v25 = vpop.permute.xlu0 %1268  ;;  %v612_v61 = vsel %vm9356_vm4, %v582_v48, %v611_v24  ;;  %v677_v17 = vld [vmem:[#allocation2 + $0x48] sm:$0x66]  ;;  %v14075_v53 = vrot.slane %v14074_v33, 4  ;;  %vm14079_vm5 = vcmask 261120  }
 0x193   :  { %361 = vst [vmem:[#allocation2] sm:$0x88] %v342_v49  ;;  %v8252_v41 = vld [vmem:[#allocation2 + $0xf8] sm:$0x30]  ;;  %v7019_v29 = vld [vmem:[#allocation2 + $0xfc] sm:$0x30]  ;;  %v649_v38 = vpop.permute.xlu1 %648 }
 0x194   :  { %14070 = vst [vmem:[#allocation29_spill] sm:$0xff] %v9962_v30  ;;  %v7018_v60 = vor.u32 %v8252_v41, %v7017_v9  ;;  %v7022_v51 = vor.u32 %v8249_v37, %v7019_v29  ;;  %v8245_v49 = vld [vmem:[#allocation2 + $0xc0] sm:$0xf0]  ;;  %v6991_v30 = vld [vmem:[#allocation2 + $0xc4] sm:$0xf0]  ;;  %v653_v41 = vrot.slane %v649_v38, 4 }
 0x195   :  { %4484 = vst [vmem:[#allocation1 + $0x10] ss:$2 sm:$0xff] %v9105_v12  ;;  %v8242_v37 = vld [vmem:[#allocation2 + $0xac] sm:$0xf]  ;;  %v681_v29 = vld [vmem:[#allocation2 + $0x50] sm:$0x6]  ;;  %v6990_v50 = vor.u32 %v8245_v49, %v6989_v26 }
 0x196   :  { %610 = vst [vmem:[#allocation2 + $0x1c] sm:$0x88] %v609_v4  ;;  %v2086_v9 = vand.u32 %v7018_v60, %v9898_v40  ;;  %v2089_v5 = vand.u32 %v7022_v51, %v9898_v40  ;;  %v1291_v4 = vld [vmem:[#allocation2 + $0x94] sm:$0xcc]  ;;  %v659_v24 = vsel %vm13556_vm13, %v14075_v53, %v653_v41  ;;  %v661_v60 = vsel %vm14076_vm10, %v649_v38, %v653_v41  ;;  %v6963_v41 = vld [vmem:[#allocation2 + $0x8c] sm:$0xf0] }
 0x197   :  { %613 = vst [vmem:[#allocation2 + $0x24] sm:$0x88] %v612_v61  ;;  %v6994_v51 = vor.u32 %v8242_v37, %v6991_v30  ;;  %v14077_v61 = vrot.slane %v9976_v25, 4  ;;  %v14078_v26 = vrot.slane %v9223_v32, 4  ;;  %v660_v53 = vsel %vm14080_vm7, %v14074_v33, %v659_v24  ;;  %v8238_v30 = vld [vmem:[#allocation2 + $0x88] sm:$0xf0] }
 0x198   :  { %2109 = vmatpush.bf16.msra.mxu0 %v2086_v9  ;;  %2122 = vmatpush.bf16.msra.mxu1 %v2089_v5  ;;  %v682_v38 = vsel %vm9445_vm3, %v661_v60, %v681_v29  ;;  %v8235_v60 = vld [vmem:[#allocation2 + $0x74] sm:$0xf]  ;;  %vm14085_vm10 = vcmask 498688   ;;  %vm14089_vm7 = vcmask 752640   ;;  %vm14113_vm3 = vcmask 228352  }
 0x199   :  { %v4601_v3 = vld.sshfl [vmem:[#allocation1] sm:$0xff pattern:$0x75643120]  ;;  %v4602_v56 = vld.sshfl [vmem:[#allocation1 + $0x8] sm:$0xff pattern:$0x75643120]  ;;  %v1279_v49 = vsel %vm13556_vm13, %v14078_v26, %v14077_v61 }
 0x19a   :  { %4668 = vst [vmem:[#allocation1] ss:$2 sm:$0xff] %v9100_v1  ;;  %v4605_v48 = vshrl.u32 %v4601_v3, 16  ;;  %v4608_v0 = vshll.u32 %v4601_v3, 16  ;;  %v4612_v42 = vshrl.u32 %v4602_v56, 16  ;;  %v1280_v9 = vsel %vm14079_vm5, %v9223_v32, %v1279_v49 }
 0x19b   :  { %v4615_v5 = vshll.u32 %v4602_v56, 16  ;;  %v1292_v63 = vsel %vm9057_vm12, %v1280_v9, %v1291_v4  ;;  %683 = vst [vmem:[#allocation2 + $0x50] sm:$0x6] %v682_v38  ;;  %v6961_v61 = vld [vmem:[#allocation2 + $0x70] sm:$0xf]  ;;  %v678_v32 = vsel %vm8966_vm9, %v660_v53, %v677_v17  ;;  %vm14086_vm5 = vcmask 1031168  }
 0x19c   :  { %v4607_v37 = vrot.slane %v4605_v48, 6  ;;  %v4610_v3 = vrot.slane %v4608_v0, 7  ;;  %v4614_v39 = vrot.slane %v4612_v42, 6  ;;  %1293 = vst [vmem:[#allocation2 + $0x94] sm:$0xcc] %v1292_v63  ;;  %2110 = vmatpush.bf16.msra.mxu0 %v6990_v50  ;;  %2123 = vmatpush.bf16.msra.mxu1 %v6994_v51  ;;  %v6962_v24 = vor.u32 %v8238_v30, %v6961_v61 }
 0x19d   :  { %v4617_v26 = vrot.slane %v4615_v5, 7  ;;  %v10003_v33 = vld.sshfl [vmem:[#allocation1 + $0x10] sm:$0xff pattern:$0x75643120]  ;;  %679 = vst [vmem:[#allocation2 + $0x48] sm:$0x66] %v678_v32  ;;  %v6966_v63 = vor.u32 %v8235_v60, %v6963_v41  ;;  %v10012_v5 = vpop.permute.xlu0 %1127  ;;  %v10020_v41 = vpop.permute.xlu1 %847 }
 0x19e   :  { %14081 = vst [vmem:[#allocation30_spill] sm:$0xff] %v10003_v33  ;;  %v4611_v56 = vor.u32 %v4610_v3, %v4607_v37  ;;  %v10005_v29 = vld.sshfl [vmem:[#allocation1 + $0x18] sm:$0xff pattern:$0x75643120]  ;;  %v6933_v42 = vld [vmem:[#allocation2 + $0x38] sm:$0xf] }
 0x19f   :  { %14082 = vst [vmem:[#allocation68_spill] sm:$0xff] %v10005_v29  ;;  %v4618_v0 = vor.u32 %v4617_v26, %v4614_v39  ;;  %v8231_v4 = vld [vmem:[#allocation2 + $0x50] sm:$0xf0]  ;;  %v8228_v48 = vld [vmem:[#allocation2 + $0x3c] sm:$0xf]  ;;  %v10014_v39 = vpop.permute.xlu2 %320  ;;  %v13544_v38 = vrot.slane %v10012_v5, 4 }
 0x1a0   :  { %4554 = vst [vmem:[#allocation1 + $0x10] ss:$2 sm:$0xff] %v9105_v12  ;;  %4633 = vrot.lane.b32.xlu0 %v4611_v56, %s13572_s28  ;;  %v6935_v17 = vld [vmem:[#allocation2 + $0x54] sm:$0xf0]  ;;  %v8254_v50 = vld [vmem:[#allocation2 + $0x108] sm:$0x30]  ;;  %2111 = vmatpush.bf16.msra.mxu0 %v6962_v24  ;;  %v6934_v61 = vor.u32 %v8231_v4, %v6933_v42 }
 0x1a1   :  { %v7035_v51 = vld [vmem:[#allocation2 + $0x10c] sm:$0x30]  ;;  %v10009_v49 = vld.sshfl [vmem:[#allocation1] sm:$0xff pattern:$0x75643120]  ;;  %4635 = vrot.lane.b32.xlu1 %v4618_v0, %s13572_s28  ;;  %v13550_v30 = vrot.slane %v10014_v39, 4  ;;  %2124 = vmatpush.bf16.msra.mxu1 %v6966_v63  ;;  %v6938_v26 = vor.u32 %v8228_v48, %v6935_v17 }
 0x1a2   :  { %v4673_v9 = vld.sshfl [vmem:[#allocation1 + $0x8] sm:$0xff pattern:$0x75643120]  ;;  %v4679_v53 = vrot.slane %v10009_v49, 5  ;;  %v853_v3 = vrot.slane %v10020_v41, 4  ;;  %v14083_v0 = vrot.slane %v9360_v28, 4 }
 0x1a3   :  { %4749 = vst [vmem:[#allocation1] ss:$2 sm:$0xff] %v9100_v1  ;;  %v4680_v37 = vrot.slane %v4673_v9, 5  ;;  %v7033_v32 = vld [vmem:[#allocation2 + $0xf0] sm:$0xf]  ;;  %v14084_v60 = vrot.slane %v9767_v34, 4 }
 0x1a4   :  { %v8251_v56 = vld [vmem:[#allocation2 + $0xf4] sm:$0xf]  ;;  %4687 = vrot.lane.b32.xlu2 %v4679_v53, %s13982_s20  ;;  %v1149_v24 = vsel %vm13556_vm13, %v14083_v0, %v13544_v38  ;;  %v6905_v49 = vld [vmem:[#allocation2] sm:$0xf]  ;;  %v8224_v9 = vld [vmem:[#allocation2 + $0x18] sm:$0xf0]  ;;  %v7034_v4 = vor.u32 %v8254_v50, %v7033_v32  ;;  %2112 = vmatpush.bf16.msra.mxu0 %v6934_v61 }
 0x1a5   :  { %v343_v63 = vsel %vm13556_vm13, %v14084_v60, %v13550_v30  ;;  %v7038_v42 = vor.u32 %v8251_v56, %v7035_v51  ;;  %v1150_v48 = vsel %vm14085_vm10, %v9360_v28, %v1149_v24  ;;  %v4684_v29 = vrot.slane %v4680_v37, 4  ;;  %v14087_v33 = vld [vmem:[#allocation35_spill] sm:$0xff]  ;;  %v8221_v38 = vld [vmem:[#allocation2 + $0x4] sm:$0xf]  ;;  %2125 = vmatpush.bf16.msra.mxu1 %v6938_v26  ;;  %v10054_v26 = vpop.permute.xlu0 %723  ;;  %vm14095_vm10 = vmmov %vm14089_vm7  ;;  %s13806_s28 = smov 84  }
 0x1a6   :  { %v344_v17 = vsel %vm14086_vm5, %v9767_v34, %v343_v63  ;;  %v14088_v54 = vrot.slane %v14087_v33, 4  ;;  %v6907_v58 = vld [vmem:[#allocation2 + $0x1c] sm:$0xf0]  ;;  %1175 = vst [vmem:[#allocation2 + $0x94] sm:$0x11] %v1150_v48  ;;  %v6906_v34 = vor.u32 %v8224_v9, %v6905_v49  ;;  %v2098_v56 = vand.u32 %v7034_v4, %v9898_v40 }
 0x1a7   :  { %v870_v60 = vld [vmem:[#allocation2 + $0x5c] sm:$0x66]  ;;  %362 = vst [vmem:[#allocation2 + $0x8] sm:$0x88] %v344_v17  ;;  %v6910_v61 = vor.u32 %v8221_v38, %v6907_v58  ;;  %v850_v48 = vpop.permute.xlu2 %849  ;;  %v2101_v9 = vand.u32 %v7038_v42, %v9898_v40  ;;  %v13549_v4 = vrot.slane %v10054_v26, 4  ;;  %vm14096_vm5 = vcmask 769024  }
 0x1a8   :  { %v858_v0 = vsel %vm13556_vm13, %v14088_v54, %v853_v3  ;;  %v3529_v51 = vld [vmem:[#allocation2] sm:$0x33]  ;;  %v10045_v32 = vld.sshfl [vmem:[#allocation1 + $0x10] sm:$0xff pattern:$0x75643120]  ;;  %4689 = vrot.lane.b32.xlu0 %v4680_v37, %s13982_s20  ;;  %2113 = vmatpush.bf16.msra.mxu0 %v6906_v34  ;;  %v854_v17 = vrot.slane %v850_v48, 4 }
 0x1a9   :  { %v859_v50 = vsel %vm14089_vm7, %v14087_v33, %v858_v0  ;;  %14090 = vst [vmem:[#allocation35_spill] sm:$0xff] %v10045_v32  ;;  %v876_v54 = vld [vmem:[#allocation2 + $0x6c] sm:$0x6]  ;;  %v10049_v24 = vld.sshfl [vmem:[#allocation1 + $0x18] sm:$0xff pattern:$0x75643120]  ;;  %4697 = vrot.lane.b32.xlu1 %v4684_v29, %s13982_s20  ;;  %2126 = vmatpush.bf16.msra.mxu1 %v6910_v61  ;;  %v10062_v29 = vpop.permute.xlu1 %566 }
 0x1aa   :  { %v871_v28 = vsel %vm13980_vm15, %v859_v50, %v870_v60  ;;  %14091 = vst [vmem:[#allocation69_spill] sm:$0xff] %v10049_v24  ;;  %v4752_v63 = vld.sshfl [vmem:[#allocation1] sm:$0xff pattern:$0x75643120]  ;;  %v14092_v49 = vld [vmem:[#allocation36_spill] sm:$0xff]  ;;  %v4683_v0 = vrot.slane %v4679_v53, 4  ;;  %v860_v34 = vsel %vm13556_vm13, %v853_v3, %v854_v17 }
 0x1ab   :  { %872 = vst [vmem:[#allocation2 + $0x5c] sm:$0x66] %v871_v28  ;;  %v10051_v33 = vld.sshfl [vmem:[#allocation1 + $0x8] sm:$0xff pattern:$0x75643120]  ;;  %v3530_v37 = vsel %vm8795_vm6, %v14092_v49, %v3529_v51  ;;  %v4756_v58 = vshrl.u32 %v4752_v63, 16  ;;  %v861_v49 = vsel %vm14089_vm7, %v10020_v41, %v860_v34 }
 0x1ac   :  { %v4759_v38 = vshll.u32 %v4752_v63, 16  ;;  %4816 = vst [vmem:[#allocation1 + $0x1] ss:$2 sm:$0xff] %v9100_v1  ;;  %2161 = vmatpush.bf16.msrb.mxu0 %v2098_v56  ;;  %v13548_v60 = vrot.slane %v10062_v29, 4  ;;  %v14093_v42 = vld [vmem:[#allocation31_spill] sm:$0xff]  ;;  %v862_v63 = vsel %vm14095_vm10, %v850_v48, %v854_v17  ;;  %vm14100_vm10 = vcmask 785408  }
 0x1ad   :  { %3531 = vst [vmem:[#allocation2] sm:$0x33] %v3530_v37  ;;  %2174 = vmatpush.bf16.msrb.mxu1 %v2101_v9  ;;  %v4758_v50 = vrot.slane %v4756_v58, 7  ;;  %v14094_v51 = vrot.slane %v14093_v42, 4  ;;  %v751_v61 = vld [vmem:[#allocation2 + $0x40] sm:$0xcc]  ;;  %v877_v37 = vsel %vm14097_vm11, %v862_v63, %v876_v54 }
 0x1ae   :  { %4600 = vst [vmem:[#allocation1 + $0x10] ss:$2 sm:$0xff] %v9105_v12  ;;  %v873_v56 = vld [vmem:[#allocation2 + $0x64] sm:$0x66]  ;;  %v14098_v9 = vld [vmem:[#allocation26_spill] sm:$0xff]  ;;  %vm14107_vm7 = vcmask 1008640  }
 0x1af   :  { %v734_v28 = vsel %vm13556_vm13, %v14094_v51, %v13549_v4  ;;  %v14099_v58 = vrot.slane %v14098_v9, 4  ;;  %v4761_v48 = vor.u32 %v4759_v38, %v4758_v50  ;;  %878 = vst [vmem:[#allocation2 + $0x6c] sm:$0x6] %v877_v37  ;;  %v4838_v34 = vld [vmem:[#allocation2 + $0xc4] sm:$0xcc]  ;;  %v14108_v4 = vmov 0 }
 0x1b0   :  { %v735_v53 = vsel %vm14096_vm5, %v14093_v42, %v734_v28  ;;  %v874_v42 = vsel %vm13980_vm15, %v861_v49, %v873_v56  ;;  %4695 = vrot.lane.b32.xlu0 %v4683_v0, %s13982_s20  ;;  %v6969_v37 = vld [vmem:[#allocation2 + $0x78] sm:$0xf]  ;;  %vm14106_vm5 = vsmask.f32 7938  ;;  %v1564_v32 = vld [vmem:[#allocation2 + $0xdc] sm:$0x3] }
 0x1b1   :  { %v588_v3 = vsel %vm13556_vm13, %v14099_v58, %v13548_v60  ;;  %v752_v17 = vsel %vm9057_vm12, %v735_v53, %v751_v61  ;;  %4780 = vrot.lane.b32.xlu2 %v4761_v48, %s13584_s27  ;;  %875 = vst [vmem:[#allocation2 + $0x64] sm:$0x66] %v874_v42  ;;  %3768 = vrot.lane.b32.xlu1 %v9378_v21, %s13737_s15  ;;  %v4762_v58 = vshrl.u32 %v10051_v33, 16  ;;  %v6971_v48 = vld [vmem:[#allocation2 + $0x94] sm:$0xf0]  ;;  %v10119_v42 = vpop.permute.xlu2 %258 }
 0x1b2   :  { %753 = vst [vmem:[#allocation2 + $0x40] sm:$0xcc] %v752_v17  ;;  %v589_v41 = vsel %vm14100_vm10, %v14098_v9, %v588_v3  ;;  %v8236_v9 = vld [vmem:[#allocation2 + $0x7c] sm:$0xf]  ;;  %v8239_v3 = vld [vmem:[#allocation2 + $0x90] sm:$0xf0]  ;;  %v1538_v17 = vpop.permute.xlu0 %1537  ;;  %vm10126_vm10 = vmand %vm14107_vm7, %vm14106_vm5 }
 0x1b3   :  { %v4819_v54 = vld.sshfl [vmem:[#allocation1] sm:$0xff pattern:$0x75643120]  ;;  %v10092_v51 = vld.sshfl [vmem:[#allocation1 + $0x8] sm:$0xff pattern:$0x75643120]  ;;  %vm14114_vm5 = vmmov %vm14113_vm3 }
 0x1b4   :  { %14101 = vst [vmem:[#allocation36_spill] sm:$0xff] %v10092_v51  ;;  %v4827_v38 = vrot.slane %v4819_v54, 4  ;;  %v13547_v50 = vrot.slane %v10092_v51, 4  ;;  %v6970_v54 = vor.u32 %v8239_v3, %v6969_v37  ;;  %v14109_v4 = vsel %vm10126_vm10, 4294967295, %v14108_v4  ;;  %v1561_v30 = vld [vmem:[#allocation2 + $0xd4] sm:$0x33] }
 0x1b5   :  { %4850 = vst [vmem:[#allocation1] ss:$2 sm:$0xff] %v9100_v1  ;;  %v10098_v28 = vld.sshfl [vmem:[#allocation1 + $0x10] sm:$0xff pattern:$0x75643120]  ;;  %v4764_v37 = vrot.slane %v4762_v58, 7 }
 0x1b6   :  { %623 = vst [vmem:[#allocation2 + $0x40] sm:$0x11] %v589_v41  ;;  %v4831_v0 = vsel %vm13556_vm13, %v4827_v38, %v13547_v50  ;;  %v10103_v63 = vld.sshfl [vmem:[#allocation1 + $0x18] sm:$0xff pattern:$0x75643120]  ;;  %v4765_v41 = vshll.u32 %v10051_v33, 16  ;;  %v6974_v38 = vor.u32 %v8236_v9, %v6971_v48  ;;  %2137 = vmatpush.bf16.msra.mxu2 %v6970_v54 }
 0x1b7   :  { %14102 = vst [vmem:[#allocation31_spill] sm:$0xff] %v10098_v28  ;;  %v4839_v53 = vsel %vm8917_vm0, %v4831_v0, %v4838_v34  ;;  %v1542_v0 = vrot.slane %v1538_v17, 4  ;;  %v214_v34 = vld [vmem:[#allocation2 + $0x18] sm:$0x3]  ;;  %v14112_v9 = vrot.slane %v9523_v47, 4  ;;  %vm14120_vm7 = vcmask 1031168  }
 0x1b8   :  { %14103 = vst [vmem:[#allocation26_spill] sm:$0xff] %v10103_v63  ;;  %v14111_v63 = vld [vmem:[#allocation10_spill] sm:$0xff]  ;;  %2150 = vmatpush.bf16.msra.mxu3 %v6974_v38  ;;  %v4767_v38 = vor.u32 %v4765_v41, %v4764_v37 }
 0x1b9   :  { %4670 = vst [vmem:[#allocation1 + $0x10] ss:$2 sm:$0xff] %v9105_v12  ;;  %v215_v28 = vsel %vm9548_vm2, %v14111_v63, %v214_v34  ;;  %v1548_v3 = vsel %vm13556_vm13, %v14112_v9, %v1542_v0  ;;  %v1550_v48 = vsel %vm14113_vm3, %v1538_v17, %v1542_v0  ;;  %vm14117_vm3 = vnez %v13907_v19  ;;  %v379_v9 = vld [vmem:[#allocation2 + $0x2c] sm:$0x11] }
 0x1ba   :  { %4840 = vst [vmem:[#allocation2 + $0xc4] sm:$0xcc] %v4839_v53  ;;  %v331_v53 = vpop.permute.xlu1 %330  ;;  %v1549_v24 = vsel %vm14114_vm5, %v9523_v47, %v1548_v3  ;;  %v1565_v0 = vsel %vm10126_vm10, %v1550_v48, %v1564_v32  ;;  %4782 = vrot.lane.b32.xlu0 %v4767_v38, %s13584_s27  ;;  %v1444_v37 = vpop.permute.xlu0 %1443  ;;  %v8232_v38 = vld [vmem:[#allocation2 + $0x58] sm:$0xf0]  ;;  %vm14121_vm5 = vnez %v13873_v11  ;;  %s8544_s27 = smov 83  }
 0x1bb   :  { %14110 = vst [vmem:[#allocation72_spill] sm:$0xff] %v14109_v4  ;;  %v1562_v17 = vsel %vm9287_vm14, %v1549_v24, %v1561_v30  ;;  %v339_v34 = vrot.slane %v331_v53, 4  ;;  %v14118_v30 = vld [vmem:[#allocation22_spill] sm:$0xff]  ;;  %v323_v3 = vpop.permute.xlu2 %322 }
 0x1bc   :  { %v10108_v21 = vld.sshfl [vmem:[#allocation1] sm:$0xff pattern:$0x75643120]  ;;  %v10110_v61 = vld.sshfl [vmem:[#allocation1 + $0x8] sm:$0xff pattern:$0x75643120] }
 0x1bd   :  { %4949 = vst [vmem:[#allocation1] ss:$2 sm:$0xff] %v9100_v1  ;;  %v4857_v63 = vshll.u32 %v10108_v21, 16  ;;  %v14119_v24 = vrot.slane %v14118_v30, 4  ;;  %v4874_v48 = vshrl.u32 %v10110_v61, 16 }
 0x1be   :  { %216 = vst [vmem:[#allocation2 + $0x18] sm:$0x3] %v215_v28 }
 0x1bf   :  { %v10152_v47 = vrot.slane %v4857_v63, 5  ;;  %1563 = vst [vmem:[#allocation2 + $0xd4] sm:$0x33] %v1562_v17  ;;  %v351_v32 = vsel %vm13556_vm13, %v14119_v24, %v339_v34  ;;  %v6941_v63 = vld [vmem:[#allocation2 + $0x40] sm:$0xf]  ;;  %vm14122_vm13 = vcmask 1010691  }
 0x1c0   :  { %v10113_v56 = vld.sshfl [vmem:[#allocation1 + $0x10] sm:$0xff pattern:$0x75643120]  ;;  %v10115_v49 = vld.sshfl [vmem:[#allocation1 + $0x18] sm:$0xff pattern:$0x75643120]  ;;  %vm14126_vm9 = vmmov %vm14122_vm13 }
 0x1c1   :  { %14104 = vst [vmem:[#allocation70_spill] sm:$0xff] %v10113_v56  ;;  %v4876_v24 = vrot.slane %v4874_v48, 4 }
 0x1c2   :  { %14105 = vst [vmem:[#allocation71_spill] sm:$0xff] %v10115_v49  ;;  %v384_v49 = vld [vmem:[#allocation2 + $0x34] sm:$0x1]  ;;  %v10164_v17 = vpop.permute.xlu1 %422  ;;  %3766 = vrot.lane.b32.xlu0 %v9376_v57, %s13737_s15 }
 0x1c3   :  { %4751 = vst [vmem:[#allocation1 + $0x10] ss:$2 sm:$0xff] %v9105_v12 }
 0x1c4   :  { %v10122_v50 = vld.sshfl [vmem:[#allocation1 + $0x8] sm:$0xff pattern:$0x75643120]  ;;  %v4952_v60 = vld.sshfl [vmem:[#allocation1] sm:$0xff pattern:$0x75643120] }
 0x1c5   :  { %v4960_v33 = vrot.slane %v4952_v60, 7  ;;  %4998 = vst [vmem:[#allocation1] ss:$2 sm:$0xff] %v9100_v1  ;;  %v4860_v60 = vshll.u32 %v10110_v61, 16  ;;  %v6942_v61 = vor.u32 %v8232_v38, %v6941_v63  ;;  %v294_v19 = vld [vmem:[#allocation2 + $0x18] sm:$0x6] }
 0x1c6   :  { %1566 = vst [vmem:[#allocation2 + $0xdc] sm:$0x3] %v1565_v0  ;;  %v8229_v63 = vld [vmem:[#allocation2 + $0x44] sm:$0xf] }
 0x1c7   :  { %4964 = vrot.lane.b32.xlu2 %v4960_v33, %s8518_s30  ;;  %v4862_v28 = vrot.slane %v4860_v60, 5  ;;  %v385_v33 = vsel %vm14117_vm3, %v331_v53, %v384_v49  ;;  %v352_v60 = vsel %vm14120_vm7, %v14118_v30, %v351_v32  ;;  %v1456_v49 = vrot.slane %v1444_v37, 4  ;;  %365 = vst.msk [vmem:[#allocation2 + $0x18] sm:$0x8] %vm14122_vm13, %v323_v3  ;;  %2138 = vmatpush.bf16.msra.mxu2 %v6942_v61 }
 0x1c8   :  { %386 = vst [vmem:[#allocation2 + $0x34] sm:$0x1] %v385_v33  ;;  %v335_v53 = vrot.slane %v323_v3, 4  ;;  %v380_v0 = vsel %vm14121_vm5, %v352_v60, %v379_v9  ;;  %v14123_v30 = vrot.slane %v9371_v44, 4  ;;  %vm14124_vm7 = vcmask 1043456  }
 0x1c9   :  { %v8447_v41 = vpack.i.bf16 %v4862_v28, %v10152_v47  ;;  %381 = vst [vmem:[#allocation2 + $0x2c] sm:$0x11] %v380_v0  ;;  %vm14125_vm3 = vcmask 236544   ;;  %v14127_v9 = vrot.slane %v10014_v39, 4  ;;  %vm14128_vm5 = vmmov %vm14124_vm7  ;;  %v4877_v48 = vor.u32 %v4876_v24, %v4862_v28  ;;  %v6943_v60 = vld [vmem:[#allocation2 + $0x5c] sm:$0xf0] }
 0x1ca   :  { %v10143_v58 = vld.sshfl [vmem:[#allocation1 + $0x10] sm:$0xff pattern:$0x75643120]  ;;  %v10145_v54 = vld.sshfl [vmem:[#allocation1 + $0x18] sm:$0xff pattern:$0x75643120]  ;;  %v1466_v33 = vsel %vm14124_vm7, %v14123_v30, %v1456_v49  ;;  %v1468_v32 = vsel %vm14125_vm3, %v1444_v37, %v1456_v49  ;;  %vm14130_vm13 = vmmov %vm14125_vm3  ;;  %v6946_v49 = vor.u32 %v8229_v63, %v6943_v60 }
 0x1cb   :  { %14115 = vst [vmem:[#allocation10_spill] sm:$0xff] %v10143_v58  ;;  %8448 = vrot.lane.b32.xlu1 %v8447_v41, %s13592_s29  ;;  %v295_v41 = vsel %vm14097_vm11, %v10119_v42, %v294_v19  ;;  %v345_v3 = vsel %vm14128_vm5, %v14127_v9, %v335_v53  ;;  %v1467_v37 = vsel %vm14130_vm13, %v9371_v44, %v1466_v33  ;;  %v4878_v30 = vrot.slane %v4877_v48, 4  ;;  %vm14133_vm3 = vmmov %vm14128_vm5  ;;  %v206_v9 = vld [vmem:[#allocation2 + $0x8] sm:$0x33]  ;;  %v209_v63 = vld [vmem:[#allocation2 + $0x10] sm:$0x33] }
 0x1cc   :  { %14116 = vst [vmem:[#allocation73_spill] sm:$0xff] %v10145_v54  ;;  %v5001_v34 = vld.sshfl [vmem:[#allocation1] sm:$0xff pattern:$0x75643120]  ;;  %v13561_v53 = vrot.slane %v10164_v17, 4  ;;  %2151 = vmatpush.bf16.msra.mxu3 %v6946_v49  ;;  %v14132_v61 = vrot.slane %v9715_v18, 4  ;;  %vm14139_vm7 = vmmov %vm14133_vm3 }
 0x1cd   :  { %4818 = vst [vmem:[#allocation1 + $0x11] ss:$2 sm:$0xff] %v9105_v12  ;;  %v5005_v28 = vshrl.u32 %v5001_v34, 16  ;;  %v5008_v24 = vshll.u32 %v5001_v34, 16  ;;  %v4869_v33 = vshrl.u32 %v10108_v21, 16  ;;  %v4231_v34 = vshrl.u32 %v9744_v16, 16  ;;  %vm14144_vm13 = vmmov %vm14133_vm3 }
 0x1ce   :  { %1487 = vst.msk [vmem:[#allocation2 + $0xc0] sm:$0x8] %vm14126_vm9, %v1468_v32  ;;  %vm14131_vm9 = vcmask 1031168   ;;  %v449_v32 = vld [vmem:[#allocation2 + $0x24] sm:$0x33]  ;;  %vm14134_vm5 = vcmask 1022976  }
 0x1cf   :  { %v346_v19 = vsel %vm14131_vm9, %v10014_v39, %v345_v3  ;;  %296 = vst [vmem:[#allocation2 + $0x18] sm:$0x6] %v295_v41  ;;  %v433_v39 = vsel %vm14133_vm3, %v14132_v61, %v13561_v53  ;;  %v257_v41 = vpop.permute.xlu0 %256  ;;  %v14135_v3 = vld [vmem:[#allocation8_spill] sm:$0xff]  ;;  %v263_v61 = vrot.slane %v10119_v42, 4  ;;  %v14136_v53 = vld [vmem:[#allocation9_spill] sm:$0xff]  ;;  %v4233_v44 = vrot.slane %v4231_v34, 7  ;;  %vm14145_vm9 = vmmov %vm14133_vm3 }
 0x1d0   :  { %1486 = vst [vmem:[#allocation2 + $0xb8] sm:$0x88] %v1467_v37  ;;  %v434_v57 = vsel %vm14134_vm5, %v9715_v18, %v433_v39  ;;  %v207_v48 = vsel %vm8795_vm6, %v14135_v3, %v206_v9  ;;  %v262_v60 = vrot.slane %v257_v41, 4  ;;  %v1271_v37 = vpop.permute.xlu1 %1270  ;;  %v210_v18 = vsel %vm8795_vm6, %v14136_v53, %v209_v63  ;;  %v10214_v39 = vld [vmem:[#allocation2 + $0xf8] sm:$0xf]  ;;  %vm14148_vm5 = vmmov %vm14139_vm7 }
 0x1d1   :  { %363 = vst [vmem:[#allocation2 + $0x10] sm:$0x88] %v346_v19  ;;  %v450_v21 = vsel %vm9287_vm14, %v434_v57, %v449_v32  ;;  %v4871_v19 = vrot.slane %v4869_v33, 4  ;;  %v10216_v9 = vld [vmem:[#allocation2 + $0x110] sm:$0x30]  ;;  %v10218_v3 = vrot.slane %v5005_v28, 5 }
 0x1d2   :  { %208 = vst [vmem:[#allocation2 + $0x8] sm:$0x33] %v207_v48  ;;  %v14137_v33 = vld [vmem:[#allocation24_spill] sm:$0xff]  ;;  %v4234_v53 = vshll.u32 %v9744_v16, 16  ;;  %v8247_v63 = vld [vmem:[#allocation2 + $0xd0] sm:$0xf0]  ;;  %v270_v16 = vsel %vm14145_vm9, %v262_v60, %v263_v61 }
 0x1d3   :  { %4899 = vrot.lane.b32.xlu1 %v4878_v30, %s13592_s29  ;;  %451 = vst [vmem:[#allocation2 + $0x24] sm:$0x33] %v450_v21  ;;  %v10221_v30 = vrot.slane %v5008_v24, 6  ;;  %v4872_v32 = vor.u32 %v4871_v19, %v10152_v47  ;;  %v14138_v57 = vrot.slane %v14137_v33, 4  ;;  %v4844_v49 = vld [vmem:[#allocation2 + $0xd4] sm:$0xcc] }
 0x1d4   :  { %v10181_v38 = vld.sshfl [vmem:[#allocation1 + $0x10] sm:$0xff pattern:$0x75643120]  ;;  %v10183_v0 = vld.sshfl [vmem:[#allocation1 + $0x18] sm:$0xff pattern:$0x75643120] }
 0x1d5   :  { %14129 = vst [vmem:[#allocation22_spill] sm:$0xff] %v10181_v38  ;;  %v268_v48 = vsel %vm14139_vm7, %v14138_v57, %v262_v60  ;;  %v14142_v21 = vrot.slane %v10183_v0, 4  ;;  %v14143_v24 = vrot.slane %v10181_v38, 4  ;;  %v4873_v19 = vrot.slane %v4872_v32, 4  ;;  %v1297_v42 = vld [vmem:[#allocation2 + $0xa4] sm:$0xc] }
 0x1d6   :  { %4852 = vst [vmem:[#allocation1 + $0x10] ss:$2 sm:$0xff] %v9105_v12  ;;  %v4236_v57 = vor.u32 %v4234_v53, %v4233_v44  ;;  %v1275_v54 = vrot.slane %v1271_v37, 4  ;;  %vm14146_vm3 = vcmask 1039360   ;;  %v4499_v32 = vshll.u32 %v9921_v23, 16 }
 0x1d7   :  { %211 = vst [vmem:[#allocation2 + $0x10] sm:$0x33] %v210_v18  ;;  %v4833_v34 = vsel %vm14144_vm13, %v14143_v24, %v14142_v21  ;;  %v10241_v18 = vpop.permute.xlu2 %4296  ;;  %v269_v58 = vsel %vm14146_vm3, %v14137_v33, %v268_v48  ;;  %v8244_v56 = vld [vmem:[#allocation2 + $0xbc] sm:$0xf]  ;;  %v4496_v24 = vshrl.u32 %v9921_v23, 16  ;;  %4897 = vrot.lane.b32.xlu0 %v4873_v19, %s13592_s29  ;;  %v14147_v60 = vrot.slane %v9976_v25, 4  ;;  %v999_v48 = vpop.permute.xlu0 %998  ;;  %vm14150_vm13 = vmmov %vm14146_vm3 }
 0x1d8   :  { %v4845_v21 = vsel %vm8917_vm0, %v4833_v34, %v4844_v49  ;;  %vm14149_vm7 = vcmask 261120   ;;  %v1294_v53 = vld [vmem:[#allocation2 + $0x9c] sm:$0xcc]  ;;  %v271_v49 = vsel %vm14150_vm13, %v257_v41, %v270_v16  ;;  %v1003_v19 = vrot.slane %v999_v48, 4  ;;  %v1025_v38 = vld [vmem:[#allocation2 + $0x88] sm:$0x3]  ;;  %vm14153_vm3 = vmmov %vm14148_vm5 }
 0x1d9   :  { %v1281_v44 = vsel %vm14148_vm5, %v14147_v60, %v1275_v54  ;;  %v1283_v61 = vsel %vm14149_vm7, %v1271_v37, %v1275_v54  ;;  %v5002_v20 = vld.sshfl [vmem:[#allocation1 + $0x8] sm:$0xff pattern:$0x75643120]  ;;  %v286_v51 = vld [vmem:[#allocation2 + $0x8] sm:$0x66]  ;;  %vm14151_vm9 = vmmov %vm14149_vm7  ;;  %v726_v60 = vpop.permute.xlu1 %725  ;;  %v4498_v41 = vrot.slane %v4496_v24, 5 }
 0x1da   :  { %v1282_v34 = vsel %vm14151_vm9, %v9976_v25, %v1281_v44  ;;  %v1298_v23 = vsel %vm14052_vm8, %v1283_v61, %v1297_v42  ;;  %v287_v54 = vsel %vm13980_vm15, %v269_v58, %v286_v51  ;;  %v4501_v25 = vrot.slane %v4499_v32, 6  ;;  %v758_v51 = vld [vmem:[#allocation2 + $0x50] sm:$0xc]  ;;  %v754_v32 = vld [vmem:[#allocation2 + $0x48] sm:$0xcc]  ;;  %vm14157_vm13 = vmmov %vm14153_vm3  ;;  %s13740_s29 = smov 71  }
 0x1db   :  { %4251 = vrot.lane.b32.xlu1 %v4236_v57, %s13578_s22  ;;  %1299 = vst [vmem:[#allocation2 + $0xa4] sm:$0xc] %v1298_v23  ;;  %v14152_v42 = vrot.slane %v9909_v7, 4  ;;  %vm14154_vm5 = vcmask 515072   ;;  %v730_v58 = vrot.slane %v726_v60, 4  ;;  %v5012_v16 = vshrl.u32 %v5002_v20, 16 }
 0x1dc   :  { %288 = vst [vmem:[#allocation2 + $0x8] sm:$0x66] %v287_v54  ;;  %vm14155_vm7 = vmmov %vm14154_vm5  ;;  %vm14158_vm9 = vcmask 769024   ;;  %v10288_v23 = vld [vmem:[%s13365_s1] sm:$0x7] }
 0x1dd   :  { %v10228_v36 = vld.sshfl [vmem:[#allocation1 + $0x10] sm:$0xff pattern:$0x75643120]  ;;  %v10230_v28 = vld.sshfl [vmem:[#allocation1 + $0x18] sm:$0xff pattern:$0x75643120] }
 0x1de   :  { %14140 = vst [vmem:[#allocation8_spill] sm:$0xff] %v10228_v36  ;;  %v7005_v36 = vld [vmem:[#allocation2 + $0xb8] sm:$0xf]  ;;  %v289_v37 = vld [vmem:[#allocation2 + $0x10] sm:$0x66]  ;;  %v5014_v54 = vrot.slane %v5012_v16, 5  ;;  %v14160_v16 = vor.u32 %v10216_v9, %v10214_v39 }
 0x1df   :  { %14141 = vst [vmem:[#allocation9_spill] sm:$0xff] %v10230_v28  ;;  %v7007_v28 = vld [vmem:[#allocation2 + $0xd4] sm:$0xf0]  ;;  %v7006_v47 = vor.u32 %v8247_v63, %v7005_v36  ;;  %v1295_v36 = vsel %vm9057_vm12, %v1282_v34, %v1294_v53  ;;  %v1009_v63 = vsel %vm14153_vm3, %v14152_v42, %v1003_v19  ;;  %v290_v57 = vsel %vm13980_vm15, %v271_v49, %v289_v37  ;;  %vm14159_vm3 = vmmov %vm14158_vm9  ;;  %v6915_v37 = vld [vmem:[#allocation2 + $0x24] sm:$0xf0] }
 0x1e0   :  { %4951 = vst [vmem:[#allocation1 + $0x10] ss:$2 sm:$0xff] %v9105_v12  ;;  %v7010_v33 = vor.u32 %v8244_v56, %v7007_v28  ;;  %v1022_v56 = vld [vmem:[#allocation2 + $0x80] sm:$0x33]  ;;  %v1011_v28 = vsel %vm14154_vm5, %v999_v48, %v1003_v19  ;;  %v4502_v53 = vor.u32 %v4501_v25, %v4498_v41  ;;  %v738_v49 = vsel %vm14158_vm9, %v726_v60, %v730_v58 }
 0x1e1   :  { %4846 = vst [vmem:[#allocation2 + $0xd4] sm:$0xcc] %v4845_v21  ;;  %2162 = vmatpush.bf16.msrb.mxu0 %v7006_v47  ;;  %v4961_v47 = vrot.slane %v10122_v50, 7  ;;  %v1010_v21 = vsel %vm14155_vm7, %v9909_v7, %v1009_v63  ;;  %v1026_v24 = vsel %vm10126_vm10, %v1011_v28, %v1025_v38  ;;  %v759_v38 = vsel %vm14052_vm8, %v738_v49, %v758_v51  ;;  %v905_v42 = vpop.permute.xlu1 %904  ;;  %vm14162_vm7 = vmmov %vm14157_vm13 }
 0x1e2   :  { %2175 = vmatpush.bf16.msrb.mxu1 %v7010_v33  ;;  %1296 = vst [vmem:[#allocation2 + $0x9c] sm:$0xcc] %v1295_v36  ;;  %v1023_v61 = vsel %vm9287_vm14, %v1010_v21, %v1022_v56  ;;  %v14156_v33 = vrot.slane %v10054_v26, 4  ;;  %v5015_v34 = vshll.u32 %v5002_v20, 16  ;;  %v4341_v19 = vshll.u32 %v9802_v31, 16  ;;  %v1130_v36 = vpop.permute.xlu0 %1129 }
 0x1e3   :  { %291 = vst [vmem:[#allocation2 + $0x10] sm:$0x66] %v290_v57  ;;  %vm13574_vm5 = vcmask 613376   ;;  %4966 = vrot.lane.b32.xlu0 %v4961_v47, %s8518_s30  ;;  %v8225_v56 = vld [vmem:[#allocation2 + $0x20] sm:$0xf0]  ;;  %v1138_v25 = vrot.slane %v1130_v36, 4  ;;  %v5011_v28 = vor.u32 %v10221_v30, %v10218_v3  ;;  %4519 = vrot.lane.b32.xlu1 %v4502_v53, %s13582_s26  ;;  %v2104_v57 = vand.u32 %v14160_v16, %v9898_v40 }
 0x1e4   :  { %v736_v48 = vsel %vm14157_vm13, %v14156_v33, %v730_v58  ;;  %1024 = vst [vmem:[#allocation2 + $0x80] sm:$0x33] %v1023_v61  ;;  %v5017_v20 = vrot.slane %v5015_v34, 6  ;;  %7043 = vmatmul.msk.bf16.vlgmr.msra.gmra.mxu0 %vm13574_vm5, %v10288_v23  ;;  %v4225_v63 = vshrl.u32 %v9740_v14, 16  ;;  %7044 = vmatmul.msk.bf16.vlgmr.msra.gmra.mxu1 %vm13574_vm5, %v10288_v23  ;;  %v6913_v51 = vld [vmem:[#allocation2 + $0x8] sm:$0xf] }
 0x1e5   :  { %v737_v7 = vsel %vm14159_vm3, %v10054_v26, %v736_v48  ;;  %1027 = vst [vmem:[#allocation2 + $0x88] sm:$0x3] %v1026_v24  ;;  %v10295_v26 = vpop.permute.xlu2 %3916  ;;  %v8222_v58 = vld [vmem:[#allocation2 + $0xc] sm:$0xf]  ;;  %v14161_v47 = vrot.slane %v10012_v5, 4  ;;  %vm14163_vm13 = vcmask 498688  }
 0x1e6   :  { %v755_v60 = vsel %vm9057_vm12, %v737_v7, %v754_v32  ;;  %760 = vst [vmem:[#allocation2 + $0x50] sm:$0xc] %v759_v38  ;;  %v1153_v24 = vsel %vm14163_vm13, %v1130_v36, %v1138_v25  ;;  %v6914_v32 = vor.u32 %v8225_v56, %v6913_v51  ;;  %v3532_v3 = vld [vmem:[#allocation2 + $0x8] sm:$0x33]  ;;  %v5018_v30 = vor.u32 %v5017_v20, %v5014_v54  ;;  %vm14164_vm9 = vmmov %vm14163_vm13  ;;  %v7013_v53 = vld [vmem:[#allocation2 + $0xc0] sm:$0xf] }
 0x1e7   :  { %v4956_v44 = vld.sshfl [vmem:[#allocation1 + $0x10] sm:$0xff pattern:$0x75643120]  ;;  %756 = vst [vmem:[#allocation2 + $0x48] sm:$0xcc] %v755_v60  ;;  %v1151_v21 = vsel %vm14162_vm7, %v14161_v47, %v1138_v25  ;;  %vm14165_vm3 = vcmask 1007616  }
 0x1e8   :  { %v4962_v50 = vrot.slane %v4956_v44, 7  ;;  %v4958_v41 = vld.sshfl [vmem:[#allocation1 + $0x18] sm:$0xff pattern:$0x75643120]  ;;  %5067 = vst [vmem:[#allocation1] ss:$2 sm:$0xff] %v9100_v1  ;;  %v6918_v44 = vor.u32 %v8222_v58, %v6915_v37  ;;  %v1152_v1 = vsel %vm14164_vm9, %v10012_v5, %v1151_v21  ;;  %2139 = vmatpush.bf16.msra.mxu2 %v6914_v32 }
 0x1e9   :  { %5000 = vst [vmem:[#allocation1 + $0x10] ss:$2 sm:$0xff] %v9105_v12  ;;  %v14166_v61 = vld [vmem:[#allocation37_spill] sm:$0xff]  ;;  %v917_v9 = vrot.slane %v905_v42, 4  ;;  %v4963_v33 = vrot.slane %v4958_v41, 7  ;;  %v14167_v48 = vrot.slane %v9884_v45, 4  ;;  %v561_v37 = vpop.permute.xlu1 %560 }
 0x1ea   :  { %4968 = vrot.lane.b32.xlu2 %v4962_v50, %s8518_s30  ;;  %1177 = vst.msk [vmem:[#allocation2 + $0xa4] sm:$0x1] %vm14165_vm3, %v1153_v24  ;;  %v3533_v39 = vsel %vm8795_vm6, %v14166_v61, %v3532_v3  ;;  %2152 = vmatpush.bf16.msra.mxu3 %v6918_v44  ;;  %vm14168_vm13 = vcmask 523264   ;;  %v8248_v50 = vld [vmem:[#allocation2 + $0xd8] sm:$0xf0]  ;;  %v14169_v7 = vshll.u32 %v9800_v13, 16  ;;  %v569_v25 = vpop.permute.xlu0 %568 }
 0x1eb   :  { %1176 = vst [vmem:[#allocation2 + $0x9c] sm:$0x11] %v1152_v1  ;;  %v927_v49 = vsel %vm14162_vm7, %v14167_v48, %v917_v9  ;;  %v929_v5 = vsel %vm14168_vm13, %v905_v42, %v917_v9  ;;  %v10329_v34 = vrot.slane %v4341_v19, 5  ;;  %vm14170_vm9 = vmmov %vm14168_vm13  ;;  %vm14171_vm3 = vcmask 1010691   ;;  %v4847_v54 = vld [vmem:[#allocation2 + $0xdc] sm:$0xc]  ;;  %5035 = vrot.lane.b32.xlu0 %v5018_v30, %s8519_s14  ;;  %7045 = vmatmul.msk.bf16.vlgmr.msra.gmra.mxu2 %vm13574_vm5, %v10288_v23 }
 0x1ec   :  { %3534 = vst [vmem:[#allocation2 + $0x8] sm:$0x33] %v3533_v39  ;;  %2187 = vmatpush.bf16.msrb.mxu2 %v2104_v57  ;;  %v10327_v38 = vrot.slane %v14169_v7, 5  ;;  %v928_v60 = vsel %vm14170_vm9, %v9884_v45, %v927_v49  ;;  %v7014_v20 = vor.u32 %v8248_v50, %v7013_v53  ;;  %v14172_v36 = vrot.slane %v10183_v0, 4  ;;  %4970 = vrot.lane.b32.xlu1 %v4963_v33, %s8518_s30  ;;  %v6985_v58 = vld [vmem:[#allocation2 + $0x88] sm:$0xf] }
 0x1ed   :  { %948 = vst.msk [vmem:[#allocation2 + $0x6c] sm:$0x8] %vm14171_vm3, %v929_v5  ;;  %v4227_v41 = vrot.slane %v4225_v63, 7  ;;  %v4228_v19 = vshll.u32 %v9740_v14, 16  ;;  %7046 = vmatmul.msk.bf16.vlgmr.msra.gmra.mxu3 %vm13574_vm5, %v10288_v23  ;;  %v577_v45 = vrot.slane %v569_v25, 4  ;;  %v4489_v42 = vshrl.u32 %v9916_v6, 16  ;;  %v10348_v51 = vpop.permute.xlu2 %4034 }
 0x1ee   :  { %947 = vst [vmem:[#allocation2 + $0x64] sm:$0x88] %v928_v60  ;;  %v4848_v56 = vsel %vm9145_vm1, %v14172_v36, %v4847_v54  ;;  %v4492_v0 = vshll.u32 %v9916_v6, 16  ;;  %v6977_v16 = vld [vmem:[#allocation2 + $0x80] sm:$0xf]  ;;  %v14173_v57 = vrot.slane %v10062_v29, 4  ;;  %v8452_v44 = vpack.i.bf16 %v10329_v34, %v10327_v38 }
 0x1ef   :  { %4849 = vst [vmem:[#allocation2 + $0xdc] sm:$0xc] %v4848_v56  ;;  %vm14174_vm13 = vcmask 785408   ;;  %v619_v21 = vld [vmem:[#allocation2 + $0x34] sm:$0x8]  ;;  %v4350_v32 = vshrl.u32 %v9800_v13, 16  ;;  %v4230_v3 = vor.u32 %v4228_v19, %v4227_v41 }
 0x1f0   :  { %v10350_v63 = vld.sshfl [vmem:[#allocation1 + $0x10] sm:$0xff pattern:$0x75643120]  ;;  %v10352_v14 = vld.sshfl [vmem:[#allocation1 + $0x18] sm:$0xff pattern:$0x75643120]  ;;  %2188 = vmatpush.bf16.msrb.mxu2 %v7014_v20  ;;  %v590_v47 = vsel %vm14162_vm7, %v14173_v57, %v577_v45  ;;  %v592_v6 = vsel %vm14174_vm13, %v569_v25, %v577_v45  ;;  %vm14175_vm9 = vmmov %vm14174_vm13 }
 0x1f1   :  { %5069 = vst [vmem:[#allocation1 + $0x10] ss:$2 sm:$0xff] %v9105_v12  ;;  %v8237_v24 = vld [vmem:[#allocation2 + $0x84] sm:$0xf]  ;;  %v591_v30 = vsel %vm14175_vm9, %v10062_v29, %v590_v47  ;;  %vm14176_vm3 = vcmask 1007616   ;;  %v14177_v61 = vrot.slane %v9959_v43, 4  ;;  %vm14178_vm13 = vmmov %vm14175_vm9 }
 0x1f2   :  { %5033 = vrot.lane.b32.xlu2 %v5011_v28, %s8519_s14  ;;  %v4355_v28 = vshrl.u32 %v9802_v31, 16  ;;  %v573_v31 = vrot.slane %v561_v37, 4  ;;  %626 = vst.msk [vmem:[#allocation2 + $0x50] sm:$0x1] %vm14176_vm3, %v592_v6  ;;  %v8241_v12 = vld [vmem:[#allocation2 + $0xa0] sm:$0xf0]  ;;  %vm14179_vm5 = vmmov %vm14175_vm9  ;;  %vm14180_vm9 = vnez %v13991_v55  ;;  %v425_v41 = vpop.permute.xlu0 %424 }
 0x1f3   :  { %v8240_v1 = vld [vmem:[#allocation2 + $0x98] sm:$0xf0]  ;;  %624 = vst [vmem:[#allocation2 + $0x48] sm:$0x11] %v591_v30  ;;  %v6986_v53 = vor.u32 %v8241_v12, %v6985_v58  ;;  %v6979_v33 = vld [vmem:[#allocation2 + $0x9c] sm:$0xf0]  ;;  %4249 = vrot.lane.b32.xlu0 %v4230_v3, %s13578_s22 }
 0x1f4   :  { %v583_v39 = vsel %vm14162_vm7, %v14177_v61, %v573_v31  ;;  %v585_v9 = vsel %vm14178_vm13, %v561_v37, %v573_v31  ;;  %v6978_v13 = vor.u32 %v8240_v1, %v6977_v16  ;;  %v3538_v48 = vld [vmem:[#allocation2 + $0x18] sm:$0x3]  ;;  %v614_v5 = vld [vmem:[#allocation2 + $0x2c] sm:$0x88]  ;;  %v6982_v50 = vor.u32 %v8237_v24, %v6979_v33  ;;  %v14181_v36 = vld [vmem:[#allocation39_spill] sm:$0xff]  ;;  %s13732_s22 = smov 111  }
 0x1f5   :  { %v584_v49 = vsel %vm14179_vm5, %v9959_v43, %v583_v39  ;;  %v620_v29 = vsel %vm14180_vm9, %v585_v9, %v619_v21  ;;  %v6929_v7 = vld [vmem:[#allocation2 + $0x18] sm:$0xf]  ;;  %2189 = vmatpush.bf16.msrb.mxu2 %v6986_v53  ;;  %v4491_v20 = vrot.slane %v4489_v42, 5  ;;  %v3539_v56 = vsel %vm9548_vm2, %v14181_v36, %v3538_v48  ;;  %v456_v19 = vld [vmem:[#allocation2 + $0x34] sm:$0x3]  ;;  %v10383_v42 = vpop.permute.xlu1 %4166  ;;  %vm14183_vm5 = vmmov %vm14162_vm7  ;;  %v10390_v30 = vpop.permute.xlu2 %4449 }
 0x1f6   :  { %v5070_v60 = vld.sshfl [vmem:[#allocation1] sm:$0xff pattern:$0x75643120]  ;;  %v615_v54 = vsel %vm9356_vm4, %v584_v49, %v614_v5  ;;  %621 = vst [vmem:[#allocation2 + $0x34] sm:$0x8] %v620_v29  ;;  %2163 = vmatpush.bf16.msrb.mxu0 %v6978_v13  ;;  %v4494_v43 = vrot.slane %v4492_v0, 6  ;;  %2176 = vmatpush.bf16.msrb.mxu1 %v6982_v50  ;;  %v457_v37 = vsel %vm10126_vm10, %v425_v41, %v456_v19  ;;  %vm14187_vm7 = vmmov %vm14183_vm5  ;;  %vm14197_vm10 = vnez %v13873_v11 }
 0x1f7   :  { %616 = vst [vmem:[#allocation2 + $0x2c] sm:$0x88] %v615_v54  ;;  %v4352_v25 = vrot.slane %v4350_v32, 4  ;;  %v429_v45 = vrot.slane %v425_v41, 4  ;;  %v8234_v58 = vld [vmem:[#allocation2 + $0x68] sm:$0xf0]  ;;  %5078 = vrot.lane.b32.xlu1 %v5070_v60, %s13737_s15 }
 0x1f8   :  { %v4357_v16 = vrot.slane %v4355_v28, 4  ;;  %3540 = vst [vmem:[#allocation2 + $0x18] sm:$0x3] %v3539_v56  ;;  %v452_v57 = vld [vmem:[#allocation2 + $0x2c] sm:$0x33]  ;;  %v14182_v21 = vrot.slane %v10164_v17, 4  ;;  %v4495_v28 = vor.u32 %v4494_v43, %v4491_v20 }
 0x1f9   :  { %458 = vst [vmem:[#allocation2 + $0x34] sm:$0x3] %v457_v37  ;;  %v8233_v47 = vld [vmem:[#allocation2 + $0x60] sm:$0xf0]  ;;  %v6951_v6 = vld [vmem:[#allocation2 + $0x64] sm:$0xf0]  ;;  %v4353_v0 = vor.u32 %v4352_v25, %v10327_v38 }
 0x1fa   :  { %8453 = vrot.lane.b32.xlu2 %v8452_v44, %s13580_s24  ;;  %v6921_v31 = vld [vmem:[#allocation2 + $0x10] sm:$0xf]  ;;  %v435_v24 = vsel %vm14183_vm5, %v14182_v21, %v429_v45  ;;  %v8223_v44 = vld [vmem:[#allocation2 + $0x14] sm:$0xf]  ;;  %vm14184_vm3 = vcmask 1022976   ;;  %v4358_v49 = vor.u32 %v4357_v16, %v10329_v34  ;;  %v10402_v5 = vpop.permute.xlu0 %2206  ;;  %vm14189_vm13 = vcmask 760832  }
 0x1fb   :  { %v6957_v32 = vld [vmem:[#allocation2 + $0x50] sm:$0xf]  ;;  %v436_v12 = vsel %vm14184_vm3, %v10164_v17, %v435_v24  ;;  %v6949_v61 = vld [vmem:[#allocation2 + $0x48] sm:$0xf]  ;;  %v8230_v39 = vld [vmem:[#allocation2 + $0x4c] sm:$0xf]  ;;  %4517 = vrot.lane.b32.xlu0 %v4495_v28, %s13582_s26 }
 0x1fc   :  { %v3535_v3 = vld [vmem:[#allocation2 + $0x10] sm:$0x33]  ;;  %v6958_v1 = vor.u32 %v8234_v58, %v6957_v32  ;;  %v4354_v9 = vrot.slane %v4353_v0, 4  ;;  %v453_v38 = vsel %vm9287_vm14, %v436_v12, %v452_v57  ;;  %v6950_v53 = vor.u32 %v8233_v47, %v6949_v61  ;;  %14186 = vst [vmem:[#allocation24_spill] sm:$0xff] %v10402_v5  ;;  %vm14193_vm3 = vmmov %vm14187_vm7  ;;  %s13733_s26 = smov 82  }
 0x1fd   :  { %v6954_v13 = vor.u32 %v8230_v39, %v6951_v6  ;;  %v14185_v33 = vld [vmem:[#allocation38_spill] sm:$0xff]  ;;  %454 = vst [vmem:[#allocation2 + $0x2c] sm:$0x33] %v453_v38  ;;  %v13597_v17 = vrot.slane %v10348_v51, 4  ;;  %v4033_v29 = vpop.permute.xlu1 %4032  ;;  %v4359_v20 = vrot.slane %v4358_v49, 4  ;;  %v10411_v37 = vpop.permute.xlu2 %3639  ;;  %v13601_v6 = vrot.slane %v10383_v42, 4  ;;  %vm14196_vm11 = vmmov %vm14193_vm3 }
 0x1fe   :  { %v3536_v48 = vsel %vm8795_vm6, %v14185_v33, %v3535_v3  ;;  %2190 = vmatpush.bf16.msrb.mxu2 %v6958_v1  ;;  %2164 = vmatpush.bf16.msrb.mxu0 %v6950_v53  ;;  %v4040_v60 = vrot.slane %v4033_v29, 4  ;;  %v14188_v56 = vld [vmem:[#allocation14_spill] sm:$0xff]  ;;  %14190 = vst [vmem:[#allocation37_spill] sm:$0xff] %v10411_v37  ;;  %v5072_v57 = vld.sshfl [vmem:[#allocation1 + $0x8] sm:$0xff pattern:$0x75643120] }
 0x1ff   :  { %2177 = vmatpush.bf16.msrb.mxu1 %v6954_v13  ;;  %3537 = vst [vmem:[#allocation2 + $0x10] sm:$0x33] %v3536_v48  ;;  %v3965_v43 = vshrl.u32 %v14188_v56, 16  ;;  %v3968_v41 = vshll.u32 %v14188_v56, 16  ;;  %v4055_v19 = vld [vmem:[#allocation2 + $0x54] sm:$0x33] }
 0x200   :  { %v8227_v50 = vld [vmem:[#allocation2 + $0x30] sm:$0xf0]  ;;  %v4044_v36 = vsel %vm14187_vm7, %v4040_v60, %v13597_v17  ;;  %v13594_v47 = vrot.slane %v10411_v37, 4  ;;  %vm14191_vm5 = vcmask 613376   ;;  %vm14198_vm9 = vcmask 1031168  }
 0x201   :  { %v6930_v54 = vor.u32 %v8227_v50, %v6929_v7  ;;  %v4045_v34 = vsel %vm14189_vm13, %v4033_v29, %v4044_v36  ;;  %v3967_v0 = vrot.slane %v3965_v43, 5  ;;  %v3970_v21 = vrot.slane %v3968_v41, 6  ;;  %v14192_v32 = vld [vmem:[#allocation62_spill] sm:$0xff]  ;;  %vm14194_vm7 = vmmov %vm14191_vm5  ;;  %v3677_v49 = vld [vmem:[#allocation2 + $0x1c] sm:$0x11] }
 0x202   :  { %4378 = vrot.lane.b32.xlu2 %v4354_v9, %s13580_s24  ;;  %v4056_v7 = vsel %vm8795_vm6, %v4045_v34, %v4055_v19  ;;  %v4165_v24 = vpop.permute.xlu0 %4164  ;;  %v3958_v3 = vshrl.u32 %v14192_v32, 16  ;;  %v4206_v38 = vld [vmem:[#allocation2 + $0x70] sm:$0x11]  ;;  %vm14195_vm13 = vcmask 523264   ;;  %v4304_v60 = vrot.slane %v10241_v18, 4 }
 0x203   :  { %2191 = vmatpush.bf16.msrb.mxu2 %v6930_v54  ;;  %4057 = vst [vmem:[#allocation2 + $0x54] sm:$0x33] %v4056_v7  ;;  %4380 = vrot.lane.b32.xlu0 %v4359_v20, %s13580_s24  ;;  %v3971_v9 = vor.u32 %v3970_v21, %v3967_v0  ;;  %v4319_v41 = vld [vmem:[#allocation2 + $0x70] sm:$0xcc]  ;;  %s13731_s24 = smov 68   ;;  %vm14404_vm1 = vcmask 1043459  }
 0x204   :  { %v8226_v25 = vld [vmem:[#allocation2 + $0x28] sm:$0xf0]  ;;  %v6923_v45 = vld [vmem:[#allocation2 + $0x2c] sm:$0xf0]  ;;  %v3960_v1 = vrot.slane %v3958_v3, 5 }
 0x205   :  { %v6922_v58 = vor.u32 %v8226_v25, %v6921_v31  ;;  %v6926_v16 = vor.u32 %v8223_v44, %v6923_v45  ;;  %v3961_v31 = vshll.u32 %v14192_v32, 16  ;;  %v4176_v44 = vrot.slane %v4165_v24, 4  ;;  %v3638_v28 = vpop.permute.xlu1 %3637  ;;  %v4470_v7 = vld [vmem:[#allocation2 + $0x8c] sm:$0x66] }
 0x206   :  { %7049 = vmatmul.msk.bf16.vlgmr.msrb.gmra.mxu2 %vm14191_vm5, %v10288_v23  ;;  %v3649_v12 = vrot.slane %v3638_v28, 4 }
 0x207   :  { %2165 = vmatpush.bf16.msrb.mxu0 %v6922_v58  ;;  %2178 = vmatpush.bf16.msrb.mxu1 %v6926_v16  ;;  %v3963_v61 = vrot.slane %v3961_v31, 6  ;;  %v4187_v39 = vsel %vm14193_vm3, %v4176_v44, %v13601_v6  ;;  %v3924_v16 = vrot.slane %v10295_v26, 4  ;;  %v3939_v31 = vld [vmem:[#allocation2 + $0x38] sm:$0x66] }
 0x208   :  { %v4188_v53 = vsel %vm14195_vm13, %v4165_v24, %v4187_v39  ;;  %v3659_v13 = vsel %vm14196_vm11, %v3649_v12, %v13594_v47  ;;  %vm14199_vm11 = vmmov %vm14193_vm3  ;;  %vm14202_vm13 = vnez %v13885_v62  ;;  %v14579_v62 = vld [vmem:[#allocation37_spill] sm:$0xff] }
 0x209   :  { %v4207_v33 = vsel %vm14197_vm10, %v4188_v53, %v4206_v38  ;;  %v3660_v48 = vsel %vm14198_vm9, %v3638_v28, %v3659_v13  ;;  %v3964_v29 = vor.u32 %v3963_v61, %v3960_v1  ;;  %vm14200_vm9 = vcmask 506880   ;;  %v4586_v61 = vld [vmem:[#allocation2 + $0xa8] sm:$0x33] }
 0x20a   :  { %5080 = vrot.lane.b32.xlu2 %v5072_v57, %s13737_s15  ;;  %7047 = vmatmul.msk.bf16.vlgmr.msrb.gmra.mxu0 %vm14194_vm7, %v10288_v23  ;;  %4208 = vst [vmem:[#allocation2 + $0x70] sm:$0x11] %v4207_v33  ;;  %v3678_v50 = vsel %vm14197_vm10, %v3660_v48, %v3677_v49  ;;  %v10442_v54 = vpop.permute.xlu0 %4298  ;;  %vm14201_vm7 = vcmask 490496   ;;  %v10460_v57 = vpop.permute.xlu2 %4565 }
 0x20b   :  { %7048 = vmatmul.msk.bf16.vlgmr.msrb.gmra.mxu1 %vm14191_vm5, %v10288_v23  ;;  %3679 = vst [vmem:[#allocation2 + $0x1c] sm:$0x11] %v3678_v50  ;;  %v13602_v23 = vrot.slane %v10390_v30, 4  ;;  %3988 = vrot.lane.b32.xlu0 %v3971_v9, %s13962_s18  ;;  %v13598_v20 = vrot.slane %v10442_v54, 4  ;;  %vm14203_vm5 = vmmov %vm14193_vm3 }
 0x20d   :  { %v4448_v36 = vpop.permute.xlu1 %4447  ;;  %v4308_v43 = vsel %vm14199_vm11, %v4304_v60, %v13598_v20  ;;  %vm14204_vm11 = vcmask 777216   ;;  %v7228_v20 = vld [vmem:[%s13367_s3 + $0x160] sm:$0xf] }
 0x20e   :  { %v4455_v56 = vrot.slane %v4448_v36, 4  ;;  %v4309_v34 = vsel %vm14200_vm9, %v10241_v18, %v4308_v43  ;;  %v13603_v18 = vrot.slane %v10460_v57, 4  ;;  %vm14205_vm9 = vmmov %vm14193_vm3 }
 0x20f   :  { %v4320_v25 = vsel %vm8917_vm0, %v4309_v34, %v4319_v41 }
 0x210   :  { %v4459_v19 = vsel %vm14193_vm3, %v4455_v56, %v13602_v23  ;;  %4321 = vst [vmem:[#allocation2 + $0x70] sm:$0xcc] %v4320_v25  ;;  %vm14206_vm3 = vcmask 252928  }
 0x211   :  { %v4460_v45 = vsel %vm14201_vm7, %v4448_v36, %v4459_v19  ;;  %vm14207_vm7 = vmmov %vm14203_vm5 }
 0x212   :  { %3986 = vrot.lane.b32.xlu2 %v3964_v29, %s13962_s18  ;;  %v4471_v58 = vsel %vm14202_vm13, %v4460_v45, %v4470_v7  ;;  %v10463_v0 = vpop.permute.xlu0 %3918  ;;  %v4688_v53 = vpop.permute.xlu2 %4687 }
 0x213   :  { %4472 = vst [vmem:[#allocation2 + $0x8c] sm:$0x66] %v4471_v58  ;;  %v13600_v21 = vrot.slane %v10463_v0, 4  ;;  %v4703_v50 = vrot.slane %v4688_v53, 4  ;;  %v7108_v58 = vld [vmem:[%s13367_s3 + $0x70] sm:$0xf] }
 0x215   :  { %v4564_v24 = vpop.permute.xlu1 %4563  ;;  %v3928_v3 = vsel %vm14203_vm5, %v3924_v16, %v13600_v21  ;;  %vm14208_vm5 = vcmask 244736   ;;  %v8114_v16 = vld [vmem:[%s13367_s3 + $0x74] sm:$0xf0] }
 0x216   :  { %v4571_v32 = vrot.slane %v4564_v24, 4  ;;  %v3929_v44 = vsel %vm14204_vm11, %v10295_v26, %v3928_v3  ;;  %vm14210_vm11 = vmmov %vm14207_vm7  ;;  %v10513_v3 = vor.u32 %v8114_v16, %v7108_v58  ;;  %v8110_v58 = vld [vmem:[%s13367_s3 + $0x54] sm:$0xf0] }
 0x217   :  { %v3940_v12 = vsel %vm14202_vm13, %v3929_v44, %v3939_v31  ;;  %v8130_v31 = vld [vmem:[%s13367_s3 + $0xf4] sm:$0xf0]  ;;  %v7300_v44 = vld [vmem:[%s13367_s3 + $0x1f0] sm:$0xf] }
 0x218   :  { %v4575_v28 = vsel %vm14205_vm9, %v4571_v32, %v13603_v18  ;;  %3941 = vst [vmem:[#allocation2 + $0x38] sm:$0x66] %v3940_v12  ;;  %vm14211_vm9 = vcmask 236544   ;;  %2777 = vmatpush.bf16.msrb.mxu3 %v10513_v3  ;;  %v8122_v21 = vld [vmem:[%s13367_s3 + $0xb4] sm:$0xf0] }
 0x219   :  { %v4576_v1 = vsel %vm14206_vm3, %v4564_v24, %v4575_v28  ;;  %v7172_v24 = vld [vmem:[%s13367_s3 + $0xf0] sm:$0xf]  ;;  %14213 = vst [vmem:[#allocation14_spill] sm:$0xff] %v10513_v3  ;;  %vm14215_vm3 = vmmov %vm14207_vm7 }
 0x21a   :  { %v4587_v39 = vsel %vm8795_vm6, %v4576_v1, %v4586_v61  ;;  %v4634_v9 = vpop.permute.xlu0 %4633  ;;  %v10491_v56 = vpop.permute.xlu2 %4780  ;;  %v4737_v28 = vld [vmem:[#allocation2 + $0xc4] sm:$0x11]  ;;  %v10521_v12 = vor.u32 %v8130_v31, %v7172_v24  ;;  %v8162_v1 = vld [vmem:[%s13367_s3 + $0x1f4] sm:$0xf0]  ;;  %v7100_v61 = vld [vmem:[%s13367_s3 + $0x60] sm:$0xf] }
 0x21b   :  { %4588 = vst [vmem:[#allocation2 + $0xa8] sm:$0x33] %v4587_v39  ;;  %v4641_v26 = vrot.slane %v4634_v9, 4  ;;  %v8112_v39 = vld [vmem:[%s13367_s3 + $0x64] sm:$0xf0] }
 0x21c   :  { %14214 = vst [vmem:[#allocation62_spill] sm:$0xff] %v10521_v12  ;;  %2790 = vmatpush.bf16.msra.mxu0 %v10521_v12  ;;  %v7156_v24 = vld [vmem:[%s13367_s3 + $0xd0] sm:$0xf] }
 0x21d   :  { %v10479_v38 = vpop.permute.xlu1 %4635  ;;  %v7284_v31 = vld [vmem:[%s13367_s3 + $0x1d0] sm:$0xf] }
 0x21e   :  { %v13596_v13 = vrot.slane %v10479_v38, 4 }
 0x220   :  { %v4645_v33 = vsel %vm14207_vm7, %v4641_v26, %v13596_v13  ;;  %v10538_v26 = vor.u32 %v8112_v39, %v7100_v61  ;;  %vm14218_vm7 = vmmov %vm14211_vm9  ;;  %v7084_v61 = vld [vmem:[%s13367_s3 + $0x40] sm:$0xf] }
 0x221   :  { %v4646_v49 = vsel %vm14208_vm5, %v4634_v9, %v4645_v33  ;;  %v7164_v33 = vld [vmem:[%s13367_s3 + $0xe0] sm:$0xf]  ;;  %vm14226_vm5 = vmmov %vm14215_vm3 }
 0x222   :  { %v4656_v48 = vld [vmem:[#allocation2 + $0xa8] sm:$0x66]  ;;  %v10488_v60 = vpop.permute.xlu0 %4689  ;;  %v10499_v19 = vpop.permute.xlu2 %4964  ;;  %14217 = vst [vmem:[#allocation75_spill] sm:$0xff] %v10538_v26  ;;  %2778 = vmatpush.bf16.msrb.mxu3 %v10538_v26  ;;  %v4416_v26 = vld [vmem:[#allocation2 + $0x70] sm:$0x88] }
 0x223   :  { %v4657_v29 = vsel %vm13980_vm15, %v4646_v49, %v4656_v48  ;;  %14209 = vst [vmem:[#allocation39_spill] sm:$0xff] %v10488_v60  ;;  %v13595_v36 = vrot.slane %v10488_v60, 4  ;;  %v8128_v48 = vld [vmem:[%s13367_s3 + $0xe4] sm:$0xf0]  ;;  %v7292_v49 = vld [vmem:[%s13367_s3 + $0x1e0] sm:$0xf] }
 0x224   :  { %4658 = vst [vmem:[#allocation2 + $0xa8] sm:$0x66] %v4657_v29 }
 0x225   :  { %v4711_v43 = vsel %vm14210_vm11, %v4703_v50, %v13595_v36  ;;  %v10497_v34 = vpop.permute.xlu1 %4697  ;;  %v10551_v50 = vor.u32 %v8128_v48, %v7164_v33  ;;  %v8108_v48 = vld [vmem:[%s13367_s3 + $0x44] sm:$0xf0]  ;;  %v7276_v36 = vld [vmem:[%s13367_s3 + $0x1c0] sm:$0xf]  ;;  %vm14228_vm11 = vcmask 228352  }
 0x226   :  { %v4712_v41 = vsel %vm14211_vm9, %v4688_v53, %v4711_v43  ;;  %v13604_v25 = vrot.slane %v10497_v34, 4  ;;  %v10536_v53 = vor.u32 %v8162_v1, %v7300_v44  ;;  %v8160_v43 = vld [vmem:[%s13367_s3 + $0x1e4] sm:$0xf0]  ;;  %v8158_v44 = vld [vmem:[%s13367_s3 + $0x1d4] sm:$0xf0]  ;;  %vm14233_vm9 = vmmov %vm14215_vm3 }
 0x227   :  { %4733 = vst [vmem:[#allocation2 + $0xa8] sm:$0x88] %v4712_v41  ;;  %v7092_v41 = vld [vmem:[%s13367_s3 + $0x50] sm:$0xf]  ;;  %2791 = vmatpush.bf16.msra.mxu0 %v10551_v50 }
 0x228   :  { %14216 = vst [vmem:[#allocation74_spill] sm:$0xff] %v10536_v53  ;;  %2816 = vmatpush.bf16.msra.mxu2 %v10536_v53  ;;  %v10581_v1 = vor.u32 %v8110_v58, %v7092_v41  ;;  %v10604_v41 = vor.u32 %v8158_v44, %v7284_v31  ;;  %v7148_v58 = vld [vmem:[%s13367_s3 + $0xc0] sm:$0xf]  ;;  %v8156_v31 = vld [vmem:[%s13367_s3 + $0x1c4] sm:$0xf0] }
 0x229   :  { %14219 = vst [vmem:[#allocation76_spill] sm:$0xff] %v10551_v50  ;;  %v7060_v53 = vld [vmem:[%s13367_s3 + $0x10] sm:$0xf]  ;;  %v7244_v50 = vld [vmem:[%s13367_s3 + $0x180] sm:$0xf] }
 0x22a   :  { %v4696_v45 = vpop.permute.xlu0 %4695  ;;  %14221 = vst [vmem:[#allocation78_spill] sm:$0xff] %v10581_v1  ;;  %2779 = vmatpush.bf16.msrb.mxu3 %v10581_v1  ;;  %v8113_v1 = vld [vmem:[%s13367_s3 + $0x74] sm:$0xf] }
 0x22b   :  { %v4707_v32 = vrot.slane %v4696_v45, 4  ;;  %14224 = vst [vmem:[#allocation81_spill] sm:$0xff] %v10604_v41 }
 0x22d   :  { %v10502_v7 = vpop.permute.xlu1 %3768  ;;  %v4718_v9 = vsel %vm14215_vm3, %v4707_v32, %v13604_v25  ;;  %v8126_v32 = vld [vmem:[%s13367_s3 + $0xd4] sm:$0xf0]  ;;  %vm14236_vm3 = vcmask 1039360  }
 0x22e   :  { %14212 = vst [vmem:[#allocation38_spill] sm:$0xff] %v10502_v7  ;;  %v4719_v29 = vsel %vm14218_vm7, %v4696_v45, %v4718_v9  ;;  %v10565_v45 = vor.u32 %v8160_v43, %v7292_v49  ;;  %v10591_v33 = vor.u32 %v8126_v32, %v7156_v24  ;;  %v7236_v49 = vld [vmem:[%s13367_s3 + $0x170] sm:$0xf]  ;;  %vm14240_vm7 = vmmov %vm14226_vm5 }
 0x22f   :  { %v4738_v16 = vsel %vm14197_vm10, %v4719_v29, %v4737_v28  ;;  %v4788_v28 = vrot.slane %v10491_v56, 4  ;;  %v8146_v29 = vld [vmem:[%s13367_s3 + $0x174] sm:$0xf0] }
 0x230   :  { %14220 = vst [vmem:[#allocation77_spill] sm:$0xff] %v10565_v45  ;;  %2817 = vmatpush.bf16.msra.mxu2 %v10565_v45  ;;  %v10612_v24 = vor.u32 %v8146_v29, %v7236_v49  ;;  %v10625_v49 = vor.u32 %v8108_v48, %v7084_v61  ;;  %v7076_v29 = vld [vmem:[%s13367_s3 + $0x30] sm:$0xf]  ;;  %2792 = vmatpush.bf16.msra.mxu0 %v10591_v33  ;;  %v8106_v48 = vld [vmem:[%s13367_s3 + $0x34] sm:$0xf0] }
 0x231   :  { %4739 = vst [vmem:[#allocation2 + $0xc4] sm:$0x11] %v4738_v16  ;;  %v8124_v16 = vld [vmem:[%s13367_s3 + $0xc4] sm:$0xf0] }
 0x232   :  { %v10588_v9 = vpop.permute.xlu0 %4782  ;;  %14223 = vst [vmem:[#allocation80_spill] sm:$0xff] %v10591_v33  ;;  %2803 = vmatpush.bf16.msra.mxu1 %v10612_v24  ;;  %v10640_v61 = vor.u32 %v8124_v16, %v7148_v58  ;;  %v10656_v58 = vor.u32 %v8156_v31, %v7276_v36  ;;  %v7268_v16 = vld [vmem:[%s13367_s3 + $0x1b0] sm:$0xf]  ;;  %2780 = vmatpush.bf16.msrb.mxu3 %v10625_v49 }
 0x233   :  { %14222 = vst [vmem:[#allocation79_spill] sm:$0xff] %v10588_v9  ;;  %v13599_v43 = vrot.slane %v10588_v9, 4  ;;  %v4933_v31 = vld [vmem:[#allocation2 + $0xc4] sm:$0x88] }
 0x234   :  { %14225 = vst [vmem:[#allocation82_spill] sm:$0xff] %v10612_v24  ;;  %2818 = vmatpush.bf16.msra.mxu2 %v10604_v41  ;;  %2793 = vmatpush.bf16.msra.mxu0 %v10640_v61 }
 0x235   :  { %v4792_v44 = vsel %vm14226_vm5, %v4788_v28, %v13599_v43  ;;  %14227 = vst [vmem:[#allocation83_spill] sm:$0xff] %v10625_v49  ;;  %v8144_v28 = vld [vmem:[%s13367_s3 + $0x164] sm:$0xf0]  ;;  %v7140_v43 = vld [vmem:[%s13367_s3 + $0xb0] sm:$0xf]  ;;  %vm14243_vm5 = vcmask 1014784  }
 0x236   :  { %14229 = vst [vmem:[#allocation84_spill] sm:$0xff] %v10640_v61  ;;  %v10651_v6 = vor.u32 %v8144_v28, %v7228_v20  ;;  %v8154_v20 = vld [vmem:[%s13367_s3 + $0x1b4] sm:$0xf0]  ;;  %v7220_v28 = vld [vmem:[%s13367_s3 + $0x150] sm:$0xf] }
 0x237   :  { %14232 = vst [vmem:[#allocation87_spill] sm:$0xff] %v10656_v58 }
 0x238   :  { %14230 = vst [vmem:[#allocation85_spill] sm:$0xff] %v10651_v6  ;;  %v4803_v23 = vld [vmem:[#allocation2 + $0xc4] sm:$0x33]  ;;  %2804 = vmatpush.bf16.msra.mxu1 %v10651_v6  ;;  %2819 = vmatpush.bf16.msra.mxu2 %v10656_v58  ;;  %v14239_v58 = vrot.slane %v10502_v7, 4 }
 0x23a   :  { %v3767_v41 = vpop.permute.xlu0 %3766 }
 0x23d   :  { %v8449_v47 = vpop.permute.xlu1 %8448 }
 0x23e   :  { %v8451_v13 = vunpack.i.h.bf16 %v8449_v47  ;;  %v8450_v17 = vunpack.i.l.bf16 %v8449_v47  ;;  %v4793_v47 = vsel %vm14228_vm11, %v10491_v56, %v4792_v44  ;;  %vm14254_vm11 = vmmov %vm14240_vm7 }
 0x23f   :  { %v4804_v18 = vsel %vm9287_vm14, %v4793_v47, %v4803_v23  ;;  %v10675_v23 = vor.u32 %v8106_v48, %v7076_v29  ;;  %v7068_v47 = vld [vmem:[%s13367_s3 + $0x20] sm:$0xf]  ;;  %v8104_v29 = vld [vmem:[%s13367_s3 + $0x24] sm:$0xf0] }
 0x240   :  { %v10653_v56 = vrot.slane %v8451_v13, 4  ;;  %v4905_v44 = vrot.slane %v8450_v17, 4  ;;  %v8142_v17 = vld [vmem:[%s13367_s3 + $0x154] sm:$0xf0]  ;;  %4805 = vst [vmem:[#allocation2 + $0xc4] sm:$0x33] %v4804_v18 }
 0x241   :  { %14234 = vst [vmem:[#allocation88_spill] sm:$0xff] %v10675_v23  ;;  %v10681_v25 = vor.u32 %v8142_v17, %v7220_v28  ;;  %v7132_v48 = vld [vmem:[%s13367_s3 + $0xa0] sm:$0xf]  ;;  %v8120_v28 = vld [vmem:[%s13367_s3 + $0xa4] sm:$0xf0]  ;;  %v3774_v17 = vrot.slane %v3767_v41, 4  ;;  %2781 = vmatpush.bf16.msrb.mxu3 %v10675_v23 }
 0x242   :  { %14231 = vst [vmem:[#allocation86_spill] sm:$0xff] %v10653_v56  ;;  %v4913_v36 = vsel %vm14233_vm9, %v4905_v44, %v10653_v56  ;;  %v10687_v44 = vor.u32 %v8122_v21, %v7140_v43  ;;  %v10701_v21 = vor.u32 %v8154_v20, %v7268_v16  ;;  %v7260_v43 = vld [vmem:[%s13367_s3 + $0x1a0] sm:$0xf]  ;;  %v8140_v16 = vld [vmem:[%s13367_s3 + $0x144] sm:$0xf0]  ;;  %v10732_v20 = vor.u32 %v8120_v28, %v7132_v48  ;;  %vm14256_vm9 = vmmov %vm14236_vm3 }
 0x243   :  { %14235 = vst [vmem:[#allocation89_spill] sm:$0xff] %v10681_v25  ;;  %v4914_v18 = vsel %vm14236_vm3, %v4913_v36, %v8451_v13  ;;  %v7212_v36 = vld [vmem:[%s13367_s3 + $0x140] sm:$0xf]  ;;  %v3778_v61 = vsel %vm14240_vm7, %v3774_v17, %v14239_v58  ;;  %2805 = vmatpush.bf16.msra.mxu1 %v10681_v25  ;;  %v8102_v58 = vld [vmem:[%s13367_s3 + $0x14] sm:$0xf0]  ;;  %vm14260_vm3 = vmmov %vm14240_vm7  ;;  %vm14263_vm7 = vcmask 498688  }
 0x244   :  { %v10586_v39 = vpop.permute.xlu2 %4968  ;;  %14237 = vst [vmem:[#allocation90_spill] sm:$0xff] %v10687_v44  ;;  %v4934_v13 = vsel %vm9356_vm4, %v4914_v18, %v4933_v31  ;;  %v8152_v31 = vld [vmem:[%s13367_s3 + $0x1a4] sm:$0xf0]  ;;  %v10728_v33 = vor.u32 %v8140_v16, %v7212_v36  ;;  %v3779_v6 = vsel %vm14243_vm5, %v3767_v41, %v3778_v61  ;;  %2794 = vmatpush.bf16.msra.mxu0 %v10687_v44  ;;  %v7252_v28 = vld [vmem:[%s13367_s3 + $0x190] sm:$0xf]  ;;  %vm14271_vm5 = vmmov %vm14260_vm3 }
 0x245   :  { %14238 = vst [vmem:[#allocation91_spill] sm:$0xff] %v10701_v21  ;;  %v10709_v45 = vpop.permute.xlu1 %4899  ;;  %v3788_v18 = vld [vmem:[#allocation2 + $0x1c] sm:$0xcc]  ;;  %2820 = vmatpush.bf16.msra.mxu2 %v10701_v21  ;;  %v10748_v48 = vor.u32 %v8152_v31, %v7260_v43  ;;  %v8150_v36 = vld [vmem:[%s13367_s3 + $0x194] sm:$0xf0]  ;;  %v10766_v31 = vor.u32 %v8102_v58, %v7060_v53 }
 0x246   :  { %4935 = vst [vmem:[#allocation2 + $0xc4] sm:$0x88] %v4934_v13  ;;  %v10722_v13 = vor.u32 %v8104_v29, %v7068_v47  ;;  %v7124_v47 = vld [vmem:[%s13367_s3 + $0x90] sm:$0xf]  ;;  %v8118_v29 = vld [vmem:[%s13367_s3 + $0x94] sm:$0xf0]  ;;  %v3789_v41 = vsel %vm8917_vm0, %v3779_v6, %v3788_v18 }
 0x247   :  { %14242 = vst [vmem:[#allocation93_spill] sm:$0xff] %v10728_v33  ;;  %v7052_v16 = vld [vmem:[%s13367_s3] sm:$0xf]  ;;  %v8100_v6 = vld [vmem:[%s13367_s3 + $0x4] sm:$0xf0]  ;;  %2806 = vmatpush.bf16.msra.mxu1 %v10728_v33  ;;  %v10781_v53 = vor.u32 %v8118_v29, %v7124_v47  ;;  %v10797_v29 = vor.u32 %v8150_v36, %v7252_v28 }
 0x248   :  { %14241 = vst [vmem:[#allocation92_spill] sm:$0xff] %v10722_v13  ;;  %v7204_v43 = vld [vmem:[%s13367_s3 + $0x130] sm:$0xf]  ;;  %2782 = vmatpush.bf16.msrb.mxu3 %v10722_v13  ;;  %v7116_v18 = vld [vmem:[%s13367_s3 + $0x80] sm:$0xf]  ;;  %2795 = vmatpush.bf16.msra.mxu0 %v10732_v20  ;;  %v10824_v12 = vor.u32 %v8100_v6, %v7052_v16 }
 0x249   :  { %14244 = vst [vmem:[#allocation94_spill] sm:$0xff] %v10732_v20  ;;  %v8138_v17 = vld [vmem:[%s13367_s3 + $0x134] sm:$0xf0]  ;;  %v4898_v21 = vpop.permute.xlu0 %4897  ;;  %v7364_v58 = vld [vmem:[%s13367_s3 + $0x270] sm:$0xf]  ;;  %2821 = vmatpush.bf16.msra.mxu2 %v10748_v48 }
 0x24a   :  { %14245 = vst [vmem:[#allocation95_spill] sm:$0xff] %v10748_v48  ;;  %v8178_v44 = vld [vmem:[%s13367_s3 + $0x274] sm:$0xf0]  ;;  %v7428_v33 = vld [vmem:[%s13367_s3 + $0x2f0] sm:$0xf]  ;;  %v10792_v13 = vor.u32 %v8138_v17, %v7204_v43  ;;  %v4909_v47 = vrot.slane %v4898_v21, 4 }
 0x24b   :  { %3790 = vst [vmem:[#allocation2 + $0x1c] sm:$0xcc] %v3789_v41  ;;  %v8116_v41 = vld [vmem:[%s13367_s3 + $0x84] sm:$0xf0]  ;;  %v8194_v23 = vld [vmem:[%s13367_s3 + $0x2f4] sm:$0xf0]  ;;  %v10838_v16 = vor.u32 %v8178_v44, %v7364_v58 }
 0x24c   :  { %v10683_v32 = vpop.permute.xlu2 %5033  ;;  %14246 = vst [vmem:[#allocation96_spill] sm:$0xff] %v10766_v31  ;;  %v8148_v17 = vld [vmem:[%s13367_s3 + $0x184] sm:$0xf0]  ;;  %v7196_v21 = vld [vmem:[%s13367_s3 + $0x120] sm:$0xf]  ;;  %v14253_v48 = vrot.slane %v10709_v45, 4  ;;  %2783 = vmatpush.bf16.msrb.mxu3 %v10766_v31  ;;  %2807 = vmatpush.bf16.msra.mxu1 %v10792_v13  ;;  %v10848_v31 = vor.u32 %v8194_v23, %v7428_v33 }
 0x24d   :  { %14248 = vst [vmem:[#allocation98_spill] sm:$0xff] %v10781_v53  ;;  %v10805_v49 = vpop.permute.xlu1 %4251  ;;  %v8136_v28 = vld [vmem:[%s13367_s3 + $0x124] sm:$0xf0]  ;;  %2796 = vmatpush.bf16.msra.mxu0 %v10781_v53  ;;  %v7356_v6 = vld [vmem:[%s13367_s3 + $0x260] sm:$0xf]  ;;  %2822 = vmatpush.bf16.msra.mxu2 %v10797_v29 }
 0x24e   :  { %14249 = vst [vmem:[#allocation99_spill] sm:$0xff] %v10792_v13  ;;  %v4919_v24 = vsel %vm14254_vm11, %v4909_v47, %v14253_v48  ;;  %v10836_v48 = vor.u32 %v8116_v41, %v7116_v18  ;;  %v10843_v47 = vor.u32 %v8136_v28, %v7196_v21  ;;  %v8176_v44 = vld [vmem:[%s13367_s3 + $0x264] sm:$0xf0]  ;;  %v7420_v18 = vld [vmem:[%s13367_s3 + $0x2e0] sm:$0xf]  ;;  %vm14273_vm11 = vmmov %vm14260_vm3 }
 0x24f   :  { %14250 = vst [vmem:[#allocation100_spill] sm:$0xff] %v10797_v29  ;;  %v4920_v3 = vsel %vm14256_vm9, %v4919_v24, %v10709_v45  ;;  %v10850_v24 = vor.u32 %v8148_v17, %v7244_v50  ;;  %v7188_v50 = vld [vmem:[%s13367_s3 + $0x110] sm:$0xf]  ;;  %v8134_v33 = vld [vmem:[%s13367_s3 + $0x114] sm:$0xf0]  ;;  %v10887_v17 = vor.u32 %v8176_v44, %v7356_v6  ;;  %vm14275_vm9 = vcmask 1031168  }
 0x250   :  { %14251 = vst [vmem:[#allocation101_spill] sm:$0xff] %v10805_v49  ;;  %2784 = vmatpush.bf16.msrb.mxu3 %v10824_v12  ;;  %2808 = vmatpush.bf16.msra.mxu1 %v10843_v47  ;;  %v8174_v21 = vld [vmem:[%s13367_s3 + $0x254] sm:$0xf0]  ;;  %v7412_v28 = vld [vmem:[%s13367_s3 + $0x2d0] sm:$0xf] }
 0x251   :  { %14255 = vst [vmem:[#allocation103_spill] sm:$0xff] %v10824_v12  ;;  %2797 = vmatpush.bf16.msra.mxu0 %v10836_v48  ;;  %2823 = vmatpush.bf16.msra.mxu2 %v10850_v24  ;;  %v7180_v6 = vld [vmem:[%s13367_s3 + $0x100] sm:$0xf]  ;;  %v8132_v44 = vld [vmem:[%s13367_s3 + $0x104] sm:$0xf0] }
 0x252   :  { %14257 = vst [vmem:[#allocation104_spill] sm:$0xff] %v10836_v48  ;;  %v4989_v29 = vld [vmem:[#allocation2 + $0xe8] sm:$0x66]  ;;  %v7094_v53 = vld [vmem:[%s13367_s3 + $0x58] sm:$0xf0] }
 0x253   :  { %14258 = vst [vmem:[#allocation105_spill] sm:$0xff] %v10838_v16 }
 0x254   :  { %v10778_v61 = vpop.permute.xlu2 %8453  ;;  %14259 = vst [vmem:[#allocation106_spill] sm:$0xff] %v10843_v47  ;;  %2829 = vmatpush.bf16.msra.mxu3 %v10838_v16  ;;  %v10933_v47 = vor.u32 %v8132_v44, %v7180_v6  ;;  %v8172_v6 = vld [vmem:[%s13367_s3 + $0x244] sm:$0xf0]  ;;  %v7484_v44 = vld [vmem:[%s13367_s3 + $0x360] sm:$0xf] }
 0x255   :  { %14247 = vst [vmem:[#allocation97_spill] sm:$0xff] %v10778_v61  ;;  %v13625_v25 = vunpack.i.h.bf16 %v10778_v61  ;;  %v8455_v20 = vunpack.i.l.bf16 %v10778_v61  ;;  %2842 = vmatpush.bf16.msrb.mxu0 %v10848_v31 }
 0x256   :  { %4945 = vst [vmem:[#allocation2 + $0xe0] sm:$0x11] %v4920_v3  ;;  %v8192_v3 = vld [vmem:[%s13367_s3 + $0x2e4] sm:$0xf0] }
 0x257   :  { %v10818_v36 = vrot.slane %v13625_v25, 4  ;;  %v4386_v43 = vrot.slane %v8455_v20, 4  ;;  %v7110_v25 = vld [vmem:[%s13367_s3 + $0x78] sm:$0xf0]  ;;  %14261 = vst [vmem:[#allocation107_spill] sm:$0xff] %v10848_v31  ;;  %v14270_v31 = vrot.slane %v10499_v19, 4 }
 0x258   :  { %14262 = vst [vmem:[#allocation108_spill] sm:$0xff] %v10850_v24  ;;  %v10859_v58 = vor.u32 %v8113_v1, %v7110_v25  ;;  %v8111_v25 = vld [vmem:[%s13367_s3 + $0x64] sm:$0xf]  ;;  %v7102_v1 = vld [vmem:[%s13367_s3 + $0x68] sm:$0xf0]  ;;  %2830 = vmatpush.bf16.msra.mxu3 %v10887_v17 }
 0x259   :  { %14252 = vst [vmem:[#allocation102_spill] sm:$0xff] %v10818_v36  ;;  %v4394_v13 = vsel %vm14260_vm3, %v4386_v43, %v10818_v36  ;;  %v10909_v43 = vor.u32 %v8111_v25, %v7102_v1  ;;  %v8210_v24 = vld [vmem:[%s13367_s3 + $0x374] sm:$0x30]  ;;  %v14272_v25 = vrot.slane %v10586_v39, 4  ;;  %vm14276_vm3 = vmmov %vm14275_vm9  ;;  %v14493_v36 = vld [vmem:[#allocation68_spill] sm:$0xff] }
 0x25a   :  { %v4395_v41 = vsel %vm14263_vm7, %v8455_v20, %v4394_v13  ;;  %14264 = vst [vmem:[#allocation109_spill] sm:$0xff] %v10859_v58  ;;  %v7348_v20 = vld [vmem:[%s13367_s3 + $0x250] sm:$0xf]  ;;  %v10883_v13 = vor.u32 %v8134_v33, %v7188_v50  ;;  %v10898_v50 = vor.u32 %v8192_v3, %v7420_v18  ;;  %v4986_v33 = vld [vmem:[#allocation2 + $0xe0] sm:$0x66]  ;;  %2868 = vmatpush.bf16.msrb.mxu2 %v10859_v58  ;;  %vm14279_vm7 = vcmask 1045504  }
 0x25b   :  { %v4417_v23 = vsel %vm9356_vm4, %v4395_v41, %v4416_v26  ;;  %v4967_v26 = vpop.permute.xlu0 %4966  ;;  %14266 = vst [vmem:[#allocation111_spill] sm:$0xff] %v10887_v17  ;;  %v8190_v18 = vld [vmem:[%s13367_s3 + $0x2d4] sm:$0xf0]  ;;  %v7492_v3 = vld [vmem:[%s13367_s3 + $0x370] sm:$0xf]  ;;  %v4510_v37 = vshrl.u32 %v14493_v36, 16 }
 0x25c   :  { %14265 = vst [vmem:[#allocation110_spill] sm:$0xff] %v10883_v13  ;;  %v4973_v41 = vrot.slane %v4967_v26, 4  ;;  %2809 = vmatpush.bf16.msra.mxu1 %v10883_v13  ;;  %v8109_v58 = vld [vmem:[%s13367_s3 + $0x54] sm:$0xf]  ;;  %v7493_v16 = vor.u32 %v8210_v24, %v7492_v3  ;;  %v7340_v13 = vld [vmem:[%s13367_s3 + $0x240] sm:$0xf]  ;;  %2843 = vmatpush.bf16.msrb.mxu0 %v10898_v50 }
 0x25d   :  { %4418 = vst [vmem:[#allocation2 + $0x70] sm:$0x88] %v4417_v23  ;;  %v10906_v23 = vpop.permute.xlu1 %4519  ;;  %v8208_v3 = vld [vmem:[%s13367_s3 + $0x364] sm:$0xf0]  ;;  %v4513_v9 = vshll.u32 %v14493_v36, 16 }
 0x25e   :  { %14267 = vst [vmem:[#allocation112_spill] sm:$0xff] %v10898_v50  ;;  %v4976_v48 = vsel %vm14271_vm5, %v14270_v31, %v4973_v41  ;;  %v4978_v1 = vsel %vm14273_vm11, %v4973_v41, %v14272_v25  ;;  %v10939_v41 = vor.u32 %v8174_v21, %v7348_v20  ;;  %v10941_v25 = vpop.permute.xlu2 %4378  ;;  %v10960_v21 = vsel %vm14279_vm7, %v7493_v16, 0  ;;  %2869 = vmatpush.bf16.msrb.mxu2 %v10909_v43  ;;  %v8107_v16 = vld [vmem:[%s13367_s3 + $0x44] sm:$0xf] }
 0x25f   :  { %14268 = vst [vmem:[#allocation113_spill] sm:$0xff] %v10906_v23  ;;  %v4977_v19 = vsel %vm14275_vm9, %v4976_v48, %v4967_v26  ;;  %v4979_v31 = vsel %vm14276_vm3, %v4978_v1, %v10586_v39  ;;  %v7404_v48 = vld [vmem:[%s13367_s3 + $0x2c0] sm:$0xf]  ;;  %v10957_v26 = vor.u32 %v8190_v18, %v7412_v28  ;;  %v7086_v28 = vld [vmem:[%s13367_s3 + $0x48] sm:$0xf0]  ;;  %v10987_v18 = vor.u32 %v8172_v6, %v7340_v13  ;;  %vm14292_vm9 = vmmov %vm14271_vm5 }
 0x260   :  { %14269 = vst [vmem:[#allocation114_spill] sm:$0xff] %v10909_v43  ;;  %v4987_v24 = vsel %vm14202_vm13, %v4977_v19, %v4986_v33  ;;  %v4990_v20 = vsel %vm14202_vm13, %v4979_v31, %v4989_v29  ;;  %v10969_v33 = vor.u32 %v8109_v58, %v7094_v53  ;;  %v8188_v29 = vld [vmem:[%s13367_s3 + $0x2c4] sm:$0xf0]  ;;  %2810 = vmatpush.bf16.msra.mxu1 %v10933_v47  ;;  %v7332_v53 = vld [vmem:[%s13367_s3 + $0x230] sm:$0xf]  ;;  %vm14288_vm11 = vcmask 1022976  }
 0x261   :  { %14274 = vst [vmem:[#allocation115_spill] sm:$0xff] %v10933_v47  ;;  %2831 = vmatpush.bf16.msra.mxu3 %v10939_v41  ;;  %v8170_v1 = vld [vmem:[%s13367_s3 + $0x234] sm:$0xf0]  ;;  %v7396_v19 = vld [vmem:[%s13367_s3 + $0x2b0] sm:$0xf]  ;;  %2844 = vmatpush.bf16.msrb.mxu0 %v10957_v26  ;;  %v11003_v13 = vor.u32 %v8188_v29, %v7404_v48  ;;  %v2115_v12 = vpop.f32.mrf.mxu0  ;;  %vm14293_vm3 = vnez %v13953_v46  ;;  %vm14295_vm7 = vcmask 1031168  }
 0x262   :  { %14277 = vst [vmem:[#allocation116_spill] sm:$0xff] %v10939_v41  ;;  %v8186_v31 = vld [vmem:[%s13367_s3 + $0x2b4] sm:$0xf0]  ;;  %v7476_v6 = vld [vmem:[%s13367_s3 + $0x350] sm:$0xf]  ;;  %2870 = vmatpush.bf16.msrb.mxu2 %v10969_v33  ;;  %v11025_v41 = vor.u32 %v8170_v1, %v7332_v53 }
 0x263   :  { %14278 = vst [vmem:[#allocation117_spill] sm:$0xff] %v10957_v26  ;;  %v10984_v58 = vpop.permute.xlu0 %5035  ;;  %v8206_v43 = vld [vmem:[%s13367_s3 + $0x354] sm:$0xf0]  ;;  %v7078_v48 = vld [vmem:[%s13367_s3 + $0x38] sm:$0xf0]  ;;  %v11031_v17 = vor.u32 %v8186_v31, %v7396_v19 }
 0x264   :  { %14280 = vst [vmem:[#allocation118_spill] sm:$0xff] %v10960_v21  ;;  %2855 = vmatpush.bf16.msrb.mxu1 %v10960_v21  ;;  %v11012_v21 = vor.u32 %v8107_v16, %v7086_v28  ;;  %v4995_v47 = vld [vmem:[#allocation2 + $0xf8] sm:$0x6]  ;;  %v8168_v53 = vld [vmem:[%s13367_s3 + $0x224] sm:$0xf0]  ;;  %v11040_v1 = vor.u32 %v8206_v43, %v7476_v6  ;;  %v11048_v16 = vpack.c.bf16 %v2115_v12, %v2115_v12 }
 0x265   :  { %4988 = vst [vmem:[#allocation2 + $0xe0] sm:$0x66] %v4987_v24  ;;  %v10999_v24 = vor.u32 %v8208_v3, %v7484_v44  ;;  %v4971_v50 = vpop.permute.xlu1 %4970  ;;  %v8105_v44 = vld [vmem:[%s13367_s3 + $0x34] sm:$0xf]  ;;  %v14286_v3 = vrot.slane %v10683_v32, 4  ;;  %2832 = vmatpush.bf16.msra.mxu3 %v10987_v18  ;;  %2845 = vmatpush.bf16.msrb.mxu0 %v11003_v13 }
 0x266   :  { %14281 = vst [vmem:[#allocation119_spill] sm:$0xff] %v10969_v33  ;;  %v4975_v26 = vrot.slane %v4971_v50, 4  ;;  %v4992_v33 = vld [vmem:[#allocation2 + $0xf0] sm:$0x66]  ;;  %v7324_v32 = vld [vmem:[%s13367_s3 + $0x220] sm:$0xf]  ;;  %2871 = vmatpush.bf16.msrb.mxu2 %v11012_v21  ;;  %v11062_v12 = vpop.permute.xlu2 %5080  ;;  %2785 = vmatmul.bf16.vlgmr.msrb.gmra.mxu3 %v11048_v16 }
 0x267   :  { %4991 = vst [vmem:[#allocation2 + $0xe8] sm:$0x66] %v4990_v20  ;;  %v13648_v20 = vrot.slane %v10984_v58, 4  ;;  %v7468_v43 = vld [vmem:[%s13367_s3 + $0x340] sm:$0xf] }
 0x268   :  { %14282 = vst [vmem:[#allocation120_spill] sm:$0xff] %v10987_v18  ;;  %2856 = vmatpush.bf16.msrb.mxu1 %v10999_v24  ;;  %v4996_v31 = vsel %vm14293_vm3, %v4975_v26, %v4995_v47  ;;  %v8204_v6 = vld [vmem:[%s13367_s3 + $0x344] sm:$0xf0]  ;;  %v7388_v47 = vld [vmem:[%s13367_s3 + $0x2a0] sm:$0xf] }
 0x269   :  { %14283 = vst [vmem:[#allocation121_spill] sm:$0xff] %v10999_v24  ;;  %v5045_v29 = vsel %vm14271_vm5, %v14286_v3, %v13648_v20  ;;  %v2128_v3 = vpop.f32.mrf.mxu1  ;;  %v14291_v20 = vrot.slane %v10586_v39, 4  ;;  %v11050_v24 = vor.u32 %v8105_v44, %v7078_v48  ;;  %2833 = vmatpush.bf16.msra.mxu3 %v11025_v41  ;;  %2846 = vmatpush.bf16.msrb.mxu0 %v11031_v17  ;;  %v5100_v18 = vld [vmem:[#allocation2 + $0xfc] sm:$0x33] }
 0x26a   :  { %14284 = vst [vmem:[#allocation122_spill] sm:$0xff] %v11003_v13  ;;  %v5046_v28 = vsel %vm14288_vm11, %v5045_v29, %v10984_v58  ;;  %v11070_v44 = vpack.c.bf16 %v2128_v3, %v2128_v3  ;;  %v11082_v3 = vor.u32 %v8168_v53, %v7324_v32  ;;  %v7380_v32 = vld [vmem:[%s13367_s3 + $0x290] sm:$0xf]  ;;  %v8182_v53 = vld [vmem:[%s13367_s3 + $0x294] sm:$0xf0]  ;;  %vm14301_vm11 = vcmask 515072  }
 0x26b   :  { %14285 = vst [vmem:[#allocation123_spill] sm:$0xff] %v11012_v21  ;;  %v4980_v19 = vsel %vm14292_vm9, %v14291_v20, %v4975_v26  ;;  %v8184_v26 = vld [vmem:[%s13367_s3 + $0x2a4] sm:$0xf0]  ;;  %v4272_v21 = vld [vmem:[#allocation2 + $0x70] sm:$0x33]  ;;  %2872 = vmatpush.bf16.msrb.mxu2 %v11050_v24  ;;  %vm14305_vm9 = vmmov %vm14271_vm5 }
 0x26c   :  { %14287 = vst [vmem:[#allocation124_spill] sm:$0xff] %v11025_v41  ;;  %v5055_v29 = vld [vmem:[#allocation2 + $0xe0] sm:$0xcc]  ;;  %v4981_v20 = vsel %vm14295_vm7, %v4980_v19, %v4971_v50  ;;  %v8103_v50 = vld [vmem:[%s13367_s3 + $0x24] sm:$0xf]  ;;  %2857 = vmatpush.bf16.msrb.mxu1 %v11040_v1  ;;  %2798 = vmatmul.bf16.vlgmr.msra.gmra.mxu0 %v11070_v44  ;;  %vm14307_vm7 = vcmask 1014784  }
 0x26d   :  { %14289 = vst [vmem:[#allocation125_spill] sm:$0xff] %v11031_v17  ;;  %v5056_v39 = vsel %vm9057_vm12, %v5046_v28, %v5055_v29  ;;  %v4993_v48 = vsel %vm14202_vm13, %v4981_v20, %v4992_v33  ;;  %v7070_v28 = vld [vmem:[%s13367_s3 + $0x28] sm:$0xf0]  ;;  %v4250_v29 = vpop.permute.xlu0 %4249  ;;  %v7316_v33 = vld [vmem:[%s13367_s3 + $0x210] sm:$0xf]  ;;  %v5079_v13 = vpop.permute.xlu1 %5078  ;;  %2834 = vmatpush.bf16.msra.mxu3 %v11082_v3 }
 0x26e   :  { %14290 = vst [vmem:[#allocation126_spill] sm:$0xff] %v11040_v1  ;;  %v8166_v19 = vld [vmem:[%s13367_s3 + $0x214] sm:$0xf0]  ;;  %v7062_v17 = vld [vmem:[%s13367_s3 + $0x18] sm:$0xf0]  ;;  %v2117_v20 = vpop.f32.mrf.mxu0 }
 0x26f   :  { %14294 = vst [vmem:[#allocation127_spill] sm:$0xff] %v11050_v24  ;;  %v14300_v24 = vrot.slane %v10805_v49, 4  ;;  %v7308_v1 = vld [vmem:[%s13367_s3 + $0x200] sm:$0xf]  ;;  %v11128_v7 = vor.u32 %v8166_v19, %v7316_v33  ;;  %v14304_v19 = vrot.slane %v11062_v12, 4 }
 0x270   :  { %4997 = vst [vmem:[#allocation2 + $0xf8] sm:$0x6] %v4996_v31  ;;  %v11091_v31 = vor.u32 %v8204_v6, %v7468_v43  ;;  %v11104_v43 = vor.u32 %v8103_v50, %v7070_v28  ;;  %v8101_v6 = vld [vmem:[%s13367_s3 + $0x14] sm:$0xf]  ;;  %v5086_v28 = vrot.slane %v5079_v13, 4 }
 0x271   :  { %5057 = vst [vmem:[#allocation2 + $0xe0] sm:$0xcc] %v5056_v39  ;;  %v4257_v39 = vrot.slane %v4250_v29, 4  ;;  %v7372_v13 = vld [vmem:[%s13367_s3 + $0x280] sm:$0xf]  ;;  %2835 = vmatpush.bf16.msra.mxu3 %v11128_v7 }
 0x272   :  { %4994 = vst [vmem:[#allocation2 + $0xf0] sm:$0x66] %v4993_v48  ;;  %v11095_v48 = vor.u32 %v8184_v26, %v7388_v47  ;;  %v7460_v47 = vld [vmem:[%s13367_s3 + $0x330] sm:$0xf]  ;;  %v8202_v26 = vld [vmem:[%s13367_s3 + $0x334] sm:$0xf0]  ;;  %2858 = vmatpush.bf16.msrb.mxu1 %v11091_v31  ;;  %v5090_v20 = vsel %vm14305_vm9, %v5086_v28, %v14304_v19  ;;  %2873 = vmatpush.bf16.msrb.mxu2 %v11104_v43  ;;  %vm14328_vm9 = vmmov %vm14271_vm5 }
 0x273   :  { %14296 = vst [vmem:[#allocation128_spill] sm:$0xff] %v11082_v3  ;;  %v4261_v50 = vsel %vm14271_vm5, %v4257_v39, %v14300_v24  ;;  %v8164_v24 = vld [vmem:[%s13367_s3 + $0x204] sm:$0xf0]  ;;  %v11140_v39 = vor.u32 %v8202_v26, %v7460_v47  ;;  %v8129_v3 = vld [vmem:[%s13367_s3 + $0xf4] sm:$0xf] }
 0x274   :  { %14297 = vst [vmem:[#allocation129_spill] sm:$0xff] %v11091_v31  ;;  %v4262_v41 = vsel %vm14301_vm11, %v4250_v29, %v4261_v50  ;;  %v8180_v29 = vld [vmem:[%s13367_s3 + $0x284] sm:$0xf0]  ;;  %v2130_v50 = vpop.f32.mrf.mxu1  ;;  %2847 = vmatpush.bf16.msrb.mxu0 %v11095_v48  ;;  %v11148_v31 = vor.u32 %v8182_v53, %v7380_v32  ;;  %v7174_v47 = vld [vmem:[%s13367_s3 + $0xf8] sm:$0xf0]  ;;  %v11162_v32 = vor.u32 %v8101_v6, %v7062_v17  ;;  %vm14316_vm11 = vcmask 261120  }
 0x275   :  { %14298 = vst [vmem:[#allocation130_spill] sm:$0xff] %v11095_v48  ;;  %v4273_v33 = vsel %vm9287_vm14, %v4262_v41, %v4272_v21  ;;  %v7452_v41 = vld [vmem:[%s13367_s3 + $0x320] sm:$0xf]  ;;  %v5091_v21 = vsel %vm14307_vm7, %v5090_v20, %v11062_v12  ;;  %v8145_v53 = vld [vmem:[%s13367_s3 + $0x174] sm:$0xf]  ;;  %v11182_v19 = vor.u32 %v8164_v24, %v7308_v1  ;;  %v11196_v48 = vor.u32 %v8129_v3, %v7174_v47 }
 0x276   :  { %14299 = vst [vmem:[#allocation131_spill] sm:$0xff] %v11104_v43  ;;  %v8200_v26 = vld [vmem:[%s13367_s3 + $0x324] sm:$0xf0]  ;;  %v5101_v28 = vsel %vm8795_vm6, %v5091_v21, %v5100_v18  ;;  %v7238_v50 = vld [vmem:[%s13367_s3 + $0x178] sm:$0xf0]  ;;  %2859 = vmatpush.bf16.msrb.mxu1 %v11140_v39  ;;  %2874 = vmatpush.bf16.msrb.mxu2 %v11162_v32  ;;  %vm14329_vm7 = vcmask 498688  }
 0x277   :  { %14302 = vst [vmem:[#allocation132_spill] sm:$0xff] %v11128_v7  ;;  %v8099_v17 = vld [vmem:[%s13367_s3 + $0x4] sm:$0xf]  ;;  %v7054_v6 = vld [vmem:[%s13367_s3 + $0x8] sm:$0xf0]  ;;  %v11191_v21 = vor.u32 %v8200_v26, %v7452_v41  ;;  %v11205_v41 = vor.u32 %v8145_v53, %v7238_v50  ;;  %v14314_v26 = vrot.slane %v10906_v23, 4  ;;  %2836 = vmatpush.bf16.msra.mxu3 %v11182_v19 }
 0x278   :  { %14303 = vst [vmem:[#allocation133_spill] sm:$0xff] %v11140_v39  ;;  %v8177_v18 = vld [vmem:[%s13367_s3 + $0x274] sm:$0xf]  ;;  %v7366_v20 = vld [vmem:[%s13367_s3 + $0x278] sm:$0xf0]  ;;  %2848 = vmatpush.bf16.msrb.mxu0 %v11148_v31  ;;  %v2154_v39 = vpop.f32.mrf.mxu3 }
 0x279   :  { %14306 = vst [vmem:[#allocation134_spill] sm:$0xff] %v11148_v31  ;;  %v7444_v1 = vld [vmem:[%s13367_s3 + $0x310] sm:$0xf]  ;;  %v8198_v24 = vld [vmem:[%s13367_s3 + $0x314] sm:$0xf0]  ;;  %v11216_v7 = vpack.c.bf16 %v2154_v39, %v2154_v39  ;;  %v11230_v23 = vor.u32 %v8177_v18, %v7366_v20 }
 0x27a   :  { %4274 = vst [vmem:[#allocation2 + $0x70] sm:$0x33] %v4273_v33  ;;  %v4518_v33 = vpop.permute.xlu0 %4517  ;;  %v7166_v3 = vld [vmem:[%s13367_s3 + $0xe8] sm:$0xf0]  ;;  %v4540_v47 = vld [vmem:[#allocation2 + $0x8c] sm:$0xcc]  ;;  %2860 = vmatpush.bf16.msrb.mxu1 %v11191_v21 }
 0x27b   :  { %14308 = vst [vmem:[#allocation135_spill] sm:$0xff] %v11162_v32  ;;  %v4525_v43 = vrot.slane %v4518_v33, 4  ;;  %v11218_v32 = vor.u32 %v8099_v17, %v7054_v6  ;;  %v8143_v53 = vld [vmem:[%s13367_s3 + $0x164] sm:$0xf]  ;;  %v7230_v50 = vld [vmem:[%s13367_s3 + $0x168] sm:$0xf0]  ;;  %v11242_v6 = vor.u32 %v8198_v24, %v7444_v1  ;;  %2881 = vmatpush.bf16.msrb.mxu3 %v11196_v48  ;;  %2824 = vmatmul.bf16.vlgmr.msra.gmra.mxu2 %v11216_v7 }
 0x27c   :  { %5102 = vst [vmem:[#allocation2 + $0xfc] sm:$0x33] %v5101_v28  ;;  %v11194_v28 = vor.u32 %v8180_v29, %v7372_v13  ;;  %v8127_v13 = vld [vmem:[%s13367_s3 + $0xe4] sm:$0xf]  ;;  %v2141_v29 = vpop.f32.mrf.mxu2  ;;  %v7358_v39 = vld [vmem:[%s13367_s3 + $0x268] sm:$0xf0] }
 0x27d   :  { %14309 = vst [vmem:[#allocation136_spill] sm:$0xff] %v11182_v19  ;;  %v4529_v31 = vsel %vm14271_vm5, %v4525_v43, %v14314_v26  ;;  %v11226_v49 = vpack.c.bf16 %v2141_v29, %v2141_v29  ;;  %v8175_v43 = vld [vmem:[%s13367_s3 + $0x264] sm:$0xf]  ;;  %v8125_v17 = vld [vmem:[%s13367_s3 + $0xd4] sm:$0xf]  ;;  %2875 = vmatpush.bf16.msrb.mxu2 %v11218_v32 }
 0x27e   :  { %14310 = vst [vmem:[#allocation137_spill] sm:$0xff] %v11191_v21  ;;  %v4530_v4 = vsel %vm14316_vm11, %v4518_v33, %v4529_v31  ;;  %2849 = vmatpush.bf16.msrb.mxu0 %v11194_v28  ;;  %v11248_v33 = vor.u32 %v8127_v13, %v7166_v3  ;;  %v7158_v18 = vld [vmem:[%s13367_s3 + $0xd8] sm:$0xf0]  ;;  %v7436_v20 = vld [vmem:[%s13367_s3 + $0x300] sm:$0xf]  ;;  %v4390_v3 = vrot.slane %v10941_v25, 4  ;;  %2861 = vmatpush.bf16.msrb.mxu1 %v11242_v6 }
 0x27f   :  { %14311 = vst [vmem:[#allocation138_spill] sm:$0xff] %v11194_v28  ;;  %v4541_v31 = vsel %vm9057_vm12, %v4530_v4, %v4540_v47  ;;  %v8196_v1 = vld [vmem:[%s13367_s3 + $0x304] sm:$0xf0]  ;;  %v11261_v4 = vor.u32 %v8143_v53, %v7230_v50  ;;  %v8161_v24 = vld [vmem:[%s13367_s3 + $0x1f4] sm:$0xf]  ;;  %2811 = vmatmul.bf16.vlgmr.msra.gmra.mxu1 %v11226_v49  ;;  %v11281_v53 = vor.u32 %v8175_v43, %v7358_v39  ;;  %vm14340_vm11 = vcmask 769024  }
 0x280   :  { %14312 = vst [vmem:[#allocation139_spill] sm:$0xff] %v11196_v48  ;;  %v7302_v13 = vld [vmem:[%s13367_s3 + $0x1f8] sm:$0xf0]  ;;  %v8141_v29 = vld [vmem:[%s13367_s3 + $0x154] sm:$0xf]  ;;  %2882 = vmatpush.bf16.msrb.mxu3 %v11248_v33  ;;  %v2156_v28 = vpop.f32.mrf.mxu3 }
 0x281   :  { %14313 = vst [vmem:[#allocation140_spill] sm:$0xff] %v11205_v41  ;;  %v7222_v47 = vld [vmem:[%s13367_s3 + $0x158] sm:$0xf0]  ;;  %2920 = vmatpush.bf16.msra.mxu2 %v11230_v23  ;;  %v8173_v50 = vld [vmem:[%s13367_s3 + $0x254] sm:$0xf]  ;;  %v11299_v39 = vor.u32 %v8161_v24, %v7302_v13 }
 0x282   :  { %14315 = vst [vmem:[#allocation141_spill] sm:$0xff] %v11218_v32  ;;  %2894 = vmatpush.bf16.msra.mxu0 %v11205_v41  ;;  %v11278_v26 = vpop.permute.xlu0 %4380  ;;  %v11291_v41 = vor.u32 %v8125_v17, %v7158_v18  ;;  %v8123_v43 = vld [vmem:[%s13367_s3 + $0xc4] sm:$0xf]  ;;  %v7294_v32 = vld [vmem:[%s13367_s3 + $0x1e8] sm:$0xf0] }
 0x283   :  { %14317 = vst [vmem:[#allocation142_spill] sm:$0xff] %v11230_v23  ;;  %v7350_v23 = vld [vmem:[%s13367_s3 + $0x258] sm:$0xf0]  ;;  %v8159_v18 = vld [vmem:[%s13367_s3 + $0x1e4] sm:$0xf]  ;;  %v14327_v24 = vrot.slane %v11278_v26, 4 }
 0x284   :  { %14318 = vst [vmem:[#allocation143_spill] sm:$0xff] %v11242_v6  ;;  %v2143_v17 = vpop.f32.mrf.mxu2  ;;  %v11325_v6 = vor.u32 %v8173_v50, %v7350_v23  ;;  %v8171_v28 = vld [vmem:[%s13367_s3 + $0x244] sm:$0xf]  ;;  %2883 = vmatpush.bf16.msrb.mxu3 %v11291_v41  ;;  %v8121_v23 = vld [vmem:[%s13367_s3 + $0xb4] sm:$0xf]  ;;  %v11341_v50 = vor.u32 %v8159_v18, %v7294_v32 }
 0x285   :  { %14319 = vst [vmem:[#allocation144_spill] sm:$0xff] %v11248_v33  ;;  %v4401_v13 = vsel %vm14328_vm9, %v4390_v3, %v14327_v24  ;;  %2921 = vmatpush.bf16.msra.mxu2 %v11281_v53  ;;  %v8137_v32 = vld [vmem:[%s13367_s3 + $0x134] sm:$0xf]  ;;  %v7206_v18 = vld [vmem:[%s13367_s3 + $0x138] sm:$0xf0]  ;;  %vm14349_vm9 = vcmask 1014784  }
 0x286   :  { %4542 = vst [vmem:[#allocation2 + $0x8c] sm:$0xcc] %v4541_v31  ;;  %v11287_v31 = vor.u32 %v8196_v1, %v7436_v20  ;;  %2895 = vmatpush.bf16.msra.mxu0 %v11261_v4  ;;  %v11302_v20 = vor.u32 %v8141_v29, %v7222_v47  ;;  %v7150_v1 = vld [vmem:[%s13367_s3 + $0xc8] sm:$0xf0]  ;;  %v8139_v29 = vld [vmem:[%s13367_s3 + $0x144] sm:$0xf]  ;;  %v4402_v17 = vsel %vm14329_vm7, %v10941_v25, %v4401_v13  ;;  %vm14359_vm7 = vmmov %vm14271_vm5 }
 0x287   :  { %14320 = vst [vmem:[#allocation145_spill] sm:$0xff] %v11261_v4  ;;  %v7214_v47 = vld [vmem:[%s13367_s3 + $0x148] sm:$0xf0]  ;;  %v3987_v4 = vpop.permute.xlu2 %3986  ;;  %v11332_v3 = vor.u32 %v8123_v43, %v7150_v1  ;;  %v7142_v43 = vld [vmem:[%s13367_s3 + $0xb8] sm:$0xf0] }
 0x288   :  { %14321 = vst [vmem:[#allocation146_spill] sm:$0xff] %v11278_v26  ;;  %2862 = vmatpush.bf16.msrb.mxu1 %v11287_v31  ;;  %v7342_v25 = vld [vmem:[%s13367_s3 + $0x248] sm:$0xf0]  ;;  %v11344_v24 = vor.u32 %v8139_v29, %v7214_v47  ;;  %v8157_v1 = vld [vmem:[%s13367_s3 + $0x1d4] sm:$0xf] }
 0x289   :  { %14322 = vst [vmem:[#allocation147_spill] sm:$0xff] %v11281_v53  ;;  %v7286_v13 = vld [vmem:[%s13367_s3 + $0x1d8] sm:$0xf0]  ;;  %2922 = vmatpush.bf16.msra.mxu2 %v11325_v6  ;;  %v11364_v47 = vor.u32 %v8171_v28, %v7342_v25  ;;  %v8169_v53 = vld [vmem:[%s13367_s3 + $0x234] sm:$0xf]  ;;  %2884 = vmatpush.bf16.msrb.mxu3 %v11332_v3 }
 0x28a   :  { %14323 = vst [vmem:[#allocation148_spill] sm:$0xff] %v11287_v31  ;;  %2896 = vmatpush.bf16.msra.mxu0 %v11302_v20  ;;  %v11361_v29 = vpop.permute.xlu0 %3988  ;;  %v7334_v31 = vld [vmem:[%s13367_s3 + $0x238] sm:$0xf0]  ;;  %v8119_v28 = vld [vmem:[%s13367_s3 + $0xa4] sm:$0xf]  ;;  %v11380_v25 = vor.u32 %v8157_v1, %v7286_v13 }
 0x28b   :  { %14324 = vst [vmem:[#allocation149_spill] sm:$0xff] %v11291_v41  ;;  %v8135_v13 = vld [vmem:[%s13367_s3 + $0x124] sm:$0xf]  ;;  %2876 = vmatmul.bf16.vlgmr.msrb.gmra.mxu2 %v11048_v16  ;;  %v7310_v48 = vld [vmem:[%s13367_s3 + $0x208] sm:$0xf0] }
 0x28c   :  { %14325 = vst [vmem:[#allocation150_spill] sm:$0xff] %v11299_v39  ;;  %2907 = vmatpush.bf16.msra.mxu1 %v11299_v39  ;;  %v7278_v39 = vld [vmem:[%s13367_s3 + $0x1c8] sm:$0xf0]  ;;  %v8167_v41 = vld [vmem:[%s13367_s3 + $0x224] sm:$0xf] }
 0x28d   :  { %14326 = vst [vmem:[#allocation151_spill] sm:$0xff] %v11302_v20  ;;  %v11371_v20 = vor.u32 %v8121_v23, %v7142_v43  ;;  %v7134_v23 = vld [vmem:[%s13367_s3 + $0xa8] sm:$0xf0]  ;;  %v8155_v43 = vld [vmem:[%s13367_s3 + $0x1c4] sm:$0xf]  ;;  %2923 = vmatpush.bf16.msra.mxu2 %v11364_v47 }
 0x28e   :  { %14330 = vst [vmem:[#allocation152_spill] sm:$0xff] %v11325_v6  ;;  %2897 = vmatpush.bf16.msra.mxu0 %v11344_v24  ;;  %v11383_v6 = vor.u32 %v8137_v32, %v7206_v18  ;;  %v7198_v32 = vld [vmem:[%s13367_s3 + $0x128] sm:$0xf0]  ;;  %v4009_v18 = vld [vmem:[#allocation2 + $0x38] sm:$0xcc] }
 0x28f   :  { %4428 = vst [vmem:[#allocation2 + $0x8c] sm:$0x11] %v4402_v17  ;;  %v3994_v17 = vrot.slane %v3987_v4, 4  ;;  %2885 = vmatpush.bf16.msrb.mxu3 %v11371_v20  ;;  %v8163_v21 = vld [vmem:[%s13367_s3 + $0x204] sm:$0xf] }
 0x290   :  { %14331 = vst [vmem:[#allocation153_spill] sm:$0xff] %v11332_v3  ;;  %2908 = vmatpush.bf16.msra.mxu1 %v11341_v50  ;;  %v11405_v3 = vor.u32 %v8169_v53, %v7334_v31  ;;  %v8117_v53 = vld [vmem:[%s13367_s3 + $0x94] sm:$0xf]  ;;  %v7126_v31 = vld [vmem:[%s13367_s3 + $0x98] sm:$0xf0] }
 0x291   :  { %14332 = vst [vmem:[#allocation154_spill] sm:$0xff] %v11341_v50  ;;  %v14339_v50 = vrot.slane %v11361_v29, 4 }
 0x292   :  { %14333 = vst [vmem:[#allocation155_spill] sm:$0xff] %v11344_v24  ;;  %2898 = vmatpush.bf16.msra.mxu0 %v11383_v6  ;;  %2924 = vmatpush.bf16.msra.mxu2 %v11405_v3 }
 0x293   :  { %14334 = vst [vmem:[#allocation156_spill] sm:$0xff] %v11361_v29  ;;  %v3998_v1 = vsel %vm14271_vm5, %v3994_v17, %v14339_v50  ;;  %v11413_v17 = vor.u32 %v8119_v28, %v7134_v23  ;;  %v2167_v28 = vpop.f32.mrf.mxu0  ;;  %v8153_v23 = vld [vmem:[%s13367_s3 + $0x1b4] sm:$0xf]  ;;  %vm14360_vm5 = vcmask 1045504  }
 0x294   :  { %14335 = vst [vmem:[#allocation157_spill] sm:$0xff] %v11364_v47  ;;  %v3999_v24 = vsel %vm14340_vm11, %v3987_v4, %v3998_v1  ;;  %2909 = vmatpush.bf16.msra.mxu1 %v11380_v25  ;;  %v7326_v4 = vld [vmem:[%s13367_s3 + $0x228] sm:$0xf0]  ;;  %v11425_v1 = vor.u32 %v8155_v43, %v7278_v39  ;;  %v8133_v39 = vld [vmem:[%s13367_s3 + $0x114] sm:$0xf]  ;;  %v11443_v16 = vpack.c.bf16 %v2167_v28, %v2167_v28  ;;  %v2193_v47 = vpop.f32.mrf.mxu2  ;;  %vm14379_vm11 = vmmov %vm14349_vm9 }
 0x295   :  { %14336 = vst [vmem:[#allocation158_spill] sm:$0xff] %v11371_v20  ;;  %v4010_v50 = vsel %vm9057_vm12, %v3999_v24, %v4009_v18  ;;  %v11429_v24 = vor.u32 %v8135_v13, %v7198_v32  ;;  %v7270_v18 = vld [vmem:[%s13367_s3 + $0x1b8] sm:$0xf0]  ;;  %v2180_v13 = vpop.f32.mrf.mxu1  ;;  %v11446_v32 = vor.u32 %v8167_v41, %v7326_v4  ;;  %v8115_v28 = vld [vmem:[%s13367_s3 + $0x84] sm:$0xf]  ;;  %2886 = vmatpush.bf16.msrb.mxu3 %v11413_v17 }
 0x296   :  { %14337 = vst [vmem:[#allocation159_spill] sm:$0xff] %v11380_v25  ;;  %v7190_v43 = vld [vmem:[%s13367_s3 + $0x118] sm:$0xf0]  ;;  %v8165_v25 = vld [vmem:[%s13367_s3 + $0x214] sm:$0xf]  ;;  %v11462_v41 = vpack.c.bf16 %v2193_v47, %v2193_v47  ;;  %v11474_v33 = vor.u32 %v8153_v23, %v7270_v18  ;;  %2837 = vmatmul.bf16.vlgmr.msra.gmra.mxu3 %v11443_v16 }
 0x297   :  { %14338 = vst [vmem:[#allocation160_spill] sm:$0xff] %v11383_v6  ;;  %v7318_v6 = vld [vmem:[%s13367_s3 + $0x218] sm:$0xf0]  ;;  %v7118_v4 = vld [vmem:[%s13367_s3 + $0x88] sm:$0xf0]  ;;  %2899 = vmatpush.bf16.msra.mxu0 %v11429_v24  ;;  %v11477_v47 = vor.u32 %v8133_v39, %v7190_v43  ;;  %2925 = vmatpush.bf16.msra.mxu2 %v11446_v32 }
 0x298   :  { %14341 = vst [vmem:[#allocation161_spill] sm:$0xff] %v11405_v3  ;;  %v11460_v3 = vor.u32 %v8117_v53, %v7126_v31  ;;  %2910 = vmatpush.bf16.msra.mxu1 %v11425_v1  ;;  %v7494_v20 = vld [vmem:[%s13367_s3 + $0x378] sm:$0x30]  ;;  %v8131_v53 = vld [vmem:[%s13367_s3 + $0x104] sm:$0xf]  ;;  %v11502_v43 = vor.u32 %v8165_v25, %v7318_v6 }
 0x299   :  { %14342 = vst [vmem:[#allocation162_spill] sm:$0xff] %v11413_v17  ;;  %v8151_v31 = vld [vmem:[%s13367_s3 + $0x1a4] sm:$0xf]  ;;  %v7182_v23 = vld [vmem:[%s13367_s3 + $0x108] sm:$0xf0]  ;;  %7498 = vmatmul.msk.bf16.vlgmr.msrb.gmra.mxu1 %vm14349_vm9, %v11462_v41  ;;  %v11505_v17 = vor.u32 %v8115_v28, %v7118_v4  ;;  %vm13747_vm9 = vcmask 1042432  }
 0x29a   :  { %14343 = vst [vmem:[#allocation163_spill] sm:$0xff] %v11425_v1  ;;  %v7262_v1 = vld [vmem:[%s13367_s3 + $0x1a8] sm:$0xf0]  ;;  %v8193_v18 = vld [vmem:[%s13367_s3 + $0x2f4] sm:$0xf]  ;;  %2887 = vmatpush.bf16.msrb.mxu3 %v11460_v3  ;;  %v11517_v6 = vor.u32 %v8131_v53, %v7182_v23 }
 0x29b   :  { %4011 = vst [vmem:[#allocation2 + $0x38] sm:$0xcc] %v4010_v50  ;;  %v11448_v50 = vpack.c.bf16 %v2180_v13, %v2180_v13  ;;  %v8209_v13 = vld [vmem:[%s13367_s3 + $0x374] sm:$0xf]  ;;  %v7430_v39 = vld [vmem:[%s13367_s3 + $0x2f8] sm:$0xf0]  ;;  %v11514_v19 = vor.u32 %v8151_v31, %v7262_v1  ;;  %2900 = vmatpush.bf16.msra.mxu0 %v11477_v47  ;;  %v2169_v25 = vpop.f32.mrf.mxu0  ;;  %2926 = vmatpush.bf16.msra.mxu2 %v11502_v43 }
 0x29c   :  { %14344 = vst [vmem:[#allocation164_spill] sm:$0xff] %v11429_v24  ;;  %v7497_v24 = vor.u32 %v8209_v13, %v7494_v20  ;;  %2911 = vmatpush.bf16.msra.mxu1 %v11474_v33  ;;  %v11519_v20 = vor.u32 %v8193_v18, %v7430_v39  ;;  %v8149_v28 = vld [vmem:[%s13367_s3 + $0x194] sm:$0xf]  ;;  %v7254_v4 = vld [vmem:[%s13367_s3 + $0x198] sm:$0xf0]  ;;  %v11542_v25 = vor.u32 %v8163_v21, %v7310_v48 }
 0x29d   :  { %14345 = vst [vmem:[#allocation165_spill] sm:$0xff] %v11446_v32  ;;  %2850 = vmatmul.bf16.vlgmr.msrb.gmra.mxu0 %v11448_v50  ;;  %v14355_v13 = vld [vmem:[#allocation22_spill] sm:$0xff]  ;;  %v8191_v53 = vld [vmem:[%s13367_s3 + $0x2e4] sm:$0xf]  ;;  %v7422_v23 = vld [vmem:[%s13367_s3 + $0x2e8] sm:$0xf0] }
 0x29e   :  { %14346 = vst [vmem:[#allocation166_spill] sm:$0xff] %v11460_v3  ;;  %v14356_v32 = vrot.slane %v14355_v13, 4  ;;  %v4841_v18 = vld [vmem:[#allocation2 + $0xcc] sm:$0xcc]  ;;  %v11540_v39 = vsel %vm14360_vm5, %v7497_v24, 0  ;;  %2888 = vmatpush.bf16.msrb.mxu3 %v11505_v17  ;;  %v11552_v13 = vor.u32 %v8149_v28, %v7254_v4  ;;  %v11558_v48 = vor.u32 %v8191_v53, %v7422_v23 }
 0x29f   :  { %14347 = vst [vmem:[#allocation167_spill] sm:$0xff] %v11474_v33  ;;  %v14357_v33 = vld [vmem:[#allocation36_spill] sm:$0xff]  ;;  %2901 = vmatpush.bf16.msra.mxu0 %v11517_v6  ;;  %v8147_v21 = vld [vmem:[%s13367_s3 + $0x184] sm:$0xf]  ;;  %v8189_v4 = vld [vmem:[%s13367_s3 + $0x2d4] sm:$0xf]  ;;  %2927 = vmatpush.bf16.msra.mxu2 %v11542_v25 }
 0x2a0   :  { %14348 = vst [vmem:[#allocation168_spill] sm:$0xff] %v11477_v47  ;;  %v14358_v1 = vrot.slane %v14357_v33, 4  ;;  %v2182_v47 = vpop.f32.mrf.mxu1  ;;  %v8207_v33 = vld [vmem:[%s13367_s3 + $0x364] sm:$0xf]  ;;  %2912 = vmatpush.bf16.msra.mxu1 %v11514_v19  ;;  %v8205_v53 = vld [vmem:[%s13367_s3 + $0x354] sm:$0xf] }
 0x2a1   :  { %14350 = vst [vmem:[#allocation169_spill] sm:$0xff] %v11502_v43  ;;  %v2195_v47 = vpop.f32.mrf.mxu2  ;;  %v7478_v23 = vld [vmem:[%s13367_s3 + $0x358] sm:$0xf0] }
 0x2a2   :  { %14351 = vst [vmem:[#allocation170_spill] sm:$0xff] %v11505_v17  ;;  %v4832_v31 = vsel %vm14359_vm7, %v14358_v1, %v14356_v32  ;;  %v7486_v32 = vld [vmem:[%s13367_s3 + $0x368] sm:$0xf0]  ;;  %2933 = vmatpush.bf16.msra.mxu3 %v11519_v20  ;;  %2928 = vmatmul.bf16.vlgmr.msra.gmra.mxu2 %v11443_v16  ;;  %v8187_v47 = vld [vmem:[%s13367_s3 + $0x2c4] sm:$0xf]  ;;  %vm2961_vm7 = vcmask 63492  }
 0x2a3   :  { %14352 = vst [vmem:[#allocation171_spill] sm:$0xff] %v11514_v19  ;;  %v4842_v24 = vsel %vm8917_vm0, %v4832_v31, %v4841_v18  ;;  %v7246_v1 = vld [vmem:[%s13367_s3 + $0x188] sm:$0xf0]  ;;  %2946 = vmatpush.bf16.msrb.mxu0 %v11540_v39  ;;  %v11567_v28 = vor.u32 %v8207_v33, %v7486_v32  ;;  %v7414_v31 = vld [vmem:[%s13367_s3 + $0x2d8] sm:$0xf0]  ;;  %v11590_v32 = vor.u32 %v8205_v53, %v7478_v23  ;;  %vm11703_vm5 = vmor %vm2961_vm7, %vm13747_vm9  ;;  %vm13748_vm7 = vcmask 908288  }
 0x2a4   :  { %14353 = vst [vmem:[#allocation172_spill] sm:$0xff] %v11517_v6  ;;  %2913 = vmatpush.bf16.msra.mxu1 %v11552_v13  ;;  %v11583_v18 = vor.u32 %v8147_v21, %v7246_v1  ;;  %v11586_v33 = vor.u32 %v8189_v4, %v7414_v31  ;;  %v8203_v21 = vld [vmem:[%s13367_s3 + $0x344] sm:$0xf]  ;;  %v7470_v1 = vld [vmem:[%s13367_s3 + $0x348] sm:$0xf0]  ;;  %vm3012_vm9 = vcmask 64517  }
 0x2a5   :  { %14354 = vst [vmem:[#allocation173_spill] sm:$0xff] %v11519_v20  ;;  %v11609_v4 = vor.u32 %v8203_v21, %v7470_v1  ;;  %v8185_v31 = vld [vmem:[%s13367_s3 + $0x2b4] sm:$0xf]  ;;  %v7398_v53 = vld [vmem:[%s13367_s3 + $0x2b8] sm:$0xf0]  ;;  %vm13757_vm0 = vcmask 588800  }
 0x2a6   :  { %14361 = vst [vmem:[#allocation22_spill] sm:$0xff] %v11540_v39  ;;  %2934 = vmatpush.bf16.msra.mxu3 %v11558_v48  ;;  %v8201_v23 = vld [vmem:[%s13367_s3 + $0x334] sm:$0xf]  ;;  %v7390_v21 = vld [vmem:[%s13367_s3 + $0x2a8] sm:$0xf0] }
 0x2a7   :  { %14362 = vst [vmem:[#allocation36_spill] sm:$0xff] %v11542_v25  ;;  %2947 = vmatpush.bf16.msrb.mxu0 %v11567_v28  ;;  %2889 = vmatmul.bf16.vlgmr.msrb.gmra.mxu3 %v11070_v44  ;;  %v11627_v44 = vor.u32 %v8185_v31, %v7398_v53  ;;  %v7454_v1 = vld [vmem:[%s13367_s3 + $0x328] sm:$0xf0]  ;;  %v8197_v25 = vld [vmem:[%s13367_s3 + $0x314] sm:$0xf] }
 0x2a8   :  { %14363 = vst [vmem:[#allocation174_spill] sm:$0xff] %v11552_v13  ;;  %2914 = vmatpush.bf16.msra.mxu1 %v11583_v18 }
 0x2a9   :  { %14364 = vst [vmem:[#allocation175_spill] sm:$0xff] %v11558_v48 }
 0x2aa   :  { %14365 = vst [vmem:[#allocation176_spill] sm:$0xff] %v11567_v28  ;;  %2935 = vmatpush.bf16.msra.mxu3 %v11586_v33 }
 0x2ab   :  { %4843 = vst [vmem:[#allocation2 + $0xcc] sm:$0xcc] %v4842_v24  ;;  %v7406_v24 = vld [vmem:[%s13367_s3 + $0x2c8] sm:$0xf0]  ;;  %2948 = vmatpush.bf16.msrb.mxu0 %v11590_v32  ;;  %2915 = vmatmul.bf16.vlgmr.msra.gmra.mxu1 %v11216_v7  ;;  %v8199_v7 = vld [vmem:[%s13367_s3 + $0x324] sm:$0xf] }
 0x2ac   :  { %14366 = vst [vmem:[#allocation177_spill] sm:$0xff] %v11583_v18  ;;  %v11606_v16 = vor.u32 %v8187_v47, %v7406_v24  ;;  %v7462_v47 = vld [vmem:[%s13367_s3 + $0x338] sm:$0xf0]  ;;  %v11648_v53 = vor.u32 %v8199_v7, %v7454_v1  ;;  %v8179_v1 = vld [vmem:[%s13367_s3 + $0x284] sm:$0xf] }
 0x2ad   :  { %14367 = vst [vmem:[#allocation178_spill] sm:$0xff] %v11586_v33  ;;  %2902 = vmatmul.bf16.vlgmr.msra.gmra.mxu0 %v11226_v49  ;;  %v11630_v24 = vor.u32 %v8201_v23, %v7462_v47  ;;  %v8183_v49 = vld [vmem:[%s13367_s3 + $0x2a4] sm:$0xf]  ;;  %v8181_v23 = vld [vmem:[%s13367_s3 + $0x294] sm:$0xf] }
 0x2ae   :  { %14368 = vst [vmem:[#allocation179_spill] sm:$0xff] %v11590_v32  ;;  %2936 = vmatpush.bf16.msra.mxu3 %v11606_v16  ;;  %v11645_v31 = vor.u32 %v8183_v49, %v7390_v21  ;;  %v7382_v47 = vld [vmem:[%s13367_s3 + $0x298] sm:$0xf0]  ;;  %v7374_v18 = vld [vmem:[%s13367_s3 + $0x288] sm:$0xf0] }
 0x2af   :  { %14369 = vst [vmem:[#allocation180_spill] sm:$0xff] %v11606_v16  ;;  %2949 = vmatpush.bf16.msrb.mxu0 %v11609_v4  ;;  %v7446_v49 = vld [vmem:[%s13367_s3 + $0x318] sm:$0xf0]  ;;  %v11663_v21 = vor.u32 %v8181_v23, %v7382_v47  ;;  %v7438_v23 = vld [vmem:[%s13367_s3 + $0x308] sm:$0xf0] }
 0x2b0   :  { %14370 = vst [vmem:[#allocation181_spill] sm:$0xff] %v11609_v4  ;;  %v11666_v7 = vor.u32 %v8197_v25, %v7446_v49  ;;  %v11681_v25 = vor.u32 %v8179_v1, %v7374_v18 }
 0x2b1   :  { %14371 = vst [vmem:[#allocation182_spill] sm:$0xff] %v11627_v44 }
 0x2b2   :  { %14372 = vst [vmem:[#allocation183_spill] sm:$0xff] %v11630_v24  ;;  %2937 = vmatpush.bf16.msra.mxu3 %v11627_v44  ;;  %v14380_v44 = vld [vmem:[#allocation25_spill] sm:$0xff] }
 0x2b3   :  { %14373 = vst [vmem:[#allocation184_spill] sm:$0xff] %v11645_v31  ;;  %2950 = vmatpush.bf16.msrb.mxu0 %v11630_v24  ;;  %v8195_v24 = vld [vmem:[%s13367_s3 + $0x304] sm:$0xf]  ;;  %v4077_v19 = vshll.u32 %v14380_v44, 16  ;;  %s13736_s3 = smov 98  }
 0x2b4   :  { %14374 = vst [vmem:[#allocation185_spill] sm:$0xff] %v11648_v53  ;;  %v11684_v47 = vor.u32 %v8195_v24, %v7438_v23 }
 0x2b5   :  { %14375 = vst [vmem:[#allocation186_spill] sm:$0xff] %v11663_v21 }
 0x2b6   :  { %2938 = vmatpush.bf16.msra.mxu3 %v11645_v31  ;;  %14376 = vst [vmem:[#allocation187_spill] sm:$0xff] %v11666_v7 }
 0x2b7   :  { %2951 = vmatpush.bf16.msrb.mxu0 %v11648_v53  ;;  %14377 = vst [vmem:[#allocation188_spill] sm:$0xff] %v11681_v25 }
 0x2b8   :  { %14378 = vst [vmem:[#allocation189_spill] sm:$0xff] %v11684_v47 }
 0x2ba   :  { %2939 = vmatpush.bf16.msra.mxu3 %v11663_v21 }
 0x2bb   :  { %2952 = vmatpush.bf16.msrb.mxu0 %v11666_v7 }
 0x2be   :  { %2940 = vmatpush.bf16.msra.mxu3 %v11681_v25 }
 0x2bf   :  { %2953 = vmatpush.bf16.msrb.mxu0 %v11684_v47 }
 0x2c1   :  { %2941 = vmatmul.bf16.vlgmr.msra.gmra.mxu3 %v11448_v50  ;;  %v4074_v50 = vshrl.u32 %v14380_v44, 16 }
 0x2c2   :  { %7499 = vmatmul.msk.bf16.vlgmr.msrb.gmra.mxu0 %vm14379_vm11, %v11462_v41  ;;  %vm13746_vm11 = vcmask 801792  }
 0x2c3   :  { %v4076_v28 = vrot.slane %v4074_v50, 6 }
 0x2e9   :  { %v2799_v49 = vpop.f32.mrf.mxu0  ;;  %v2786_v53 = vpop.f32.mrf.mxu3 }
 0x2ea   :  { %v2787_v43 = vadd.f32 %v2786_v53, %v10402_v5  ;;  %v4079_v53 = vrot.slane %v4077_v19, 7 }
 0x2ec   :  { %v2800_v21 = vadd.f32 %v2799_v49, %v2787_v43  ;;  %v4080_v43 = vor.u32 %v4079_v53, %v4076_v28 }
 0x2ee   :  { %4102 = vrot.lane.b32.xlu1 %v4080_v43, %s13959_s0 }
 0x2f1   :  { %v2801_v18 = vpop.f32.mrf.mxu0  ;;  %v2788_v1 = vpop.f32.mrf.mxu3 }
 0x2fc   :  { %v2812_v31 = vpop.f32.mrf.mxu1 }
 0x2fe   :  { %v2825_v7 = vpop.f32.mrf.mxu2 }
 0x304   :  { %v2814_v24 = vpop.f32.mrf.mxu1 }
 0x306   :  { %v2827_v23 = vpop.f32.mrf.mxu2 }
 0x30e   :  { %v2877_v4 = vpop.f32.mrf.mxu2 }
 0x30f   :  { %v2878_v20 = vadd.f32 %v2877_v4, %v10402_v5 }
 0x316   :  { %v2864_v25 = vpop.f32.mrf.mxu1  ;;  %v2879_v16 = vpop.f32.mrf.mxu2 }
 0x319   :  { %v2838_v47 = vpop.f32.mrf.mxu3 }
 0x31a   :  { %v2851_v13 = vpop.f32.mrf.mxu0 }
 0x31e   :  { %v2866_v32 = vpop.f32.mrf.mxu1 }
 0x321   :  { %v2840_v49 = vpop.f32.mrf.mxu3 }
 0x322   :  { %v2853_v41 = vpop.f32.mrf.mxu0 }
 0x323   :  { %v2813_v41 = vadd.f32 %v2812_v31, %v2800_v21 }
 0x325   :  { %v2929_v24 = vpop.f32.mrf.mxu2  ;;  %v2826_v16 = vadd.f32 %v2825_v7, %v2813_v41 }
 0x327   :  { %v2839_v50 = vadd.f32 %v2838_v47, %v2826_v16  ;;  %v14388_v47 = vld [vmem:[#allocation12_spill] sm:$0xff] }
 0x328   :  { %v2916_v1 = vpop.f32.mrf.mxu1 }
 0x329   :  { %v2852_v53 = vadd.f32 %v2851_v13, %v2839_v50 }
 0x32a   :  { %v2903_v18 = vpop.f32.mrf.mxu0  ;;  %v2890_v23 = vpop.f32.mrf.mxu3 }
 0x32b   :  { %v2891_v44 = vadd.f32 %v2890_v23, %v2878_v20  ;;  %v2865_v3 = vadd.f32 %v2864_v25, %v2852_v53 }
 0x32d   :  { %v2931_v48 = vpop.f32.mrf.mxu2  ;;  %v2904_v32 = vadd.f32 %v2903_v18, %v2891_v44  ;;  %v4081_v18 = vshrl.u32 %v14388_v47, 16  ;;  %v14389_v44 = vld [vmem:[#allocation56_spill] sm:$0xff] }
 0x32e   :  { %v3810_v41 = vshll.u32 %v14389_v44, 16 }
 0x32f   :  { %v2917_v28 = vadd.f32 %v2916_v1, %v2904_v32  ;;  %v4084_v1 = vshll.u32 %v14388_v47, 16  ;;  %v3824_v32 = vshrl.u32 %v14389_v44, 16  ;;  %v14397_v44 = vld [vmem:[#allocation70_spill] sm:$0xff] }
 0x330   :  { %v2918_v39 = vpop.f32.mrf.mxu1 }
 0x331   :  { %v2930_v49 = vadd.f32 %v2929_v24, %v2917_v28  ;;  %v14386_v39 = vld [vmem:[#allocation55_spill] sm:$0xff]  ;;  %v4083_v24 = vrot.slane %v4081_v18, 6  ;;  %v4086_v23 = vrot.slane %v4084_v1, 7  ;;  %v14390_v28 = vld [vmem:[#allocation41_spill] sm:$0xff] }
 0x332   :  { %v2905_v33 = vpop.f32.mrf.mxu0  ;;  %v2892_v6 = vpop.f32.mrf.mxu3  ;;  %v3807_v13 = vshll.u32 %v14386_v39, 16  ;;  %v3819_v48 = vshrl.u32 %v14386_v39, 16  ;;  %v3548_v53 = vshrl.u32 %v14390_v28, 16  ;;  %v14395_v1 = vld [vmem:[#allocation17_spill] sm:$0xff] }
 0x334   :  { %v11732_v4 = vrot.slane %v3807_v13, 5  ;;  %v3821_v31 = vrot.slane %v3819_v48, 4 }
 0x336   :  { %v3822_v7 = vor.u32 %v3821_v31, %v11732_v4 }
 0x338   :  { %v3823_v25 = vrot.slane %v3822_v7, 4  ;;  %v14394_v7 = vld [vmem:[#allocation52_spill] sm:$0xff] }
 0x33f   :  { %v2955_v19 = vpop.f32.mrf.mxu0 }
 0x344   :  { %v2942_v43 = vpop.f32.mrf.mxu3 }
 0x345   :  { %v2943_v17 = vadd.f32 %v2942_v43, %v2930_v49  ;;  %v3551_v49 = vshll.u32 %v14390_v28, 16 }
 0x347   :  { %v2956_v29 = vadd.f32 %v2955_v19, %v2943_v17  ;;  %v2957_v26 = vpop.f32.mrf.mxu0  ;;  %v4087_v19 = vor.u32 %v4086_v23, %v4083_v24  ;;  %v3553_v39 = vrot.slane %v3551_v49, 7  ;;  %v3705_v23 = vshll.u32 %v14394_v7, 16  ;;  %v14401_v49 = vld [vmem:[#allocation51_spill] sm:$0xff] }
 0x348   :  { %v14381_v26 = vmov 0 }
 0x349   :  { %v2959_v33 = vpack.c.bf16 %v2956_v29, %v2865_v3  ;;  %v14382_v26 = vsel %vm11703_vm5, 4294967295, %v14381_v26 }
 0x34a   :  { %14383 = vst [vmem:[#allocation25_spill] sm:$0xff] %v14382_v26  ;;  %v14465_v26 = vld [vmem:[#allocation19_spill] sm:$0xff] }
 0x34b   :  { %3094 = vrot.lane.b32.xlu2 %v2959_v33, %s13736_s3  ;;  %3133 = vrot.lane.b32.xlu0 %v2959_v33, %s13735_s19  ;;  %2963 = vst.msk [vmem:[#allocation3] sm:$0x77] %vm11703_vm5, %v2959_v33  ;;  %v3005_v3 = vrot.slane %v2959_v33, 7  ;;  %v2985_v29 = vrot.slane %v2959_v33, 6  ;;  %v2965_v17 = vrot.slane %v2959_v33, 5  ;;  %s13801_s19 = smov 70  }
 0x34c   :  { %3173 = vrot.lane.b32.xlu1 %v2959_v33, %s13734_s21  ;;  %v2944_v6 = vpop.f32.mrf.mxu3  ;;  %s13799_s21 = smov 110   ;;  %s13755_s3 = smov 113   ;;  %v4237_v5 = vshrl.u32 %v14465_v26, 16 }
 0x34d   :  { %v2986_v20 = vrot.slane %v2985_v29, 4  ;;  %v2966_v21 = vrot.slane %v2965_v17, 4  ;;  %v3826_v6 = vrot.slane %v3824_v32, 4 }
 0x353   :  { %3054 = vrot.lane.b32.xlu2 %v2959_v33, %s13732_s22  ;;  %3015 = vrot.lane.b32.xlu0 %v2959_v33, %s13737_s15  ;;  %s13805_s22 = smov 86   ;;  %s13743_s15 = smov 112  }
 0x354   :  { %3213 = vrot.lane.b32.xlu1 %v2959_v33, %s13731_s24  ;;  %s13803_s24 = smov 97   ;;  %v11751_v33 = vrot.slane %v3810_v41, 5  ;;  %v13779_v41 = vrot.slane %v14397_v44, 5 }
 0x356   :  { %v3827_v13 = vor.u32 %v3826_v6, %v11751_v33 }
 0x358   :  { %v3828_v18 = vrot.slane %v3827_v13, 4  ;;  %v3699_v13 = vshll.u32 %v14401_v49, 16 }
 0x35b   :  { %3166 = vrot.lane.b32.xlu2 %v3005_v3, %s13733_s26  ;;  %3153 = vrot.lane.b32.xlu0 %v2985_v29, %s8544_s27  ;;  %s13742_s26 = smov 69  }
 0x35c   :  { %3140 = vrot.lane.b32.xlu1 %v2965_v17, %s13806_s28 }
 0x360   :  { %v11772_v32 = vpop.permute.xlu1 %4102 }
 0x363   :  { %3114 = vrot.lane.b32.xlu0 %v2985_v29, %s14384_s25  ;;  %3180 = vrot.lane.b32.xlu2 %v2965_v17, %s13740_s29  ;;  %s13744_s29 = smov 114  }
 0x364   :  { %3087 = vrot.lane.b32.xlu1 %v3005_v3, %s13739_s17  ;;  %s13769_s17 = smov 100  }
 0x36b   :  { %3101 = vrot.lane.b32.xlu0 %v2965_v17, %s13803_s24  ;;  %3126 = vrot.lane.b32.xlu2 %v3005_v3, %s13805_s22  ;;  %s14824_s22 = smov 99  }
 0x36c   :  { %3206 = vrot.lane.b32.xlu1 %v3005_v3, %s13742_s26  ;;  %s14385_s26 = smov 127  }
 0x373   :  { %3061 = vrot.lane.b32.xlu0 %v2965_v17, %s13799_s21  ;;  %3193 = vrot.lane.b32.xlu2 %v2985_v29, %s13801_s19 }
 0x374   :  { %3034 = vrot.lane.b32.xlu1 %v2985_v29, %s13755_s3 }
 0x37b   :  { %3047 = vrot.lane.b32.xlu0 %v3005_v3, %s13743_s15  ;;  %3074 = vrot.lane.b32.xlu2 %v2985_v29, %s13769_s17  ;;  %s14387_s15 = smov 71  }
 0x37c   :  { %3021 = vrot.lane.b32.xlu1 %v2965_v17, %s13744_s29 }
 0x383   :  { %3076 = vrot.lane.b32.xlu0 %v2986_v20, %s13769_s17  ;;  %3006 = vrot.lane.b32.xlu2 %v3005_v3, %s8519_s14  ;;  %v14392_v3 = vld [vmem:[#allocation21_spill] sm:$0xff]  ;;  %s14434_s17 = smov 95  }
 0x384   :  { %2987 = vrot.lane.b32.xlu1 %v2985_v29, %s8518_s30  ;;  %v14393_v29 = vrot.slane %v14392_v3, 5  ;;  %v14402_v3 = vld [vmem:[#allocation42_spill] sm:$0xff] }
 0x38b   :  { %3195 = vrot.lane.b32.xlu0 %v2986_v20, %s13801_s19  ;;  %2967 = vrot.lane.b32.xlu2 %v2965_v17, %s14385_s26  ;;  %v3550_v17 = vrot.slane %v3548_v53, 6  ;;  %v4685_v53 = vrot.slane %v13779_v41, 4  ;;  %s14822_s19 = smov 84  }
 0x38c   :  { %3155 = vrot.lane.b32.xlu1 %v2986_v20, %s8544_s27 }
 0x393   :  { %3023 = vrot.lane.b32.xlu0 %v2966_v21, %s13744_s29  ;;  %3142 = vrot.lane.b32.xlu2 %v2966_v21, %s13806_s28  ;;  %s14391_s29 = smov 64   ;;  %s14829_s28 = smov 100  }
 0x394   :  { %3116 = vrot.lane.b32.xlu1 %v2986_v20, %s14384_s25 }
 0x39b   :  { %3847 = vrot.lane.b32.xlu0 %v3823_v25, %s14384_s25  ;;  %3103 = vrot.lane.b32.xlu2 %v2966_v21, %s13803_s24  ;;  %v3702_v25 = vshrl.u32 %v14394_v7, 16  ;;  %s14827_s24 = smov 69  }
 0x39c   :  { %3182 = vrot.lane.b32.xlu1 %v2966_v21, %s14387_s15 }
 0x39d   :  { %v3704_v24 = vrot.slane %v3702_v25, 7 }
 0x39f   :  { %v3707_v28 = vor.u32 %v3705_v23, %v3704_v24  ;;  %v5019_v23 = vshrl.u32 %v10350_v63, 16 }
 0x3a3   :  { %2969 = vrot.lane.b32.xlu0 %v2966_v21, %s14385_s26  ;;  %3036 = vrot.lane.b32.xlu2 %v2986_v20, %s13755_s3  ;;  %s14408_s3 = smov 124  }
 0x3a4   :  { %3063 = vrot.lane.b32.xlu1 %v2966_v21, %s13799_s21  ;;  %v3554_v21 = vor.u32 %v3553_v39, %v3550_v17  ;;  %v3558_v17 = vshll.u32 %v14402_v3, 16  ;;  %s14474_s21 = smov 63  }
 0x3a5   :  { %v3095_v16 = vpop.permute.xlu2 %3094 }
 0x3a6   :  { %v3096_v50 = vrot.slane %v3095_v16, 4 }
 0x3a8   :  { %v3098_v43 = vsel %vm13746_vm11, %v3095_v16, %v3096_v50  ;;  %vm3011_vm11 = vcmask 1043457   ;;  %v14398_v50 = vmov 0 }
 0x3a9   :  { %3100 = vst.msk [vmem:[#allocation3 + $0x48] sm:$0x77] %vm11703_vm5, %v3098_v43  ;;  %vm11774_vm3 = vmor %vm3012_vm9, %vm3011_vm11  ;;  %v3696_v43 = vshrl.u32 %v14401_v49, 16  ;;  %vm13759_vm9 = vcmask 695296   ;;  %vm2978_vm11 = vcmask 64519  }
 0x3aa   :  { %v14399_v50 = vsel %vm11774_vm3, 4294967295, %v14398_v50  ;;  %vm11795_vm8 = vmor %vm2978_vm11, %vm14404_vm1  ;;  %v5074_v49 = vld.sshfl [vmem:[#allocation1 + $0x10] sm:$0xff pattern:$0x75643120]  ;;  %vm13758_vm1 = vcmask 703488   ;;  %vm13763_vm11 = vcmask 556032  }
 0x3ab   :  { %4158 = vrot.lane.b32.xlu0 %v14393_v29, %s14391_s29  ;;  %4104 = vrot.lane.b32.xlu2 %v4087_v19, %s13959_s0  ;;  %14400 = vst [vmem:[#allocation55_spill] sm:$0xff] %v14399_v50  ;;  %v3555_v29 = vshrl.u32 %v14402_v3, 16  ;;  %v3698_v39 = vrot.slane %v3696_v43, 7 }
 0x3ac   :  { %2989 = vrot.lane.b32.xlu1 %v2986_v20, %s8518_s30  ;;  %v14396_v20 = vrot.slane %v14395_v1, 5 }
 0x3ad   :  { %v3055_v48 = vpop.permute.xlu2 %3054  ;;  %v3701_v24 = vor.u32 %v3699_v13, %v3698_v39 }
 0x3ae   :  { %v3056_v31 = vrot.slane %v3055_v48, 4 }
 0x3b0   :  { %v3058_v47 = vsel %vm13748_vm7, %v3055_v48, %v3056_v31  ;;  %vm13749_vm7 = vcmask 670720   ;;  %v14403_v48 = vld [vmem:[#allocation35_spill] sm:$0xff]  ;;  %v3557_v31 = vrot.slane %v3555_v29, 6  ;;  %v5021_v29 = vrot.slane %v5019_v23, 5 }
 0x3b1   :  { %3060 = vst.msk [vmem:[#allocation3 + $0x30] sm:$0x77] %vm11703_vm5, %v3058_v47  ;;  %v14412_v23 = vmov 0 }
 0x3b3   :  { %3576 = vrot.lane.b32.xlu0 %v3554_v21, %s14385_s26  ;;  %4156 = vrot.lane.b32.xlu2 %v14396_v20, %s14391_s29  ;;  %v3560_v21 = vrot.slane %v3558_v17, 7 }
 0x3b4   :  { %3849 = vrot.lane.b32.xlu1 %v3828_v18, %s14384_s25 }
 0x3b5   :  { %v3167_v16 = vpop.permute.xlu2 %3166  ;;  %v3561_v43 = vor.u32 %v3560_v21, %v3557_v31 }
 0x3b6   :  { %v3168_v19 = vrot.slane %v3167_v16, 4 }
 0x3b8   :  { %v3170_v6 = vsel %vm13749_vm7, %v3167_v16, %v3168_v19  ;;  %vm13760_vm7 = vcmask 580608   ;;  %v5022_v16 = vshll.u32 %v10350_v63, 16  ;;  %v14409_v63 = vld [vmem:[#allocation16_spill] sm:$0xff] }
 0x3b9   :  { %3172 = vst.msk [vmem:[#allocation3 + $0x70] sm:$0xee] %vm11774_vm3, %v3170_v6  ;;  %v13777_v3 = vrot.slane %v14409_v63, 5 }
 0x3ba   :  { %v5024_v17 = vrot.slane %v5022_v16, 6 }
 0x3bb   :  { %3722 = vrot.lane.b32.xlu0 %v3707_v28, %s8519_s14  ;;  %4699 = vrot.lane.b32.xlu2 %v4685_v53, %s13982_s20  ;;  %v14405_v28 = vmov 0 }
 0x3bc   :  { %4567 = vrot.lane.b32.xlu1 %v14403_v48, %s14068_s16  ;;  %v14406_v28 = vsel %vm11795_vm8, 4294967295, %v14405_v28 }
 0x3bd   :  { %v3134_v7 = vpop.permute.xlu0 %3133  ;;  %v3181_v25 = vpop.permute.xlu2 %3180  ;;  %14407 = vst [vmem:[#allocation12_spill] sm:$0xff] %v14406_v28 }
 0x3be   :  { %v3135_v47 = vrot.slane %v3134_v7, 4  ;;  %v3174_v18 = vpop.permute.xlu1 %3173  ;;  %v3184_v1 = vrot.slane %v3181_v25, 4 }
 0x3bf   :  { %v3175_v20 = vrot.slane %v3174_v18, 4 }
 0x3c0   :  { %v3137_v19 = vsel %vm13759_vm9, %v3134_v7, %v3135_v47  ;;  %v3187_v53 = vsel %vm13760_vm7, %v3181_v25, %v3184_v1  ;;  %v4154_v25 = vrot.slane %v13777_v3, 4  ;;  %v5025_v47 = vor.u32 %v5024_v17, %v5021_v29 }
 0x3c1   :  { %3139 = vst.msk [vmem:[#allocation3 + $0x60] sm:$0x77] %vm11703_vm5, %v3137_v19  ;;  %v3177_v6 = vsel %vm13757_vm0, %v3174_v18, %v3175_v20  ;;  %vm14410_vm0 = vcmask 1014784   ;;  %v8457_v20 = vpack.i.bf16 %v11751_v33, %v11732_v4  ;;  %vm13765_vm9 = vcmask 572416  }
 0x3c2   :  { %3179 = vst.msk [vmem:[#allocation3 + $0x78] sm:$0x77] %vm11703_vm5, %v3177_v6  ;;  %vm14411_vm7 = vcmask 1043458   ;;  %v5029_v6 = vshll.u32 %v10352_v14, 16 }
 0x3c3   :  { %3191 = vst.msk [vmem:[#allocation3 + $0x78] sm:$0x88] %vm11795_vm8, %v3187_v53  ;;  %5082 = vrot.lane.b32.xlu0 %v5074_v49, %s14408_s3  ;;  %3720 = vrot.lane.b32.xlu2 %v3701_v24, %s8519_s14 }
 0x3c4   :  { %3578 = vrot.lane.b32.xlu1 %v3561_v43, %s14385_s26  ;;  %v5026_v43 = vshrl.u32 %v10352_v14, 16  ;;  %v14415_v14 = vld [vmem:[#allocation69_spill] sm:$0xff] }
 0x3c5   :  { %v3016_v39 = vpop.permute.xlu0 %3015  ;;  %v3127_v13 = vpop.permute.xlu2 %3126 }
 0x3c6   :  { %v3017_v48 = vrot.slane %v3016_v39, 4  ;;  %v3214_v31 = vpop.permute.xlu1 %3213  ;;  %v3128_v21 = vrot.slane %v3127_v13, 4 }
 0x3c7   :  { %v3215_v7 = vrot.slane %v3214_v31, 4 }
 0x3c8   :  { %v3018_v18 = vsel %vm14410_vm0, %v3016_v39, %v3017_v48  ;;  %v3130_v1 = vsel %vm13758_vm1, %v3127_v13, %v3128_v21  ;;  %vm2998_vm0 = vcmask 64518   ;;  %vm13764_vm1 = vcmask 678912  }
 0x3c9   :  { %3020 = vst.msk [vmem:[#allocation3 + $0x18] sm:$0x77] %vm11703_vm5, %v3018_v18  ;;  %v3217_v24 = vsel %vm13763_vm11, %v3214_v31, %v3215_v7  ;;  %vm11828_vm2 = vmor %vm2998_vm0, %vm14411_vm7  ;;  %vm13774_vm11 = vcmask 687104   ;;  %v14416_v31 = vld [vmem:[#allocation46_spill] sm:$0xff]  ;;  %v5028_v7 = vrot.slane %v5026_v43, 5  ;;  %vm13766_vm7 = vcmask 809984  }
 0x3ca   :  { %3219 = vst.msk [vmem:[#allocation3 + $0x90] sm:$0x77] %vm11703_vm5, %v3217_v24  ;;  %v14413_v23 = vsel %vm11828_vm2, 4294967295, %v14412_v23  ;;  %v14417_v21 = vrot.slane %v14416_v31, 5  ;;  %vm13773_vm0 = vcmask 818176   ;;  %v14422_v43 = vld [vmem:[#allocation29_spill] sm:$0xff] }
 0x3cb   :  { %3132 = vst.msk [vmem:[#allocation3 + $0x58] sm:$0xee] %vm11774_vm3, %v3130_v1  ;;  %4168 = vrot.lane.b32.xlu0 %v4154_v25, %s14391_s29  ;;  %5037 = vrot.lane.b32.xlu2 %v5025_v47, %s8519_s14  ;;  %v5031_v25 = vrot.slane %v5029_v6, 6  ;;  %v14418_v47 = vld [vmem:[#allocation8_spill] sm:$0xff]  ;;  %v4445_v6 = vrot.slane %v14422_v43, 7  ;;  %vm14441_vm5 = vcmask 687104  }
 0x3cc   :  { %8458 = vrot.lane.b32.xlu1 %v8457_v20, %s14384_s25  ;;  %14414 = vst [vmem:[#allocation56_spill] sm:$0xff] %v14413_v23  ;;  %v4863_v18 = vshll.u32 %v14418_v47, 16  ;;  %v4879_v1 = vshrl.u32 %v14418_v47, 16  ;;  %v14419_v20 = vld [vmem:[#allocation45_spill] sm:$0xff]  ;;  %v7568_v50 = vld [vmem:[#allocation3 + $0x78] sm:$0xf0] }
 0x3cd   :  { %v3154_v4 = vpop.permute.xlu0 %3153  ;;  %v3194_v33 = vpop.permute.xlu2 %3193  ;;  %v14420_v24 = vrot.slane %v14419_v20, 5  ;;  %v8271_v23 = vld [vmem:[#allocation3 + $0x74] sm:$0xf0] }
 0x3ce   :  { %v3157_v16 = vrot.slane %v3154_v4, 4  ;;  %v3141_v19 = vpop.permute.xlu1 %3140  ;;  %v3197_v53 = vrot.slane %v3194_v33, 4  ;;  %v4881_v31 = vrot.slane %v4879_v1, 4 }
 0x3cf   :  { %v3144_v49 = vrot.slane %v3141_v19, 4 }
 0x3d0   :  { %v3160_v29 = vsel %vm13764_vm1, %v3154_v4, %v3157_v16  ;;  %v3200_v17 = vsel %vm13765_vm9, %v3194_v33, %v3197_v53  ;;  %vm14421_vm1 = vcmask 1042432   ;;  %vm14423_vm9 = vcmask 785408  }
 0x3d1   :  { %3164 = vst.msk [vmem:[#allocation3 + $0x68] sm:$0xcc] %vm11828_vm2, %v3160_v29  ;;  %v3147_v39 = vsel %vm13774_vm11, %v3141_v19, %v3144_v49  ;;  %v11839_v13 = vld [vmem:[#allocation3 + $0x90] sm:$0x77] }
 0x3d2   :  { %3151 = vst.msk [vmem:[#allocation3 + $0x60] sm:$0x88] %vm11795_vm8, %v3147_v39  ;;  %v3303_v48 = vunpack.c.l.b16 %v11839_v13  ;;  %v5032_v39 = vor.u32 %v5031_v25, %v5028_v7  ;;  %v14424_v25 = vld [vmem:[#allocation64_spill] sm:$0xff] }
 0x3d3   :  { %3204 = vst.msk [vmem:[#allocation3 + $0x80] sm:$0xcc] %vm11828_vm2, %v3200_v17  ;;  %4569 = vrot.lane.b32.xlu0 %v14415_v14, %s14068_s16  ;;  %3631 = vrot.lane.b32.xlu2 %v14417_v21, %s8518_s30  ;;  %v11858_v14 = vrot.slane %v4863_v18, 5  ;;  %v14425_v18 = vld [vmem:[#allocation71_spill] sm:$0xff]  ;;  %s14427_s16 = smov 93  }
 0x3d4   :  { %3629 = vrot.lane.b32.xlu1 %v14420_v24, %s8518_s30  ;;  %v3323_v4 = vpack.c.b16 %v3303_v48, %v3303_v48  ;;  %v13778_v1 = vrot.slane %v14425_v18, 5 }
 0x3d5   :  { %v3115_v33 = vpop.permute.xlu0 %3114  ;;  %v3075_v16 = vpop.permute.xlu2 %3074  ;;  %v4882_v7 = vor.u32 %v4881_v31, %v11858_v14 }
 0x3d6   :  { %v3118_v19 = vrot.slane %v3115_v33, 4  ;;  %v3088_v53 = vpop.permute.xlu1 %3087  ;;  %v3078_v49 = vrot.slane %v3075_v16, 4  ;;  %v3348_v29 = vsel %vm14421_vm1, %v3323_v4, 0  ;;  %vm13768_vm1 = vcmask 564224  }
 0x3d7   :  { %v3089_v17 = vrot.slane %v3088_v53, 4  ;;  %3373 = vmatpush.bf16.msrb.mxu2 %v3348_v29  ;;  %v4686_v43 = vrot.slane %v13778_v1, 4 }
 0x3d8   :  { %v3120_v21 = vsel %vm14423_vm9, %v3115_v33, %v3118_v19  ;;  %v3081_v48 = vsel %vm13773_vm0, %v3075_v16, %v3078_v49  ;;  %vm13767_vm9 = vcmask 793600   ;;  %vm14437_vm0 = vcmask 1041408  }
 0x3d9   :  { %3124 = vst.msk [vmem:[#allocation3 + $0x50] sm:$0xcc] %vm11828_vm2, %v3120_v21  ;;  %v3091_v47 = vsel %vm13766_vm7, %v3088_v53, %v3089_v17  ;;  %v4883_v53 = vrot.slane %v4882_v7, 4  ;;  %vm14426_vm7 = vcmask 1022976   ;;  %v14428_v17 = vld [vmem:[#allocation11_spill] sm:$0xff] }
 0x3da   :  { %3093 = vst.msk [vmem:[#allocation3 + $0x40] sm:$0xee] %vm11774_vm3, %v3091_v47 }
 0x3db   :  { %3085 = vst.msk [vmem:[#allocation3 + $0x38] sm:$0xcc] %vm11828_vm2, %v3081_v48  ;;  %5039 = vrot.lane.b32.xlu0 %v5032_v39, %s8519_s14  ;;  %4451 = vrot.lane.b32.xlu2 %v4445_v6, %s14057_s2 }
 0x3dc   :  { %4300 = vrot.lane.b32.xlu1 %v14424_v25, %s14026_s23  ;;  %v14429_v25 = vld [vmem:[#allocation67_spill] sm:$0xff] }
 0x3dd   :  { %v3102_v20 = vpop.permute.xlu0 %3101  ;;  %v3007_v24 = vpop.permute.xlu2 %3006 }
 0x3de   :  { %v3105_v4 = vrot.slane %v3102_v20, 4  ;;  %v3207_v33 = vpop.permute.xlu1 %3206  ;;  %v3008_v16 = vrot.slane %v3007_v24, 4 }
 0x3df   :  { %v3208_v19 = vrot.slane %v3207_v33, 4 }
 0x3e0   :  { %v3108_v49 = vsel %vm13767_vm9, %v3102_v20, %v3105_v4  ;;  %v3009_v29 = vsel %vm14426_vm7, %v3007_v24, %v3008_v16  ;;  %vm13771_vm7 = vcmask 900096   ;;  %vm13772_vm9 = vcmask 924672   ;;  %v14430_v24 = vld [vmem:[#allocation60_spill] sm:$0xff] }
 0x3e1   :  { %3112 = vst.msk [vmem:[#allocation3 + $0x48] sm:$0x88] %vm11795_vm8, %v3108_v49  ;;  %v3210_v6 = vsel %vm13768_vm1, %v3207_v33, %v3208_v19  ;;  %v4446_v20 = vrot.slane %v14429_v25, 7  ;;  %v3914_v4 = vrot.slane %v14430_v24, 7  ;;  %v14431_v33 = vld [vmem:[#allocation10_spill] sm:$0xff]  ;;  %vm14432_vm1 = vcmask 1039360  }
 0x3e2   :  { %3212 = vst.msk [vmem:[#allocation3 + $0x88] sm:$0xee] %vm11774_vm3, %v3210_v6  ;;  %v4768_v16 = vshrl.u32 %v14431_v33, 16 }
 0x3e3   :  { %3014 = vst.msk [vmem:[#allocation3 + $0x10] sm:$0xee] %vm11774_vm3, %v3009_v29  ;;  %4036 = vrot.lane.b32.xlu0 %v14428_v17, %s14427_s16  ;;  %4901 = vrot.lane.b32.xlu2 %v4883_v53, %s14385_s26  ;;  %v5076_v29 = vld.sshfl [vmem:[#allocation1 + $0x18] sm:$0xff pattern:$0x75643120] }
 0x3e4   :  { %4701 = vrot.lane.b32.xlu1 %v4686_v43, %s13982_s20  ;;  %v14433_v43 = vld [vmem:[#allocation27_spill] sm:$0xff]  ;;  %v4770_v17 = vrot.slane %v4768_v16, 7 }
 0x3e5   :  { %v3062_v39 = vpop.permute.xlu0 %3061  ;;  %v2968_v31 = vpop.permute.xlu2 %2967  ;;  %v13783_v6 = vrot.slane %v14433_v43, 5 }
 0x3e6   :  { %v3065_v21 = vrot.slane %v3062_v39, 4  ;;  %v3035_v48 = vpop.permute.xlu1 %3034  ;;  %v2971_v47 = vrot.slane %v2968_v31, 4 }
 0x3e7   :  { %v3038_v7 = vrot.slane %v3035_v48, 4 }
 0x3e8   :  { %v3068_v19 = vsel %vm13771_vm7, %v3062_v39, %v3065_v21  ;;  %v2973_v53 = vsel %vm14432_vm1, %v2968_v31, %v2971_v47  ;;  %v4771_v39 = vshll.u32 %v14431_v33, 16  ;;  %v14435_v31 = vld [vmem:[#allocation9_spill] sm:$0xff]  ;;  %vm2982_vm1 = vcmask 62468   ;;  %v14436_v33 = vld [vmem:[#allocation31_spill] sm:$0xff] }
 0x3e9   :  { %3072 = vst.msk [vmem:[#allocation3 + $0x30] sm:$0x88] %vm11795_vm8, %v3068_v19  ;;  %v3041_v49 = vsel %vm13772_vm9, %v3035_v48, %v3038_v7  ;;  %v4866_v21 = vshll.u32 %v14435_v31, 16  ;;  %v4884_v48 = vshrl.u32 %v14435_v31, 16  ;;  %vm13780_vm7 = vcmask 916480   ;;  %vm11914_vm11 = vmor %vm2982_vm1, %vm14437_vm0 }
 0x3ea   :  { %3045 = vst.msk [vmem:[#allocation3 + $0x20] sm:$0xcc] %vm11828_vm2, %v3041_v49  ;;  %vm13781_vm9 = vcmask 932864   ;;  %v4773_v16 = vor.u32 %v4771_v39, %v4770_v17  ;;  %v4622_v49 = vshll.u32 %v14436_v33, 16  ;;  %v14443_v39 = vld [vmem:[#allocation65_spill] sm:$0xff]  ;;  %vm3002_vm0 = vcmask 61444  }
 0x3eb   :  { %2980 = vst.msk [vmem:[#allocation3] sm:$0x88] %vm11795_vm8, %v2973_v53  ;;  %4453 = vrot.lane.b32.xlu0 %v4446_v20, %s14057_s2  ;;  %3920 = vrot.lane.b32.xlu2 %v3914_v4, %s14434_s17  ;;  %v4155_v20 = vrot.slane %v13783_v6, 4  ;;  %v4619_v53 = vshrl.u32 %v14436_v33, 16  ;;  %v4868_v1 = vrot.slane %v4866_v21, 5  ;;  %v4886_v41 = vrot.slane %v4884_v48, 4 }
 0x3ec   :  { %5084 = vrot.lane.b32.xlu1 %v5076_v29, %s14408_s3  ;;  %v14438_v29 = vmov 0  ;;  %s14442_s2 = smov 28  }
 0x3ed   :  { %v3048_v47 = vpop.permute.xlu0 %3047  ;;  %v3143_v7 = vpop.permute.xlu2 %3142  ;;  %v14439_v29 = vsel %vm11914_vm11, 4294967295, %v14438_v29  ;;  %v4621_v48 = vrot.slane %v4619_v53, 6 }
 0x3ee   :  { %v3049_v25 = vrot.slane %v3048_v47, 4  ;;  %v3022_v24 = vpop.permute.xlu1 %3021  ;;  %v3145_v19 = vrot.slane %v3143_v7, 4  ;;  %14440 = vst [vmem:[#allocation41_spill] sm:$0xff] %v14439_v29 }
 0x3ef   :  { %v3025_v4 = vrot.slane %v3022_v24, 4 }
 0x3f0   :  { %v3051_v31 = vsel %vm13780_vm7, %v3048_v47, %v3049_v25  ;;  %v3148_v3 = vsel %vm14441_vm5, %v3143_v7, %v3145_v19  ;;  %v14444_v47 = vld [vmem:[#allocation47_spill] sm:$0xff]  ;;  %v4624_v7 = vrot.slane %v4622_v49, 7  ;;  %v4887_v25 = vor.u32 %v4886_v41, %v4868_v1 }
 0x3f1   :  { %3053 = vst.msk [vmem:[#allocation3 + $0x28] sm:$0xee] %vm11774_vm3, %v3051_v31  ;;  %v3028_v17 = vsel %vm13781_vm9, %v3022_v24, %v3025_v4  ;;  %v13782_v21 = vrot.slane %v14444_v47, 5  ;;  %vm14445_vm5 = vcmask 1040384   ;;  %v14446_v4 = vmov 0 }
 0x3f2   :  { %3032 = vst.msk [vmem:[#allocation3 + $0x18] sm:$0x88] %vm11795_vm8, %v3028_v17  ;;  %vm11933_vm1 = vmor %vm3002_vm0, %vm14445_vm5  ;;  %vm14449_vm7 = vcmask 818176   ;;  %vm14450_vm9 = vcmask 793600   ;;  %v4888_v41 = vrot.slane %v4887_v25, 4  ;;  %vm14451_vm0 = vcmask 1031168  }
 0x3f3   :  { %3152 = vst.msk [vmem:[#allocation3 + $0x68] sm:$0x33] %vm11914_vm11, %v3148_v3  ;;  %4784 = vrot.lane.b32.xlu0 %v4773_v16, %s14442_s2  ;;  %4302 = vrot.lane.b32.xlu2 %v14443_v39, %s14026_s23  ;;  %v14447_v4 = vsel %vm11933_vm1, 4294967295, %v14446_v4  ;;  %v3627_v17 = vrot.slane %v13782_v21, 4  ;;  %v4625_v39 = vor.u32 %v4624_v7, %v4621_v48  ;;  %s14452_s23 = smov 30   ;;  %vm14456_vm5 = vcmask 678912  }
 0x3f4   :  { %4170 = vrot.lane.b32.xlu1 %v4155_v20, %s14391_s29  ;;  %14448 = vst [vmem:[#allocation21_spill] sm:$0xff] %v14447_v4  ;;  %vm14551_vm3 = vcmask 236544  }
 0x3f5   :  { %v3077_v24 = vpop.permute.xlu0 %3076  ;;  %v3104_v19 = vpop.permute.xlu2 %3103 }
 0x3f6   :  { %v3079_v3 = vrot.slane %v3077_v24, 4  ;;  %v2988_v16 = vpop.permute.xlu1 %2987  ;;  %v3106_v33 = vrot.slane %v3104_v19, 4 }
 0x3f7   :  { %v2991_v31 = vrot.slane %v2988_v16, 4 }
 0x3f8   :  { %v3082_v53 = vsel %vm14449_vm7, %v3077_v24, %v3079_v3  ;;  %v3109_v20 = vsel %vm14450_vm9, %v3104_v19, %v3106_v33  ;;  %v14453_v33 = vld [vmem:[#allocation30_spill] sm:$0xff]  ;;  %vm14454_vm9 = vcmask 572416   ;;  %vm14455_vm7 = vcmask 924672  }
 0x3f9   :  { %3086 = vst.msk [vmem:[#allocation3 + $0x40] sm:$0x11] %vm11933_vm1, %v3082_v53  ;;  %v2993_v49 = vsel %vm14451_vm0, %v2988_v16, %v2991_v31  ;;  %v4503_v16 = vshrl.u32 %v14453_v33, 16  ;;  %v4506_v31 = vshll.u32 %v14453_v33, 16  ;;  %vm14463_vm0 = vcmask 932864  }
 0x3fa   :  { %3000 = vst.msk [vmem:[#allocation3 + $0x8] sm:$0xcc] %vm11828_vm2, %v2993_v49  ;;  %v14458_v49 = vrot.slane %v14397_v44, 5  ;;  %v8259_v46 = vld [vmem:[#allocation3 + $0x14] sm:$0xf0] }
 0x3fb   :  { %3113 = vst.msk [vmem:[#allocation3 + $0x50] sm:$0x33] %vm11914_vm11, %v3109_v20  ;;  %3641 = vrot.lane.b32.xlu0 %v3627_v17, %s8518_s30  ;;  %4637 = vrot.lane.b32.xlu2 %v4625_v39, %s14452_s23  ;;  %v8462_v17 = vpack.i.bf16 %v4868_v1, %v11858_v14  ;;  %v4508_v14 = vrot.slane %v4506_v31, 6  ;;  %v14459_v1 = vld [vmem:[#allocation34_spill] sm:$0xff] }
 0x3fc   :  { %4903 = vrot.lane.b32.xlu1 %v4888_v41, %s14385_s26  ;;  %v14457_v41 = vld [vmem:[#allocation13_spill] sm:$0xff]  ;;  %v7520_v60 = vld [vmem:[#allocation3 + $0x18] sm:$0xf0] }
 0x3fd   :  { %v3196_v48 = vpop.permute.xlu0 %3195  ;;  %v3037_v7 = vpop.permute.xlu2 %3036 }
 0x3fe   :  { %v3198_v25 = vrot.slane %v3196_v48, 4  ;;  %v3156_v24 = vpop.permute.xlu1 %3155  ;;  %v3039_v19 = vrot.slane %v3037_v7, 4 }
 0x3ff   :  { %v3158_v3 = vrot.slane %v3156_v24, 4 }
 0x400   :  { %v3201_v53 = vsel %vm14454_vm9, %v3196_v48, %v3198_v25  ;;  %v3042_v20 = vsel %vm14455_vm7, %v3037_v7, %v3039_v19  ;;  %v4505_v48 = vrot.slane %v4503_v16, 5  ;;  %v4344_v7 = vshll.u32 %v14459_v1, 16 }
 0x401   :  { %3205 = vst.msk [vmem:[#allocation3 + $0x88] sm:$0x11] %vm11933_vm1, %v3201_v53  ;;  %v3161_v39 = vsel %vm14456_vm5, %v3156_v24, %v3158_v3  ;;  %v4360_v25 = vshrl.u32 %v14459_v1, 16  ;;  %v4110_v24 = vrot.slane %v11772_v32, 4  ;;  %vm14464_vm9 = vcmask 1043456  }
 0x402   :  { %3165 = vst.msk [vmem:[#allocation3 + $0x70] sm:$0x11] %vm11933_vm1, %v3161_v39  ;;  %v14461_v39 = vld [vmem:[#allocation61_spill] sm:$0xff]  ;;  %v4509_v21 = vor.u32 %v4508_v14, %v4505_v48  ;;  %v4346_v6 = vrot.slane %v4344_v7, 5  ;;  %vm14466_vm7 = vcmask 785408   ;;  %vm14467_vm5 = vcmask 752640  }
 0x403   :  { %3046 = vst.msk [vmem:[#allocation3 + $0x28] sm:$0x11] %vm11933_vm1, %v3042_v20  ;;  %4038 = vrot.lane.b32.xlu0 %v14457_v41, %s14427_s16  ;;  %4691 = vrot.lane.b32.xlu2 %v14458_v49, %s13982_s20  ;;  %v3915_v44 = vrot.slane %v14461_v39, 7  ;;  %v14462_v41 = vld [vmem:[#allocation33_spill] sm:$0xff]  ;;  %v4125_v49 = vld [vmem:[#allocation2 + $0x54] sm:$0x66] }
 0x404   :  { %8463 = vrot.lane.b32.xlu1 %v8462_v17, %s14385_s26  ;;  %v4347_v16 = vshll.u32 %v14462_v41, 16  ;;  %v4362_v1 = vrot.slane %v4360_v25, 4  ;;  %s14468_s16 = smov 32   ;;  %v7560_v39 = vld [vmem:[#allocation3 + $0x68] sm:$0xf0] }
 0x405   :  { %v3024_v19 = vpop.permute.xlu0 %3023  ;;  %v11972_v3 = vpop.permute.xlu2 %4104  ;;  %v8266_v61 = vld [vmem:[#allocation3 + $0x54] sm:$0xf] }
 0x406   :  { %14460 = vst [vmem:[#allocation52_spill] sm:$0xff] %v11972_v3  ;;  %v3117_v33 = vpop.permute.xlu1 %3116  ;;  %v3026_v53 = vrot.slane %v3024_v19, 4  ;;  %v13795_v20 = vrot.slane %v11972_v3, 4 }
 0x407   :  { %v3119_v31 = vrot.slane %v3117_v33, 4 }
 0x408   :  { %v3029_v17 = vsel %vm14463_vm0, %v3024_v19, %v3026_v53  ;;  %v4114_v28 = vsel %vm14464_vm9, %v4110_v24, %v13795_v20  ;;  %v11991_v53 = vrot.slane %v4347_v16, 5  ;;  %v4239_v16 = vrot.slane %v4237_v5, 7 }
 0x409   :  { %v3121_v56 = vsel %vm14466_vm7, %v3117_v33, %v3119_v31  ;;  %3033 = vst.msk [vmem:[#allocation3 + $0x20] sm:$0x33] %vm11914_vm11, %v3029_v17  ;;  %v4115_v48 = vsel %vm14467_vm5, %v11772_v32, %v4114_v28  ;;  %v7566_v14 = vld [vmem:[#allocation3 + $0x70] sm:$0xf]  ;;  %v8270_v7 = vld [vmem:[#allocation3 + $0x74] sm:$0xf]  ;;  %v4363_v32 = vor.u32 %v4362_v1, %v4346_v6 }
 0x40a   :  { %3125 = vst.msk [vmem:[#allocation3 + $0x58] sm:$0x11] %vm11933_vm1, %v3121_v56  ;;  %v4126_v25 = vsel %vm13980_vm15, %v4115_v48, %v4125_v49  ;;  %v7567_v24 = vor.u32 %v8271_v23, %v7566_v14  ;;  %v7571_v19 = vor.u32 %v8270_v7, %v7568_v50  ;;  %v8269_v33 = vld [vmem:[#allocation3 + $0x64] sm:$0xf0]  ;;  %v14469_v28 = vld [vmem:[#allocation53_spill] sm:$0xff]  ;;  %v4240_v49 = vshll.u32 %v14465_v26, 16 }
 0x40b   :  { %4127 = vst [vmem:[#allocation2 + $0x54] sm:$0x66] %v4126_v25  ;;  %4521 = vrot.lane.b32.xlu0 %v4509_v21, %s14468_s16  ;;  %3922 = vrot.lane.b32.xlu2 %v3915_v44, %s14434_s17  ;;  %v7558_v50 = vld [vmem:[#allocation3 + $0x60] sm:$0xf]  ;;  %v8268_v23 = vld [vmem:[#allocation3 + $0x64] sm:$0xf]  ;;  %v8467_v1 = vpack.i.bf16 %v11991_v53, %v4346_v6 }
 0x40c   :  { %3353 = vmatpush.bf16.msrb.mxu1 %v7567_v24  ;;  %3381 = vmatpush.bf16.msrb.mxu3 %v7571_v19  ;;  %v7559_v17 = vor.u32 %v8269_v33, %v7558_v50  ;;  %v7563_v44 = vor.u32 %v8268_v23, %v7560_v39  ;;  %v4364_v14 = vrot.slane %v4363_v32, 4  ;;  %v14470_v7 = vld [vmem:[#allocation73_spill] sm:$0xff]  ;;  %v14471_v19 = vld [vmem:[#allocation26_spill] sm:$0xff]  ;;  %vm14472_vm0 = vcmask 580608   ;;  %s14473_s17 = smov 61  }
 0x40d   :  { %3770 = vrot.lane.b32.xlu1 %v14469_v28, %s14408_s3  ;;  %v11997_v56 = vpop.permute.xlu0 %3847  ;;  %v11999_v31 = vpop.permute.xlu2 %4156  ;;  %v4774_v25 = vshrl.u32 %v14470_v7, 16  ;;  %v7550_v24 = vld [vmem:[#allocation3 + $0x50] sm:$0xf]  ;;  %v4626_v28 = vshrl.u32 %v14471_v19, 16  ;;  %v4629_v20 = vshll.u32 %v14471_v19, 16  ;;  %v4242_v3 = vor.u32 %v4240_v49, %v4239_v16 }
 0x40e   :  { %v3183_v21 = vpop.permute.xlu1 %3182  ;;  %v7542_v32 = vld [vmem:[#allocation3 + $0x40] sm:$0xf]  ;;  %v8264_v50 = vld [vmem:[#allocation3 + $0x44] sm:$0xf]  ;;  %v3304_v16 = vunpack.c.h.b16 %v11839_v13  ;;  %vm14476_vm9 = vcmask 1039360   ;;  %vm14478_vm7 = vcmask 1043456  }
 0x40f   :  { %v3185_v48 = vrot.slane %v3183_v21, 4  ;;  %v4776_v23 = vrot.slane %v4774_v25, 7  ;;  %vm14479_vm5 = vcmask 900096  }
 0x410   :  { %3354 = vmatpush.bf16.msrb.mxu1 %v7559_v17  ;;  %3382 = vmatpush.bf16.msrb.mxu3 %v7563_v44  ;;  %v4777_v17 = vshll.u32 %v14470_v7, 16  ;;  %v8265_v44 = vld [vmem:[#allocation3 + $0x44] sm:$0xf0] }
 0x411   :  { %v3188_v5 = vsel %vm14472_vm0, %v3183_v21, %v3185_v48  ;;  %v8267_v26 = vld [vmem:[#allocation3 + $0x54] sm:$0xf0]  ;;  %v7552_v33 = vld [vmem:[#allocation3 + $0x58] sm:$0xf0]  ;;  %v4628_v48 = vrot.slane %v4626_v28, 6  ;;  %v7543_v25 = vor.u32 %v8265_v44, %v7542_v32  ;;  %vm14480_vm0 = vcmask 236544  }
 0x412   :  { %3192 = vst.msk [vmem:[#allocation3 + $0x80] sm:$0x33] %vm11914_vm11, %v3188_v5  ;;  %v7551_v39 = vor.u32 %v8267_v26, %v7550_v24  ;;  %v7555_v6 = vor.u32 %v8266_v61, %v7552_v33  ;;  %v7544_v61 = vld [vmem:[#allocation3 + $0x48] sm:$0xf0]  ;;  %v4740_v26 = vld [vmem:[#allocation2 + $0xcc] sm:$0x11]  ;;  %v4779_v33 = vor.u32 %v4777_v17, %v4776_v23 }
 0x413   :  { %4382 = vrot.lane.b32.xlu0 %v4364_v14, %s14473_s17  ;;  %8468 = vrot.lane.b32.xlu2 %v8467_v1, %s14473_s17  ;;  %v4631_v14 = vrot.slane %v4629_v20, 7  ;;  %v7547_v5 = vor.u32 %v8264_v50, %v7544_v61  ;;  %v3324_v20 = vpack.c.b16 %v3304_v16, %v3304_v16  ;;  %v8211_v32 = vld [vmem:[%s13368_s4 + $0x4] sm:$0xf]  ;;  %v7504_v50 = vld [vmem:[%s13368_s4 + $0x8] sm:$0xf0] }
 0x414   :  { %3355 = vmatpush.bf16.msrb.mxu1 %v7551_v39  ;;  %3383 = vmatpush.bf16.msrb.mxu3 %v7555_v6  ;;  %v14475_v39 = vld [vmem:[#allocation15_spill] sm:$0xff]  ;;  %v14477_v6 = vrot.slane %v10497_v34, 4 }
 0x415   :  { %4253 = vrot.lane.b32.xlu1 %v4242_v3, %s14474_s21  ;;  %v2970_v49 = vpop.permute.xlu0 %2969  ;;  %v12014_v21 = vpop.permute.xlu2 %4699  ;;  %v4243_v13 = vshrl.u32 %v14475_v39, 16  ;;  %v8305_v23 = vld [vmem:[#allocation2 + $0xf8] sm:$0x30]  ;;  %v4632_v44 = vor.u32 %v4631_v14, %v4628_v48  ;;  %v8273_v16 = vld [vmem:[#allocation3 + $0x84] sm:$0xf0]  ;;  %v4246_v48 = vshll.u32 %v14475_v39, 16 }
 0x416   :  { %v2972_v24 = vrot.slane %v2970_v49, 4  ;;  %v3064_v1 = vpop.permute.xlu1 %3063  ;;  %v13808_v19 = vrot.slane %v12014_v21, 4  ;;  %v14482_v14 = vld [vmem:[#allocation48_spill] sm:$0xff] }
 0x417   :  { %v3066_v7 = vrot.slane %v3064_v1, 4 }
 0x418   :  { %v2974_v3 = vsel %vm14476_vm9, %v2970_v49, %v2972_v24  ;;  %v4720_v28 = vsel %vm14478_vm7, %v14477_v6, %v13808_v19  ;;  %3356 = vmatpush.bf16.msrb.mxu1 %v7543_v25  ;;  %3384 = vmatpush.bf16.msrb.mxu3 %v7547_v5  ;;  %v7731_v5 = vld [vmem:[#allocation2 + $0xe0] sm:$0xf]  ;;  %v14481_v6 = vld [vmem:[#allocation54_spill] sm:$0xff]  ;;  %vm14483_vm9 = vcmask 1042432   ;;  %vm13830_vm7 = vcmask 179200  }
 0x419   :  { %2984 = vst.msk [vmem:[#allocation3 + $0x8] sm:$0x33] %vm11914_vm11, %v2974_v3  ;;  %v3069_v17 = vsel %vm14479_vm5, %v3064_v1, %v3066_v7  ;;  %v4721_v49 = vsel %vm14480_vm0, %v10497_v34, %v4720_v28  ;;  %v7574_v61 = vld [vmem:[#allocation3 + $0x80] sm:$0xf]  ;;  %v12042_v1 = vor.u32 %v8211_v32, %v7504_v50  ;;  %v4245_v34 = vrot.slane %v4243_v13, 7  ;;  %v14485_v50 = vld [vmem:[#allocation28_spill] sm:$0xff] }
 0x41a   :  { %3073 = vst.msk [vmem:[#allocation3 + $0x38] sm:$0x33] %vm11914_vm11, %v3069_v17  ;;  %v4741_v24 = vsel %vm14197_vm10, %v4721_v49, %v4740_v26  ;;  %v7575_v25 = vor.u32 %v8273_v16, %v7574_v61  ;;  %v13811_v7 = vrot.slane %v14482_v14, 5  ;;  %v4172_v3 = vrot.slane %v11999_v31, 4  ;;  %v8272_v28 = vld [vmem:[#allocation3 + $0x84] sm:$0xf] }
 0x41b   :  { %4742 = vst [vmem:[#allocation2 + $0xcc] sm:$0x11] %v4741_v24  ;;  %3772 = vrot.lane.b32.xlu0 %v14481_v6, %s14408_s3  ;;  %4786 = vrot.lane.b32.xlu2 %v4779_v33, %s14442_s2  ;;  %v3351_v26 = vsel %vm14483_vm9, %v3324_v20, 0  ;;  %v7732_v17 = vor.u32 %v8305_v23, %v7731_v5  ;;  %v7576_v32 = vld [vmem:[#allocation3 + $0x88] sm:$0xf0]  ;;  %v4088_v61 = vshrl.u32 %v14485_v50, 16  ;;  %v4248_v23 = vor.u32 %v4246_v48, %v4245_v34 }
 0x41c   :  { %3374 = vmatpush.bf16.msrb.mxu2 %v7575_v25  ;;  %v4091_v16 = vshll.u32 %v14485_v50, 16  ;;  %v7579_v20 = vor.u32 %v8272_v28, %v7576_v32  ;;  %vm14486_vm5 = vcmask 1043456   ;;  %v7534_v6 = vld [vmem:[#allocation3 + $0x30] sm:$0xf]  ;;  %v8298_v19 = vld [vmem:[#allocation2 + $0xc0] sm:$0xf0]  ;;  %vm14529_vm11 = vnez %v13967_v8 }
 0x41d   :  { %4639 = vrot.lane.b32.xlu1 %v4632_v44, %s14452_s23  ;;  %v12049_v49 = vpop.permute.xlu0 %4158  ;;  %v12051_v33 = vpop.permute.xlu2 %3720  ;;  %v3628_v44 = vrot.slane %v13811_v7, 4  ;;  %v5326_v5 = vand.u32 %v7732_v17, %v9898_v40  ;;  %vm14487_vm0 = vcmask 523264   ;;  %vm14488_vm9 = vcmask 1031168   ;;  %v14489_v48 = vld [vmem:[#allocation18_spill] sm:$0xff]  ;;  %v7703_v17 = vld [vmem:[#allocation2 + $0xa8] sm:$0xf] }
 0x41e   :  { %14484 = vst [vmem:[#allocation17_spill] sm:$0xff] %v12049_v49  ;;  %v13812_v13 = vrot.slane %v12049_v49, 4  ;;  %v2990_v39 = vpop.permute.xlu1 %2989  ;;  %v3972_v32 = vshrl.u32 %v14489_v48, 16  ;;  %v3975_v7 = vshll.u32 %v14489_v48, 16  ;;  %v4090_v49 = vrot.slane %v4088_v61, 6  ;;  %s14817_s2 = smov 85  }
 0x41f   :  { %v2992_v24 = vrot.slane %v2990_v39, 4  ;;  %7580 = vmatmul.msk.bf16.vlgmr.msrb.gmra.mxu2 %vm13830_vm7, %v12042_v1  ;;  %v4093_v55 = vrot.slane %v4091_v16, 7  ;;  %v3859_v61 = vrot.slane %v11997_v56, 4  ;;  %s14818_s23 = smov 72  }
 0x420   :  { %3401 = vmatpush.bf16.msra.mxu2 %v3351_v26  ;;  %v4180_v25 = vsel %vm14486_vm5, %v4172_v3, %v13812_v13  ;;  %v8262_v26 = vld [vmem:[#allocation3 + $0x34] sm:$0xf] }
 0x421   :  { %v4181_v50 = vsel %vm14487_vm0, %v11999_v31, %v4180_v25  ;;  %v2994_v29 = vsel %vm14488_vm9, %v2990_v39, %v2992_v24  ;;  %v8263_v28 = vld [vmem:[#allocation3 + $0x34] sm:$0xf0]  ;;  %v7536_v34 = vld [vmem:[#allocation3 + $0x38] sm:$0xf0]  ;;  %v7526_v31 = vld [vmem:[#allocation3 + $0x20] sm:$0xf]  ;;  %v7704_v24 = vor.u32 %v8298_v19, %v7703_v17  ;;  %v4094_v4 = vor.u32 %v4093_v55, %v4090_v49 }
 0x422   :  { %4202 = vst [vmem:[#allocation2 + $0x54] sm:$0x88] %v4181_v50  ;;  %v7535_v3 = vor.u32 %v8263_v28, %v7534_v6  ;;  %v7539_v13 = vor.u32 %v8262_v26, %v7536_v34  ;;  %v8260_v39 = vld [vmem:[#allocation3 + $0x24] sm:$0xf]  ;;  %v8291_v25 = vld [vmem:[#allocation2 + $0x88] sm:$0xf0]  ;;  %vm14495_vm0 = vmmov %vm14486_vm5 }
 0x423   :  { %3004 = vst.msk [vmem:[#allocation3 + $0x10] sm:$0x11] %vm11933_vm1, %v2994_v29  ;;  %4255 = vrot.lane.b32.xlu0 %v4248_v23, %s14474_s21  ;;  %3643 = vrot.lane.b32.xlu2 %v3628_v44, %s8518_s30  ;;  %v14491_v29 = vrot.slane %v14425_v18, 5  ;;  %v7528_v44 = vld [vmem:[#allocation3 + $0x28] sm:$0xf0]  ;;  %v3974_v50 = vrot.slane %v3972_v32, 5 }
 0x424   :  { %3402 = vmatpush.bf16.msra.mxu2 %v7579_v20  ;;  %3357 = vmatpush.bf16.msrb.mxu1 %v7535_v3  ;;  %v8261_v20 = vld [vmem:[#allocation3 + $0x24] sm:$0xf0]  ;;  %v7531_v48 = vor.u32 %v8260_v39, %v7528_v44  ;;  %v14492_v17 = vld [vmem:[#allocation49_spill] sm:$0xff]  ;;  %v8302_v39 = vld [vmem:[#allocation2 + $0xe4] sm:$0xf]  ;;  %vm14496_vm9 = vcmask 1022976  }
 0x425   :  { %3385 = vmatpush.bf16.msrb.mxu3 %v7539_v13  ;;  %4693 = vrot.lane.b32.xlu1 %v14491_v29, %s13982_s20  ;;  %v12079_v16 = vpop.permute.xlu0 %3576  ;;  %v12081_v23 = vpop.permute.xlu2 %5037  ;;  %v3977_v13 = vrot.slane %v3975_v7, 6  ;;  %v7527_v34 = vor.u32 %v8261_v20, %v7526_v31  ;;  %v7733_v3 = vld [vmem:[#allocation2 + $0xfc] sm:$0x30]  ;;  %v7675_v29 = vld [vmem:[#allocation2 + $0x70] sm:$0xf]  ;;  %v14494_v7 = vrot.slane %v10984_v58, 4 }
 0x426   :  { %v12083_v19 = vpop.permute.xlu1 %3849  ;;  %v13829_v28 = vrot.slane %v12081_v23, 4  ;;  %v5058_v32 = vld [vmem:[#allocation2 + $0xe8] sm:$0xcc]  ;;  %v7676_v31 = vor.u32 %v8291_v25, %v7675_v29  ;;  %v7736_v58 = vor.u32 %v8302_v39, %v7733_v3  ;;  %v3711_v29 = vshll.u32 %v14492_v17, 16  ;;  %s14821_s20 = smov 68   ;;  %s14823_s21 = smov 86  }
 0x427   :  { %v13828_v18 = vrot.slane %v12083_v19, 4  ;;  %v3978_v49 = vor.u32 %v3977_v13, %v3974_v50  ;;  %v14498_v50 = vrot.slane %v14409_v63, 5 }
 0x428   :  { %5349 = vmatpush.bf16.msrb.mxu2 %v5326_v5  ;;  %v14490_v5 = vld [vmem:[#allocation57_spill] sm:$0xff]  ;;  %3358 = vmatpush.bf16.msrb.mxu1 %v7527_v34  ;;  %v7502_v34 = vld [vmem:[%s13368_s4] sm:$0xf] }
 0x429   :  { %v3813_v6 = vshll.u32 %v14490_v5, 16  ;;  %v3829_v26 = vshrl.u32 %v14490_v5, 16  ;;  %v3708_v5 = vshrl.u32 %v14492_v17, 16  ;;  %3386 = vmatpush.bf16.msrb.mxu3 %v7531_v48  ;;  %v3870_v55 = vsel %vm14495_vm0, %v3859_v61, %v13828_v18 }
 0x42a   :  { %v8258_v61 = vld [vmem:[#allocation3 + $0x14] sm:$0xf] }
 0x42b   :  { %v12095_v20 = vrot.slane %v3813_v6, 5  ;;  %v3831_v44 = vrot.slane %v3829_v26, 4  ;;  %v7518_v26 = vld [vmem:[#allocation3 + $0x10] sm:$0xf]  ;;  %v3710_v48 = vrot.slane %v3708_v5, 7  ;;  %4160 = vrot.lane.b32.xlu0 %v14498_v50, %s14391_s29  ;;  %4106 = vrot.lane.b32.xlu2 %v4094_v4, %s13959_s0  ;;  %v7523_v3 = vor.u32 %v8258_v61, %v7520_v60 }
 0x42c   :  { %5350 = vmatpush.bf16.msrb.mxu2 %v7704_v24  ;;  %v5047_v24 = vsel %vm14486_vm5, %v14494_v7, %v13829_v28  ;;  %vm14497_vm5 = vcmask 785408   ;;  %v7519_v13 = vor.u32 %v8259_v46, %v7518_v26  ;;  %v4515_v7 = vrot.slane %v4513_v9, 6  ;;  %v8257_v5 = vld [vmem:[#allocation3 + $0x4] sm:$0xf0]  ;;  %v7512_v60 = vld [vmem:[#allocation3 + $0x8] sm:$0xf0] }
 0x42d   :  { %v5048_v36 = vsel %vm14496_vm9, %v5047_v24, %v12081_v23  ;;  %v3871_v25 = vsel %vm14497_vm5, %v11997_v56, %v3870_v55  ;;  %v8212_v56 = vld [vmem:[%s13368_s4 + $0x4] sm:$0xf0]  ;;  %v3728_v24 = vrot.slane %v12051_v33, 4  ;;  %v3832_v17 = vor.u32 %v3831_v44, %v12095_v20  ;;  %3990 = vrot.lane.b32.xlu1 %v3978_v49, %s13962_s18  ;;  %v12121_v63 = vpop.permute.xlu0 %3722  ;;  %v12123_v46 = vpop.permute.xlu2 %3631  ;;  %3387 = vmatpush.bf16.msrb.mxu3 %v7523_v3  ;;  %v8256_v50 = vld [vmem:[#allocation3 + $0x4] sm:$0xf]  ;;  %vm14502_vm5 = vmmov %vm14495_vm0  ;;  %s14826_s4 = smov 70  }
 0x42e   :  { %v5059_v6 = vsel %vm9057_vm12, %v5048_v36, %v5058_v32  ;;  %3897 = vst [vmem:[#allocation2 + $0x38] sm:$0x11] %v3871_v25  ;;  %v4512_v32 = vrot.slane %v4510_v37, 5  ;;  %3359 = vmatpush.bf16.msrb.mxu1 %v7519_v13  ;;  %v5329_v4 = vand.u32 %v7736_v58, %v9898_v40  ;;  %v4365_v9 = vshrl.u32 %v14462_v41, 16  ;;  %v12129_v44 = vpop.permute.xlu1 %4567  ;;  %v7510_v36 = vld [vmem:[#allocation3] sm:$0xf] }
 0x42f   :  { %5060 = vst [vmem:[#allocation2 + $0xe8] sm:$0xcc] %v5059_v6  ;;  %v13834_v55 = vrot.slane %v12121_v63, 4  ;;  %v12131_v25 = vor.u32 %v8212_v56, %v7502_v34  ;;  %v14500_v49 = vld [vmem:[#allocation43_spill] sm:$0xff]  ;;  %v4573_v61 = vrot.slane %v12129_v44, 4  ;;  %7581 = vmatmul.msk.bf16.vlgmr.msra.gmra.mxu2 %vm13830_vm7, %v12042_v1  ;;  %v7511_v58 = vor.u32 %v8257_v5, %v7510_v36  ;;  %vm14510_vm7 = vmmov %vm14502_vm5 }
 0x430   :  { %5351 = vmatpush.bf16.msrb.mxu2 %v7676_v31  ;;  %v14499_v31 = vld [vmem:[#allocation20_spill] sm:$0xff]  ;;  %v3562_v6 = vshrl.u32 %v14500_v49, 16  ;;  %v3565_v26 = vshll.u32 %v14500_v49, 16  ;;  %v3713_v41 = vor.u32 %v3711_v29, %v3710_v48  ;;  %v4516_v13 = vor.u32 %v4515_v7, %v4512_v32  ;;  %v3742_v3 = vld [vmem:[#allocation2 + $0x1c] sm:$0x33] }
 0x431   :  { %v4095_v39 = vshrl.u32 %v14499_v31, 16  ;;  %v4098_v37 = vshll.u32 %v14499_v31, 16  ;;  %v3732_v31 = vsel %vm14495_vm0, %v3728_v24, %v13834_v55  ;;  %v4589_v34 = vld [vmem:[#allocation2 + $0xb0] sm:$0x33]  ;;  %v7515_v56 = vor.u32 %v8256_v50, %v7512_v60  ;;  %v7705_v29 = vld [vmem:[#allocation2 + $0xc4] sm:$0xf0] }
 0x432   :  { %v3833_v18 = vrot.slane %v3832_v17, 4  ;;  %v3733_v49 = vsel %vm14496_vm9, %v12051_v33, %v3732_v31  ;;  %v14501_v5 = vrot.slane %v10460_v57, 4  ;;  %3360 = vmatpush.bf16.msrb.mxu1 %v7511_v58  ;;  %v7677_v32 = vld [vmem:[#allocation2 + $0x8c] sm:$0xf0]  ;;  %v4367_v36 = vrot.slane %v4365_v9, 4  ;;  %vm14507_vm9 = vmmov %vm14502_vm5 }
 0x433   :  { %v12141_v28 = vrot.slane %v4095_v39, 6  ;;  %v4100_v7 = vrot.slane %v4098_v37, 7  ;;  %v3743_v24 = vsel %vm9287_vm14, %v3733_v49, %v3742_v3  ;;  %vm14503_vm0 = vcmask 252928   ;;  %3388 = vmatpush.bf16.msrb.mxu3 %v7515_v56  ;;  %v8284_v33 = vld [vmem:[#allocation2 + $0x50] sm:$0xf0]  ;;  %3724 = vrot.lane.b32.xlu0 %v3713_v41, %s8519_s14 }
 0x434   :  { %v4577_v48 = vsel %vm14502_vm5, %v14501_v5, %v4573_v61  ;;  %v3564_v60 = vrot.slane %v3562_v6, 6  ;;  %v3567_v50 = vrot.slane %v3565_v26, 7  ;;  %3744 = vst [vmem:[#allocation2 + $0x1c] sm:$0x33] %v3743_v24  ;;  %v8295_v9 = vld [vmem:[#allocation2 + $0xac] sm:$0xf]  ;;  %3851 = vrot.lane.b32.xlu2 %v3833_v18, %s14384_s25  ;;  %v4368_v3 = vor.u32 %v4367_v36, %v11991_v53 }
 0x435   :  { %v4578_v17 = vsel %vm14503_vm0, %v10460_v57, %v4577_v48  ;;  %v7647_v39 = vld [vmem:[#allocation2 + $0x38] sm:$0xf]  ;;  %3361 = vmatmul.bf16.vlgmr.msrb.gmra.mxu1 %v12131_v25  ;;  %v7708_v57 = vor.u32 %v8295_v9, %v7705_v29  ;;  %v8288_v58 = vld [vmem:[#allocation2 + $0x74] sm:$0xf]  ;;  %4523 = vrot.lane.b32.xlu1 %v4516_v13, %s14468_s16  ;;  %v12161_v6 = vpop.permute.xlu0 %5082  ;;  %v12163_v26 = vpop.permute.xlu2 %4451  ;;  %v4101_v41 = vor.u32 %v4100_v7, %v12141_v28  ;;  %v3584_v48 = vrot.slane %v12079_v16, 4  ;;  %s14819_s16 = smov 111  }
 0x436   :  { %v4590_v31 = vsel %vm8795_vm6, %v4578_v17, %v4589_v34  ;;  %v7648_v37 = vor.u32 %v8284_v33, %v7647_v39  ;;  %3389 = vmatmul.bf16.vlgmr.msrb.gmra.mxu3 %v12131_v25  ;;  %v180_v34 = vld [vmem:[%s13370_s6 + $0x40] sm:$0xf]  ;;  %v5088_v18 = vrot.slane %v12161_v6, 4  ;;  %v12171_v56 = vpop.permute.xlu1 %3578  ;;  %v4457_v13 = vrot.slane %v12163_v26, 4 }
 0x437   :  { %5362 = vmatpush.bf16.msra.mxu3 %v5329_v4  ;;  %4591 = vst [vmem:[#allocation2 + $0xb0] sm:$0x33] %v4590_v31  ;;  %v7680_v4 = vor.u32 %v8288_v58, %v7677_v32  ;;  %v3568_v49 = vor.u32 %v3567_v50, %v3564_v60  ;;  %v3454_v5 = vunpack.c.l.b16 %v180_v34  ;;  %v3585_v28 = vrot.slane %v12171_v56, 4  ;;  %v14504_v29 = vld [vmem:[#allocation59_spill] sm:$0xff]  ;;  %v5103_v50 = vld [vmem:[#allocation2 + $0x104] sm:$0x33] }
 0x438   :  { %5352 = vmatpush.bf16.msrb.mxu2 %v7648_v37  ;;  %v3816_v53 = vshll.u32 %v14504_v29, 16  ;;  %v14505_v32 = vld [vmem:[#allocation63_spill] sm:$0xff]  ;;  %v14506_v36 = vrot.slane %v11062_v12, 4  ;;  %v14508_v17 = vrot.slane %v10390_v30, 4  ;;  %vm14509_vm0 = vcmask 1014784  }
 0x439   :  { %v3979_v7 = vshrl.u32 %v14505_v32, 16  ;;  %v3982_v33 = vshll.u32 %v14505_v32, 16  ;;  %v3463_v60 = vpack.c.b16 %v3454_v5, %v3454_v5  ;;  %v3588_v37 = vsel %vm14510_vm7, %v3584_v48, %v3585_v28  ;;  %v4473_v12 = vld [vmem:[#allocation2 + $0x94] sm:$0x66]  ;;  %v3598_v34 = vld [vmem:[#allocation2] sm:$0x66] }
 0x43a   :  { %v5092_v24 = vsel %vm14507_vm9, %v14506_v36, %v5088_v18  ;;  %v4461_v39 = vsel %vm14502_vm5, %v14508_v17, %v4457_v13  ;;  %vm14511_vm9 = vcmask 490496   ;;  %vm14512_vm5 = vcmask 1039360   ;;  %v8281_v36 = vld [vmem:[#allocation2 + $0x3c] sm:$0xf] }
 0x43b   :  { %5363 = vmatpush.bf16.msra.mxu3 %v7708_v57  ;;  %v5093_v31 = vsel %vm14509_vm0, %v5092_v24, %v12161_v6  ;;  %v4462_v9 = vsel %vm14511_vm9, %v10390_v30, %v4461_v39  ;;  %v4369_v57 = vrot.slane %v4368_v3, 4  ;;  %v3589_v5 = vsel %vm14512_vm5, %v12079_v16, %v3588_v37  ;;  %vm14513_vm0 = vmmov %vm14510_vm7  ;;  %4108 = vrot.lane.b32.xlu0 %v4101_v41, %s13959_s0  ;;  %v7649_v16 = vld [vmem:[#allocation2 + $0x54] sm:$0xf0]  ;;  %s14828_s0 = smov 110  }
 0x43c   :  { %v5104_v58 = vsel %vm8795_vm6, %v5093_v31, %v5103_v50  ;;  %v4474_v32 = vsel %vm14202_vm13, %v4462_v9, %v4473_v12  ;;  %v12203_v24 = vsel %vm14513_vm0, %v3463_v60, 0  ;;  %v3599_v48 = vsel %vm13980_vm15, %v3589_v5, %v3598_v34  ;;  %3580 = vrot.lane.b32.xlu2 %v3568_v49, %s14385_s26  ;;  %vm14515_vm7 = vmmov %vm14513_vm0  ;;  %v4209_v34 = vld [vmem:[#allocation2 + $0x78] sm:$0x11] }
 0x43d   :  { %5105 = vst [vmem:[#allocation2 + $0x104] sm:$0x33] %v5104_v58  ;;  %v3818_v30 = vrot.slane %v3816_v53, 5  ;;  %v3981_v3 = vrot.slane %v3979_v7, 5  ;;  %v3984_v17 = vrot.slane %v3982_v33, 6  ;;  %v3834_v39 = vshrl.u32 %v14504_v29, 16  ;;  %3501 = vmatpush.bf16.msra.mxu1 %v12203_v24  ;;  %4384 = vrot.lane.b32.xlu1 %v4369_v57, %s14473_s17  ;;  %v12212_v50 = vpop.permute.xlu0 %4168  ;;  %vm14517_vm9 = vmmov %vm14513_vm0 }
 0x43e   :  { %3600 = vst [vmem:[#allocation2] sm:$0x66] %v3599_v48  ;;  %v7652_v60 = vor.u32 %v8281_v36, %v7649_v16  ;;  %v4178_v41 = vrot.slane %v12212_v50, 4  ;;  %v12217_v53 = vpop.permute.xlu1 %8458  ;;  %v14514_v31 = vrot.slane %v10383_v42, 4  ;;  %v14516_v12 = vrot.slane %v10709_v45, 4  ;;  %v8213_v6 = vld [vmem:[%s13370_s6] sm:$0xff] }
 0x43f   :  { %5364 = vmatpush.bf16.msra.mxu3 %v7680_v4  ;;  %4475 = vst [vmem:[#allocation2 + $0x94] sm:$0x66] %v4474_v32  ;;  %v12214_v4 = vpop.permute.xlu2 %4901  ;;  %v13833_v7 = vunpack.i.h.bf16 %v12217_v53  ;;  %v8460_v29 = vunpack.i.l.bf16 %v12217_v53  ;;  %v8472_v33 = vpack.i.bf16 %v3818_v30, %v12095_v20  ;;  %v3985_v57 = vor.u32 %v3984_v17, %v3981_v3  ;;  %s14820_s17 = smov 82  }
 0x440   :  { %v4911_v49 = vrot.slane %v12214_v4, 4  ;;  %v4189_v37 = vsel %vm14515_vm7, %v14514_v31, %v4178_v41  ;;  %v3836_v58 = vrot.slane %v3834_v39, 4  ;;  %vm14518_vm5 = vcmask 523264  }
 0x441   :  { %v4190_v5 = vsel %vm14518_vm5, %v10383_v42, %v4189_v37  ;;  %v12237_v20 = vrot.slane %v13833_v7, 4  ;;  %v3855_v32 = vrot.slane %v8460_v29, 4  ;;  %vm14519_vm0 = vcmask 1039360   ;;  %v3885_v42 = vld [vmem:[#allocation2 + $0x1c] sm:$0x88]  ;;  %vm14524_vm5 = vmmov %vm14515_vm7 }
 0x442   :  { %v4921_v9 = vsel %vm14517_vm9, %v14516_v12, %v4911_v49  ;;  %v4210_v48 = vsel %vm14197_vm10, %v4190_v5, %v4209_v34  ;;  %v14520_v3 = vrot.slane %v14433_v43, 5  ;;  %vm14521_vm9 = vcmask 785408   ;;  %v14523_v5 = vld [vmem:[#allocation50_spill] sm:$0xff] }
 0x443   :  { %5365 = vmatpush.bf16.msra.mxu3 %v7652_v60  ;;  %v4922_v36 = vsel %vm14519_vm0, %v4921_v9, %v12214_v4  ;;  %4211 = vst [vmem:[#allocation2 + $0x78] sm:$0x11] %v4210_v48  ;;  %v3863_v45 = vsel %vm14515_vm7, %v3855_v32, %v12237_v20  ;;  %v3837_v17 = vor.u32 %v3836_v58, %v3818_v30  ;;  %v3646_v39 = vrot.slane %v12123_v46, 4  ;;  %vm14527_vm7 = vmmov %vm14524_vm5 }
 0x444   :  { %4946 = vst [vmem:[#allocation2 + $0xe8] sm:$0x11] %v4922_v36  ;;  %4162 = vrot.lane.b32.xlu0 %v14520_v3, %s14391_s29  ;;  %v3864_v16 = vsel %vm14521_vm9, %v8460_v29, %v3863_v45  ;;  %3992 = vrot.lane.b32.xlu2 %v3985_v57, %s13962_s18  ;;  %v8220_v29 = vld [vmem:[%s13370_s6 + $0x38] sm:$0xff]  ;;  %v14522_v57 = vld [vmem:[#allocation44_spill] sm:$0xff]  ;;  %v3714_v32 = vshrl.u32 %v14523_v5, 16  ;;  %vm14525_vm0 = vcmask 252928  }
 0x445   :  { %v3886_v60 = vsel %vm9356_vm4, %v3864_v16, %v3885_v42  ;;  %8473 = vrot.lane.b32.xlu1 %v8472_v33, %s14384_s25  ;;  %v4570_v31 = vpop.permute.xlu0 %4569  ;;  %v3569_v58 = vshrl.u32 %v14522_v57, 16  ;;  %v3572_v34 = vshll.u32 %v14522_v57, 16  ;;  %v4592_v33 = vld [vmem:[#allocation2 + $0xb8] sm:$0x33]  ;;  %v4595_v36 = vld [vmem:[#allocation2 + $0xc0] sm:$0x3]  ;;  %3480 = vmatpush.bf16.msra.mxu0 %v8220_v29  ;;  %vm14528_vm9 = vmmov %vm14525_vm0 }
 0x446   :  { %3887 = vst [vmem:[#allocation2 + $0x1c] sm:$0x88] %v3886_v60  ;;  %v4574_v12 = vrot.slane %v4570_v31, 4  ;;  %v3630_v43 = vpop.permute.xlu1 %3629  ;;  %v14526_v3 = vrot.slane %v10463_v0, 4  ;;  %v3838_v16 = vrot.slane %v3837_v17, 4  ;;  %v8219_v60 = vld [vmem:[%s13370_s6 + $0x30] sm:$0xff] }
 0x447   :  { %v12254_v37 = vpop.permute.xlu2 %3920  ;;  %v3645_v30 = vrot.slane %v3630_v43, 4  ;;  %v8306_v29 = vld [vmem:[#allocation2 + $0x100] sm:$0x30]  ;;  %s14830_s18 = smov 113   ;;  %s14831_s29 = smov 112  }
 0x448   :  { %v3926_v9 = vrot.slane %v12254_v37, 4  ;;  %v4579_v48 = vsel %vm14524_vm5, %v4573_v61, %v4574_v12  ;;  %v4581_v45 = vsel %vm14525_vm0, %v4570_v31, %v4574_v12  ;;  %v3942_v12 = vld [vmem:[#allocation2 + $0x40] sm:$0x66]  ;;  %vm14530_vm0 = vcmask 777216  }
 0x449   :  { %v4580_v57 = vsel %vm14528_vm9, %v12129_v44, %v4579_v48  ;;  %v4596_v61 = vsel %vm14529_vm11, %v4581_v45, %v4595_v36  ;;  %v3653_v31 = vsel %vm14524_vm5, %v3645_v30, %v3646_v39  ;;  %v14532_v30 = vrot.slane %v14482_v14, 5  ;;  %3481 = vmatpush.bf16.msra.mxu0 %v8219_v60  ;;  %v8218_v60 = vld [vmem:[%s13370_s6 + $0x28] sm:$0xff]  ;;  %vm14535_vm9 = vmmov %vm14524_vm5 }
 0x44a   :  { %v3930_v42 = vsel %vm14527_vm7, %v14526_v3, %v3926_v9  ;;  %v4593_v7 = vsel %vm8795_vm6, %v4580_v57, %v4592_v33  ;;  %4597 = vst [vmem:[#allocation2 + $0xc0] sm:$0x3] %v4596_v61  ;;  %vm14531_vm7 = vcmask 1031168   ;;  %v3571_v48 = vrot.slane %v3569_v58, 6  ;;  %vm14540_vm1 = vmmov %vm14535_vm9 }
 0x44b   :  { %v3931_v3 = vsel %vm14530_vm0, %v10463_v0, %v3930_v42  ;;  %v7739_v17 = vld [vmem:[#allocation2 + $0xe8] sm:$0xf]  ;;  %v3654_v55 = vsel %vm14531_vm7, %v3630_v43, %v3653_v31  ;;  %4594 = vst [vmem:[#allocation2 + $0xb8] sm:$0x33] %v4593_v7  ;;  %v3574_v45 = vrot.slane %v3572_v34, 7  ;;  %v3716_v0 = vrot.slane %v3714_v32, 7  ;;  %vm14541_vm8 = vmmov %vm14540_vm1 }
 0x44c   :  { %v3943_v44 = vsel %vm14202_vm13, %v3931_v3, %v3942_v12  ;;  %v7740_v36 = vor.u32 %v8306_v29, %v7739_v17  ;;  %3635 = vrot.lane.b32.xlu0 %v14532_v30, %s8518_s30  ;;  %v3717_v42 = vshll.u32 %v14523_v5, 16  ;;  %3673 = vst [vmem:[#allocation2] sm:$0x88] %v3654_v55  ;;  %3853 = vrot.lane.b32.xlu2 %v3838_v16, %s14384_s25  ;;  %v14533_v43 = vrot.slane %v14444_v47, 5  ;;  %v8303_v14 = vld [vmem:[#allocation2 + $0xec] sm:$0xf] }
 0x44d   :  { %3944 = vst [vmem:[#allocation2 + $0x40] sm:$0x66] %v3943_v44  ;;  %v5040_v7 = vpop.permute.xlu0 %5039  ;;  %v5064_v32 = vld [vmem:[#allocation2 + $0xf8] sm:$0xc]  ;;  %v3575_v55 = vor.u32 %v3574_v45, %v3571_v48  ;;  %v7741_v16 = vld [vmem:[#allocation2 + $0x104] sm:$0x30]  ;;  %vm14536_vm5 = vnez %v14051_v27  ;;  %3482 = vmatpush.bf16.msra.mxu0 %v8218_v60 }
 0x44e   :  { %v5332_v33 = vand.u32 %v7740_v36, %v9898_v40  ;;  %3633 = vrot.lane.b32.xlu1 %v14533_v43, %s8518_s30  ;;  %v5044_v61 = vrot.slane %v5040_v7, 4  ;;  %v4301_v58 = vpop.permute.xlu1 %4300  ;;  %v3719_v31 = vor.u32 %v3717_v42, %v3716_v0  ;;  %v14534_v12 = vrot.slane %v12081_v23, 4  ;;  %v4322_v17 = vld [vmem:[#allocation2 + $0x78] sm:$0xcc]  ;;  %v4325_v29 = vld [vmem:[#allocation2 + $0x80] sm:$0xcc] }
 0x44f   :  { %v4303_v57 = vpop.permute.xlu2 %4302  ;;  %v4306_v5 = vrot.slane %v4301_v58, 4  ;;  %v4328_v44 = vld [vmem:[#allocation2 + $0x88] sm:$0xc]  ;;  %vm14537_vm0 = vcmask 506880   ;;  %v7744_v30 = vor.u32 %v8303_v14, %v7741_v16  ;;  %v5061_v48 = vld [vmem:[#allocation2 + $0xf0] sm:$0xcc] }
 0x450   :  { %v4307_v34 = vrot.slane %v4303_v57, 4  ;;  %5375 = vmatpush.bf16.msrb.mxu1 %v5332_v33  ;;  %v5049_v47 = vsel %vm14535_vm9, %v14534_v12, %v5044_v61  ;;  %v5065_v3 = vsel %vm14536_vm5, %v5044_v61, %v5064_v32  ;;  %vm14538_vm7 = vcmask 1022976   ;;  %v8277_v43 = vld [vmem:[#allocation2 + $0x18] sm:$0xf0]  ;;  %vm14543_vm2 = vmmov %vm14537_vm0 }
 0x451   :  { %v5050_v45 = vsel %vm14538_vm7, %v5049_v47, %v5040_v7  ;;  %5066 = vst [vmem:[#allocation2 + $0xf8] sm:$0xc] %v5065_v3  ;;  %v14539_v0 = vrot.slane %v10442_v54, 4  ;;  %vm14542_vm9 = vnez %v13901_v59  ;;  %v7621_v7 = vld [vmem:[#allocation2 + $0x1c] sm:$0xf0]  ;;  %v8217_v32 = vld [vmem:[%s13370_s6 + $0x20] sm:$0xff]  ;;  %v5335_v47 = vand.u32 %v7744_v30, %v9898_v40 }
 0x452   :  { %v4314_v36 = vsel %vm14537_vm0, %v4303_v57, %v4307_v34  ;;  %v4312_v23 = vsel %vm14541_vm8, %v4306_v5, %v4307_v34  ;;  %v5062_v61 = vsel %vm9057_vm12, %v5050_v45, %v5061_v48  ;;  %vm14544_vm8 = vnez %v13878_v2  ;;  %3483 = vmatpush.bf16.msra.mxu0 %v8217_v32 }
 0x453   :  { %v4310_v42 = vsel %vm14540_vm1, %v14539_v0, %v4306_v5  ;;  %v4329_v33 = vsel %vm14542_vm9, %v4314_v36, %v4328_v44  ;;  %v4313_v14 = vsel %vm14543_vm2, %v4301_v58, %v4312_v23  ;;  %5063 = vst [vmem:[#allocation2 + $0xf0] sm:$0xcc] %v5062_v61  ;;  %v7619_v16 = vld [vmem:[#allocation2] sm:$0xf]  ;;  %v8274_v12 = vld [vmem:[#allocation2 + $0x4] sm:$0xf]  ;;  %vm14546_vm2 = vmmov %vm14540_vm1 }
 0x454   :  { %v4311_v57 = vsel %vm14537_vm0, %v10442_v54, %v4310_v42  ;;  %4330 = vst [vmem:[#allocation2 + $0x88] sm:$0xc] %v4329_v33  ;;  %v4326_v5 = vsel %vm14544_vm8, %v4313_v14, %v4325_v29  ;;  %3726 = vrot.lane.b32.xlu2 %v3719_v31, %s8519_s14  ;;  %v7620_v54 = vor.u32 %v8277_v43, %v7619_v16  ;;  %v14545_v31 = vrot.slane %v10348_v51, 4  ;;  %v4058_v0 = vld [vmem:[#allocation2 + $0x5c] sm:$0x33]  ;;  %vm14550_vm0 = vmmov %vm14540_vm1 }
 0x455   :  { %v4323_v34 = vsel %vm14544_vm8, %v4311_v57, %v4322_v17  ;;  %v7624_v58 = vor.u32 %v8274_v12, %v7621_v7  ;;  %4327 = vst [vmem:[#allocation2 + $0x80] sm:$0xcc] %v4326_v5  ;;  %v12328_v60 = vpop.permute.xlu0 %4036  ;;  %v14547_v48 = vrot.slane %v10479_v38, 4  ;;  %vm14548_vm7 = vcmask 760832   ;;  %v4746_v23 = vld [vmem:[#allocation2 + $0xdc] sm:$0x1] }
 0x456   :  { %4324 = vst [vmem:[#allocation2 + $0x78] sm:$0xcc] %v4323_v34  ;;  %3582 = vrot.lane.b32.xlu1 %v3575_v55, %s14385_s26  ;;  %5353 = vmatpush.bf16.msrb.mxu2 %v7620_v54  ;;  %v4042_v17 = vrot.slane %v12328_v60, 4  ;;  %v4702_v29 = vpop.permute.xlu1 %4701  ;;  %v8216_v55 = vld [vmem:[%s13370_s6 + $0x18] sm:$0xff]  ;;  %v14549_v33 = vrot.slane %v12014_v21, 4  ;;  %vm14552_vm5 = vcmask 244736  }
 0x457   :  { %v12331_v3 = vpop.permute.xlu2 %4637  ;;  %5366 = vmatpush.bf16.msra.mxu3 %v7624_v58  ;;  %v4710_v36 = vrot.slane %v4702_v29, 4  ;;  %v12359_v14 = vld [vmem:[%s13365_s1] sm:$0x7]  ;;  %v14555_v34 = vld [vmem:[#allocation40_spill] sm:$0xff]  ;;  %v4659_v16 = vld [vmem:[#allocation2 + $0xb0] sm:$0x66]  ;;  %3484 = vmatpush.bf16.msra.mxu0 %v8216_v55 }
 0x458   :  { %v4643_v44 = vrot.slane %v12331_v3, 4  ;;  %v4046_v30 = vsel %vm14546_vm2, %v14545_v31, %v4042_v17  ;;  %vm14553_vm2 = vcmask 613376   ;;  %v4743_v7 = vld [vmem:[#allocation2 + $0xd4] sm:$0x11]  ;;  %v8215_v54 = vld [vmem:[%s13370_s6 + $0x10] sm:$0xff]  ;;  %s14825_s1 = smov 97  }
 0x459   :  { %v4047_v42 = vsel %vm14548_vm7, %v10348_v51, %v4046_v30  ;;  %v4722_v43 = vsel %vm14550_vm0, %v14549_v33, %v4710_v36  ;;  %v4724_v61 = vsel %vm14551_vm3, %v4702_v29, %v4710_v36  ;;  %7757 = vmatmul.msk.bf16.vlgmr.msrb.gmra.mxu2 %vm14553_vm2, %v12359_v14  ;;  %v4479_v30 = vld [vmem:[#allocation2 + $0xa4] sm:$0x6]  ;;  %vm14558_vm7 = vmmov %vm14550_vm0  ;;  %vm14559_vm0 = vcmask 490496   ;;  %v4476_v33 = vld [vmem:[#allocation2 + $0x9c] sm:$0x66] }
 0x45a   :  { %5388 = vmatpush.bf16.msra.mxu2 %v5335_v47  ;;  %v4647_v45 = vsel %vm14540_vm1, %v14547_v48, %v4643_v44  ;;  %v4059_v51 = vsel %vm8795_vm6, %v4047_v42, %v4058_v0  ;;  %vm14554_vm1 = vmmov %vm14551_vm3  ;;  %vm14556_vm3 = vnez %v14555_v34 }
 0x45b   :  { %v4648_v57 = vsel %vm14552_vm5, %v10479_v38, %v4647_v45  ;;  %v4723_v32 = vsel %vm14554_vm1, %v12014_v21, %v4722_v43  ;;  %v4747_v5 = vsel %vm14556_vm3, %v4724_v61, %v4746_v23  ;;  %vm14557_vm5 = vmmov %vm14553_vm2  ;;  %4060 = vst [vmem:[#allocation2 + $0x5c] sm:$0x33] %v4059_v51  ;;  %3485 = vmatpush.bf16.msra.mxu0 %v8215_v54  ;;  %v14560_v45 = vld [vmem:[#allocation39_spill] sm:$0xff]  ;;  %v14564_v61 = vld [vmem:[#allocation58_spill] sm:$0xff] }
 0x45c   :  { %7758 = vmatmul.msk.bf16.vlgmr.msra.gmra.mxu3 %vm14557_vm5, %v12359_v14  ;;  %v4744_v38 = vsel %vm14197_vm10, %v4723_v32, %v4743_v7  ;;  %v4660_v12 = vsel %vm13980_vm15, %v4648_v57, %v4659_v16  ;;  %4748 = vst [vmem:[#allocation2 + $0xdc] sm:$0x1] %v4747_v5  ;;  %v14561_v0 = vrot.slane %v14560_v45, 4  ;;  %vm14562_vm2 = vmmov %vm14558_vm7  ;;  %v8214_v23 = vld [vmem:[%s13370_s6 + $0x8] sm:$0xff]  ;;  %vm14565_vm5 = vnez %v14564_v61  ;;  %v5106_v32 = vld [vmem:[#allocation2 + $0x10c] sm:$0x33] }
 0x45d   :  { %4745 = vst [vmem:[#allocation2 + $0xd4] sm:$0x11] %v4744_v38  ;;  %v4454_v21 = vpop.permute.xlu0 %4453  ;;  %vm14563_vm1 = vmmov %vm14559_vm0  ;;  %vm14576_vm15 = vcmask 523264  }
 0x45e   :  { %4661 = vst [vmem:[#allocation2 + $0xb0] sm:$0x66] %v4660_v12  ;;  %v4458_v47 = vrot.slane %v4454_v21, 4  ;;  %v5085_v29 = vpop.permute.xlu1 %5084 }
 0x45f   :  { %v12378_v58 = vpop.permute.xlu2 %4691  ;;  %v5089_v31 = vrot.slane %v5085_v29, 4  ;;  %3486 = vmatpush.bf16.msra.mxu0 %v8214_v23  ;;  %v4215_v23 = vld [vmem:[#allocation2 + $0x88] sm:$0x1] }
 0x460   :  { %v4705_v36 = vrot.slane %v12378_v58, 4  ;;  %v4463_v55 = vsel %vm14558_vm7, %v4457_v13, %v4458_v47  ;;  %v4465_v48 = vsel %vm14559_vm0, %v4454_v21, %v4458_v47  ;;  %v5109_v13 = vld [vmem:[#allocation2 + $0x114] sm:$0x3]  ;;  %vm14566_vm7 = vmmov %vm14562_vm2  ;;  %vm14567_vm0 = vcmask 1014784  }
 0x461   :  { %v4464_v43 = vsel %vm14563_vm1, %v12163_v26, %v4463_v55  ;;  %v4480_v57 = vsel %vm14565_vm5, %v4465_v48, %v4479_v30  ;;  %v5094_v51 = vsel %vm14566_vm7, %v5088_v18, %v5089_v31  ;;  %v5110_v16 = vsel %vm14529_vm11, %v5089_v31, %v5109_v13  ;;  %v14569_v31 = vld [vmem:[#allocation79_spill] sm:$0xff]  ;;  %vm14571_vm1 = vmmov %vm14566_vm7 }
 0x462   :  { %v4713_v42 = vsel %vm14562_vm2, %v14561_v0, %v4705_v36  ;;  %v4477_v7 = vsel %vm14202_vm13, %v4464_v43, %v4476_v33  ;;  %4481 = vst [vmem:[#allocation2 + $0xa4] sm:$0x6] %v4480_v57  ;;  %v5095_v5 = vsel %vm14567_vm0, %v5094_v51, %v5085_v29  ;;  %vm14568_vm2 = vcmask 236544   ;;  %vm14572_vm7 = vmmov %vm14571_vm1 }
 0x463   :  { %4478 = vst [vmem:[#allocation2 + $0x9c] sm:$0x66] %v4477_v7  ;;  %v5107_v26 = vsel %vm8795_vm6, %v5095_v5, %v5106_v32  ;;  %v4714_v38 = vsel %vm14568_vm2, %v14560_v45, %v4713_v42  ;;  %3487 = vmatpush.bf16.msra.mxu0 %v8213_v6  ;;  %v14570_v30 = vrot.slane %v14569_v31, 4  ;;  %vm14573_vm0 = vcmask 777216   ;;  %v4806_v42 = vld [vmem:[#allocation2 + $0xcc] sm:$0x33]  ;;  %vm14575_vm9 = vmmov %vm14571_vm1 }
 0x464   :  { %5108 = vst [vmem:[#allocation2 + $0x10c] sm:$0x33] %v5107_v26  ;;  %vm14574_vm2 = vcmask 228352   ;;  %vm14577_vm8 = vmmov %vm14573_vm0  ;;  %v3945_v32 = vld [vmem:[#allocation2 + $0x48] sm:$0x66] }
 0x465   :  { %5111 = vst [vmem:[#allocation2 + $0x114] sm:$0x3] %v5110_v16  ;;  %v12412_v18 = vpop.permute.xlu0 %4784  ;;  %v3948_v5 = vld [vmem:[#allocation2 + $0x50] sm:$0x6] }
 0x466   :  { %4734 = vst [vmem:[#allocation2 + $0xb0] sm:$0x88] %v4714_v38  ;;  %v4790_v54 = vrot.slane %v12412_v18, 4  ;;  %v4171_v21 = vpop.permute.xlu1 %4170 }
 0x467   :  { %v3923_v12 = vpop.permute.xlu2 %3922  ;;  %v4179_v29 = vrot.slane %v4171_v21, 4 }
 0x468   :  { %v3927_v47 = vrot.slane %v3923_v12, 4  ;;  %v4794_v55 = vsel %vm14571_vm1, %v14570_v30, %v4790_v54  ;;  %vm14578_vm1 = vmmov %vm14576_vm15 }
 0x469   :  { %v4795_v0 = vsel %vm14574_vm2, %v14569_v31, %v4794_v55  ;;  %v4191_v33 = vsel %vm14575_vm9, %v4178_v41, %v4179_v29  ;;  %v4193_v43 = vsel %vm14576_vm15, %v4171_v21, %v4179_v29  ;;  %v14580_v29 = vrot.slane %v14579_v62, 4  ;;  %vm14581_vm15 = vmmov %vm14572_vm7  ;;  %v3680_v55 = vld [vmem:[#allocation2 + $0x24] sm:$0x11] }
 0x46a   :  { %v3932_v48 = vsel %vm14572_vm7, %v3926_v9, %v3927_v47  ;;  %v3934_v45 = vsel %vm14573_vm0, %v3923_v12, %v3927_v47  ;;  %v4807_v13 = vsel %vm9287_vm14, %v4795_v0, %v4806_v42  ;;  %v4212_v9 = vld [vmem:[#allocation2 + $0x80] sm:$0x11]  ;;  %v4192_v51 = vsel %vm14578_vm1, %v12212_v50, %v4191_v33  ;;  %vm14583_vm9 = vmmov %vm14572_vm7 }
 0x46b   :  { %v3933_v57 = vsel %vm14577_vm8, %v12254_v37, %v3932_v48  ;;  %v4216_v7 = vsel %vm14556_vm3, %v4193_v43, %v4215_v23  ;;  %4808 = vst [vmem:[#allocation2 + $0xcc] sm:$0x33] %v4807_v13  ;;  %v4213_v41 = vsel %vm14197_vm10, %v4192_v51, %v4212_v9  ;;  %v3949_v37 = vsel %vm14565_vm5, %v3934_v45, %v3948_v5  ;;  %v4425_v23 = vld [vmem:[#allocation2 + $0x88] sm:$0x8]  ;;  %v14587_v43 = vld [vmem:[#allocation102_spill] sm:$0xff]  ;;  %vm14588_vm0 = vmmov %vm14583_vm9 }
 0x46c   :  { %v3946_v16 = vsel %vm14202_vm13, %v3933_v57, %v3945_v32  ;;  %4214 = vst [vmem:[#allocation2 + $0x80] sm:$0x11] %v4213_v41  ;;  %vm14582_vm13 = vcmask 1031168   ;;  %vm14584_vm8 = vcmask 1007616   ;;  %vm14585_vm5 = vcmask 1039360   ;;  %v14589_v9 = vld [vmem:[#allocation23_spill] sm:$0xff] }
 0x46d   :  { %4217 = vst [vmem:[#allocation2 + $0x88] sm:$0x1] %v4216_v7  ;;  %v12444_v26 = vpop.permute.xlu0 %3641  ;;  %vm14586_vm7 = vcmask 498688   ;;  %v4419_v13 = vld [vmem:[#allocation2 + $0x78] sm:$0x88]  ;;  %vm14590_vm2 = vnez %v14589_v9  ;;  %v14591_v51 = vld [vmem:[#allocation97_spill] sm:$0xff] }
 0x46e   :  { %3947 = vst [vmem:[#allocation2 + $0x48] sm:$0x66] %v3946_v16  ;;  %v3651_v38 = vrot.slane %v12444_v26, 4  ;;  %v4904_v6 = vpop.permute.xlu1 %4903  ;;  %vm14593_vm1 = vmmov %vm14586_vm7  ;;  %v4422_v41 = vld [vmem:[#allocation2 + $0x80] sm:$0x88] }
 0x46f   :  { %v8469_v50 = vpop.permute.xlu2 %8468  ;;  %3950 = vst [vmem:[#allocation2 + $0x50] sm:$0x6] %v3949_v37  ;;  %v4912_v47 = vrot.slane %v4904_v6, 4 }
 0x470   :  { %v8471_v12 = vunpack.i.h.bf16 %v8469_v50  ;;  %v8470_v21 = vunpack.i.l.bf16 %v8469_v50  ;;  %v3661_v31 = vsel %vm14581_vm15, %v14580_v29, %v3651_v38  ;;  %vm14594_vm15 = vmmov %vm14588_vm0 }
 0x471   :  { %v3662_v48 = vsel %vm14582_vm13, %v14579_v62, %v3661_v31  ;;  %v4923_v45 = vsel %vm14583_vm9, %v4911_v49, %v4912_v47  ;;  %4948 = vst.msk [vmem:[#allocation2 + $0xf8] sm:$0x1] %vm14584_vm8, %v4912_v47  ;;  %v14592_v49 = vunpack.i.h.bf16 %v14591_v51  ;;  %vm14595_vm13 = vmmov %vm14593_vm1  ;;  %vm14597_vm8 = vcmask 760832   ;;  %v7749_v51 = vld [vmem:[#allocation2 + $0x10c] sm:$0x30] }
 0x472   :  { %v4389_v61 = vrot.slane %v8471_v12, 4  ;;  %v4388_v30 = vrot.slane %v8470_v21, 4  ;;  %v3681_v0 = vsel %vm14197_vm10, %v3662_v48, %v3680_v55  ;;  %v4924_v42 = vsel %vm14585_vm5, %v4923_v45, %v4904_v6  ;;  %vm14596_vm9 = vmmov %vm14588_vm0 }
 0x473   :  { %3682 = vst [vmem:[#allocation2 + $0x24] sm:$0x11] %v3681_v0  ;;  %vm14598_vm5 = vmmov %vm14588_vm0 }
 0x474   :  { %v4400_v33 = vsel %vm14586_vm7, %v8471_v12, %v4389_v61  ;;  %v4396_v57 = vsel %vm14588_vm0, %v14587_v43, %v4388_v30  ;;  %v4398_v32 = vsel %vm14594_vm15, %v4388_v30, %v4389_v61  ;;  %4947 = vst [vmem:[#allocation2 + $0xf0] sm:$0x11] %v4924_v42  ;;  %v4061_v61 = vld [vmem:[#allocation2 + $0x64] sm:$0x33]  ;;  %v4064_v30 = vld [vmem:[#allocation2 + $0x6c] sm:$0x3]  ;;  %vm14599_vm7 = vmmov %vm14597_vm8 }
 0x475   :  { %v4426_v4 = vsel %vm14590_vm2, %v4400_v33, %v4425_v23  ;;  %v4397_v7 = vsel %vm14593_vm1, %v14592_v49, %v4396_v57  ;;  %v4399_v5 = vsel %vm14595_vm13, %v8470_v21, %v4398_v32  ;;  %v4039_v50 = vpop.permute.xlu0 %4038  ;;  %v4942_v42 = vld [vmem:[#allocation2 + $0xdc] sm:$0x8]  ;;  %v4809_v43 = vld [vmem:[#allocation2 + $0xd4] sm:$0x33]  ;;  %vm14600_vm0 = vcmask 228352   ;;  %vm14604_vm15 = vmmov %vm14598_vm5 }
 0x476   :  { %v4420_v16 = vsel %vm9356_vm4, %v4397_v7, %v4419_v13  ;;  %4427 = vst [vmem:[#allocation2 + $0x88] sm:$0x8] %v4426_v4  ;;  %v4423_v37 = vsel %vm9356_vm4, %v4399_v5, %v4422_v41  ;;  %v4043_v12 = vrot.slane %v4039_v50, 4  ;;  %v8464_v47 = vpop.permute.xlu1 %8463  ;;  %vm14601_vm1 = vmmov %vm14600_vm0  ;;  %v8307_v4 = vld [vmem:[#allocation2 + $0x108] sm:$0x30] }
 0x477   :  { %v4787_v6 = vpop.permute.xlu2 %4786  ;;  %4421 = vst [vmem:[#allocation2 + $0x78] sm:$0x88] %v4420_v16  ;;  %v8466_v29 = vunpack.i.h.bf16 %v8464_v47  ;;  %v8465_v31 = vunpack.i.l.bf16 %v8464_v47  ;;  %v4939_v5 = vld [vmem:[#allocation2 + $0xd4] sm:$0x88] }
 0x478   :  { %v4791_v62 = vrot.slane %v4787_v6, 4  ;;  %4424 = vst [vmem:[#allocation2 + $0x80] sm:$0x88] %v4423_v37  ;;  %v4048_v21 = vsel %vm14596_vm9, %v4042_v17, %v4043_v12  ;;  %v4050_v55 = vsel %vm14597_vm8, %v4039_v50, %v4043_v12  ;;  %v4936_v17 = vld [vmem:[#allocation2 + $0xcc] sm:$0x88]  ;;  %vm14611_vm8 = vmmov %vm14598_vm5 }
 0x479   :  { %v4049_v45 = vsel %vm14599_vm7, %v12328_v60, %v4048_v21  ;;  %v4065_v0 = vsel %vm14529_vm11, %v4050_v55, %v4064_v30  ;;  %v4908_v23 = vrot.slane %v8466_v29, 4  ;;  %v4907_v33 = vrot.slane %v8465_v31, 4  ;;  %v14602_v60 = vld [vmem:[#allocation86_spill] sm:$0xff]  ;;  %vm14603_vm11 = vmmov %vm14598_vm5  ;;  %v4812_v37 = vld [vmem:[#allocation2 + $0xdc] sm:$0x3] }
 0x47a   :  { %v4796_v48 = vsel %vm14598_vm5, %v4790_v54, %v4791_v62  ;;  %v4062_v57 = vsel %vm8795_vm6, %v4049_v45, %v4061_v61  ;;  %4066 = vst [vmem:[#allocation2 + $0x6c] sm:$0x3] %v4065_v0  ;;  %v4798_v54 = vsel %vm14601_vm1, %v4787_v6, %v4791_v62  ;;  %vm14605_vm6 = vcmask 1039360   ;;  %v14607_v62 = vld [vmem:[#allocation72_spill] sm:$0xff]  ;;  %v3686_v21 = vld [vmem:[#allocation2 + $0x34] sm:$0x1] }
 0x47b   :  { %v4797_v13 = vsel %vm14600_vm0, %v12412_v18, %v4796_v48  ;;  %4063 = vst [vmem:[#allocation2 + $0x64] sm:$0x33] %v4062_v57  ;;  %v4943_v8 = vsel %vm14590_vm2, %v4908_v23, %v4942_v42  ;;  %v4915_v49 = vsel %vm14603_vm11, %v14602_v60, %v4907_v33  ;;  %v4917_v7 = vsel %vm14604_vm15, %v4907_v33, %v4908_v23  ;;  %v7747_v32 = vld [vmem:[#allocation2 + $0xf0] sm:$0xf]  ;;  %v8304_v41 = vld [vmem:[#allocation2 + $0xf4] sm:$0xf]  ;;  %vm14606_vm13 = vmmov %vm14605_vm6 }
 0x47c   :  { %v4810_v35 = vsel %vm9287_vm14, %v4797_v13, %v4809_v43  ;;  %4944 = vst [vmem:[#allocation2 + $0xdc] sm:$0x8] %v4943_v8  ;;  %v4916_v18 = vsel %vm14605_vm6, %v4915_v49, %v8465_v31  ;;  %v4918_v16 = vsel %vm14606_vm13, %v4917_v7, %v8466_v29  ;;  %v7748_v50 = vor.u32 %v8307_v4, %v7747_v32  ;;  %v14609_v23 = vld [vmem:[#allocation113_spill] sm:$0xff]  ;;  %v4543_v13 = vld [vmem:[#allocation2 + $0x94] sm:$0xcc]  ;;  %vm14616_vm0 = vmmov %vm14598_vm5 }
 0x47d   :  { %v7752_v6 = vor.u32 %v8304_v41, %v7749_v51  ;;  %v4937_v12 = vsel %vm9356_vm4, %v4916_v18, %v4936_v17  ;;  %v4940_v47 = vsel %vm9356_vm4, %v4918_v16, %v4939_v5  ;;  %4811 = vst [vmem:[#allocation2 + $0xd4] sm:$0x33] %v4810_v35  ;;  %vm14608_vm9 = vnez %v14607_v62  ;;  %v12506_v30 = vpop.permute.xlu0 %4521  ;;  %v14614_v8 = vld [vmem:[#allocation38_spill] sm:$0xff]  ;;  %v3791_v7 = vld [vmem:[#allocation2 + $0x24] sm:$0xcc]  ;;  %vm14624_vm15 = vmmov %vm14616_vm0 }
 0x47e   :  { %v4813_v61 = vsel %vm14608_vm9, %v4798_v54, %v4812_v37  ;;  %4938 = vst [vmem:[#allocation2 + $0xcc] sm:$0x88] %v4937_v12  ;;  %v4527_v29 = vrot.slane %v12506_v30, 4  ;;  %v5338_v45 = vand.u32 %v7748_v50, %v9898_v40  ;;  %v14610_v33 = vrot.slane %v14609_v23, 4  ;;  %v3683_v54 = vld [vmem:[#allocation2 + $0x2c] sm:$0x11] }
 0x47f   :  { %v3644_v55 = vpop.permute.xlu2 %3643  ;;  %4941 = vst [vmem:[#allocation2 + $0xd4] sm:$0x88] %v4940_v47  ;;  %v3771_v0 = vpop.permute.xlu1 %3770  ;;  %v5341_v42 = vand.u32 %v7752_v6, %v9898_v40  ;;  %vm14613_vm7 = vcmask 1031168   ;;  %v14615_v60 = vrot.slane %v14614_v8, 4  ;;  %vm14617_vm1 = vcmask 1014784  }
 0x480   :  { %v3652_v31 = vrot.slane %v3644_v55, 4  ;;  %v3687_v48 = vsel %vm14556_vm3, %v3644_v55, %v3686_v21  ;;  %4814 = vst [vmem:[#allocation2 + $0xdc] sm:$0x3] %v4813_v61  ;;  %v4531_v43 = vsel %vm14611_vm8, %v14610_v33, %v4527_v29  ;;  %v3776_v57 = vrot.slane %v3771_v0, 4  ;;  %5401 = vmatpush.bf16.msrb.mxu0 %v5338_v45  ;;  %v7711_v32 = vld [vmem:[#allocation2 + $0xb0] sm:$0xf]  ;;  %vm14629_vm8 = vmmov %vm14616_vm0 }
 0x481   :  { %vm14612_vm3 = vcmask 261120   ;;  %3688 = vst [vmem:[#allocation2 + $0x34] sm:$0x1] %v3687_v48  ;;  %5414 = vmatpush.bf16.msrb.mxu3 %v5341_v42  ;;  %vm14618_vm11 = vnez %v13878_v2  ;;  %v8296_v41 = vld [vmem:[#allocation2 + $0xb4] sm:$0xf]  ;;  %v14622_v48 = vld [vmem:[#allocation52_spill] sm:$0xff] }
 0x482   :  { %v3663_v17 = vsel %vm14598_vm5, %v3651_v38, %v3652_v31  ;;  %v4532_v34 = vsel %vm14612_vm3, %v14609_v23, %v4531_v43  ;;  %v3780_v49 = vsel %vm14616_vm0, %v14615_v60, %v3776_v57  ;;  %v14619_v61 = vld [vmem:[#allocation146_spill] sm:$0xff]  ;;  %v14623_v45 = vrot.slane %v14622_v48, 4  ;;  %v4128_v33 = vld [vmem:[#allocation2 + $0x5c] sm:$0x66]  ;;  %v4134_v15 = vld [vmem:[#allocation2 + $0x6c] sm:$0x6] }
 0x483   :  { %v3664_v4 = vsel %vm14613_vm7, %v12444_v26, %v3663_v17  ;;  %v4544_v51 = vsel %vm9057_vm12, %v4532_v34, %v4543_v13  ;;  %v3781_v35 = vsel %vm14617_vm1, %v14614_v8, %v3780_v49  ;;  %v14620_v21 = vrot.slane %v14619_v61, 4  ;;  %v14627_v17 = vld [vmem:[#allocation101_spill] sm:$0xff]  ;;  %v3797_v60 = vld [vmem:[#allocation2 + $0x34] sm:$0xc] }
 0x484   :  { %v3684_v38 = vsel %vm14197_vm10, %v3664_v4, %v3683_v54  ;;  %4545 = vst [vmem:[#allocation2 + $0x94] sm:$0xcc] %v4544_v51  ;;  %v3792_v26 = vsel %vm14618_vm11, %v3781_v35, %v3791_v7  ;;  %vm14621_vm10 = vmmov %vm14616_vm0  ;;  %vm14625_vm6 = vcmask 498688   ;;  %vm14626_vm13 = vcmask 752640   ;;  %v4275_v4 = vld [vmem:[#allocation2 + $0x78] sm:$0x33] }
 0x485   :  { %3685 = vst [vmem:[#allocation2 + $0x2c] sm:$0x11] %v3684_v38  ;;  %v12536_v5 = vpop.permute.xlu0 %4382  ;;  %v8299_v16 = vld [vmem:[#allocation2 + $0xc8] sm:$0xf0]  ;;  %v7713_v37 = vld [vmem:[#allocation2 + $0xcc] sm:$0xf0]  ;;  %vm14630_vm5 = vnez %v13979_v52  ;;  %vm14632_vm7 = vnez %v13901_v59 }
 0x486   :  { %3793 = vst [vmem:[#allocation2 + $0x24] sm:$0xcc] %v3792_v26  ;;  %v4392_v11 = vrot.slane %v12536_v5, 4  ;;  %v7712_v6 = vor.u32 %v8299_v16, %v7711_v32  ;;  %v7716_v12 = vor.u32 %v8296_v41, %v7713_v37  ;;  %v14628_v34 = vrot.slane %v14627_v17, 4  ;;  %v3794_v37 = vld [vmem:[#allocation2 + $0x2c] sm:$0xcc] }
 0x487   :  { %v12538_v18 = vpop.permute.xlu2 %4106  ;;  %v4254_v47 = vpop.permute.xlu1 %4253  ;;  %vm14631_vm3 = vcmask 515072  }
 0x488   :  { %v4112_v50 = vrot.slane %v12538_v18, 4  ;;  %v4403_v55 = vsel %vm14621_vm10, %v14620_v21, %v4392_v11  ;;  %v4259_v31 = vrot.slane %v4254_v47, 4  ;;  %5376 = vmatpush.bf16.msrb.mxu1 %v7712_v6  ;;  %5389 = vmatpush.bf16.msra.mxu2 %v7716_v12  ;;  %v14633_v12 = vrot.slane %v12083_v19, 4  ;;  %vm14634_vm10 = vmmov %vm14616_vm0  ;;  %v4665_v21 = vld [vmem:[#allocation2 + $0xc0] sm:$0x6] }
 0x489   :  { %v4404_v23 = vsel %vm14625_vm6, %v14619_v61, %v4403_v55  ;;  %vm14636_vm6 = vcmask 244736  }
 0x48a   :  { %v4116_v42 = vsel %vm14624_vm15, %v14623_v45, %v4112_v50  ;;  %4429 = vst [vmem:[#allocation2 + $0x94] sm:$0x11] %v4404_v23  ;;  %v4263_v13 = vsel %vm14629_vm8, %v14628_v34, %v4259_v31  ;;  %vm14635_vm15 = vmmov %vm14616_vm0  ;;  %v14638_v23 = vld [vmem:[#allocation66_spill] sm:$0xff] }
 0x48b   :  { %v4117_v43 = vsel %vm14626_vm13, %v14622_v48, %v4116_v42  ;;  %v4264_v51 = vsel %vm14631_vm3, %v14627_v17, %v4263_v13  ;;  %vm14637_vm13 = vmmov %vm14636_vm6  ;;  %vm14639_vm8 = vnez %v14638_v23  ;;  %vm14640_vm3 = vcmask 785408  }
 0x48c   :  { %v4129_v54 = vsel %vm14630_vm5, %v4117_v43, %v4128_v33  ;;  %v4276_v8 = vsel %vm9287_vm14, %v4264_v51, %v4275_v4 }
 0x48d   :  { %4130 = vst [vmem:[#allocation2 + $0x5c] sm:$0x66] %v4129_v54  ;;  %v3773_v49 = vpop.permute.xlu0 %3772 }
 0x48e   :  { %4277 = vst [vmem:[#allocation2 + $0x78] sm:$0x33] %v4276_v8  ;;  %v3777_v38 = vrot.slane %v3773_v49, 4  ;;  %v3798_v7 = vsel %vm14632_vm7, %v3773_v49, %v3797_v60  ;;  %vm14642_vm7 = vcmask 515072   ;;  %v4281_v49 = vld [vmem:[#allocation2 + $0x88] sm:$0x3] }
 0x48f   :  { %v12567_v35 = vpop.permute.xlu2 %3851  ;;  %3799 = vst [vmem:[#allocation2 + $0x34] sm:$0xc] %v3798_v7  ;;  %v4640_v26 = vpop.permute.xlu1 %4639 }
 0x490   :  { %v3861_v32 = vrot.slane %v12567_v35, 4  ;;  %v3782_v41 = vsel %vm14616_vm0, %v3776_v57, %v3777_v38  ;;  %v4644_v16 = vrot.slane %v4640_v26, 4 }
 0x491   :  { %v3783_v6 = vsel %vm14617_vm1, %v3771_v0, %v3782_v41  ;;  %v8292_v48 = vld [vmem:[#allocation2 + $0x90] sm:$0xf0]  ;;  %v7685_v45 = vld [vmem:[#allocation2 + $0x94] sm:$0xf0]  ;;  %vm14644_vm1 = vmmov %vm14634_vm10 }
 0x492   :  { %v3872_v61 = vsel %vm14634_vm10, %v14633_v12, %v3861_v32  ;;  %v3795_v59 = vsel %vm14618_vm11, %v3783_v6, %v3794_v37  ;;  %v4649_v55 = vsel %vm14635_vm15, %v4643_v44, %v4644_v16  ;;  %v4651_v57 = vsel %vm14636_vm6, %v4640_v26, %v4644_v16  ;;  %v4662_v0 = vld [vmem:[#allocation2 + $0xb8] sm:$0x66]  ;;  %vm14641_vm11 = vmmov %vm14616_vm0  ;;  %v4278_v26 = vld [vmem:[#allocation2 + $0x80] sm:$0x33] }
 0x493   :  { %3796 = vst [vmem:[#allocation2 + $0x2c] sm:$0xcc] %v3795_v59  ;;  %v4650_v42 = vsel %vm14637_vm13, %v12331_v3, %v4649_v55  ;;  %v4666_v33 = vsel %vm14639_vm8, %v4651_v57, %v4665_v21  ;;  %v3873_v2 = vsel %vm14640_vm3, %v12083_v19, %v3872_v61  ;;  %vm14643_vm0 = vmmov %vm14642_vm7  ;;  %vm14646_vm15 = vcmask 236544   ;;  %v3601_v6 = vld [vmem:[#allocation2 + $0x8] sm:$0x66] }
 0x494   :  { %v4663_v43 = vsel %vm14630_vm5, %v4650_v42, %v4662_v0  ;;  %4667 = vst [vmem:[#allocation2 + $0xc0] sm:$0x6] %v4666_v33  ;;  %vm14645_vm10 = vmmov %vm14644_vm1  ;;  %vm14647_vm6 = vcmask 1039360   ;;  %vm14649_vm3 = vcmask 1010691   ;;  %v4012_v42 = vld [vmem:[#allocation2 + $0x40] sm:$0xcc] }
 0x495   :  { %v7683_v44 = vld [vmem:[#allocation2 + $0x78] sm:$0xf]  ;;  %v8289_v17 = vld [vmem:[#allocation2 + $0x7c] sm:$0xf]  ;;  %4664 = vst [vmem:[#allocation2 + $0xb8] sm:$0x66] %v4663_v43  ;;  %v4256_v34 = vpop.permute.xlu0 %4255  ;;  %vm14648_vm13 = vmmov %vm14646_vm15 }
 0x496   :  { %v7684_v13 = vor.u32 %v8292_v48, %v7683_v44  ;;  %v7688_v54 = vor.u32 %v8289_v17, %v7685_v45  ;;  %3898 = vst [vmem:[#allocation2 + $0x40] sm:$0x11] %v3873_v2  ;;  %v4260_v4 = vrot.slane %v4256_v34, 4  ;;  %v4015_v33 = vld [vmem:[#allocation2 + $0x48] sm:$0xcc]  ;;  %v14655_v44 = vld [vmem:[#allocation156_spill] sm:$0xff] }
 0x497   :  { %v12591_v51 = vpop.permute.xlu2 %3580  ;;  %v4694_v3 = vpop.permute.xlu1 %4693  ;;  %v4018_v2 = vld [vmem:[#allocation2 + $0x50] sm:$0xc]  ;;  %v14656_v17 = vrot.slane %v14655_v44, 4 }
 0x498   :  { %v3586_v8 = vrot.slane %v12591_v51, 4  ;;  %5377 = vmatpush.bf16.msrb.mxu1 %v7684_v13  ;;  %5390 = vmatpush.bf16.msra.mxu2 %v7688_v54  ;;  %v4265_v19 = vsel %vm14641_vm11, %v4259_v31, %v4260_v4  ;;  %v4267_v60 = vsel %vm14642_vm7, %v4256_v34, %v4260_v4  ;;  %v4706_v38 = vrot.slane %v4694_v3, 4  ;;  %vm14652_vm11 = vmmov %vm14644_vm1 }
 0x499   :  { %v4266_v7 = vsel %vm14643_vm0, %v4254_v47, %v4265_v19  ;;  %v4282_v41 = vsel %vm14608_vm9, %v4267_v60, %v4281_v49  ;;  %vm14653_vm7 = vcmask 523264   ;;  %vm14654_vm0 = vcmask 769024   ;;  %v7721_v19 = vld [vmem:[#allocation2 + $0xd4] sm:$0xf0] }
 0x49a   :  { %v3590_v16 = vsel %vm14644_vm1, %v3585_v28, %v3586_v8  ;;  %v4279_v37 = vsel %vm9287_vm14, %v4266_v7, %v4278_v26  ;;  %4283 = vst [vmem:[#allocation2 + $0x88] sm:$0x3] %v4282_v41  ;;  %v4715_v31 = vsel %vm14645_vm10, %v4705_v36, %v4706_v38  ;;  %v4717_v47 = vsel %vm14646_vm15, %v4694_v3, %v4706_v38  ;;  %vm14657_vm10 = vmmov %vm14644_vm1  ;;  %v8300_v3 = vld [vmem:[#allocation2 + $0xd0] sm:$0xf0] }
 0x49b   :  { %v3591_v12 = vsel %vm14647_vm6, %v12171_v56, %v3590_v16  ;;  %4280 = vst [vmem:[#allocation2 + $0x80] sm:$0x33] %v4279_v37  ;;  %v4716_v61 = vsel %vm14648_vm13, %v12378_v58, %v4715_v31  ;;  %v14650_v56 = vld [vmem:[#allocation17_spill] sm:$0xff]  ;;  %vm14658_vm15 = vnez %v14051_v27  ;;  %vm14659_vm6 = vmmov %vm14654_vm0 }
 0x49c   :  { %v3602_v28 = vsel %vm14630_vm5, %v3591_v12, %v3601_v6  ;;  %4735 = vst [vmem:[#allocation2 + $0xb8] sm:$0x88] %v4716_v61  ;;  %v14651_v48 = vrot.slane %v14650_v56, 4  ;;  %vm14660_vm13 = vmmov %vm14654_vm0 }
 0x49d   :  { %4736 = vst.msk [vmem:[#allocation2 + $0xc0] sm:$0x8] %vm14649_vm3, %v4717_v47  ;;  %v12617_v59 = vpop.permute.xlu0 %4160  ;;  %vm14662_vm3 = vmmov %vm14644_vm1 }
 0x49e   :  { %3603 = vst [vmem:[#allocation2 + $0x8] sm:$0x66] %v3602_v28  ;;  %v4174_v36 = vrot.slane %v12617_v59, 4  ;;  %v14661_v28 = vrot.slane %v12121_v63, 4 }
 0x49f   :  { %v3993_v21 = vpop.permute.xlu2 %3992  ;;  %v3991_v55 = vpop.permute.xlu1 %3990 }
 0x4a0   :  { %v3997_v57 = vrot.slane %v3993_v21, 4  ;;  %v4182_v58 = vsel %vm14652_vm11, %v14651_v48, %v4174_v36  ;;  %v3996_v45 = vrot.slane %v3991_v55, 4  ;;  %vm14663_vm11 = vcmask 1022976   ;;  %v4549_v48 = vld [vmem:[#allocation2 + $0xa4] sm:$0xc] }
 0x4a1   :  { %v4183_v0 = vsel %vm14653_vm7, %v14650_v56, %v4182_v58  ;;  %vm14664_vm7 = vmmov %vm14644_vm1 }
 0x4a2   :  { %v4004_v43 = vsel %vm14654_vm0, %v3993_v21, %v3997_v57  ;;  %4203 = vst [vmem:[#allocation2 + $0x5c] sm:$0x88] %v4183_v0  ;;  %v4000_v34 = vsel %vm14644_vm1, %v14656_v17, %v3996_v45  ;;  %v4002_v13 = vsel %vm14657_vm10, %v3996_v45, %v3997_v57  ;;  %v12634_v4 = vpop.f32.mrf.mxu2  ;;  %v3745_v57 = vld [vmem:[#allocation2 + $0x24] sm:$0x33]  ;;  %vm14665_vm0 = vcmask 785408  }
 0x4a3   :  { %v4019_v54 = vsel %vm14658_vm15, %v4004_v43, %v4018_v2  ;;  %v4001_v60 = vsel %vm14659_vm6, %v14655_v44, %v4000_v34  ;;  %v4003_v49 = vsel %vm14660_vm13, %v3991_v55, %v4002_v13  ;;  %v7719_v38 = vld [vmem:[#allocation2 + $0xb8] sm:$0xf]  ;;  %v8297_v7 = vld [vmem:[#allocation2 + $0xbc] sm:$0xf]  ;;  %vm14666_vm10 = vcmask 261120  }
 0x4a4   :  { %4020 = vst [vmem:[#allocation2 + $0x50] sm:$0xc] %v4019_v54  ;;  %v4013_v26 = vsel %vm9057_vm12, %v4001_v60, %v4012_v42  ;;  %v4016_v41 = vsel %vm9057_vm12, %v4003_v49, %v4015_v33  ;;  %v7720_v16 = vor.u32 %v8300_v3, %v7719_v38  ;;  %v7724_v37 = vor.u32 %v8297_v7, %v7721_v19  ;;  %vm14668_vm13 = vmmov %vm14666_vm10  ;;  %v3751_v49 = vld [vmem:[#allocation2 + $0x34] sm:$0x3] }
 0x4a5   :  { %4014 = vst [vmem:[#allocation2 + $0x40] sm:$0xcc] %v4013_v26  ;;  %v3725_v31 = vpop.permute.xlu0 %3724  ;;  %vm14667_vm6 = vcmask 1007616  }
 0x4a6   :  { %4017 = vst [vmem:[#allocation2 + $0x48] sm:$0xcc] %v4016_v41  ;;  %5402 = vmatpush.bf16.msrb.mxu0 %v7720_v16  ;;  %5415 = vmatpush.bf16.msrb.mxu3 %v7724_v37  ;;  %v3730_v47 = vrot.slane %v3725_v31, 4  ;;  %v4131_v37 = vld [vmem:[#allocation2 + $0x64] sm:$0x66] }
 0x4a7   :  { %v3854_v6 = vpop.permute.xlu2 %3853  ;;  %v4524_v12 = vpop.permute.xlu1 %4523 }
 0x4a8   :  { %v3862_v61 = vrot.slane %v3854_v6, 4  ;;  %v3734_v21 = vsel %vm14662_vm3, %v14661_v28, %v3730_v47  ;;  %v4528_v55 = vrot.slane %v4524_v12, 4  ;;  %vm14669_vm3 = vmmov %vm14665_vm0 }
 0x4a9   :  { %v3735_v56 = vsel %vm14663_vm11, %v12121_v63, %v3734_v21  ;;  %v8285_v2 = vld [vmem:[#allocation2 + $0x58] sm:$0xf0]  ;;  %v7657_v63 = vld [vmem:[#allocation2 + $0x5c] sm:$0xf0] }
 0x4aa   :  { %v3874_v58 = vsel %vm14664_vm7, %v3861_v32, %v3862_v61  ;;  %v3876_v45 = vsel %vm14665_vm0, %v3854_v6, %v3862_v61  ;;  %v3746_v0 = vsel %vm9287_vm14, %v3735_v56, %v3745_v57  ;;  %v4533_v42 = vsel %vm14644_vm1, %v4527_v29, %v4528_v55  ;;  %v4546_v32 = vld [vmem:[#allocation2 + $0x9c] sm:$0xcc]  ;;  %v3378_v34 = vpop.f32.mrf.mxu2  ;;  %vm14673_vm7 = vmmov %vm14644_vm1 }
 0x4ab   :  { %v4535_v33 = vsel %vm14666_vm10, %v4524_v12, %v4528_v55  ;;  %3900 = vst.msk [vmem:[#allocation2 + $0x50] sm:$0x1] %vm14667_vm6, %v3876_v45  ;;  %v4534_v43 = vsel %vm14668_vm13, %v12506_v30, %v4533_v42  ;;  %v3875_v17 = vsel %vm14669_vm3, %v12567_v35, %v3874_v58  ;;  %vm14675_vm0 = vcmask 498688   ;;  %v3748_v55 = vld [vmem:[#allocation2 + $0x2c] sm:$0x33]  ;;  %vm14678_vm13 = vmmov %vm14673_vm7 }
 0x4ac   :  { %3747 = vst [vmem:[#allocation2 + $0x24] sm:$0x33] %v3746_v0  ;;  %v4550_v44 = vsel %vm14658_vm15, %v4535_v33, %v4549_v48  ;;  %v4547_v29 = vsel %vm9057_vm12, %v4534_v43, %v4546_v32  ;;  %v7655_v13 = vld [vmem:[#allocation2 + $0x40] sm:$0xf]  ;;  %v8282_v54 = vld [vmem:[#allocation2 + $0x44] sm:$0xf]  ;;  %vm14670_vm12 = vmmov %vm14644_vm1 }
 0x4ad   :  { %4551 = vst [vmem:[#allocation2 + $0xa4] sm:$0xc] %v4550_v44  ;;  %v4109_v3 = vpop.permute.xlu0 %4108  ;;  %v7656_v19 = vor.u32 %v8285_v2, %v7655_v13  ;;  %v7660_v60 = vor.u32 %v8282_v54, %v7657_v63  ;;  %vm14671_vm15 = vcmask 752640   ;;  %vm14677_vm10 = vmmov %vm14675_vm0  ;;  %vm14679_vm3 = vcmask 523264  }
 0x4ae   :  { %4548 = vst [vmem:[#allocation2 + $0x9c] sm:$0xcc] %v4547_v29  ;;  %v4113_v30 = vrot.slane %v4109_v3, 4  ;;  %vm14672_vm11 = vmmov %vm14671_vm15 }
 0x4af   :  { %3899 = vst [vmem:[#allocation2 + $0x48] sm:$0x11] %v3875_v17  ;;  %v3727_v38 = vpop.permute.xlu2 %3726  ;;  %v4385_v27 = vpop.permute.xlu1 %4384  ;;  %5378 = vmatpush.bf16.msrb.mxu1 %v7656_v19  ;;  %5391 = vmatpush.bf16.msra.mxu2 %v7660_v60  ;;  %v3888_v19 = vld [vmem:[#allocation2 + $0x24] sm:$0x88]  ;;  %v3891_v60 = vld [vmem:[#allocation2 + $0x2c] sm:$0x88] }
 0x4b0   :  { %v3731_v7 = vrot.slane %v3727_v38, 4  ;;  %v3752_v35 = vsel %vm14608_vm9, %v3727_v38, %v3751_v49  ;;  %v4118_v26 = vsel %vm14670_vm12, %v4112_v50, %v4113_v30  ;;  %v4120_v41 = vsel %vm14671_vm15, %v4109_v3, %v4113_v30  ;;  %vm14674_vm9 = vmmov %vm14644_vm1  ;;  %v7691_v3 = vld [vmem:[#allocation2 + $0x80] sm:$0xf] }
 0x4b1   :  { %v4393_v16 = vrot.slane %v4385_v27, 4  ;;  %3753 = vst [vmem:[#allocation2 + $0x34] sm:$0x3] %v3752_v35  ;;  %v4119_v6 = vsel %vm14672_vm11, %v12538_v18, %v4118_v26  ;;  %v4135_v12 = vsel %vm14639_vm8, %v4120_v41, %v4134_v15  ;;  %vm14676_vm1 = vcmask 1022976   ;;  %vm14680_vm12 = vmmov %vm14679_vm3 }
 0x4b2   :  { %v3736_v62 = vsel %vm14673_vm7, %v3730_v47, %v3731_v7  ;;  %v3362_v61 = vpop.f32.mrf.mxu1  ;;  %v4132_v28 = vsel %vm14630_vm5, %v4119_v6, %v4131_v37  ;;  %4136 = vst [vmem:[#allocation2 + $0x6c] sm:$0x6] %v4135_v12  ;;  %v3404_v48 = vpop.f32.mrf.mxu2  ;;  %vm14682_vm15 = vcmask 785408   ;;  %vm14683_vm11 = vmmov %vm14673_vm7  ;;  %v14684_v30 = vunpack.i.h.bf16 %v12217_v53 }
 0x4b3   :  { %v4405_v50 = vsel %vm14674_vm9, %v4392_v11, %v4393_v16  ;;  %v4407_v21 = vsel %vm14675_vm0, %v4385_v27, %v4393_v16  ;;  %v3737_v57 = vsel %vm14676_vm1, %v3725_v31, %v3736_v62  ;;  %4133 = vst [vmem:[#allocation2 + $0x64] sm:$0x66] %v4132_v28  ;;  %v3377_v2 = vadd.f32 %v12634_v4, %v3362_v61  ;;  %vm14685_vm9 = vmmov %vm14682_vm15  ;;  %v8290_v27 = vld [vmem:[#allocation2 + $0x84] sm:$0xf] }
 0x4b4   :  { %v4406_v18 = vsel %vm14677_vm10, %v12536_v5, %v4405_v50  ;;  %v3749_v47 = vsel %vm9287_vm14, %v3737_v57, %v3748_v55  ;;  %4431 = vst.msk [vmem:[#allocation2 + $0xa4] sm:$0x1] %vm14667_vm6, %v4407_v21  ;;  %vm14681_vm14 = vcmask 1010691   ;;  %vm14686_vm0 = vmmov %vm14685_vm9  ;;  %vm14690_vm6 = vcmask 1031168  }
 0x4b5   :  { %4430 = vst [vmem:[#allocation2 + $0x9c] sm:$0x11] %v4406_v18  ;;  %vm14687_vm1 = vmmov %vm14681_vm14 }
 0x4b6   :  { %v4163_v56 = vpop.permute.xlu0 %4162  ;;  %3750 = vst [vmem:[#allocation2 + $0x2c] sm:$0x33] %v3749_v47  ;;  %v7663_v26 = vld [vmem:[#allocation2 + $0x48] sm:$0xf]  ;;  %v8283_v6 = vld [vmem:[#allocation2 + $0x4c] sm:$0xf] }
 0x4b7   :  { %v4175_v58 = vrot.slane %v4163_v56, 4  ;;  %v8474_v11 = vpop.permute.xlu1 %8473 }
 0x4b8   :  { %v8476_v0 = vunpack.i.h.bf16 %v8474_v11  ;;  %v8475_v42 = vunpack.i.l.bf16 %v8474_v11 }
 0x4b9   :  { %v4184_v45 = vsel %vm14678_vm13, %v4174_v36, %v4175_v58  ;;  %v4186_v31 = vsel %vm14679_vm3, %v4163_v56, %v4175_v58  ;;  %v3390_v5 = vpop.f32.mrf.mxu3  ;;  %v3894_v36 = vld [vmem:[#allocation2 + $0x34] sm:$0x8]  ;;  %vm14691_vm13 = vmmov %vm14690_vm6  ;;  %v7755_v56 = vld [vmem:[#allocation2 + $0xf8] sm:$0xf] }
 0x4ba   :  { %v4185_v22 = vsel %vm14680_vm12, %v12617_v59, %v4184_v45  ;;  %4205 = vst.msk [vmem:[#allocation2 + $0x6c] sm:$0x8] %vm14681_vm14, %v4186_v31  ;;  %v3364_v33 = vpop.f32.mrf.mxu1  ;;  %v3858_v63 = vrot.slane %v8476_v0, 4  ;;  %v3857_v43 = vrot.slane %v8475_v42, 4  ;;  %v3406_v41 = vpop.f32.mrf.mxu2  ;;  %v3405_v12 = vadd.f32 %v3404_v48, %v3390_v5  ;;  %v3607_v48 = vld [vmem:[#allocation2 + $0x18] sm:$0x6] }
 0x4bb   :  { %4204 = vst [vmem:[#allocation2 + $0x64] sm:$0x88] %v4185_v22  ;;  %v3379_v32 = vadd.f32 %v3378_v34, %v3364_v33  ;;  %v8308_v45 = vld [vmem:[#allocation2 + $0x110] sm:$0x30]  ;;  %vm14693_vm12 = vcmask 1039360  }
 0x4bc   :  { %v8293_v44 = vld [vmem:[#allocation2 + $0x98] sm:$0xf0]  ;;  %v7693_v17 = vld [vmem:[#allocation2 + $0x9c] sm:$0xf0]  ;;  %v3869_v29 = vsel %vm14682_vm15, %v8476_v0, %v3858_v63  ;;  %v3865_v13 = vsel %vm14683_vm11, %v12237_v20, %v3857_v43  ;;  %v3867_v54 = vsel %vm14673_vm7, %v3857_v43, %v3858_v63  ;;  %v7756_v31 = vor.u32 %v8308_v45, %v7755_v56  ;;  %v14724_v45 = vld [vmem:[#allocation98_spill] sm:$0xff] }
 0x4bd   :  { %v3409_v59 = vpack.c.bf16 %v3379_v32, %v3377_v2  ;;  %v3895_v4 = vsel %vm14590_vm2, %v3869_v29, %v3894_v36  ;;  %v3866_v34 = vsel %vm14685_vm9, %v14684_v30, %v3865_v13  ;;  %v3868_v49 = vsel %vm14686_vm0, %v8475_v42, %v3867_v54  ;;  %v14696_v36 = vld [vmem:[#allocation75_spill] sm:$0xff]  ;;  %v8294_v29 = vld [vmem:[#allocation2 + $0xa0] sm:$0xf0]  ;;  %v14698_v30 = vld [vmem:[#allocation78_spill] sm:$0xff] }
 0x4be   :  { %v7692_v38 = vor.u32 %v8293_v44, %v7691_v3  ;;  %v3636_v7 = vpop.permute.xlu0 %3635  ;;  %3896 = vst [vmem:[#allocation2 + $0x34] sm:$0x8] %v3895_v4  ;;  %v3889_v20 = vsel %vm9356_vm4, %v3866_v34, %v3888_v19  ;;  %v3892_v35 = vsel %vm9356_vm4, %v3868_v49, %v3891_v60  ;;  %v7696_v15 = vor.u32 %v8290_v27, %v7693_v17  ;;  %vm14688_vm4 = vmmov %vm14673_vm7  ;;  %v7727_v44 = vld [vmem:[#allocation2 + $0xc0] sm:$0xf]  ;;  %v8301_v17 = vld [vmem:[#allocation2 + $0xd8] sm:$0xf0] }
 0x4bf   :  { %3488 = vmatmul.bf16.vlgmr.msra.gmra.mxu0 %v3409_v59  ;;  %v3648_v9 = vrot.slane %v3636_v7, 4  ;;  %3890 = vst [vmem:[#allocation2 + $0x24] sm:$0x88] %v3889_v20  ;;  %vm3472_vm2 = vcmask 64512   ;;  %vm14689_vm10 = vmmov %vm14688_vm4  ;;  %v5344_v32 = vand.u32 %v7756_v31, %v9898_v40  ;;  %v7699_v19 = vld [vmem:[#allocation2 + $0x88] sm:$0xf] }
 0x4c0   :  { %5403 = vmatpush.bf16.msrb.mxu0 %v7692_v38  ;;  %v3634_v53 = vpop.permute.xlu1 %3633  ;;  %3893 = vst [vmem:[#allocation2 + $0x2c] sm:$0x88] %v3892_v35  ;;  %5416 = vmatpush.bf16.msrb.mxu3 %v7696_v15  ;;  %vm14692_vm3 = vmmov %vm14688_vm4  ;;  %v7700_v60 = vor.u32 %v8294_v29, %v7699_v19  ;;  %v14699_v34 = vld [vmem:[#allocation62_spill] sm:$0xff]  ;;  %v14703_v20 = vld [vmem:[#allocation83_spill] sm:$0xff]  ;;  %vm14791_vm7 = vcmask 1014784  }
 0x4c1   :  { %v3647_v16 = vrot.slane %v3634_v53, 4  ;;  %v3392_v37 = vpop.f32.mrf.mxu3  ;;  %3676 = vst.msk [vmem:[#allocation2 + $0x18] sm:$0x8] %vm14687_vm1, %v3636_v7  ;;  %v8287_v4 = vld [vmem:[#allocation2 + $0x68] sm:$0xf0]  ;;  %v14700_v38 = vld [vmem:[#allocation82_spill] sm:$0xff]  ;;  %vm14813_vm9 = vmmov %vm14791_vm7 }
 0x4c2   :  { %v3407_v62 = vadd.f32 %v3406_v41, %v3392_v37  ;;  %v8286_v10 = vld [vmem:[#allocation2 + $0x60] sm:$0xf0]  ;;  %v7665_v61 = vld [vmem:[#allocation2 + $0x64] sm:$0xf0]  ;;  %v7671_v49 = vld [vmem:[#allocation2 + $0x50] sm:$0xf] }
 0x4c3   :  { %v3655_v28 = vsel %vm14688_vm4, %v3646_v39, %v3647_v16  ;;  %v3657_v50 = vsel %vm14689_vm10, %v3647_v16, %v3648_v9  ;;  %v7664_v21 = vor.u32 %v8286_v10, %v7663_v26  ;;  %v7668_v55 = vor.u32 %v8283_v6, %v7665_v61  ;;  %v14704_v15 = vld [vmem:[#allocation76_spill] sm:$0xff]  ;;  %v14705_v26 = vld [vmem:[#allocation85_spill] sm:$0xff]  ;;  %v14708_v6 = vld [vmem:[#allocation74_spill] sm:$0xff] }
 0x4c4   :  { %v3656_v57 = vsel %vm14690_vm6, %v12123_v46, %v3655_v28  ;;  %v3658_v18 = vsel %vm14691_vm13, %v3634_v53, %v3657_v50  ;;  %v3410_v47 = vpack.c.bf16 %v3407_v62, %v3405_v12  ;;  %v3604_v46 = vld [vmem:[#allocation2 + $0x10] sm:$0x66]  ;;  %v7672_v27 = vor.u32 %v8287_v4, %v7671_v49  ;;  %v14706_v16 = vld [vmem:[#allocation88_spill] sm:$0xff]  ;;  %v14725_v31 = vld [vmem:[#allocation111_spill] sm:$0xff] }
 0x4c5   :  { %3674 = vst [vmem:[#allocation2 + $0x8] sm:$0x88] %v3656_v57  ;;  %5404 = vmatpush.bf16.msrb.mxu0 %v7664_v21  ;;  %5417 = vmatpush.bf16.msrb.mxu3 %v7668_v55  ;;  %v8280_v9 = vld [vmem:[#allocation2 + $0x30] sm:$0xf0]  ;;  %v14707_v37 = vld [vmem:[#allocation80_spill] sm:$0xff]  ;;  %v14709_v12 = vld [vmem:[#allocation89_spill] sm:$0xff] }
 0x4c6   :  { %3675 = vst [vmem:[#allocation2 + $0x10] sm:$0x88] %v3658_v18  ;;  %7614 = vmatmul.msk.bf16.vlgmr.msra.gmra.mxu1 %vm3472_vm2, %v3410_v47  ;;  %v8278_v42 = vld [vmem:[#allocation2 + $0x20] sm:$0xf0]  ;;  %v7629_v2 = vld [vmem:[#allocation2 + $0x24] sm:$0xf0] }
 0x4c7   :  { %v8279_v52 = vld [vmem:[#allocation2 + $0x28] sm:$0xf0]  ;;  %v7637_v59 = vld [vmem:[#allocation2 + $0x2c] sm:$0xf0]  ;;  %v14710_v62 = vld [vmem:[#allocation92_spill] sm:$0xff]  ;;  %vm14833_vm1 = vcmask 695296  }
 0x4c8   :  { %v3583_v58 = vpop.permute.xlu1 %3582  ;;  %v14712_v61 = vld [vmem:[#allocation84_spill] sm:$0xff]  ;;  %v14713_v50 = vld [vmem:[#allocation77_spill] sm:$0xff]  ;;  %v14716_v57 = vld [vmem:[#allocation90_spill] sm:$0xff]  ;;  %vm14834_vm4 = vcmask 670720   ;;  %vm14837_vm6 = vcmask 678912  }
 0x4c9   :  { %v3587_v39 = vrot.slane %v3583_v58, 4  ;;  %v3608_v11 = vsel %vm14639_vm8, %v3583_v58, %v3607_v48  ;;  %vm14695_vm8 = vcmask 613376   ;;  %v14714_v21 = vld [vmem:[#allocation93_spill] sm:$0xff]  ;;  %v14715_v55 = vld [vmem:[#allocation96_spill] sm:$0xff]  ;;  %v14718_v47 = vld [vmem:[#allocation99_spill] sm:$0xff] }
 0x4ca   :  { %3609 = vst [vmem:[#allocation2 + $0x18] sm:$0x6] %v3608_v11  ;;  %v14717_v18 = vld [vmem:[#allocation81_spill] sm:$0xff]  ;;  %v14719_v48 = vld [vmem:[#allocation103_spill] sm:$0xff]  ;;  %v14723_v11 = vld [vmem:[#allocation106_spill] sm:$0xff] }
 0x4cb   :  { %v3592_v0 = vsel %vm14692_vm3, %v3586_v8, %v3587_v39  ;;  %v14694_v8 = vld [vmem:[#allocation14_spill] sm:$0xff]  ;;  %v14721_v58 = vld [vmem:[#allocation105_spill] sm:$0xff]  ;;  %v14722_v39 = vld [vmem:[#allocation87_spill] sm:$0xff]  ;;  %vm14840_vm3 = vcmask 801792  }
 0x4cc   :  { %v3593_v5 = vsel %vm14693_vm12, %v12591_v51, %v3592_v0  ;;  %v7627_v22 = vld [vmem:[#allocation2 + $0x8] sm:$0xf]  ;;  %v8275_v33 = vld [vmem:[#allocation2 + $0xc] sm:$0xf]  ;;  %v7728_v51 = vor.u32 %v8301_v17, %v7727_v44  ;;  %v14727_v0 = vld [vmem:[#allocation110_spill] sm:$0xff]  ;;  %vm14841_vm12 = vcmask 785408  }
 0x4cd   :  { %v3605_v63 = vsel %vm14630_vm5, %v3593_v5, %v3604_v46  ;;  %v7628_v23 = vor.u32 %v8278_v42, %v7627_v22  ;;  %v7632_v43 = vor.u32 %v8275_v33, %v7629_v2  ;;  %vm14697_vm5 = vmmov %vm14695_vm8  ;;  %v14726_v46 = vld [vmem:[#allocation91_spill] sm:$0xff]  ;;  %v14728_v5 = vld [vmem:[#allocation104_spill] sm:$0xff] }
 0x4ce   :  { %3606 = vst [vmem:[#allocation2 + $0x10] sm:$0x66] %v3605_v63  ;;  %vm14701_vm14 = vmmov %vm14697_vm5  ;;  %v14729_v22 = vld [vmem:[#allocation116_spill] sm:$0xff]  ;;  %v14730_v33 = vld [vmem:[#allocation107_spill] sm:$0xff] }
 0x4cf   :  { %5379 = vmatpush.bf16.msrb.mxu1 %v7628_v23  ;;  %5392 = vmatpush.bf16.msra.mxu2 %v7632_v43  ;;  %vm14702_vm15 = vmmov %vm14697_vm5  ;;  %v14731_v2 = vld [vmem:[#allocation95_spill] sm:$0xff]  ;;  %v14733_v23 = vld [vmem:[#allocation118_spill] sm:$0xff] }
 0x4d0   :  { %vm14711_vm11 = vmmov %vm14697_vm5  ;;  %v14732_v63 = vld [vmem:[#allocation115_spill] sm:$0xff]  ;;  %v14734_v43 = vld [vmem:[#allocation120_spill] sm:$0xff] }
 0x4d1   :  { %v7643_v7 = vld [vmem:[#allocation2 + $0x18] sm:$0xf]  ;;  %v14736_v44 = vld [vmem:[#allocation100_spill] sm:$0xff]  ;;  %v14748_v19 = vld [vmem:[#allocation125_spill] sm:$0xff] }
 0x4d2   :  { %7760 = vmatmul.msk.bf16.vlgmr.msra.gmra.mxu2 %vm14695_vm8, %v12359_v14  ;;  %v7644_v41 = vor.u32 %v8280_v9, %v7643_v7  ;;  %v14738_v17 = vld [vmem:[#allocation124_spill] sm:$0xff]  ;;  %v14742_v29 = vld [vmem:[#allocation126_spill] sm:$0xff]  ;;  %v14750_v4 = vld [vmem:[#allocation133_spill] sm:$0xff]  ;;  %vm14842_vm8 = vcmask 588800  }
 0x4d3   :  { %5427 = vmatpush.bf16.msra.mxu1 %v5344_v32  ;;  %5447 = vmatpush.bf16.msrb.mxu2 %v14694_v8  ;;  %v14735_v32 = vld [vmem:[#allocation112_spill] sm:$0xff]  ;;  %v14737_v8 = vld [vmem:[#allocation121_spill] sm:$0xff]  ;;  %v14753_v49 = vld [vmem:[#allocation139_spill] sm:$0xff] }
 0x4d4   :  { %v14756_v7 = vld [vmem:[#allocation134_spill] sm:$0xff] }
 0x4d5   :  { %v7635_v13 = vld [vmem:[#allocation2 + $0x10] sm:$0xf]  ;;  %v8276_v54 = vld [vmem:[#allocation2 + $0x14] sm:$0xf] }
 0x4d6   :  { %7759 = vmatmul.msk.bf16.vlgmr.msrb.gmra.mxu1 %vm14697_vm5, %v12359_v14  ;;  %v7636_v40 = vor.u32 %v8279_v52, %v7635_v13  ;;  %v7640_v3 = vor.u32 %v8276_v54, %v7637_v59  ;;  %v14741_v52 = vld [vmem:[#allocation109_spill] sm:$0xff]  ;;  %v14743_v13 = vld [vmem:[#allocation128_spill] sm:$0xff]  ;;  %v14744_v54 = vld [vmem:[#allocation122_spill] sm:$0xff]  ;;  %vm14843_vm5 = vcmask 908288  }
 0x4d7   :  { %5428 = vmatpush.bf16.msra.mxu1 %v7728_v51  ;;  %5448 = vmatpush.bf16.msrb.mxu2 %v14696_v36  ;;  %v14739_v51 = vld [vmem:[#allocation117_spill] sm:$0xff]  ;;  %v14740_v36 = vld [vmem:[#allocation108_spill] sm:$0xff]  ;;  %v14745_v59 = vld [vmem:[#allocation114_spill] sm:$0xff] }
 0x4d8   :  { %5405 = vmatpush.bf16.msrb.mxu0 %v7636_v40  ;;  %5418 = vmatpush.bf16.msrb.mxu3 %v7640_v3  ;;  %v14746_v40 = vld [vmem:[#allocation129_spill] sm:$0xff]  ;;  %v14747_v3 = vld [vmem:[#allocation132_spill] sm:$0xff]  ;;  %v14760_v9 = vld [vmem:[#allocation138_spill] sm:$0xff] }
 0x4db   :  { %5429 = vmatpush.bf16.msra.mxu1 %v7700_v60  ;;  %5449 = vmatpush.bf16.msrb.mxu2 %v14698_v30  ;;  %v14749_v60 = vld [vmem:[#allocation119_spill] sm:$0xff]  ;;  %v14751_v30 = vld [vmem:[#allocation136_spill] sm:$0xff] }
 0x4dc   :  { %5460 = vmatpush.bf16.msra.mxu0 %v14699_v34  ;;  %5473 = vmatpush.bf16.msra.mxu3 %v14700_v38  ;;  %v5355_v35 = vpop.f32.mrf.mxu2  ;;  %v14752_v34 = vld [vmem:[#allocation130_spill] sm:$0xff]  ;;  %v14754_v38 = vld [vmem:[#allocation123_spill] sm:$0xff] }
 0x4dd   :  { %7761 = vmatmul.msk.bf16.vlgmr.msrb.gmra.mxu0 %vm14701_vm14, %v12359_v14  ;;  %7762 = vmatmul.msk.bf16.vlgmr.msrb.gmra.mxu3 %vm14702_vm15, %v12359_v14  ;;  %v12761_v56 = vpack.c.bf16 %v5355_v35, %v5355_v35  ;;  %v14758_v35 = vld [vmem:[#allocation127_spill] sm:$0xff]  ;;  %vm14844_vm14 = vcmask 793600   ;;  %vm14845_vm15 = vcmask 556032  }
 0x4df   :  { %5430 = vmatpush.bf16.msra.mxu1 %v7672_v27  ;;  %5450 = vmatpush.bf16.msrb.mxu2 %v14703_v20  ;;  %v5368_v53 = vpop.f32.mrf.mxu3  ;;  %v14755_v27 = vld [vmem:[#allocation137_spill] sm:$0xff]  ;;  %v14757_v20 = vld [vmem:[#allocation144_spill] sm:$0xff] }
 0x4e0   :  { %5461 = vmatpush.bf16.msra.mxu0 %v14704_v15  ;;  %5474 = vmatpush.bf16.msra.mxu3 %v14705_v26  ;;  %v12773_v42 = vpack.c.bf16 %v5368_v53, %v5368_v53  ;;  %v14759_v15 = vld [vmem:[#allocation143_spill] sm:$0xff]  ;;  %v14761_v53 = vld [vmem:[#allocation149_spill] sm:$0xff]  ;;  %v14762_v26 = vld [vmem:[#allocation140_spill] sm:$0xff] }
 0x4e3   :  { %5431 = vmatpush.bf16.msra.mxu1 %v7644_v41  ;;  %5451 = vmatpush.bf16.msrb.mxu2 %v14706_v16  ;;  %v14763_v41 = vld [vmem:[#allocation131_spill] sm:$0xff]  ;;  %v14764_v16 = vld [vmem:[#allocation148_spill] sm:$0xff] }
 0x4e4   :  { %5462 = vmatpush.bf16.msra.mxu0 %v14707_v37  ;;  %5475 = vmatpush.bf16.msra.mxu3 %v14709_v12  ;;  %v5357_v10 = vpop.f32.mrf.mxu2  ;;  %v14765_v37 = vld [vmem:[#allocation153_spill] sm:$0xff]  ;;  %v14767_v12 = vld [vmem:[#allocation135_spill] sm:$0xff] }
 0x4e5   :  { %v14769_v10 = vld [vmem:[#allocation151_spill] sm:$0xff] }
 0x4e6   :  { %7763 = vmatmul.msk.bf16.vlgmr.msra.gmra.mxu1 %vm14711_vm11, %v12359_v14  ;;  %v14720_v14 = vld [vmem:[#allocation94_spill] sm:$0xff] }
 0x4e7   :  { %5486 = vmatpush.bf16.msrb.mxu1 %v14708_v6  ;;  %5452 = vmatpush.bf16.msrb.mxu2 %v14710_v62  ;;  %v5370_v28 = vpop.f32.mrf.mxu3  ;;  %v14766_v6 = vld [vmem:[#allocation145_spill] sm:$0xff]  ;;  %v14768_v62 = vld [vmem:[#allocation158_spill] sm:$0xff] }
 0x4e8   :  { %5463 = vmatpush.bf16.msra.mxu0 %v14712_v61  ;;  %5476 = vmatpush.bf16.msra.mxu3 %v14714_v21  ;;  %v14770_v61 = vld [vmem:[#allocation141_spill] sm:$0xff]  ;;  %v14771_v28 = vld [vmem:[#allocation162_spill] sm:$0xff] }
 0x4e9   :  { %v14773_v21 = vld [vmem:[#allocation166_spill] sm:$0xff] }
 0x4eb   :  { %5487 = vmatpush.bf16.msrb.mxu1 %v14713_v50  ;;  %5453 = vmatpush.bf16.msrb.mxu2 %v14715_v55  ;;  %v14772_v50 = vld [vmem:[#allocation155_spill] sm:$0xff]  ;;  %v14774_v55 = vld [vmem:[#allocation160_spill] sm:$0xff] }
 0x4ec   :  { %5464 = vmatpush.bf16.msra.mxu0 %v14716_v57  ;;  %5477 = vmatpush.bf16.msra.mxu3 %v14718_v47  ;;  %v14775_v57 = vld [vmem:[#allocation170_spill] sm:$0xff]  ;;  %v14777_v47 = vld [vmem:[#allocation168_spill] sm:$0xff] }
 0x4ef   :  { %5488 = vmatpush.bf16.msrb.mxu1 %v14717_v18  ;;  %5454 = vmatpush.bf16.msrb.mxu2 %v14719_v48  ;;  %v14776_v18 = vld [vmem:[#allocation164_spill] sm:$0xff] }
 0x4f0   :  { %5465 = vmatpush.bf16.msra.mxu0 %v14720_v14  ;;  %5478 = vmatpush.bf16.msra.mxu3 %v14723_v11  ;;  %v14778_v48 = vld [vmem:[#allocation172_spill] sm:$0xff] }
 0x4f2   :  { %5455 = vmatmul.bf16.vlgmr.msrb.gmra.mxu2 %v12761_v56 }
 0x4f3   :  { %5499 = vmatpush.bf16.msra.mxu2 %v14721_v58  ;;  %5489 = vmatpush.bf16.msrb.mxu1 %v14722_v39 }
 0x4f4   :  { %5466 = vmatpush.bf16.msra.mxu0 %v14724_v45  ;;  %5479 = vmatpush.bf16.msra.mxu3 %v14727_v0 }
 0x4f7   :  { %5500 = vmatpush.bf16.msra.mxu2 %v14725_v31  ;;  %5490 = vmatpush.bf16.msrb.mxu1 %v14726_v46 }
 0x4f8   :  { %5467 = vmatpush.bf16.msra.mxu0 %v14728_v5  ;;  %5480 = vmatpush.bf16.msra.mxu3 %v14732_v63  ;;  %v14779_v5 = vld [vmem:[#allocation150_spill] sm:$0xff] }
 0x4fb   :  { %5501 = vmatpush.bf16.msra.mxu2 %v14729_v22  ;;  %5491 = vmatpush.bf16.msrb.mxu1 %v14731_v2  ;;  %v14780_v2 = vld [vmem:[#allocation142_spill] sm:$0xff] }
 0x4fc   :  { %5512 = vmatpush.bf16.msrb.mxu0 %v14730_v33  ;;  %5525 = vmatpush.bf16.msrb.mxu3 %v14733_v23  ;;  %v14781_v23 = vld [vmem:[#allocation154_spill] sm:$0xff] }
 0x4fd   :  { %5468 = vmatmul.bf16.vlgmr.msra.gmra.mxu0 %v12773_v42 }
 0x4ff   :  { %5502 = vmatpush.bf16.msra.mxu2 %v14734_v43  ;;  %5492 = vmatpush.bf16.msrb.mxu1 %v14736_v44  ;;  %v14782_v43 = vld [vmem:[#allocation173_spill] sm:$0xff]  ;;  %v14783_v44 = vld [vmem:[#allocation147_spill] sm:$0xff] }
 0x500   :  { %5513 = vmatpush.bf16.msrb.mxu0 %v14735_v32  ;;  %5526 = vmatpush.bf16.msrb.mxu3 %v14737_v8 }
 0x503   :  { %5503 = vmatpush.bf16.msra.mxu2 %v14738_v17  ;;  %5493 = vmatpush.bf16.msrb.mxu1 %v14740_v36 }
 0x504   :  { %5514 = vmatpush.bf16.msrb.mxu0 %v14739_v51  ;;  %5527 = vmatpush.bf16.msrb.mxu3 %v14742_v29  ;;  %v14784_v51 = vld [vmem:[#allocation159_spill] sm:$0xff]  ;;  %v14786_v29 = vld [vmem:[#allocation152_spill] sm:$0xff] }
 0x507   :  { %5538 = vmatpush.bf16.msra.mxu1 %v14741_v52  ;;  %5504 = vmatpush.bf16.msra.mxu2 %v14743_v13  ;;  %v14785_v52 = vld [vmem:[#allocation175_spill] sm:$0xff]  ;;  %v14787_v13 = vld [vmem:[#allocation22_spill] sm:$0xff] }
 0x508   :  { %5515 = vmatpush.bf16.msrb.mxu0 %v14744_v54  ;;  %5528 = vmatpush.bf16.msrb.mxu3 %v14746_v40 }
 0x50b   :  { %5539 = vmatpush.bf16.msra.mxu1 %v14745_v59  ;;  %5505 = vmatpush.bf16.msra.mxu2 %v14747_v3  ;;  %v14788_v59 = vld [vmem:[#allocation163_spill] sm:$0xff]  ;;  %v14789_v3 = vld [vmem:[#allocation178_spill] sm:$0xff] }
 0x50c   :  { %5516 = vmatpush.bf16.msrb.mxu0 %v14748_v19  ;;  %5529 = vmatpush.bf16.msrb.mxu3 %v14750_v4  ;;  %v14790_v19 = vld [vmem:[#allocation157_spill] sm:$0xff]  ;;  %v14792_v4 = vld [vmem:[#allocation176_spill] sm:$0xff] }
 0x50f   :  { %5540 = vmatpush.bf16.msra.mxu1 %v14749_v60  ;;  %5506 = vmatpush.bf16.msra.mxu2 %v14751_v30  ;;  %v14793_v30 = vld [vmem:[#allocation167_spill] sm:$0xff] }
 0x510   :  { %5517 = vmatpush.bf16.msrb.mxu0 %v14752_v34  ;;  %5530 = vmatpush.bf16.msrb.mxu3 %v14755_v27  ;;  %v14794_v34 = vld [vmem:[#allocation180_spill] sm:$0xff] }
 0x513   :  { %5551 = vmatpush.bf16.msrb.mxu2 %v14753_v49  ;;  %5541 = vmatpush.bf16.msra.mxu1 %v14754_v38  ;;  %v14795_v49 = vld [vmem:[#allocation161_spill] sm:$0xff]  ;;  %v14796_v38 = vld [vmem:[#allocation179_spill] sm:$0xff] }
 0x514   :  { %5518 = vmatpush.bf16.msrb.mxu0 %v14756_v7  ;;  %5531 = vmatpush.bf16.msrb.mxu3 %v14759_v15  ;;  %v14797_v7 = vld [vmem:[#allocation171_spill] sm:$0xff]  ;;  %v14800_v15 = vld [vmem:[#allocation181_spill] sm:$0xff] }
 0x517   :  { %5552 = vmatpush.bf16.msrb.mxu2 %v14757_v20  ;;  %5542 = vmatpush.bf16.msra.mxu1 %v14758_v35  ;;  %v14798_v20 = vld [vmem:[#allocation182_spill] sm:$0xff]  ;;  %v14799_v35 = vld [vmem:[#allocation165_spill] sm:$0xff] }
 0x518   :  { %5519 = vmatpush.bf16.msrb.mxu0 %v14760_v9  ;;  %5532 = vmatpush.bf16.msrb.mxu3 %v14764_v16  ;;  %v14801_v9 = vld [vmem:[#allocation174_spill] sm:$0xff]  ;;  %v14805_v16 = vld [vmem:[#allocation177_spill] sm:$0xff] }
 0x51b   :  { %5553 = vmatpush.bf16.msrb.mxu2 %v14761_v53  ;;  %5543 = vmatpush.bf16.msra.mxu1 %v14763_v41  ;;  %v14803_v53 = vld [vmem:[#allocation169_spill] sm:$0xff] }
 0x51c   :  { %5564 = vmatpush.bf16.msra.mxu0 %v14762_v26  ;;  %v14804_v26 = vld [vmem:[#allocation183_spill] sm:$0xff] }
 0x51f   :  { %5554 = vmatpush.bf16.msrb.mxu2 %v14765_v37  ;;  %5544 = vmatpush.bf16.msra.mxu1 %v14767_v12  ;;  %v14806_v37 = vld [vmem:[#allocation24_spill] sm:$0xff] }
 0x520   :  { %5565 = vmatpush.bf16.msra.mxu0 %v14766_v6  ;;  %v14807_v6 = vld [vmem:[#allocation186_spill] sm:$0xff]  ;;  %v14808_v12 = vld [vmem:[#allocation36_spill] sm:$0xff] }
 0x523   :  { %5555 = vmatpush.bf16.msrb.mxu2 %v14768_v62  ;;  %5545 = vmatpush.bf16.msra.mxu1 %v14770_v61 }
 0x524   :  { %5566 = vmatpush.bf16.msra.mxu0 %v14769_v10  ;;  %v14809_v10 = vld [vmem:[#allocation185_spill] sm:$0xff] }
 0x527   :  { %5556 = vmatpush.bf16.msrb.mxu2 %v14771_v28  ;;  %v14810_v28 = vld [vmem:[#allocation188_spill] sm:$0xff] }
 0x528   :  { %5567 = vmatpush.bf16.msra.mxu0 %v14772_v50  ;;  %v14811_v50 = vld [vmem:[#allocation187_spill] sm:$0xff] }
 0x52b   :  { %5557 = vmatpush.bf16.msrb.mxu2 %v14773_v21 }
 0x52c   :  { %5568 = vmatpush.bf16.msra.mxu0 %v14774_v55  ;;  %v14812_v55 = vld [vmem:[#allocation189_spill] sm:$0xff] }
 0x52f   :  { %5558 = vmatpush.bf16.msrb.mxu2 %v14775_v57 }
 0x530   :  { %5569 = vmatpush.bf16.msra.mxu0 %v14776_v18  ;;  %v8483_v18 = vld [vmem:[%s13370_s6 + $0x38] sm:$0xff] }
 0x534   :  { %5570 = vmatpush.bf16.msra.mxu0 %v14777_v47  ;;  %v8484_v47 = vld [vmem:[%s13370_s6 + $0x30] sm:$0xff] }
 0x538   :  { %5571 = vmatpush.bf16.msra.mxu0 %v14778_v48  ;;  %v8485_v48 = vld [vmem:[%s13370_s6 + $0x28] sm:$0xff] }
 0x53c   :  { %v12829_v58 = vpop.f32.mrf.mxu0 }
 0x543   :  { %v12827_v14 = vpop.f32.mrf.mxu1 }
 0x544   :  { %v12833_v11 = vpop.f32.mrf.mxu0 }
 0x54b   :  { %v12831_v39 = vpop.f32.mrf.mxu1 }
 0x553   :  { %v5381_v45 = vpop.f32.mrf.mxu1 }
 0x554   :  { %v5439_v31 = vpack.c.bf16 %v5381_v45, %v5381_v45  ;;  %v8486_v45 = vld [vmem:[%s13370_s6 + $0x20] sm:$0xff] }
 0x555   :  { %v5394_v46 = vpop.f32.mrf.mxu2 }
 0x556   :  { %v5440_v0 = vpack.c.bf16 %v5394_v46, %v5394_v46  ;;  %5481 = vmatmul.bf16.vlgmr.msra.gmra.mxu3 %v5439_v31  ;;  %v8488_v46 = vld [vmem:[%s13370_s6 + $0x10] sm:$0xff] }
 0x557   :  { %5577 = vmatpush.bf16.msra.mxu3 %v14779_v5  ;;  %v8490_v5 = vld [vmem:[%s13370_s6] sm:$0xff] }
 0x558   :  { %5494 = vmatmul.bf16.vlgmr.msrb.gmra.mxu1 %v5440_v0 }
 0x559   :  { %5590 = vmatpush.bf16.msrb.mxu1 %v14780_v2 }
 0x55a   :  { %v5407_v22 = vpop.f32.mrf.mxu0 }
 0x55b   :  { %v5441_v33 = vpack.c.bf16 %v5407_v22, %v5407_v22  ;;  %v5383_v63 = vpop.f32.mrf.mxu1  ;;  %5578 = vmatpush.bf16.msra.mxu3 %v14781_v23 }
 0x55d   :  { %5507 = vmatmul.bf16.vlgmr.msra.gmra.mxu2 %v5441_v33  ;;  %v5396_v32 = vpop.f32.mrf.mxu2  ;;  %5591 = vmatpush.bf16.msrb.mxu1 %v14783_v44 }
 0x55e   :  { %5603 = vmatpush.bf16.msra.mxu2 %v14782_v43 }
 0x55f   :  { %5579 = vmatpush.bf16.msra.mxu3 %v14784_v51 }
 0x560   :  { %v5420_v8 = vpop.f32.mrf.mxu3 }
 0x561   :  { %v5442_v17 = vpack.c.bf16 %v5420_v8, %v5420_v8  ;;  %5592 = vmatpush.bf16.msrb.mxu1 %v14786_v29 }
 0x562   :  { %v5409_v36 = vpop.f32.mrf.mxu0  ;;  %5604 = vmatpush.bf16.msra.mxu2 %v14785_v52 }
 0x563   :  { %5520 = vmatmul.bf16.vlgmr.msrb.gmra.mxu0 %v5442_v17  ;;  %v5433_v54 = vpop.f32.mrf.mxu1  ;;  %5580 = vmatpush.bf16.msra.mxu3 %v14788_v59 }
 0x564   :  { %5616 = vmatpush.bf16.msrb.mxu0 %v14787_v13  ;;  %v5443_v40 = vpack.c.bf16 %v5433_v54, %v5433_v54 }
 0x565   :  { %5593 = vmatpush.bf16.msrb.mxu1 %v14790_v19 }
 0x566   :  { %5605 = vmatpush.bf16.msra.mxu2 %v14789_v3  ;;  %7764 = vmatmul.msk.bf16.vlgmr.msrb.gmra.mxu3 %vm14791_vm7, %v5443_v40  ;;  %vm14848_vm7 = vcmask 900096  }
 0x567   :  { %5581 = vmatpush.bf16.msra.mxu3 %v14793_v30 }
 0x568   :  { %v5422_v60 = vpop.f32.mrf.mxu3  ;;  %5617 = vmatpush.bf16.msrb.mxu0 %v14792_v4  ;;  %5546 = vmatmul.bf16.vlgmr.msra.gmra.mxu1 %v12761_v56  ;;  %v14802_v56 = vld [vmem:[#allocation184_spill] sm:$0xff] }
 0x569   :  { %5594 = vmatpush.bf16.msrb.mxu1 %v14795_v49 }
 0x56a   :  { %5606 = vmatpush.bf16.msra.mxu2 %v14794_v34 }
 0x56b   :  { %v5435_v27 = vpop.f32.mrf.mxu1  ;;  %5582 = vmatpush.bf16.msra.mxu3 %v14797_v7 }
 0x56c   :  { %5618 = vmatpush.bf16.msrb.mxu0 %v14796_v38 }
 0x56d   :  { %5559 = vmatmul.bf16.vlgmr.msrb.gmra.mxu2 %v12773_v42  ;;  %5595 = vmatpush.bf16.msrb.mxu1 %v14799_v35 }
 0x56e   :  { %5607 = vmatpush.bf16.msra.mxu2 %v14798_v20 }
 0x56f   :  { %5583 = vmatpush.bf16.msra.mxu3 %v14801_v9 }
 0x570   :  { %5619 = vmatpush.bf16.msrb.mxu0 %v14800_v15 }
 0x571   :  { %5596 = vmatpush.bf16.msrb.mxu1 %v14803_v53 }
 0x572   :  { %5608 = vmatpush.bf16.msra.mxu2 %v14802_v56 }
 0x573   :  { %5572 = vmatmul.bf16.vlgmr.msra.gmra.mxu0 %v5439_v31  ;;  %5584 = vmatpush.bf16.msra.mxu3 %v14805_v16  ;;  %v8487_v31 = vld [vmem:[%s13370_s6 + $0x18] sm:$0xff] }
 0x574   :  { %5620 = vmatpush.bf16.msrb.mxu0 %v14804_v26 }
 0x575   :  { %v5456_v41 = vpop.f32.mrf.mxu2  ;;  %5597 = vmatpush.bf16.msrb.mxu1 %v14808_v12 }
 0x576   :  { %v5457_v42 = vadd.f32 %v5456_v41, %v14806_v37  ;;  %5609 = vmatpush.bf16.msra.mxu2 %v14807_v6  ;;  %5585 = vmatmul.bf16.vlgmr.msra.gmra.mxu3 %v5440_v0  ;;  %v8489_v0 = vld [vmem:[%s13370_s6 + $0x8] sm:$0xff]  ;;  %v14814_v41 = vld [vmem:[#allocation25_spill] sm:$0xff]  ;;  %s14816_s6 = smov 98  }
 0x577   :  { %vm14815_vm0 = vnez %v14814_v41  ;;  %v14861_v41 = vld [vmem:[#allocation21_spill] sm:$0xff] }
 0x578   :  { %5621 = vmatpush.bf16.msrb.mxu0 %v14809_v10  ;;  %5598 = vmatmul.bf16.vlgmr.msrb.gmra.mxu1 %v5441_v33 }
 0x57a   :  { %v5469_v62 = vpop.f32.mrf.mxu0  ;;  %5610 = vmatpush.bf16.msra.mxu2 %v14810_v28 }
 0x57b   :  { %v5470_v61 = vadd.f32 %v5469_v62, %v5457_v42 }
 0x57c   :  { %5622 = vmatpush.bf16.msrb.mxu0 %v14811_v50 }
 0x57d   :  { %5611 = vmatmul.bf16.vlgmr.msra.gmra.mxu2 %v5442_v17  ;;  %v5458_v21 = vpop.f32.mrf.mxu2 }
 0x57e   :  { %v163_v21 = vld [vmem:[%s13369_s5 + $0x8] sm:$0xff] }
 0x580   :  { %5623 = vmatpush.bf16.msrb.mxu0 %v14812_v55  ;;  %v162_v55 = vld [vmem:[%s13369_s5] sm:$0xff] }
 0x582   :  { %v5471_v57 = vpop.f32.mrf.mxu0 }
 0x583   :  { %7765 = vmatmul.msk.bf16.vlgmr.msrb.gmra.mxu0 %vm14813_vm9, %v5443_v40  ;;  %vm14849_vm9 = vcmask 580608  }
 0x584   :  { %6034 = vmatpush.bf16.msra.mxu0 %v8483_v18 }
 0x588   :  { %6035 = vmatpush.bf16.msra.mxu0 %v8484_v47 }
 0x58c   :  { %6036 = vmatpush.bf16.msra.mxu0 %v8485_v48  ;;  %v14835_v48 = vld [vmem:[#allocation55_spill] sm:$0xff] }
 0x58d   :  { %vm14836_vm10 = vnez %v14835_v48 }
 0x590   :  { %6037 = vmatpush.bf16.msra.mxu0 %v8486_v45 }
 0x594   :  { %6038 = vmatpush.bf16.msra.mxu0 %v8487_v31 }
 0x598   :  { %6039 = vmatpush.bf16.msra.mxu0 %v8488_v46 }
 0x59c   :  { %6040 = vmatpush.bf16.msra.mxu0 %v8489_v0  ;;  %v14838_v0 = vld [vmem:[#allocation56_spill] sm:$0xff] }
 0x59d   :  { %vm14839_vm13 = vnez %v14838_v0 }
 0x5a0   :  { %6041 = vmatpush.bf16.msra.mxu0 %v8490_v5 }
 0x5d5   :  { %v5495_v22 = vpop.f32.mrf.mxu1 }
 0x5d9   :  { %v5482_v33 = vpop.f32.mrf.mxu3 }
 0x5da   :  { %v5483_v59 = vadd.f32 %v5482_v33, %v5470_v61 }
 0x5dc   :  { %v5496_v4 = vadd.f32 %v5495_v22, %v5483_v59 }
 0x5dd   :  { %v5497_v2 = vpop.f32.mrf.mxu1 }
 0x5e0   :  { %v5508_v63 = vpop.f32.mrf.mxu2  ;;  %v5521_v23 = vpop.f32.mrf.mxu0 }
 0x5e1   :  { %v5484_v43 = vpop.f32.mrf.mxu3  ;;  %v5509_v49 = vadd.f32 %v5508_v63, %v5496_v4 }
 0x5e3   :  { %v5522_v35 = vadd.f32 %v5521_v23, %v5509_v49 }
 0x5e5   :  { %v5547_v32 = vpop.f32.mrf.mxu1 }
 0x5e6   :  { %v5548_v13 = vadd.f32 %v5547_v32, %v14806_v37 }
 0x5e8   :  { %v5510_v44 = vpop.f32.mrf.mxu2  ;;  %v5523_v8 = vpop.f32.mrf.mxu0 }
 0x5e9   :  { %v5534_v17 = vpop.f32.mrf.mxu3 }
 0x5ea   :  { %v5535_v9 = vadd.f32 %v5534_v17, %v5522_v35 }
 0x5ed   :  { %v5549_v51 = vpop.f32.mrf.mxu1 }
 0x5f0   :  { %v5560_v36 = vpop.f32.mrf.mxu2  ;;  %v5573_v52 = vpop.f32.mrf.mxu0 }
 0x5f1   :  { %v5536_v29 = vpop.f32.mrf.mxu3  ;;  %v5561_v54 = vadd.f32 %v5560_v36, %v5548_v13 }
 0x5f3   :  { %v5574_v60 = vadd.f32 %v5573_v52, %v5561_v54 }
 0x5f5   :  { %v5599_v40 = vpop.f32.mrf.mxu1 }
 0x5f8   :  { %v5562_v3 = vpop.f32.mrf.mxu2  ;;  %v5575_v19 = vpop.f32.mrf.mxu0 }
 0x5f9   :  { %v5586_v30 = vpop.f32.mrf.mxu3 }
 0x5fa   :  { %v5587_v34 = vadd.f32 %v5586_v30, %v5574_v60 }
 0x5fc   :  { %v5600_v27 = vadd.f32 %v5599_v40, %v5587_v34  ;;  %v14846_v40 = vld [vmem:[#allocation12_spill] sm:$0xff] }
 0x5fd   :  { %v5601_v38 = vpop.f32.mrf.mxu1  ;;  %vm14847_vm11 = vnez %v14846_v40 }
 0x600   :  { %v5612_v7 = vpop.f32.mrf.mxu2  ;;  %v5625_v20 = vpop.f32.mrf.mxu0 }
 0x601   :  { %v5613_v15 = vadd.f32 %v5612_v7, %v5600_v27  ;;  %v5588_v53 = vpop.f32.mrf.mxu3 }
 0x603   :  { %v5626_v56 = vadd.f32 %v5625_v20, %v5613_v15 }
 0x605   :  { %v5629_v26 = vpack.c.bf16 %v5626_v56, %v5535_v9 }
 0x607   :  { %5630 = vst.msk [vmem:[#allocation3] sm:$0x77] %vm14815_vm0, %v5629_v26  ;;  %5739 = vrot.lane.b32.xlu1 %v5629_v26, %s14816_s6  ;;  %5775 = vrot.lane.b32.xlu2 %v5629_v26, %s14817_s2  ;;  %v5660_v42 = vrot.slane %v5629_v26, 7  ;;  %v5646_v6 = vrot.slane %v5629_v26, 6  ;;  %v5632_v12 = vrot.slane %v5629_v26, 5  ;;  %s14832_s6 = smov 114  }
 0x608   :  { %5811 = vrot.lane.b32.xlu0 %v5629_v26, %s14818_s23  ;;  %v5614_v16 = vpop.f32.mrf.mxu2  ;;  %v5627_v37 = vpop.f32.mrf.mxu0 }
 0x609   :  { %v5647_v62 = vrot.slane %v5646_v6, 4  ;;  %v5633_v10 = vrot.slane %v5632_v12, 4 }
 0x60f   :  { %5703 = vrot.lane.b32.xlu1 %v5629_v26, %s14819_s16  ;;  %5805 = vrot.lane.b32.xlu2 %v5660_v42, %s14820_s17  ;;  %s8557_s16 = smov [#allocation5]  }
 0x610   :  { %5847 = vrot.lane.b32.xlu0 %v5629_v26, %s14821_s20  ;;  %s6892_s17 = sshll.u32 %s8557_s16, 4  ;;  %s6893_s17 = int_to_ptr.vmem [resolvable:$true] %s6892_s17 }
 0x617   :  { %5793 = vrot.lane.b32.xlu2 %v5646_v6, %s8544_s27  ;;  %5817 = vrot.lane.b32.xlu1 %v5632_v12, %s14387_s15 }
 0x618   :  { %5781 = vrot.lane.b32.xlu0 %v5632_v12, %s14822_s19 }
 0x61f   :  { %5757 = vrot.lane.b32.xlu2 %v5646_v6, %s14384_s25  ;;  %5769 = vrot.lane.b32.xlu1 %v5660_v42, %s14823_s21 }
 0x620   :  { %5733 = vrot.lane.b32.xlu0 %v5660_v42, %s14824_s22 }
 0x627   :  { %5745 = vrot.lane.b32.xlu2 %v5632_v12, %s14825_s1  ;;  %5829 = vrot.lane.b32.xlu1 %v5646_v6, %s14826_s4 }
 0x628   :  { %5841 = vrot.lane.b32.xlu0 %v5660_v42, %s14827_s24 }
 0x62f   :  { %5709 = vrot.lane.b32.xlu2 %v5632_v12, %s14828_s0  ;;  %5721 = vrot.lane.b32.xlu1 %v5646_v6, %s14829_s28 }
 0x630   :  { %5685 = vrot.lane.b32.xlu0 %v5646_v6, %s14830_s18 }
 0x637   :  { %5697 = vrot.lane.b32.xlu2 %v5660_v42, %s14831_s29  ;;  %5795 = vrot.lane.b32.xlu1 %v5647_v62, %s8544_s27 }
 0x638   :  { %5673 = vrot.lane.b32.xlu0 %v5632_v12, %s14832_s6 }
 0x63f   :  { %5667 = vrot.lane.b32.xlu2 %v5629_v26, %s14408_s3  ;;  %5783 = vrot.lane.b32.xlu1 %v5633_v10, %s14822_s19  ;;  %s6894_s19 = sshll.u32 %s13377_s13, 4  ;;  %s6895_s19 = int_to_ptr.hbm [resolvable:$true] %s6894_s19 }
 0x640   :  { %5759 = vrot.lane.b32.xlu0 %v5647_v62, %s14384_s25 }
 0x647   :  { %5723 = vrot.lane.b32.xlu2 %v5647_v62, %s14829_s28  ;;  %5747 = vrot.lane.b32.xlu1 %v5633_v10, %s14825_s1 }
 0x648   :  { %5819 = vrot.lane.b32.xlu0 %v5633_v10, %s14387_s15 }
 0x64f   :  { %5831 = vrot.lane.b32.xlu2 %v5647_v62, %s14826_s4  ;;  %5661 = vrot.lane.b32.xlu1 %v5660_v42, %s8519_s14 }
 0x650   :  { %5711 = vrot.lane.b32.xlu0 %v5633_v10, %s14828_s0 }
 0x657   :  { %5675 = vrot.lane.b32.xlu2 %v5633_v10, %s14832_s6  ;;  %5687 = vrot.lane.b32.xlu1 %v5647_v62, %s14830_s18 }
 0x658   :  { %5650 = vrot.lane.b32.xlu0 %v5647_v62, %s8518_s30 }
 0x65f   :  { %5636 = vrot.lane.b32.xlu2 %v5633_v10, %s14385_s26  ;;  %5634 = vrot.lane.b32.xlu1 %v5632_v12, %s14385_s26 }
 0x660   :  { %5648 = vrot.lane.b32.xlu0 %v5646_v6, %s8518_s30 }
 0x661   :  { %v5776_v61 = vpop.permute.xlu2 %5775 }
 0x662   :  { %v5777_v28 = vrot.slane %v5776_v61, 4 }
 0x664   :  { %v5778_v50 = vsel %vm14833_vm1, %v5776_v61, %v5777_v28  ;;  %vm14850_vm1 = vcmask 687104  }
 0x665   :  { %5780 = vst.msk [vmem:[#allocation3 + $0x60] sm:$0x77] %vm14815_vm0, %v5778_v50 }
 0x667   :  { %3418 = vperm.xlu2 %8478, %v163_v21   ;;  %3413 = vperm.xlu1 %8477, %v162_v55  }
 0x669   :  { %v5806_v57 = vpop.permute.xlu2 %5805 }
 0x66a   :  { %v5807_v18 = vrot.slane %v5806_v57, 4 }
 0x66c   :  { %v5808_v47 = vsel %vm14834_vm4, %v5806_v57, %v5807_v18  ;;  %vm14851_vm4 = vcmask 1042432  }
 0x66d   :  { %5810 = vst.msk [vmem:[#allocation3 + $0x70] sm:$0xee] %vm14836_vm10, %v5808_v47 }
 0x671   :  { %v5794_v45 = vpop.permute.xlu2 %5793 }
 0x672   :  { %v5797_v31 = vrot.slane %v5794_v45, 4 }
 0x674   :  { %v5799_v46 = vsel %vm14837_vm6, %v5794_v45, %v5797_v31  ;;  %vm14852_vm6 = vmmov %vm14851_vm4 }
 0x675   :  { %5803 = vst.msk [vmem:[#allocation3 + $0x68] sm:$0xcc] %vm14839_vm13, %v5799_v46 }
 0x679   :  { %v5740_v5 = vpop.permute.xlu1 %5739  ;;  %v5758_v22 = vpop.permute.xlu2 %5757 }
 0x67a   :  { %v5741_v33 = vrot.slane %v5740_v5, 4  ;;  %v5812_v2 = vpop.permute.xlu0 %5811  ;;  %v5761_v63 = vrot.slane %v5758_v22, 4 }
 0x67b   :  { %v5813_v23 = vrot.slane %v5812_v2, 4 }
 0x67c   :  { %v5742_v43 = vsel %vm14840_vm3, %v5740_v5, %v5741_v33  ;;  %v5763_v32 = vsel %vm14841_vm12, %v5758_v22, %v5761_v63  ;;  %vm14853_vm3 = vcmask 916480   ;;  %vm14854_vm12 = vcmask 703488  }
 0x67d   :  { %5744 = vst.msk [vmem:[#allocation3 + $0x48] sm:$0x77] %vm14815_vm0, %v5742_v43  ;;  %v5814_v44 = vsel %vm14842_vm8, %v5812_v2, %v5813_v23  ;;  %vm14855_vm8 = vcmask 809984  }
 0x67e   :  { %5816 = vst.msk [vmem:[#allocation3 + $0x78] sm:$0x77] %vm14815_vm0, %v5814_v44 }
 0x67f   :  { %5767 = vst.msk [vmem:[#allocation3 + $0x50] sm:$0xcc] %vm14839_vm13, %v5763_v32 }
 0x681   :  { %v5704_v8 = vpop.permute.xlu1 %5703  ;;  %v5746_v17 = vpop.permute.xlu2 %5745 }
 0x682   :  { %v5705_v51 = vrot.slane %v5704_v8, 4  ;;  %v5848_v36 = vpop.permute.xlu0 %5847  ;;  %v5749_v52 = vrot.slane %v5746_v17, 4 }
 0x683   :  { %v5849_v29 = vrot.slane %v5848_v36, 4 }
 0x684   :  { %v5706_v13 = vsel %vm14843_vm5, %v5704_v8, %v5705_v51  ;;  %v5751_v54 = vsel %vm14844_vm14, %v5746_v17, %v5749_v52  ;;  %vm14856_vm5 = vcmask 1014784   ;;  %vm14857_vm14 = vcmask 572416  }
 0x685   :  { %5708 = vst.msk [vmem:[#allocation3 + $0x30] sm:$0x77] %vm14815_vm0, %v5706_v13  ;;  %v5850_v59 = vsel %vm14845_vm15, %v5848_v36, %v5849_v29  ;;  %vm14858_vm15 = vcmask 564224  }
 0x686   :  { %5852 = vst.msk [vmem:[#allocation3 + $0x90] sm:$0x77] %vm14815_vm0, %v5850_v59 }
 0x687   :  { %5755 = vst.msk [vmem:[#allocation3 + $0x48] sm:$0x88] %vm14847_vm11, %v5751_v54 }
 0x689   :  { %v5710_v3 = vpop.permute.xlu2 %5709  ;;  %v5818_v19 = vpop.permute.xlu1 %5817 }
 0x68a   :  { %v5713_v60 = vrot.slane %v5710_v3, 4  ;;  %v5782_v4 = vpop.permute.xlu0 %5781  ;;  %v5821_v30 = vrot.slane %v5818_v19, 4 }
 0x68b   :  { %v5785_v34 = vrot.slane %v5782_v4, 4 }
 0x68c   :  { %v5715_v49 = vsel %vm14848_vm7, %v5710_v3, %v5713_v60  ;;  %v5823_v38 = vsel %vm14849_vm9, %v5818_v19, %v5821_v30  ;;  %vm14859_vm7 = vcmask 818176  }
 0x68d   :  { %5719 = vst.msk [vmem:[#allocation3 + $0x30] sm:$0x88] %vm14847_vm11, %v5715_v49  ;;  %v5787_v27 = vsel %vm14850_vm1, %v5782_v4, %v5785_v34  ;;  %v5871_v7 = vld [vmem:[#allocation3 + $0x90] sm:$0x77]  ;;  %vm14860_vm9 = vmmov %vm14859_vm7  ;;  %vm14863_vm1 = vcmask 924672  }
 0x68e   :  { %5791 = vst.msk [vmem:[#allocation3 + $0x60] sm:$0x88] %vm14847_vm11, %v5787_v27  ;;  %v5927_v20 = vunpack.c.l.b16 %v5871_v7  ;;  %v5928_v35 = vunpack.c.h.b16 %v5871_v7  ;;  %v14870_v27 = vld [vmem:[#allocation41_spill] sm:$0xff] }
 0x68f   :  { %5827 = vst.msk [vmem:[#allocation3 + $0x78] sm:$0x88] %vm14847_vm11, %v5823_v38 }
 0x690   :  { %v5947_v15 = vpack.c.b16 %v5927_v20, %v5927_v20  ;;  %v5948_v9 = vpack.c.b16 %v5928_v35, %v5928_v35 }
 0x691   :  { %v5698_v56 = vpop.permute.xlu2 %5697  ;;  %v5770_v53 = vpop.permute.xlu1 %5769 }
 0x692   :  { %v5699_v26 = vrot.slane %v5698_v56, 4  ;;  %v5734_v16 = vpop.permute.xlu0 %5733  ;;  %v5771_v37 = vrot.slane %v5770_v53, 4  ;;  %v5968_v42 = vsel %vm14851_vm4, %v5947_v15, 0  ;;  %v5971_v6 = vsel %vm14852_vm6, %v5948_v9, 0  ;;  %vm14864_vm4 = vmmov %vm14857_vm14 }
 0x693   :  { %v5735_v12 = vrot.slane %v5734_v16, 4  ;;  %5993 = vmatpush.bf16.msra.mxu1 %v5968_v42  ;;  %6021 = vmatpush.bf16.msrb.mxu2 %v5971_v6  ;;  %vm14865_vm6 = vcmask 678912  }
 0x694   :  { %v5700_v62 = vsel %vm14853_vm3, %v5698_v56, %v5699_v26  ;;  %v5772_v10 = vsel %vm14854_vm12, %v5770_v53, %v5771_v37  ;;  %vm14866_vm3 = vcmask 932864  }
 0x695   :  { %5702 = vst.msk [vmem:[#allocation3 + $0x28] sm:$0xee] %vm14836_vm10, %v5700_v62  ;;  %v5736_v61 = vsel %vm14855_vm8, %v5734_v16, %v5735_v12  ;;  %vm14867_vm12 = vmmov %vm14866_vm3  ;;  %vm14868_vm8 = vcmask 687104   ;;  %v7816_v12 = vld [vmem:[#allocation3 + $0x60] sm:$0xf] }
 0x696   :  { %5738 = vst.msk [vmem:[#allocation3 + $0x40] sm:$0xee] %vm14836_vm10, %v5736_v61  ;;  %v8324_v20 = vld [vmem:[#allocation3 + $0x74] sm:$0xf0] }
 0x697   :  { %5774 = vst.msk [vmem:[#allocation3 + $0x58] sm:$0xee] %vm14836_vm10, %v5772_v10 }
 0x699   :  { %v5668_v28 = vpop.permute.xlu2 %5667  ;;  %v5830_v50 = vpop.permute.xlu1 %5829 }
 0x69a   :  { %v5669_v21 = vrot.slane %v5668_v28, 4  ;;  %v5842_v55 = vpop.permute.xlu0 %5841  ;;  %v5833_v57 = vrot.slane %v5830_v50, 4 }
 0x69b   :  { %v5843_v18 = vrot.slane %v5842_v55, 4 }
 0x69c   :  { %v5670_v47 = vsel %vm14856_vm5, %v5668_v28, %v5669_v21  ;;  %v5835_v45 = vsel %vm14857_vm14, %v5830_v50, %v5833_v57  ;;  %vm14869_vm5 = vcmask 785408   ;;  %vm14871_vm14 = vnez %v14870_v27 }
 0x69d   :  { %5672 = vst.msk [vmem:[#allocation3 + $0x18] sm:$0x77] %vm14815_vm0, %v5670_v47  ;;  %v5844_v31 = vsel %vm14858_vm15, %v5842_v55, %v5843_v18  ;;  %vm14862_vm0 = vnez %v14861_v41  ;;  %vm14872_vm15 = vcmask 1039360  }
 0x69e   :  { %5846 = vst.msk [vmem:[#allocation3 + $0x88] sm:$0xee] %vm14836_vm10, %v5844_v31 }
 0x69f   :  { %5839 = vst.msk [vmem:[#allocation3 + $0x80] sm:$0xcc] %vm14839_vm13, %v5835_v45 }
 0x6a1   :  { %v5724_v46 = vpop.permute.xlu2 %5723  ;;  %v5722_v5 = vpop.permute.xlu1 %5721 }
 0x6a2   :  { %v5726_v22 = vrot.slane %v5724_v46, 4  ;;  %v5686_v33 = vpop.permute.xlu0 %5685  ;;  %v5725_v2 = vrot.slane %v5722_v5, 4 }
 0x6a3   :  { %v5689_v63 = vrot.slane %v5686_v33, 4 }
 0x6a4   :  { %v5728_v23 = vsel %vm14859_vm7, %v5724_v46, %v5726_v22  ;;  %v5727_v43 = vsel %vm14860_vm9, %v5722_v5, %v5725_v2  ;;  %vm14873_vm7 = vcmask 793600   ;;  %vm14874_vm9 = vcmask 580608   ;;  %v7826_v5 = vld [vmem:[#allocation3 + $0x78] sm:$0xf0] }
 0x6a5   :  { %5732 = vst.msk [vmem:[#allocation3 + $0x40] sm:$0x11] %vm14862_vm0, %v5728_v23  ;;  %v5691_v32 = vsel %vm14863_vm1, %v5686_v33, %v5689_v63  ;;  %vm3510_vm1 = vcmask 199680  }
 0x6a6   :  { %5695 = vst.msk [vmem:[#allocation3 + $0x20] sm:$0xcc] %vm14839_vm13, %v5691_v32 }
 0x6a7   :  { %5731 = vst.msk [vmem:[#allocation3 + $0x38] sm:$0xcc] %vm14839_vm13, %v5727_v43 }
 0x6a9   :  { %v5832_v44 = vpop.permute.xlu2 %5831  ;;  %v5796_v8 = vpop.permute.xlu1 %5795 }
 0x6aa   :  { %v5834_v17 = vrot.slane %v5832_v44, 4  ;;  %v5674_v51 = vpop.permute.xlu0 %5673  ;;  %v5798_v36 = vrot.slane %v5796_v8, 4 }
 0x6ab   :  { %v5677_v52 = vrot.slane %v5674_v51, 4 }
 0x6ac   :  { %v5836_v29 = vsel %vm14864_vm4, %v5832_v44, %v5834_v17  ;;  %v5800_v13 = vsel %vm14865_vm6, %v5796_v8, %v5798_v36  ;;  %vm14875_vm4 = vcmask 1022976   ;;  %vm14876_vm6 = vcmask 900096   ;;  %v7800_v8 = vld [vmem:[#allocation3 + $0x40] sm:$0xf] }
 0x6ad   :  { %5840 = vst.msk [vmem:[#allocation3 + $0x88] sm:$0x11] %vm14862_vm0, %v5836_v29  ;;  %v5679_v54 = vsel %vm14866_vm3, %v5674_v51, %v5677_v52  ;;  %v8318_v52 = vld [vmem:[#allocation3 + $0x44] sm:$0xf0]  ;;  %v8321_v29 = vld [vmem:[#allocation3 + $0x64] sm:$0xf] }
 0x6ae   :  { %5683 = vst.msk [vmem:[#allocation3 + $0x18] sm:$0x88] %vm14847_vm11, %v5679_v54  ;;  %v7801_v54 = vor.u32 %v8318_v52, %v7800_v8  ;;  %v7875_v52 = vld [vmem:[%s13371_s7 + $0x28] sm:$0xf] }
 0x6af   :  { %5804 = vst.msk [vmem:[#allocation3 + $0x70] sm:$0x11] %vm14862_vm0, %v5800_v13 }
 0x6b1   :  { %v5676_v59 = vpop.permute.xlu2 %5675  ;;  %v5784_v3 = vpop.permute.xlu1 %5783 }
 0x6b2   :  { %v5760_v19 = vpop.permute.xlu0 %5759  ;;  %v5678_v60 = vrot.slane %v5676_v59, 4  ;;  %v5786_v4 = vrot.slane %v5784_v3, 4 }
 0x6b3   :  { %v5762_v30 = vrot.slane %v5760_v19, 4 }
 0x6b4   :  { %v5680_v34 = vsel %vm14867_vm12, %v5676_v59, %v5678_v60  ;;  %v5788_v49 = vsel %vm14868_vm8, %v5784_v3, %v5786_v4  ;;  %v8326_v45 = vld [vmem:[#allocation3 + $0x84] sm:$0xf0]  ;;  %v7834_v31 = vld [vmem:[#allocation3 + $0x88] sm:$0xf0]  ;;  %vm14879_vm12 = vcmask 924672   ;;  %vm14880_vm8 = vcmask 1031168  }
 0x6b5   :  { %v5764_v38 = vsel %vm14869_vm5, %v5760_v19, %v5762_v30  ;;  %5684 = vst.msk [vmem:[#allocation3 + $0x20] sm:$0x33] %vm14871_vm14, %v5680_v34  ;;  %vm14881_vm5 = vmmov %vm14872_vm15 }
 0x6b6   :  { %5768 = vst.msk [vmem:[#allocation3 + $0x58] sm:$0x11] %vm14862_vm0, %v5764_v38  ;;  %v7824_v7 = vld [vmem:[#allocation3 + $0x70] sm:$0xf]  ;;  %v8323_v46 = vld [vmem:[#allocation3 + $0x74] sm:$0xf] }
 0x6b7   :  { %5792 = vst.msk [vmem:[#allocation3 + $0x68] sm:$0x33] %vm14871_vm14, %v5788_v49  ;;  %v7825_v35 = vor.u32 %v8324_v20, %v7824_v7  ;;  %v7829_v44 = vor.u32 %v8323_v46, %v7826_v5  ;;  %v8317_v38 = vld [vmem:[#allocation3 + $0x44] sm:$0xf]  ;;  %v7802_v20 = vld [vmem:[#allocation3 + $0x48] sm:$0xf0] }
 0x6b9   :  { %5973 = vmatpush.bf16.msrb.mxu3 %v7825_v35  ;;  %v5637_v15 = vpop.permute.xlu2 %5636  ;;  %v5748_v9 = vpop.permute.xlu1 %5747 }
 0x6ba   :  { %v5639_v56 = vrot.slane %v5637_v15, 4  ;;  %v5820_v53 = vpop.permute.xlu0 %5819  ;;  %v5750_v26 = vrot.slane %v5748_v9, 4 }
 0x6bb   :  { %v5822_v16 = vrot.slane %v5820_v53, 4 }
 0x6bc   :  { %v5641_v37 = vsel %vm14872_vm15, %v5637_v15, %v5639_v56  ;;  %v5752_v42 = vsel %vm14873_vm7, %v5748_v9, %v5750_v26  ;;  %v7805_v15 = vor.u32 %v8317_v38, %v7802_v20  ;;  %v7784_v56 = vld [vmem:[#allocation3 + $0x20] sm:$0xf]  ;;  %v8313_v40 = vld [vmem:[#allocation3 + $0x24] sm:$0xf]  ;;  %v7888_v20 = vld [vmem:[%s13371_s7 + $0x38] sm:$0xf] }
 0x6bd   :  { %5645 = vst.msk [vmem:[#allocation3 + $0x8] sm:$0x33] %vm14871_vm14, %v5641_v37  ;;  %v5824_v6 = vsel %vm14874_vm9, %v5820_v53, %v5822_v16  ;;  %v8320_v23 = vld [vmem:[#allocation3 + $0x54] sm:$0xf0]  ;;  %v7810_v34 = vld [vmem:[#allocation3 + $0x58] sm:$0xf0] }
 0x6be   :  { %5828 = vst.msk [vmem:[#allocation3 + $0x80] sm:$0x33] %vm14871_vm14, %v5824_v6  ;;  %v8322_v62 = vld [vmem:[#allocation3 + $0x64] sm:$0xf0]  ;;  %v7818_v17 = vld [vmem:[#allocation3 + $0x68] sm:$0xf0] }
 0x6bf   :  { %5756 = vst.msk [vmem:[#allocation3 + $0x50] sm:$0x33] %vm14871_vm14, %v5752_v42  ;;  %v7817_v10 = vor.u32 %v8322_v62, %v7816_v12  ;;  %v7821_v59 = vor.u32 %v8321_v29, %v7818_v17  ;;  %v8315_v37 = vld [vmem:[#allocation3 + $0x34] sm:$0xf]  ;;  %v8312_v12 = vld [vmem:[#allocation3 + $0x14] sm:$0xf0] }
 0x6c0   :  { %vm6795_vm15 = vcmask 982016   ;;  %vm14886_vm7 = vcmask 687104   ;;  %vm6885_vm9 = vcmask 74752  }
 0x6c1   :  { %5974 = vmatpush.bf16.msrb.mxu3 %v7817_v10  ;;  %v13033_v61 = vpop.permute.xlu2 %3418  ;;  %v5662_v28 = vpop.permute.xlu1 %5661 }
 0x6c2   :  { %v3492_v50 = vadd.f32 %v12833_v11, %v13033_v61  ;;  %v5712_v21 = vpop.permute.xlu0 %5711  ;;  %v5663_v55 = vrot.slane %v5662_v28, 4 }
 0x6c3   :  { %v5714_v57 = vrot.slane %v5712_v21, 4 }
 0x6c4   :  { %v3506_v18 = vadd.f32 %v12831_v39, %v3492_v50  ;;  %v5664_v47 = vsel %vm14875_vm4, %v5662_v28, %v5663_v55 }
 0x6c5   :  { %v5716_v22 = vsel %vm14876_vm6, %v5712_v21, %v5714_v57  ;;  %5666 = vst.msk [vmem:[#allocation3 + $0x10] sm:$0xee] %vm14836_vm10, %v5664_v47  ;;  %v7832_v33 = vld [vmem:[#allocation3 + $0x80] sm:$0xf]  ;;  %v8325_v2 = vld [vmem:[#allocation3 + $0x84] sm:$0xf] }
 0x6c6   :  { %v3509_v11 = vpack.c.bf16 %v3506_v18, %v3506_v18  ;;  %5720 = vst.msk [vmem:[#allocation3 + $0x38] sm:$0x33] %vm14871_vm14, %v5716_v22  ;;  %v7808_v63 = vld [vmem:[#allocation3 + $0x50] sm:$0xf]  ;;  %v7833_v39 = vor.u32 %v8326_v45, %v7832_v33  ;;  %v7837_v43 = vor.u32 %v8325_v2, %v7834_v31  ;;  %vm14877_vm10 = vcmask 179200   ;;  %vm14882_vm14 = vmmov %vm14880_vm8 }
 0x6c7   :  { %v7809_v32 = vor.u32 %v8320_v23, %v7808_v63  ;;  %vm14878_vm3 = vmmov %vm14877_vm10  ;;  %v8319_v19 = vld [vmem:[#allocation3 + $0x54] sm:$0xf]  ;;  %v7778_v31 = vld [vmem:[#allocation3 + $0x18] sm:$0xf0] }
 0x6c8   :  { %3512 = vst.msk [vmem:[#allocation4 + $0x4] sm:$0xf] %vm3510_vm1, %v3509_v11  ;;  %5994 = vmatpush.bf16.msra.mxu1 %v7833_v39  ;;  %6022 = vmatpush.bf16.msrb.mxu2 %v7837_v43  ;;  %v7813_v49 = vor.u32 %v8319_v19, %v7810_v34  ;;  %v7955_v19 = vld [vmem:[%s13371_s7 + $0x88] sm:$0xf] }
 0x6c9   :  { %5975 = vmatpush.bf16.msrb.mxu3 %v7809_v32  ;;  %v5688_v48 = vpop.permute.xlu1 %5687 }
 0x6ca   :  { %v5651_v51 = vpop.permute.xlu0 %5650  ;;  %v5690_v36 = vrot.slane %v5688_v48, 4 }
 0x6cb   :  { %v5653_v13 = vrot.slane %v5651_v51, 4  ;;  %7838 = vmatmul.msk.bf16.vlgmr.msra.gmra.mxu1 %vm14877_vm10, %v12042_v1  ;;  %7839 = vmatmul.msk.bf16.vlgmr.msrb.gmra.mxu2 %vm14878_vm3, %v12042_v1 }
 0x6cc   :  { %6001 = vmatpush.bf16.msrb.mxu1 %v7829_v44  ;;  %6055 = vmatpush.bf16.msra.mxu2 %v12203_v24  ;;  %v5692_v3 = vsel %vm14879_vm12, %v5688_v48, %v5690_v36  ;;  %v7792_v24 = vld [vmem:[#allocation3 + $0x30] sm:$0xf]  ;;  %v8330_v36 = vld [vmem:[%s13371_s7 + $0x18] sm:$0x10] }
 0x6cd   :  { %v5655_v60 = vsel %vm14880_vm8, %v5651_v51, %v5653_v13  ;;  %5696 = vst.msk [vmem:[#allocation3 + $0x28] sm:$0x11] %vm14862_vm0, %v5692_v3  ;;  %5976 = vmatpush.bf16.msrb.mxu3 %v7801_v54  ;;  %v8316_v4 = vld [vmem:[#allocation3 + $0x34] sm:$0xf0]  ;;  %v7794_v26 = vld [vmem:[#allocation3 + $0x38] sm:$0xf0] }
 0x6ce   :  { %5659 = vst.msk [vmem:[#allocation3 + $0x10] sm:$0x11] %vm14862_vm0, %v5655_v60  ;;  %v7793_v30 = vor.u32 %v8316_v4, %v7792_v24  ;;  %v7797_v6 = vor.u32 %v8315_v37, %v7794_v26  ;;  %v8332_v13 = vld [vmem:[%s13371_s7 + $0x28] sm:$0x10]  ;;  %v7862_v54 = vld [vmem:[%s13371_s7 + $0x8] sm:$0xf] }
 0x6cf   :  { %v8328_v3 = vld [vmem:[%s13371_s7 + $0x8] sm:$0x10]  ;;  %vm14885_vm0 = vcmask 1041408  }
 0x6d0   :  { %6002 = vmatpush.bf16.msrb.mxu1 %v7821_v59  ;;  %v7876_v59 = vor.u32 %v8332_v13, %v7875_v52  ;;  %v8344_v60 = vld [vmem:[%s13371_s7 + $0x88] sm:$0x10] }
 0x6d1   :  { %5977 = vmatpush.bf16.msrb.mxu3 %v7793_v30  ;;  %v5635_v1 = vpop.permute.xlu1 %5634  ;;  %v14883_v24 = vld [vmem:[#allocation32_spill] sm:$0xff]  ;;  %v7863_v30 = vor.u32 %v8328_v3, %v7862_v54  ;;  %v7956_v34 = vor.u32 %v8344_v60, %v7955_v19 }
 0x6d2   :  { %v5649_v27 = vpop.permute.xlu0 %5648  ;;  %v5638_v7 = vrot.slane %v5635_v1, 4  ;;  %v6182_v38 = vand.u32 %v7876_v59, %v14883_v24  ;;  %v8336_v37 = vld [vmem:[%s13371_s7 + $0x48] sm:$0x10] }
 0x6d3   :  { %v5652_v35 = vrot.slane %v5649_v27, 4 }
 0x6d4   :  { %6003 = vmatpush.bf16.msrb.mxu1 %v7813_v49  ;;  %v5640_v9 = vsel %vm14881_vm5, %v5635_v1, %v5638_v7  ;;  %v8314_v53 = vld [vmem:[#allocation3 + $0x24] sm:$0xf0]  ;;  %v7786_v62 = vld [vmem:[#allocation3 + $0x28] sm:$0xf0]  ;;  %v8329_v1 = vld [vmem:[%s13371_s7 + $0x10] sm:$0xff]  ;;  %v6429_v7 = vand.u32 %v7956_v34, %v14883_v24 }
 0x6d5   :  { %v5654_v41 = vsel %vm14882_vm14, %v5649_v27, %v5652_v35  ;;  %5644 = vst.msk [vmem:[#allocation3] sm:$0x88] %vm14847_vm11, %v5640_v9  ;;  %v7785_v16 = vor.u32 %v8314_v53, %v7784_v56  ;;  %v7776_v42 = vld [vmem:[#allocation3 + $0x10] sm:$0xf]  ;;  %v7789_v21 = vor.u32 %v8313_v40, %v7786_v62  ;;  %v8311_v57 = vld [vmem:[#allocation3 + $0x14] sm:$0xf]  ;;  %v6143_v27 = vand.u32 %v7863_v30, %v14883_v24 }
 0x6d6   :  { %5658 = vst.msk [vmem:[#allocation3 + $0x8] sm:$0xcc] %vm14839_vm13, %v5654_v41  ;;  %v7777_v28 = vor.u32 %v8312_v12, %v7776_v42  ;;  %v7781_v46 = vor.u32 %v8311_v57, %v7778_v31  ;;  %v8334_v35 = vld [vmem:[%s13371_s7 + $0x38] sm:$0x10]  ;;  %6437 = vmatpush.bf16.msrb.mxu0 %v6429_v7  ;;  %v8327_v56 = vld [vmem:[%s13371_s7] sm:$0xff]  ;;  %vm6103_vm13 = vcmask 203776  }
 0x6d7   :  { %5978 = vmatpush.bf16.msrb.mxu3 %v7785_v16  ;;  %v7889_v9 = vor.u32 %v8334_v35, %v7888_v20  ;;  %v8343_v53 = vld [vmem:[%s13371_s7 + $0x80] sm:$0xff]  ;;  %v7901_v16 = vld [vmem:[%s13371_s7 + $0x48] sm:$0xf]  ;;  %v7914_v12 = vld [vmem:[%s13371_s7 + $0x58] sm:$0xf]  ;;  %vm14884_vm11 = vcmask 1043456  }
 0x6d8   :  { %6004 = vmatpush.bf16.msrb.mxu1 %v7805_v15  ;;  %v8331_v15 = vld [vmem:[%s13371_s7 + $0x20] sm:$0xff]  ;;  %v8338_v62 = vld [vmem:[%s13371_s7 + $0x58] sm:$0x10] }
 0x6d9   :  { %v13062_v10 = vpop.permute.xlu1 %3413  ;;  %v6222_v41 = vand.u32 %v7889_v9, %v14883_v24  ;;  %v7915_v40 = vor.u32 %v8338_v62, %v7914_v12  ;;  %v8335_v31 = vld [vmem:[%s13371_s7 + $0x40] sm:$0xff]  ;;  %v8348_v12 = vld [vmem:[%s13371_s7 + $0xa8] sm:$0x10] }
 0x6da   :  { %v3490_v50 = vadd.f32 %v12829_v58, %v13062_v10  ;;  %6438 = vmatpush.bf16.msrb.mxu0 %v8343_v53  ;;  %v8339_v53 = vld [vmem:[%s13371_s7 + $0x60] sm:$0xff] }
 0x6db   :  { %5979 = vmatpush.bf16.msrb.mxu3 %v7777_v28 }
 0x6dc   :  { %6005 = vmatpush.bf16.msrb.mxu1 %v7797_v6  ;;  %v3504_v55 = vadd.f32 %v12827_v14, %v3490_v50  ;;  %v7768_v0 = vld [vmem:[#allocation3] sm:$0xf]  ;;  %v8309_v5 = vld [vmem:[#allocation3 + $0x4] sm:$0xf]  ;;  %v7902_v6 = vor.u32 %v8336_v37, %v7901_v16  ;;  %v8333_v50 = vld [vmem:[%s13371_s7 + $0x30] sm:$0xff] }
 0x6dd   :  { %v8310_v18 = vld [vmem:[#allocation3 + $0x4] sm:$0xf0]  ;;  %v7770_v22 = vld [vmem:[#allocation3 + $0x8] sm:$0xf0]  ;;  %v8350_v16 = vld [vmem:[%s13371_s7 + $0xb8] sm:$0x10] }
 0x6de   :  { %v3508_v47 = vpack.c.bf16 %v3504_v55, %v3504_v55  ;;  %v7769_v45 = vor.u32 %v8310_v18, %v7768_v0  ;;  %v7773_v58 = vor.u32 %v8309_v5, %v7770_v22  ;;  %v6262_v55 = vand.u32 %v7902_v6, %v14883_v24  ;;  %v8351_v5 = vld [vmem:[%s13371_s7 + $0xc0] sm:$0xff]  ;;  %v7981_v6 = vld [vmem:[%s13371_s7 + $0xa8] sm:$0xf] }
 0x6df   :  { %v6302_v18 = vand.u32 %v7915_v40, %v14883_v24  ;;  %v8354_v40 = vld [vmem:[%s13371_s7 + $0xd8] sm:$0x10] }
 0x6e0   :  { %6006 = vmatpush.bf16.msrb.mxu1 %v7789_v21  ;;  %3511 = vst.msk [vmem:[#allocation4] sm:$0xf] %vm3510_vm1, %v3508_v47  ;;  %5980 = vmatpush.bf16.msrb.mxu3 %v7769_v45  ;;  %v8352_v21 = vld [vmem:[%s13371_s7 + $0xc8] sm:$0x10] }
 0x6e3   :  { %5981 = vmatmul.bf16.vlgmr.msrb.gmra.mxu3 %v12131_v25 }
 0x6e4   :  { %6007 = vmatpush.bf16.msrb.mxu1 %v7781_v46  ;;  %6151 = vmatpush.bf16.msra.mxu3 %v6143_v27  ;;  %v8337_v46 = vld [vmem:[%s13371_s7 + $0x50] sm:$0xff] }
 0x6e8   :  { %6008 = vmatpush.bf16.msrb.mxu1 %v7773_v58  ;;  %6152 = vmatpush.bf16.msra.mxu3 %v8327_v56  ;;  %v8341_v56 = vld [vmem:[%s13371_s7 + $0x70] sm:$0xff] }
 0x6eb   :  { %6009 = vmatmul.bf16.vlgmr.msrb.gmra.mxu1 %v12131_v25  ;;  %v7853_v25 = vld [vmem:[%s13371_s7 + $0x18] sm:$0xf] }
 0x6ec   :  { %v7854_v29 = vor.u32 %v8330_v36, %v7853_v25  ;;  %6190 = vmatpush.bf16.msra.mxu1 %v6182_v38  ;;  %6310 = vmatpush.bf16.msrb.mxu3 %v6302_v18  ;;  %v8346_v25 = vld [vmem:[%s13371_s7 + $0x98] sm:$0x10]  ;;  %v7982_v18 = vor.u32 %v8348_v12, %v7981_v6 }
 0x6ee   :  { %v6110_v4 = vand.u32 %v7854_v29, %v14883_v24 }
 0x6f0   :  { %6118 = vmatpush.bf16.msrb.mxu2 %v6110_v4  ;;  %6191 = vmatpush.bf16.msra.mxu1 %v8331_v15 }
 0x6f1   :  { %6311 = vmatpush.bf16.msrb.mxu3 %v8337_v46 }
 0x6f4   :  { %6119 = vmatpush.bf16.msrb.mxu2 %v8329_v1  ;;  %6270 = vmatpush.bf16.msrb.mxu1 %v6262_v55 }
 0x6f8   :  { %6271 = vmatpush.bf16.msrb.mxu1 %v8335_v31 }
 0x748   :  { %v5996_v14 = vpop.f32.mrf.mxu1 }
 0x74e   :  { %v6024_v2 = vpop.f32.mrf.mxu2 }
 0x750   :  { %v5998_v33 = vpop.f32.mrf.mxu1 }
 0x756   :  { %v6026_v23 = vpop.f32.mrf.mxu2 }
 0x766   :  { %v5982_v63 = vpop.f32.mrf.mxu3 }
 0x767   :  { %v5997_v8 = vadd.f32 %v5996_v14, %v5982_v63  ;;  %v7940_v63 = vld [vmem:[%s13371_s7 + $0x78] sm:$0xf] }
 0x768   :  { %v6010_v11 = vpop.f32.mrf.mxu1 }
 0x769   :  { %v6025_v43 = vadd.f32 %v6024_v2, %v6010_v11  ;;  %v8372_v2 = vld [vmem:[#allocation4] sm:$0xff]  }
 0x76a   :  { %v8373_v11 = vunpack.c.l.b16 %v8372_v2 }
 0x76e   :  { %v5984_v44 = vpop.f32.mrf.mxu3 }
 0x76f   :  { %v5999_v17 = vadd.f32 %v5998_v33, %v5984_v44  ;;  %v7927_v44 = vld [vmem:[%s13371_s7 + $0x68] sm:$0xf] }
 0x770   :  { %v6012_v39 = vpop.f32.mrf.mxu1 }
 0x771   :  { %v6027_v32 = vadd.f32 %v6026_v23, %v6012_v39  ;;  %v6029_v51 = vpack.c.bf16 %v5999_v17, %v5997_v8  ;;  %v8342_v23 = vld [vmem:[%s13371_s7 + $0x78] sm:$0x10]  ;;  %v8374_v39 = vunpack.c.h.b16 %v8372_v2  ;;  %v8340_v8 = vld [vmem:[%s13371_s7 + $0x68] sm:$0x10] }
 0x772   :  { %v7928_v54 = vor.u32 %v8340_v8, %v7927_v44  ;;  %v8358_v44 = vld [vmem:[%s13371_s7 + $0xf8] sm:$0x10] }
 0x773   :  { %v6030_v48 = vpack.c.bf16 %v6027_v32, %v6025_v43  ;;  %6042 = vmatmul.bf16.vlgmr.msra.gmra.mxu0 %v6029_v51  ;;  %v7941_v32 = vor.u32 %v8342_v23, %v7940_v63  ;;  %v7968_v51 = vld [vmem:[%s13371_s7 + $0x98] sm:$0xf]  ;;  %v13175_v36 = vunpack.i.l.s16 %v8374_v39  ;;  %v8349_v23 = vld [vmem:[%s13371_s7 + $0xb0] sm:$0xff]  ;;  %v8347_v39 = vld [vmem:[%s13371_s7 + $0xa0] sm:$0xff] }
 0x774   :  { %v7969_v19 = vor.u32 %v8346_v25, %v7968_v51  ;;  %v6342_v7 = vand.u32 %v7928_v54, %v14883_v24 }
 0x775   :  { %7840 = vmatmul.msk.bf16.vlgmr.msra.gmra.mxu2 %vm3472_vm2, %v6030_v48  ;;  %vm6089_vm2 = vcmask 1041409   ;;  %v6382_v3 = vand.u32 %v7941_v32, %v14883_v24  ;;  %v8046_v32 = vld [vmem:[%s13371_s7 + $0xf8] sm:$0xf] }
 0x776   :  { %6230 = vmatpush.bf16.msra.mxu2 %v6222_v41  ;;  %v6468_v9 = vand.u32 %v7969_v19, %v14883_v24  ;;  %v7994_v41 = vld [vmem:[%s13371_s7 + $0xb8] sm:$0xf] }
 0x77a   :  { %6231 = vmatpush.bf16.msra.mxu2 %v8333_v50  ;;  %v8020_v50 = vld [vmem:[%s13371_s7 + $0xd8] sm:$0xf] }
 0x7f0   :  { %v6043_v49 = vpop.f32.mrf.mxu0 }
 0x7f1   :  { %v6044_v26 = vadd.f32 %v6043_v49, %v13062_v10  ;;  %v8007_v10 = vld [vmem:[%s13371_s7 + $0xc8] sm:$0xf] }
 0x7f2   :  { %v8008_v0 = vor.u32 %v8352_v21, %v8007_v10 }
 0x7f4   :  { %v6588_v45 = vand.u32 %v8008_v0, %v14883_v24 }
 0x7f6   :  { %6596 = vmatpush.bf16.msra.mxu0 %v6588_v45  ;;  %v8021_v45 = vor.u32 %v8354_v40, %v8020_v50 }
 0x7f8   :  { %v6057_v42 = vpop.f32.mrf.mxu2  ;;  %v6045_v47 = vpop.f32.mrf.mxu0 }
 0x7f9   :  { %v6058_v28 = vadd.f32 %v6057_v42, %v6044_v26  ;;  %v6046_v22 = vadd.f32 %v6045_v47, %v13033_v61  ;;  %v13161_v61 = vunpack.i.l.s16 %v8373_v11  ;;  %v8345_v26 = vld [vmem:[%s13371_s7 + $0x90] sm:$0xff]  ;;  %v6569_v47 = vrot.slane %v13175_v36, 4 }
 0x7fa   :  { %6597 = vmatpush.bf16.msra.mxu0 %v8351_v5  ;;  %v6628_v11 = vand.u32 %v8021_v45, %v14883_v24 }
 0x7fb   :  { %v6062_v57 = vpack.c.bf16 %v6058_v28, %v6058_v28  ;;  %v6088_v13 = vrot.slane %v13161_v61, 1  ;;  %v6163_v59 = vrot.slane %v13161_v61, 2  ;;  %v6203_v42 = vrot.slane %v13161_v61, 3 }
 0x7fc   :  { %v7995_v28 = vor.u32 %v8350_v16, %v7994_v41  ;;  %v6243_v0 = vrot.slane %v13161_v61, 4  ;;  %v6363_v51 = vrot.slane %v13161_v61, 7 }
 0x7fd   :  { %6065 = vst.msk [vmem:[#allocation4 + $0x8] sm:$0xf] %vm3510_vm1, %v6062_v57  ;;  %v6283_v57 = vrot.slane %v13161_v61, 5 }
 0x7fe   :  { %v6548_v5 = vand.u32 %v7995_v28, %v14883_v24 }
 0x800   :  { %v6059_v58 = vpop.f32.mrf.mxu2 }
 0x801   :  { %v6060_v14 = vadd.f32 %v6059_v58, %v6046_v22 }
 0x803   :  { %v6063_v33 = vpack.c.bf16 %v6060_v14, %v6060_v14  ;;  %v6508_v14 = vand.u32 %v7982_v18, %v14883_v24 }
 0x805   :  { %6066 = vst.msk [vmem:[#allocation4 + $0xc] sm:$0xf] %vm3510_vm1, %v6063_v33 }
 0x80c   :  { %v8379_v43 = vld [vmem:[#allocation4 + $0x8] sm:$0xff]  }
 0x80d   :  { %v8377_v17 = vunpack.c.l.b16 %v8379_v43  ;;  %v8378_v48 = vunpack.c.h.b16 %v8379_v43  ;;  %v8353_v43 = vld [vmem:[%s13371_s7 + $0xd0] sm:$0xff] }
 0x80f   :  { %v13177_v52 = vunpack.i.l.s16 %v8377_v17  ;;  %v13179_v29 = vunpack.i.l.s16 %v8378_v48  ;;  %v8033_v17 = vld [vmem:[%s13371_s7 + $0xe8] sm:$0xf]  ;;  %v8356_v48 = vld [vmem:[%s13371_s7 + $0xe8] sm:$0x10] }
 0x810   :  { %v8034_v19 = vor.u32 %v8356_v48, %v8033_v17  ;;  %v8362_v17 = vld [vmem:[%s13373_s9 + $0x18] sm:$0xff] }
 0x811   :  { %v6090_v60 = vsel %vm6089_vm2, %v13177_v52, %v6088_v13  ;;  %v6125_v4 = vrot.slane %v13177_v52, 7  ;;  %v6164_v30 = vrot.slane %v13177_v52, 1  ;;  %v6411_v34 = vrot.slane %v13179_v29, 7 }
 0x812   :  { %v6091_v49 = vpack.c.b16 %v6090_v60, %v6090_v60  ;;  %v6204_v37 = vrot.slane %v13177_v52, 2  ;;  %v6244_v62 = vrot.slane %v13177_v52, 3  ;;  %v6284_v10 = vrot.slane %v13177_v52, 4 }
 0x813   :  { %v6126_v38 = vsel %vm6089_vm2, %v6125_v4, %v13161_v61  ;;  %v6165_v1 = vsel %vm6089_vm2, %v6164_v30, %v6163_v59  ;;  %v6412_v27 = vsel %vm6089_vm2, %v6411_v34, %v13175_v36  ;;  %v6570_v21 = vrot.slane %v13179_v29, 3 }
 0x814   :  { %7855 = vmatmul.msk.bf16.vlgmr.msrb.gmra.mxu2 %vm6103_vm13, %v6091_v49  ;;  %v6127_v20 = vpack.c.b16 %v6126_v38, %v6126_v38  ;;  %v6166_v35 = vpack.c.b16 %v6165_v1, %v6165_v1  ;;  %v6413_v15 = vpack.c.b16 %v6412_v27, %v6412_v27  ;;  %v6205_v55 = vsel %vm6089_vm2, %v6204_v37, %v6203_v42  ;;  %v8357_v27 = vld [vmem:[%s13371_s7 + $0xf0] sm:$0xff] }
 0x815   :  { %6390 = vmatpush.bf16.msrb.mxu2 %v6382_v3  ;;  %v6245_v31 = vsel %vm6089_vm2, %v6244_v62, %v6243_v0  ;;  %v6285_v46 = vsel %vm6089_vm2, %v6284_v10, %v6283_v57  ;;  %v6206_v22 = vpack.c.b16 %v6205_v55, %v6205_v55  ;;  %v6571_v58 = vsel %vm6089_vm2, %v6570_v21, %v6569_v47 }
 0x816   :  { %7864 = vmatmul.msk.bf16.vlgmr.msra.gmra.mxu3 %vm6103_vm13, %v6127_v20  ;;  %7877 = vmatmul.msk.bf16.vlgmr.msra.gmra.mxu1 %vm6103_vm13, %v6166_v35  ;;  %v6246_v33 = vpack.c.b16 %v6245_v31, %v6245_v31  ;;  %v6286_v2 = vpack.c.b16 %v6285_v46, %v6285_v46  ;;  %v6572_v63 = vpack.c.b16 %v6571_v58, %v6571_v58  ;;  %v6364_v8 = vrot.slane %v13177_v52, 6 }
 0x817   :  { %7957 = vmatmul.msk.bf16.vlgmr.msrb.gmra.mxu0 %vm6103_vm13, %v6413_v15  ;;  %6350 = vmatpush.bf16.msra.mxu1 %v6342_v7  ;;  %v6324_v25 = vrot.slane %v13177_v52, 5  ;;  %v8047_v13 = vor.u32 %v8358_v44, %v8046_v32  ;;  %v6323_v59 = vrot.slane %v13161_v61, 6  ;;  %v6450_v3 = vrot.slane %v13175_v36, 1 }
 0x818   :  { %6476 = vmatpush.bf16.msra.mxu3 %v6468_v9  ;;  %v6365_v54 = vsel %vm6089_vm2, %v6364_v8, %v6363_v51  ;;  %v6668_v49 = vand.u32 %v8034_v19, %v14883_v24  ;;  %v6649_v1 = vrot.slane %v13175_v36, 6  ;;  %v6650_v61 = vrot.slane %v13179_v29, 5 }
 0x819   :  { %6391 = vmatpush.bf16.msrb.mxu2 %v8341_v56  ;;  %v6325_v60 = vsel %vm6089_vm2, %v6324_v25, %v6323_v59  ;;  %v6451_v4 = vsel %vm6089_vm2, %v13179_v29, %v6450_v3  ;;  %v6708_v30 = vand.u32 %v8047_v13, %v14883_v24  ;;  %v6366_v34 = vpack.c.b16 %v6365_v54, %v6365_v54  ;;  %v8355_v24 = vld [vmem:[%s13371_s7 + $0xe0] sm:$0xff]  ;;  %v8361_v25 = vld [vmem:[%s13373_s9 + $0x10] sm:$0xff] }
 0x81a   :  { %v6326_v52 = vpack.c.b16 %v6325_v60, %v6325_v60  ;;  %v6452_v38 = vpack.c.b16 %v6451_v4, %v6451_v4  ;;  %v6651_v7 = vsel %vm6089_vm2, %v6650_v61, %v6649_v1  ;;  %v6530_v20 = vrot.slane %v13179_v29, 2  ;;  %v8360_v60 = vld [vmem:[%s13373_s9 + $0x8] sm:$0xff] }
 0x81b   :  { %6351 = vmatpush.bf16.msra.mxu1 %v8339_v53  ;;  %v6529_v35 = vrot.slane %v13175_v36, 3  ;;  %v6490_v15 = vrot.slane %v13179_v29, 1  ;;  %v6610_v9 = vrot.slane %v13179_v29, 4  ;;  %v6489_v53 = vrot.slane %v13175_v36, 2 }
 0x81c   :  { %6477 = vmatpush.bf16.msra.mxu3 %v8345_v26  ;;  %v6609_v26 = vrot.slane %v13175_v36, 5  ;;  %v6690_v12 = vrot.slane %v13179_v29, 6  ;;  %v6689_v62 = vrot.slane %v13175_v36, 7  ;;  %v6652_v50 = vpack.c.b16 %v6651_v7, %v6651_v7  ;;  %v6745_v36 = vld [vmem:[%s13373_s9 + $0x38] sm:$0xf] }
 0x81d   :  { %v6531_v56 = vsel %vm6089_vm2, %v6530_v20, %v6529_v35  ;;  %v6491_v41 = vsel %vm6089_vm2, %v6490_v15, %v6489_v53  ;;  %v6779_v29 = vunpack.c.l.b16 %v6745_v36 }
 0x81e   :  { %v6611_v16 = vsel %vm6089_vm2, %v6610_v9, %v6609_v26  ;;  %v6532_v37 = vpack.c.b16 %v6531_v56, %v6531_v56  ;;  %v6492_v42 = vpack.c.b16 %v6491_v41, %v6491_v41  ;;  %v6691_v10 = vsel %vm6089_vm2, %v6690_v12, %v6689_v62  ;;  %v8369_v56 = vld [vmem:[%s13375_s11 + $0x18] sm:$0xff]  ;;  %v8368_v41 = vld [vmem:[%s13375_s11 + $0x10] sm:$0xff] }
 0x81f   :  { %v6612_v6 = vpack.c.b16 %v6611_v16, %v6611_v16  ;;  %v6692_v28 = vpack.c.b16 %v6691_v10, %v6691_v10  ;;  %v8479_v10 = vld [vmem:[%s13372_s8] ss:$0 sm:$0xff] }
 0x824   :  { %7890 = vmatmul.msk.bf16.vlgmr.msra.gmra.mxu2 %vm6103_vm13, %v6206_v22 }
 0x825   :  { %6556 = vmatpush.bf16.msra.mxu2 %v6548_v5  ;;  %v6787_v5 = vpack.c.b16 %v6779_v29, %v6779_v29 }
 0x826   :  { %7903 = vmatmul.msk.bf16.vlgmr.msrb.gmra.mxu1 %vm6103_vm13, %v6246_v33  ;;  %7916 = vmatmul.msk.bf16.vlgmr.msrb.gmra.mxu3 %vm6103_vm13, %v6286_v2 }
 0x827   :  { %8009 = vmatmul.msk.bf16.vlgmr.msra.gmra.mxu0 %vm6103_vm13, %v6572_v63  ;;  %6516 = vmatpush.bf16.msrb.mxu1 %v6508_v14  ;;  %v6800_v22 = vsel %vm14884_vm11, %v6787_v5, 0  ;;  %v8365_v14 = vld [vmem:[%s13373_s9 + $0x30] sm:$0xff]  ;;  %v8364_v63 = vld [vmem:[%s13373_s9 + $0x28] sm:$0xff] }
 0x828   :  { %6636 = vmatpush.bf16.msrb.mxu3 %v6628_v11  ;;  %6802 = vmatpush.bf16.msrb.mxu0 %v6800_v22  ;;  %v8481_v22 = vld [vmem:[%s13376_s12] ss:$0 sm:$0xff] }
 0x829   :  { %6557 = vmatpush.bf16.msra.mxu2 %v8349_v23 }
 0x82b   :  { %6517 = vmatpush.bf16.msrb.mxu1 %v8347_v39 }
 0x82c   :  { %6637 = vmatpush.bf16.msrb.mxu3 %v8353_v43  ;;  %6803 = vmatpush.bf16.msrb.mxu0 %v8365_v14  ;;  %v8363_v43 = vld [vmem:[%s13373_s9 + $0x20] sm:$0xff] }
 0x830   :  { %6804 = vmatpush.bf16.msrb.mxu0 %v8364_v63 }
 0x834   :  { %7942 = vmatmul.msk.bf16.vlgmr.msrb.gmra.mxu2 %vm6103_vm13, %v6366_v34  ;;  %6805 = vmatpush.bf16.msrb.mxu0 %v8363_v43  ;;  %v8359_v34 = vld [vmem:[%s13373_s9] sm:$0xff] }
 0x835   :  { %6716 = vmatpush.bf16.msrb.mxu2 %v6708_v30 }
 0x836   :  { %7929 = vmatmul.msk.bf16.vlgmr.msra.gmra.mxu1 %vm6103_vm13, %v6326_v52  ;;  %7970 = vmatmul.msk.bf16.vlgmr.msra.gmra.mxu3 %vm6103_vm13, %v6452_v38 }
 0x837   :  { %6676 = vmatpush.bf16.msra.mxu1 %v6668_v49  ;;  %v6827_v49 = vld [vmem:[%s13375_s11 + $0x28] sm:$0x3] }
 0x838   :  { %6806 = vmatpush.bf16.msrb.mxu0 %v8362_v17  ;;  %v6853_v38 = vunpack.c.l.b16 %v6827_v49 }
 0x839   :  { %6717 = vmatpush.bf16.msrb.mxu2 %v8357_v27 }
 0x83a   :  { %v6859_v61 = vpack.c.b16 %v6853_v38, %v6853_v38 }
 0x83b   :  { %6677 = vmatpush.bf16.msra.mxu1 %v8355_v24  ;;  %v8370_v24 = vld [vmem:[%s13375_s11 + $0x20] sm:$0xff] }
 0x83c   :  { %6807 = vmatpush.bf16.msrb.mxu0 %v8361_v25  ;;  %v6870_v7 = vsel %vm14885_vm0, %v6859_v61, 0 }
 0x83d   :  { %6874 = vmatpush.bf16.msra.mxu3 %v6870_v7 }
 0x840   :  { %6808 = vmatpush.bf16.msrb.mxu0 %v8360_v60 }
 0x841   :  { %6875 = vmatpush.bf16.msra.mxu3 %v8370_v24 }
 0x844   :  { %7996 = vmatmul.msk.bf16.vlgmr.msra.gmra.mxu2 %vm6103_vm13, %v6532_v37  ;;  %6809 = vmatpush.bf16.msrb.mxu0 %v8359_v34 }
 0x845   :  { %6876 = vmatpush.bf16.msra.mxu3 %v8369_v56 }
 0x846   :  { %7983 = vmatmul.msk.bf16.vlgmr.msrb.gmra.mxu1 %vm6103_vm13, %v6492_v42  ;;  %8022 = vmatmul.msk.bf16.vlgmr.msrb.gmra.mxu3 %vm6103_vm13, %v6612_v6 }
 0x849   :  { %6877 = vmatpush.bf16.msra.mxu3 %v8368_v41 }
 0x854   :  { %8048 = vmatmul.msk.bf16.vlgmr.msrb.gmra.mxu2 %vm6103_vm13, %v6692_v28 }
 0x856   :  { %8035 = vmatmul.msk.bf16.vlgmr.msra.gmra.mxu1 %vm6103_vm13, %v6652_v50 }
 0x893   :  { %v6193_v40 = vpop.f32.mrf.mxu1 }
 0x894   :  { %v6440_v21 = vpop.f32.mrf.mxu0 }
 0x897   :  { %v6121_v55 = vpop.f32.mrf.mxu2 }
 0x899   :  { %v6154_v0 = vpop.f32.mrf.mxu3 }
 0x89a   :  { %v6155_v23 = vadd.f32 %v6154_v0, %v6121_v55 }
 0x89b   :  { %v6195_v57 = vpop.f32.mrf.mxu1 }
 0x89c   :  { %v6442_v18 = vpop.f32.mrf.mxu0  ;;  %v6197_v44 = vadd.f32 %v6193_v40, %v6155_v23 }
 0x89d   :  { %v8367_v18 = vld [vmem:[%s13375_s11 + $0x8] sm:$0xff] }
 0x89e   :  { %6878 = vmatpush.bf16.msra.mxu3 %v8367_v18 }
 0x89f   :  { %v6123_v47 = vpop.f32.mrf.mxu2 }
 0x8a0   :  { %v8366_v47 = vld [vmem:[%s13375_s11] sm:$0xff] }
 0x8a1   :  { %v6156_v45 = vpop.f32.mrf.mxu3 }
 0x8a2   :  { %6879 = vmatpush.bf16.msra.mxu3 %v8366_v47  ;;  %v8480_v45 = vld [vmem:[%s13374_s10] ss:$0 sm:$0xff] }
 0x8a3   :  { %v6273_v31 = vpop.f32.mrf.mxu1 }
 0x8a4   :  { %v6599_v46 = vpop.f32.mrf.mxu0 }
 0x8a7   :  { %v6233_v58 = vpop.f32.mrf.mxu2 }
 0x8a8   :  { %v6237_v48 = vadd.f32 %v6233_v58, %v6197_v44 }
 0x8a9   :  { %v6313_v33 = vpop.f32.mrf.mxu3 }
 0x8aa   :  { %v6277_v13 = vadd.f32 %v6273_v31, %v6237_v48 }
 0x8ab   :  { %v6275_v2 = vpop.f32.mrf.mxu1 }
 0x8ac   :  { %v6601_v11 = vpop.f32.mrf.mxu0  ;;  %v6317_v3 = vadd.f32 %v6313_v33, %v6277_v13 }
 0x8af   :  { %v6235_v39 = vpop.f32.mrf.mxu2 }
 0x8b1   :  { %v6315_v32 = vpop.f32.mrf.mxu3 }
 0x8b3   :  { %v6353_v8 = vpop.f32.mrf.mxu1 }
 0x8b4   :  { %v6357_v19 = vadd.f32 %v6353_v8, %v6317_v3 }
 0x8b7   :  { %v6393_v51 = vpop.f32.mrf.mxu2 }
 0x8b8   :  { %v6397_v30 = vadd.f32 %v6393_v51, %v6357_v19 }
 0x8b9   :  { %v6479_v54 = vpop.f32.mrf.mxu3 }
 0x8ba   :  { %v6444_v27 = vadd.f32 %v6440_v21, %v6397_v30 }
 0x8bb   :  { %v6355_v59 = vpop.f32.mrf.mxu1 }
 0x8bc   :  { %v6483_v35 = vadd.f32 %v6479_v54, %v6444_v27 }
 0x8bf   :  { %v6395_v4 = vpop.f32.mrf.mxu2 }
 0x8c1   :  { %v6481_v52 = vpop.f32.mrf.mxu3 }
 0x8c3   :  { %v6519_v1 = vpop.f32.mrf.mxu1 }
 0x8c4   :  { %v6523_v9 = vadd.f32 %v6519_v1, %v6483_v35 }
 0x8c7   :  { %v6559_v20 = vpop.f32.mrf.mxu2 }
 0x8c8   :  { %v6563_v26 = vadd.f32 %v6559_v20, %v6523_v9 }
 0x8c9   :  { %v6639_v15 = vpop.f32.mrf.mxu3 }
 0x8ca   :  { %v6603_v37 = vadd.f32 %v6599_v46, %v6563_v26 }
 0x8cb   :  { %v6521_v53 = vpop.f32.mrf.mxu1 }
 0x8cc   :  { %v6643_v12 = vadd.f32 %v6639_v15, %v6603_v37 }
 0x8cf   :  { %v6561_v16 = vpop.f32.mrf.mxu2 }
 0x8d1   :  { %v6641_v42 = vpop.f32.mrf.mxu3 }
 0x8d3   :  { %v6679_v6 = vpop.f32.mrf.mxu1 }
 0x8d4   :  { %v6683_v62 = vadd.f32 %v6679_v6, %v6643_v12 }
 0x8d7   :  { %v6719_v28 = vpop.f32.mrf.mxu2 }
 0x8d8   :  { %v6723_v50 = vadd.f32 %v6719_v28, %v6683_v62 }
 0x8da   :  { %v6728_v40 = vadd.f32 %v8479_v10, %v6723_v50 }
 0x8db   :  { %v6681_v21 = vpop.f32.mrf.mxu1 }
 0x8dc   :  { %v6729_v55 = vmax.f32 %v6728_v40, 0.0 }
 0x8de   :  { %v6730_v0 = vpack.c.bf16 %v6729_v55, %v6729_v55 }
 0x8df   :  { %v6721_v57 = vpop.f32.mrf.mxu2 }
 0x8e0   :  { %8077 = vmatmul.msk.bf16.vlgmr.msrb.gmra.mxu0 %vm6795_vm15, %v6730_v0 }
 0x95d   :  { %v6811_v36 = vpop.f32.mrf.mxu0 }
 0x95e   :  { %v6812_v29 = vadd.f32 %v8480_v45, %v6811_v36 }
 0x960   :  { %v6815_v31 = vmax.f32 %v6812_v29, 0.0 }
 0x962   :  { %v6816_v46 = vpack.c.bf16 %v6815_v31, %v6815_v31 }
 0x964   :  { %8098 = vmatmul.msk.bf16.vlgmr.msra.gmra.mxu3 %vm14886_vm7, %v6816_v46 }
 0x965   :  { %v6813_v5 = vpop.f32.mrf.mxu0 }
 0x9e7   :  { %v6881_v58 = vpop.f32.mrf.mxu3 }
 0x9e8   :  { %v6882_v14 = vadd.f32 %v8481_v22, %v6881_v58 }
 0x9ea   :  { %6886 = vst.msk [vmem:[#allocation5] sm:$0x3] %vm6885_vm9, %v6882_v14 }
 0x9eb   :  { %6897 = dma.vmem_to_hbm [thread:$0]  %s6893_s17, 32, %s6895_s19, [#allocation6]  }
 0x9ef   :  { %v6883_v33 = vpop.f32.mrf.mxu3 }
 0x9f0   :  { %8515 = dma.done.wait [#allocation6], 32  }
 0x9f1   :  { %8516 = vsyncadd [#allocation6], 4294967264 }
 0x9f2   :  { %6902 = vsyncpa [#allocation6], 1 }

</bundles_post_ra>
